<compile_context>
chip_gen: v7x
topology: tpu7x:2x2x1
jax: 0.10.0
libtpu: 0.0.40
codegen_flags: <defaults>
</compile_context>

<pallas_src>
import jax
import jax.numpy as jnp
from jax.experimental import pallas as pl
from jax.experimental.pallas import tpu as pltpu

# ----------------------------- model config ---------------------------------
NUM_ENC_XYZ = 6
NUM_ENC_DIR = 4
HIDDEN = 128
HALF = HIDDEN // 2                          # 64
DIM_XYZ = 3 + 2 * 3 * NUM_ENC_XYZ           # 39
DIM_DIR = 3 + 2 * 3 * NUM_ENC_DIR           # 27
DIM_IN = DIM_XYZ + DIM_DIR                  # 66
NUM_XYZ_LAYERS = 3                          # num_layers - 1
WIN_COLS = HIDDEN + HALF                    # 192: [layer1 | view@wdir_view]
WFE_COLS = HIDDEN + HALF                    # 192: [fc_feat | col 131 = fc_alpha]


# ------------------------------- kernel -------------------------------------
def _nerf_kernel(x_ref, win_ref, wx_ref, wfe_ref, wdirf_ref, woutd_ref, b_ref,
                 out_ref):
    x = x_ref[...]                                                    # (TN, 66) bf16

    # Fused layer1 + view-branch of layers_dir[0] (block-diagonal 66 -> 192).
    r = jnp.dot(x, win_ref[...], preferred_element_type=jnp.float32)  # (TN, 192)
    h = r[:, :HIDDEN] + b_ref[0:1, :]                 # layer1 output, NO relu
    view_c = r[:, HIDDEN:HIDDEN + HALF]               # view @ wdir_view (TN, 64)

    # layers_xyz: 3x Linear(128,128) + relu (skip-connect branch never taken).
    for i in range(NUM_XYZ_LAYERS):
        h = jnp.dot(h.astype(jnp.bfloat16), wx_ref[i],
                    preferred_element_type=jnp.float32) + b_ref[i + 1:i + 2, :]
        h = jnp.maximum(h, 0.0)

    # Fused fc_feat + fc_alpha head: cols 0:128 = wfeat, col 131 = walpha.
    ha = jnp.dot(h.astype(jnp.bfloat16), wfe_ref[...],
                 preferred_element_type=jnp.float32)                  # (TN, 192)
    feat = jnp.maximum(ha[:, :HIDDEN] + b_ref[4:5, :], 0.0)           # (TN, 128)
    alpha4 = ha[:, HIDDEN:HIDDEN + 4]           # (TN, 4) = [0, 0, 0, h@walpha]

    # layers_dir[0]: relu(feat @ wdir_feat + view @ wdir_view + bdir).
    d = jnp.dot(feat.astype(jnp.bfloat16), wdirf_ref[...],
                preferred_element_type=jnp.float32)                   # (TN, 64)
    d = jnp.maximum(d + view_c + b_ref[5:6, :HALF], 0.0)

    # fc_rgb lives in cols 0:3 of Wout_d, alpha arrives via alpha4 col 3:
    # no lane concat needed, output lands dense in its 4 columns.
    out = jnp.dot(d.astype(jnp.bfloat16), woutd_ref[...],
                  preferred_element_type=jnp.float32)                 # (TN, 4)
    out_ref[...] = (out + alpha4 + b_ref[6:7, :4]).astype(out_ref.dtype)


# --------------------------- weight packing ----------------------------------
def _pack_weights(params):
    (w1, b1, wx, bx, wfeat, bfeat, walpha, balpha, wdir, bdir, wrgb, brgb) = params
    f32, bf16 = jnp.float32, jnp.bfloat16

    # Block-diagonal input weight: rows 0:39  x cols   0:128 = layer1,
    #                              rows 39:66 x cols 128:192 = wdir[view rows].
    win = jnp.zeros((DIM_IN, WIN_COLS), f32)
    win = win.at[:DIM_XYZ, :HIDDEN].set(w1)
    win = win.at[DIM_XYZ:, HIDDEN:HIDDEN + HALF].set(wdir[HIDDEN:])

    wxs = jnp.stack(wx)                                  # (3, 128, 128)

    # Fused feat/alpha head.
    wfe = jnp.zeros((HIDDEN, WFE_COLS), f32)
    wfe = wfe.at[:, :HIDDEN].set(wfeat)
    wfe = wfe.at[:, HIDDEN + 3].set(walpha[:, 0])

    wdirf = wdir[:HIDDEN]                                # (128, 64)

    woutd = jnp.zeros((HALF, 4), f32).at[:, :3].set(wrgb)

    # Bias slab (f32, added to f32 accumulators).
    b = jnp.zeros((8, HIDDEN), f32)
    b = b.at[0].set(b1)
    for i in range(NUM_XYZ_LAYERS):
        b = b.at[1 + i].set(bx[i])
    b = b.at[4].set(bfeat)
    b = b.at[5, :HALF].set(bdir)
    b = b.at[6, :4].set(jnp.concatenate([brgb, balpha]))

    return (win.astype(bf16), wxs.astype(bf16), wfe.astype(bf16),
            wdirf.astype(bf16), woutd.astype(bf16), b)


# ------------------------------- wrapper -------------------------------------
def conditional_nerf_forward(x, params, *, tile_n=1024):
    """x: (N, DIM_IN) float32.  Returns (N, 4) float32 = [rgb(3), alpha(1)]."""
    n, d_in = x.shape
    assert d_in == DIM_IN
    assert tile_n % 16 == 0            # bf16 sublane packing

    grid_n = pl.cdiv(n, tile_n)
    n_pad = grid_n * tile_n

    xb = x.astype(jnp.bfloat16)
    if n_pad != n:
        xb = jnp.pad(xb, ((0, n_pad - n), (0, 0)))

    weights = _pack_weights(params)

    def full_spec(a):
        nd = a.ndim
        return pl.BlockSpec(a.shape, lambda i, _nd=nd: (0,) * _nd)

    flops = 2 * n_pad * (DIM_IN * WIN_COLS + NUM_XYZ_LAYERS * HIDDEN * HIDDEN
                         + HIDDEN * WFE_COLS + HIDDEN * HALF + HALF * 4)
    w_bytes = sum(int(w.size) * int(w.dtype.itemsize) for w in weights)
    bytes_accessed = int(n_pad * (DIM_IN * 2 + 4 * 4) + w_bytes)

    out = pl.pallas_call(
        _nerf_kernel,
        out_shape=jax.ShapeDtypeStruct((n_pad, 4), jnp.float32),
        grid_spec=pltpu.PrefetchScalarGridSpec(
            num_scalar_prefetch=0,
            grid=(grid_n,),
            in_specs=[pl.BlockSpec((tile_n, DIM_IN), lambda i: (i, 0))]
                     + [full_spec(w) for w in weights],
            out_specs=pl.BlockSpec((tile_n, 4), lambda i: (i, 0)),
        ),
        compiler_params=pltpu.CompilerParams(
            dimension_semantics=("parallel",)),   # N-axis shards across TCs (v7x)
        cost_estimate=pl.CostEstimate(flops=int(flops), transcendentals=0,
                                      bytes_accessed=bytes_accessed),
    )(xb, *weights)

    return out[:n] if n_pad != n else out


# --------------------------- parameter creation ------------------------------
def init_params(key):
    """Deterministic PyTorch-Linear-style init: U(-1/sqrt(fan_in), 1/sqrt(fan_in))."""
    def linear(k, fan_in, fan_out):
        kw, kb = jax.random.split(k)
        bound = 1.0 / jnp.sqrt(fan_in)
        w = jax.random.uniform(kw, (fan_in, fan_out), jnp.float32, -bound, bound)
        b = jax.random.uniform(kb, (fan_out,), jnp.float32, -bound, bound)
        return w, b

    keys = jax.random.split(key, 8)
    w1, b1 = linear(keys[0], DIM_XYZ, HIDDEN)
    wx, bx = [], []
    for i in range(NUM_XYZ_LAYERS):
        w, b = linear(keys[1 + i], HIDDEN, HIDDEN)
        wx.append(w); bx.append(b)
    wfeat, bfeat = linear(keys[4], HIDDEN, HIDDEN)
    walpha, balpha = linear(keys[5], HIDDEN, 1)
    wdir, bdir = linear(keys[6], DIM_DIR + HIDDEN, HALF)   # rows: [feat(128), view(27)]
    wrgb, brgb = linear(keys[7], HALF, 3)
    return (w1, b1, wx, bx, wfeat, bfeat, walpha, balpha, wdir, bdir, wrgb, brgb)


# ------------------------------ pure-JAX ref ----------------------------------
def reference_forward(x, params):
    """Reference matching the PyTorch forward, at the same precision the kernel
    uses (bf16 operands, f32 accumulation)."""
    (w1, b1, wx, bx, wfeat, bfeat, walpha, balpha, wdir, bdir, wrgb, brgb) = params
    bf = lambda a: a.astype(jnp.bfloat16)
    dot = lambda a, b: jnp.dot(bf(a), bf(b), preferred_element_type=jnp.float32)

    xyz, view = x[:, :DIM_XYZ], x[:, DIM_XYZ:]
    h = dot(xyz, w1) + b1                              # layer1, NO relu
    for i in range(NUM_XYZ_LAYERS):
        h = jnp.maximum(dot(h, wx[i]) + bx[i], 0.0)
    feat = jnp.maximum(dot(h, wfeat) + bfeat, 0.0)
    alpha = dot(h, walpha) + balpha
    d = jnp.maximum(dot(feat, wdir[:HIDDEN]) + dot(view, wdir[HIDDEN:]) + bdir, 0.0)
    rgb = dot(d, wrgb) + brgb
    return jnp.concatenate([rgb, alpha], axis=-1)


# ---------------------------------- main --------------------------------------
if __name__ == "__main__":
    key = jax.random.PRNGKey(0)
    kx, kp = jax.random.split(key)

    N = 2500                      # not a multiple of tile_n: exercises the padding path
    x = jax.random.normal(kx, (N, DIM_IN), dtype=jnp.float32)
    params = init_params(kp)

    out = jax.block_until_ready(conditional_nerf_forward(x, params, tile_n=1024))

    ref = reference_forward(x, params)
    assert out.shape == (N, 4)
    max_err = float(jnp.max(jnp.abs(out - ref)))
    assert jnp.allclose(out, ref, atol=2e-2, rtol=2e-2), f"mismatch vs reference: {max_err}"

    print("KERNEL_OK")
</pallas_src>

<mosaic_0001>
module attributes {stable_mosaic.version = 11 : i64} {
  func.func @_nerf_kernel(%arg0: i32, %arg1: memref<1024x66xbf16, #tpu.memory_space<vmem>>, %arg2: memref<66x192xbf16, #tpu.memory_space<vmem>>, %arg3: memref<3x128x128xbf16, #tpu.memory_space<vmem>>, %arg4: memref<128x192xbf16, #tpu.memory_space<vmem>>, %arg5: memref<128x64xbf16, #tpu.memory_space<vmem>>, %arg6: memref<64x4xbf16, #tpu.memory_space<vmem>>, %arg7: memref<8x128xf32, #tpu.memory_space<vmem>>, %arg8: memref<1024x4xf32, #tpu.memory_space<vmem>>) attributes {dimension_semantics = [#tpu.dimension_semantics<parallel>], iteration_bounds = array<i64: 3>, scalar_prefetch = 0 : i64, scratch_operands = 0 : i64, tpu.core_type = #tpu.core_type<tc>, window_params = [{transform_indices = @transform_0, window_bounds = array<i64: 1024, 66>}, {pipeline_mode = #tpu.pipeline_mode<synchronous>, transform_indices = @transform_1, window_bounds = array<i64: 66, 192>}, {pipeline_mode = #tpu.pipeline_mode<synchronous>, transform_indices = @transform_2, window_bounds = array<i64: 3, 128, 128>}, {pipeline_mode = #tpu.pipeline_mode<synchronous>, transform_indices = @transform_3, window_bounds = array<i64: 128, 192>}, {pipeline_mode = #tpu.pipeline_mode<synchronous>, transform_indices = @transform_4, window_bounds = array<i64: 128, 64>}, {pipeline_mode = #tpu.pipeline_mode<synchronous>, transform_indices = @transform_5, window_bounds = array<i64: 64, 4>}, {pipeline_mode = #tpu.pipeline_mode<synchronous>, transform_indices = @transform_6, window_bounds = array<i64: 8, 128>}, {transform_indices = @transform_7, window_bounds = array<i64: 1024, 4>}]} {
    %c0 = arith.constant 0 : index
    %c0_0 = arith.constant 0 : index
    %0 = vector.load %arg1[%c0, %c0_0] : memref<1024x66xbf16, #tpu.memory_space<vmem>>, vector<1024x66xbf16>
    %c0_1 = arith.constant 0 : index
    %c0_2 = arith.constant 0 : index
    %1 = vector.load %arg2[%c0_1, %c0_2] : memref<66x192xbf16, #tpu.memory_space<vmem>>, vector<66x192xbf16>
    %cst = arith.constant dense<0.000000e+00> : vector<1024x192xf32>
    %2 = tpu.matmul %0, %1, %cst {dimension_numbers = #tpu.dot_dimension_numbers<[1], [0], [0], [1], [0, 0, 1, 1], [], []>} : vector<1024x66xbf16>, vector<66x192xbf16>, vector<1024x192xf32> -> vector<1024x192xf32>
    %3 = vector.extract_strided_slice %2 {offsets = [0, 0], sizes = [1024, 128], strides = [1, 1]} : vector<1024x192xf32> to vector<1024x128xf32>
    %c0_3 = arith.constant 0 : index
    %c0_4 = arith.constant 0 : index
    %4 = vector.load %arg7[%c0_3, %c0_4] : memref<8x128xf32, #tpu.memory_space<vmem>>, vector<1x128xf32>
    %5 = vector.broadcast %4 : vector<1x128xf32> to vector<1024x128xf32>
    %6 = arith.addf %3, %5 : vector<1024x128xf32>
    %7 = vector.extract_strided_slice %2 {offsets = [0, 128], sizes = [1024, 64], strides = [1, 1]} : vector<1024x192xf32> to vector<1024x64xf32>
    %8 = arith.truncf %6 : vector<1024x128xf32> to vector<1024x128xbf16>
    %c0_5 = arith.constant 0 : index
    %c0_6 = arith.constant 0 : index
    %c0_7 = arith.constant 0 : index
    %9 = vector.load %arg3[%c0_5, %c0_6, %c0_7] : memref<3x128x128xbf16, #tpu.memory_space<vmem>>, vector<1x128x128xbf16>
    %10 = vector.shape_cast %9 : vector<1x128x128xbf16> to vector<128x128xbf16>
    %cst_8 = arith.constant dense<0.000000e+00> : vector<1024x128xf32>
    %11 = tpu.matmul %8, %10, %cst_8 {dimension_numbers = #tpu.dot_dimension_numbers<[1], [0], [0], [1], [0, 0, 1, 1], [], []>} : vector<1024x128xbf16>, vector<128x128xbf16>, vector<1024x128xf32> -> vector<1024x128xf32>
    %c1 = arith.constant 1 : index
    %c0_9 = arith.constant 0 : index
    %12 = vector.load %arg7[%c1, %c0_9] : memref<8x128xf32, #tpu.memory_space<vmem>>, vector<1x128xf32>
    %13 = vector.broadcast %12 : vector<1x128xf32> to vector<1024x128xf32>
    %14 = arith.addf %11, %13 : vector<1024x128xf32>
    %cst_10 = arith.constant 0.000000e+00 : f32
    %15 = vector.broadcast %cst_10 : f32 to vector<1024x128xf32>
    %16 = arith.maximumf %14, %15 : vector<1024x128xf32>
    %17 = arith.truncf %16 : vector<1024x128xf32> to vector<1024x128xbf16>
    %c1_11 = arith.constant 1 : index
    %c0_12 = arith.constant 0 : index
    %c0_13 = arith.constant 0 : index
    %18 = vector.load %arg3[%c1_11, %c0_12, %c0_13] : memref<3x128x128xbf16, #tpu.memory_space<vmem>>, vector<1x128x128xbf16>
    %19 = vector.shape_cast %18 : vector<1x128x128xbf16> to vector<128x128xbf16>
    %cst_14 = arith.constant dense<0.000000e+00> : vector<1024x128xf32>
    %20 = tpu.matmul %17, %19, %cst_14 {dimension_numbers = #tpu.dot_dimension_numbers<[1], [0], [0], [1], [0, 0, 1, 1], [], []>} : vector<1024x128xbf16>, vector<128x128xbf16>, vector<1024x128xf32> -> vector<1024x128xf32>
    %c2 = arith.constant 2 : index
    %c0_15 = arith.constant 0 : index
    %21 = vector.load %arg7[%c2, %c0_15] : memref<8x128xf32, #tpu.memory_space<vmem>>, vector<1x128xf32>
    %22 = vector.broadcast %21 : vector<1x128xf32> to vector<1024x128xf32>
    %23 = arith.addf %20, %22 : vector<1024x128xf32>
    %cst_16 = arith.constant 0.000000e+00 : f32
    %24 = vector.broadcast %cst_16 : f32 to vector<1024x128xf32>
    %25 = arith.maximumf %23, %24 : vector<1024x128xf32>
    %26 = arith.truncf %25 : vector<1024x128xf32> to vector<1024x128xbf16>
    %c2_17 = arith.constant 2 : index
    %c0_18 = arith.constant 0 : index
    %c0_19 = arith.constant 0 : index
    %27 = vector.load %arg3[%c2_17, %c0_18, %c0_19] : memref<3x128x128xbf16, #tpu.memory_space<vmem>>, vector<1x128x128xbf16>
    %28 = vector.shape_cast %27 : vector<1x128x128xbf16> to vector<128x128xbf16>
    %cst_20 = arith.constant dense<0.000000e+00> : vector<1024x128xf32>
    %29 = tpu.matmul %26, %28, %cst_20 {dimension_numbers = #tpu.dot_dimension_numbers<[1], [0], [0], [1], [0, 0, 1, 1], [], []>} : vector<1024x128xbf16>, vector<128x128xbf16>, vector<1024x128xf32> -> vector<1024x128xf32>
    %c3 = arith.constant 3 : index
    %c0_21 = arith.constant 0 : index
    %30 = vector.load %arg7[%c3, %c0_21] : memref<8x128xf32, #tpu.memory_space<vmem>>, vector<1x128xf32>
    %31 = vector.broadcast %30 : vector<1x128xf32> to vector<1024x128xf32>
    %32 = arith.addf %29, %31 : vector<1024x128xf32>
    %cst_22 = arith.constant 0.000000e+00 : f32
    %33 = vector.broadcast %cst_22 : f32 to vector<1024x128xf32>
    %34 = arith.maximumf %32, %33 : vector<1024x128xf32>
    %35 = arith.truncf %34 : vector<1024x128xf32> to vector<1024x128xbf16>
    %c0_23 = arith.constant 0 : index
    %c0_24 = arith.constant 0 : index
    %36 = vector.load %arg4[%c0_23, %c0_24] : memref<128x192xbf16, #tpu.memory_space<vmem>>, vector<128x192xbf16>
    %cst_25 = arith.constant dense<0.000000e+00> : vector<1024x192xf32>
    %37 = tpu.matmul %35, %36, %cst_25 {dimension_numbers = #tpu.dot_dimension_numbers<[1], [0], [0], [1], [0, 0, 1, 1], [], []>} : vector<1024x128xbf16>, vector<128x192xbf16>, vector<1024x192xf32> -> vector<1024x192xf32>
    %38 = vector.extract_strided_slice %37 {offsets = [0, 0], sizes = [1024, 128], strides = [1, 1]} : vector<1024x192xf32> to vector<1024x128xf32>
    %c4 = arith.constant 4 : index
    %c0_26 = arith.constant 0 : index
    %39 = vector.load %arg7[%c4, %c0_26] : memref<8x128xf32, #tpu.memory_space<vmem>>, vector<1x128xf32>
    %40 = vector.broadcast %39 : vector<1x128xf32> to vector<1024x128xf32>
    %41 = arith.addf %38, %40 : vector<1024x128xf32>
    %cst_27 = arith.constant 0.000000e+00 : f32
    %42 = vector.broadcast %cst_27 : f32 to vector<1024x128xf32>
    %43 = arith.maximumf %41, %42 : vector<1024x128xf32>
    %44 = vector.extract_strided_slice %37 {offsets = [0, 128], sizes = [1024, 4], strides = [1, 1]} : vector<1024x192xf32> to vector<1024x4xf32>
    %45 = arith.truncf %43 : vector<1024x128xf32> to vector<1024x128xbf16>
    %c0_28 = arith.constant 0 : index
    %c0_29 = arith.constant 0 : index
    %46 = vector.load %arg5[%c0_28, %c0_29] : memref<128x64xbf16, #tpu.memory_space<vmem>>, vector<128x64xbf16>
    %cst_30 = arith.constant dense<0.000000e+00> : vector<1024x64xf32>
    %47 = tpu.matmul %45, %46, %cst_30 {dimension_numbers = #tpu.dot_dimension_numbers<[1], [0], [0], [1], [0, 0, 1, 1], [], []>} : vector<1024x128xbf16>, vector<128x64xbf16>, vector<1024x64xf32> -> vector<1024x64xf32>
    %48 = arith.addf %47, %7 : vector<1024x64xf32>
    %c5 = arith.constant 5 : index
    %c0_31 = arith.constant 0 : index
    %49 = vector.load %arg7[%c5, %c0_31] : memref<8x128xf32, #tpu.memory_space<vmem>>, vector<1x64xf32>
    %50 = vector.broadcast %49 : vector<1x64xf32> to vector<1024x64xf32>
    %51 = arith.addf %48, %50 : vector<1024x64xf32>
    %cst_32 = arith.constant 0.000000e+00 : f32
    %52 = vector.broadcast %cst_32 : f32 to vector<1024x64xf32>
    %53 = arith.maximumf %51, %52 : vector<1024x64xf32>
    %54 = arith.truncf %53 : vector<1024x64xf32> to vector<1024x64xbf16>
    %c0_33 = arith.constant 0 : index
    %c0_34 = arith.constant 0 : index
    %55 = vector.load %arg6[%c0_33, %c0_34] : memref<64x4xbf16, #tpu.memory_space<vmem>>, vector<64x4xbf16>
    %cst_35 = arith.constant dense<0.000000e+00> : vector<1024x4xf32>
    %56 = tpu.matmul %54, %55, %cst_35 {dimension_numbers = #tpu.dot_dimension_numbers<[1], [0], [0], [1], [0, 0, 1, 1], [], []>} : vector<1024x64xbf16>, vector<64x4xbf16>, vector<1024x4xf32> -> vector<1024x4xf32>
    %57 = arith.addf %56, %44 : vector<1024x4xf32>
    %c6 = arith.constant 6 : index
    %c0_36 = arith.constant 0 : index
    %58 = vector.load %arg7[%c6, %c0_36] : memref<8x128xf32, #tpu.memory_space<vmem>>, vector<1x4xf32>
    %59 = vector.broadcast %58 : vector<1x4xf32> to vector<1024x4xf32>
    %60 = arith.addf %57, %59 : vector<1024x4xf32>
    %c0_37 = arith.constant 0 : index
    %c0_38 = arith.constant 0 : index
    %61 = vector.load %arg8[%c0_37, %c0_38] : memref<1024x4xf32, #tpu.memory_space<vmem>>, vector<1024x4xf32>
    tpu.vector_store %arg8[%c0_37, %c0_38], %60 {strides = array<i32>} : memref<1024x4xf32, #tpu.memory_space<vmem>>, vector<1024x4xf32>,
    return
  }
  func.func @transform_0(%arg0: i32) -> (i32, i32) {
    %c0_i32 = arith.constant 0 : i32
    %c0_i32_0 = arith.constant 0 : i32
    return %arg0, %c0_i32 : i32, i32
  }
  func.func @transform_1(%arg0: i32) -> (i32, i32) {
    %c0_i32 = arith.constant 0 : i32
    %c0_i32_0 = arith.constant 0 : i32
    %c0_i32_1 = arith.constant 0 : i32
    return %c0_i32, %c0_i32_0 : i32, i32
  }
  func.func @transform_2(%arg0: i32) -> (i32, i32, i32) {
    %c0_i32 = arith.constant 0 : i32
    %c0_i32_0 = arith.constant 0 : i32
    %c0_i32_1 = arith.constant 0 : i32
    %c0_i32_2 = arith.constant 0 : i32
    return %c0_i32, %c0_i32_0, %c0_i32_1 : i32, i32, i32
  }
  func.func @transform_3(%arg0: i32) -> (i32, i32) {
    %c0_i32 = arith.constant 0 : i32
    %c0_i32_0 = arith.constant 0 : i32
    %c0_i32_1 = arith.constant 0 : i32
    return %c0_i32, %c0_i32_0 : i32, i32
  }
  func.func @transform_4(%arg0: i32) -> (i32, i32) {
    %c0_i32 = arith.constant 0 : i32
    %c0_i32_0 = arith.constant 0 : i32
    %c0_i32_1 = arith.constant 0 : i32
    return %c0_i32, %c0_i32_0 : i32, i32
  }
  func.func @transform_5(%arg0: i32) -> (i32, i32) {
    %c0_i32 = arith.constant 0 : i32
    %c0_i32_0 = arith.constant 0 : i32
    %c0_i32_1 = arith.constant 0 : i32
    return %c0_i32, %c0_i32_0 : i32, i32
  }
  func.func @transform_6(%arg0: i32) -> (i32, i32) {
    %c0_i32 = arith.constant 0 : i32
    %c0_i32_0 = arith.constant 0 : i32
    %c0_i32_1 = arith.constant 0 : i32
    return %c0_i32, %c0_i32_0 : i32, i32
  }
  func.func @transform_7(%arg0: i32) -> (i32, i32) {
    %c0_i32 = arith.constant 0 : i32
    %c0_i32_0 = arith.constant 0 : i32
    return %arg0, %c0_i32 : i32, i32
  }
}

</mosaic_0001>

<bundles_post_ra>
// kernel: tpu_custom_call.1
= control target key start
LH: loop header
LB: loop body
LE: loop exit
PB: predicated region body
PF: predicated region fallthrough
CT: control target
= control target key end

     0   :  { %12 = vsyncpa [#allocation3], 0  ;;  %s12437_s0 = inlined_call_operand.vmem [shape: bf16[3072,66], index: 0, kind: input, shape index: {}]   ;;  %s12438_s1 = inlined_call_operand.hbm [shape: bf16[66,192], index: 1, kind: input, shape index: {}]   ;;  %s12439_s2 = inlined_call_operand.hbm [shape: bf16[3,128,128], index: 2, kind: input, shape index: {}]   ;;  %s12440_s3 = inlined_call_operand.vmem [shape: bf16[128,192], index: 3, kind: input, shape index: {}]   ;;  %s12441_s4 = inlined_call_operand.vmem [shape: bf16[128,64], index: 4, kind: input, shape index: {}]   ;;  %s12442_s5 = inlined_call_operand.vmem [shape: bf16[64,4], index: 5, kind: input, shape index: {}]   ;;  %s12443_s6 = inlined_call_operand.hbm [shape: f32[8,128], index: 6, kind: input, shape index: {}]   ;;  %s12444_s7 = inlined_call_operand.vmem [shape: f32[3072,4], index: 7, kind: output, shape index: {}]  }
   0x1   :  { %13 = vsyncpa [#allocation5], 0  ;;  %s9159_s24 = smov 0  }
   0x2 LB: > { %s9111_s25 = smov [#allocation4]   ;;  %s7464_s27 = sadd.s32 4294967295, %s9109_s24   ;;  %s9109_s24 = sphi %s9159_s24, %s19_s24  }
   0x3   : > { %s227_s26 = sshll.u32 %s9111_s25, 4  ;;  %p7466_p0 = scmp.ge.s32.totalorder %s9109_s24, 1  ;;  %s9177_s26 = int_to_ptr.vmem [resolvable:$true] %s227_s26 }
   0x4   : > { %p202_p1 = scmp.lt.s32.totalorder %s9109_s24, 4  ;;  %p9169_p2 = scmp.eq.s32.totalorder %s7464_s27, 0 }
   0x5   : > { %s9112_s30 = smov [#allocation2]   ;;  %s9113_s10 = smov [#allocation6]  }
   0x6   : > { %s12450_s28 = scalar_select %p9169_p2, 1, 0 }
   0x7   : > { %p9173_p3 = pnand %p7466_p0, %p202_p1  ;;  %s214_s8 = sshll.u32 %s9112_s30, 4  ;;  %s9181_s8 = int_to_ptr.vmem [resolvable:$true] %s214_s8 }
   0x8   : > { %s9189_s11 = sshll.u32 %s9113_s10, 4  ;;  %s9011_s14 = scalar_lea.hbm %s12439_s2, 3072  ;;  %s251_s11 = int_to_ptr.vmem [resolvable:$true] %s9189_s11 }
   0x9   : > { %s12451_s29 = scalar_select %p9173_p3, 1, 0 }
   0xa   : > { %p8833_p4 = pneg %p9173_p3  ;;  %p9012_p6 = scmp.ne.s32.totalorder %s12439_s2, %s9011_s14 }
   0xb   : > { %p9018_p10 = scmp.lt.u32.totalorder %s9011_s14, %s12439_s2 }
   0xc   : > { %p9185_p5 = pnand %p9169_p2, %p8833_p4 }
   0xe   : > { %p9199_p7 = pneg %p9185_p5 }
  0x10   : > { %p9014_p8 = pnand %p9199_p7, %p9012_p6 }
  0x12   : > { %p9015_p9 = pneg %p9014_p8 }
  0x14   : > { %p9020_p11 = pnand %p9018_p10, %p9015_p9 }
  0x16   : > { %9023 = shalt.err (!%p9020_p11)
}
  0x17   : > { %s9024_s20 = scalar_lea.vmem %s9177_s26, 3072  ;;  %p9032_p1 = scmp.lt.s32.totalorder %s9177_s26, %s9177_s26 }
  0x18   : > { %p9025_p12 = scmp.ne.s32.totalorder %s9177_s26, %s9024_s20  ;;  %p9033_p4 = scmp.lt.s32.totalorder %s9024_s20, %s9024_s20 }
  0x1a   : > { %p9027_p13 = pnand %p9025_p12, %p9199_p7  ;;  %p9034_p6 = por %p9033_p4, %p9032_p1 }
  0x1c   : > { %p9028_p0 = pneg %p9027_p13 }
  0x1e   : > { %p9035_p8 = pnand %p9034_p6, %p9028_p0 }
  0x20   : > { %9038 = shalt.err (!%p9035_p8)
}
  0x21   : > { %s9114_s21 = smov 64   ;;  %s9115_s22 = smov 4  }
  0x22   : > { %8839 = dma.hbm_to_vmem [thread:$0]  (!%p9185_p5), %s12439_s2, 3072, %s9177_s26, [#allocation5], %s9114_s21, %s9114_s21, %s9115_s22  }
  0x23   : > { %s9039_s12 = scalar_lea.hbm %s12438_s1, 1152 }
  0x24   : > { %p9040_p9 = scmp.ne.s32.totalorder %s12438_s1, %s9039_s12  ;;  %p9046_p12 = scmp.lt.u32.totalorder %s9039_s12, %s12438_s1 }
  0x26   : > { %p9042_p10 = pnand %p9040_p9, %p9199_p7 }
  0x28   : > { %p9043_p11 = pneg %p9042_p10 }
  0x2a   : > { %p9048_p13 = pnand %p9046_p12, %p9043_p11 }
  0x2c   : > { %9051 = shalt.err (!%p9048_p13)
}
  0x2d   : > { %s9052_s26 = scalar_lea.vmem %s9181_s8, 1152  ;;  %p9060_p6 = scmp.lt.s32.totalorder %s9181_s8, %s9181_s8 }
  0x2e   : > { %p9053_p0 = scmp.ne.s32.totalorder %s9181_s8, %s9052_s26  ;;  %p9061_p8 = scmp.lt.s32.totalorder %s9052_s26, %s9052_s26 }
  0x30   : > { %p9055_p1 = pnand %p9053_p0, %p9199_p7  ;;  %p9062_p9 = por %p9061_p8, %p9060_p6 }
  0x32   : > { %p9056_p4 = pneg %p9055_p1 }
  0x34   : > { %p9063_p10 = pnand %p9062_p9, %p9056_p4 }
  0x36   : > { %9066 = shalt.err (!%p9063_p10)
}
  0x37   : > { %s9116_s18 = smov 128   ;;  %s9117_s19 = smov 8  }
  0x38   : > { %8836 = dma.hbm_to_vmem [thread:$0]  (!%p9185_p5), %s12438_s1, 1152, %s9181_s8, [#allocation3], %s9116_s18, %s9116_s18, %s9117_s19  }
  0x39   : > { %s9067_s25 = scalar_lea.hbm %s12443_s6, 128 }
  0x3a   : > { %p9068_p11 = scmp.ne.s32.totalorder %s12443_s6, %s9067_s25  ;;  %p9074_p0 = scmp.lt.u32.totalorder %s9067_s25, %s12443_s6 }
  0x3c   : > { %p9070_p12 = pnand %p9068_p11, %p9199_p7 }
  0x3e   : > { %p9071_p13 = pneg %p9070_p12 }
  0x40   : > { %p9076_p1 = pnand %p9074_p0, %p9071_p13 }
  0x42   : > { %9079 = shalt.err (!%p9076_p1)
}
  0x43   : > { %s9080_s14 = scalar_lea.vmem %s251_s11, 128  ;;  %p9088_p9 = scmp.lt.s32.totalorder %s251_s11, %s251_s11 }
  0x44   : > { %p9081_p4 = scmp.ne.s32.totalorder %s251_s11, %s9080_s14  ;;  %p9089_p10 = scmp.lt.s32.totalorder %s9080_s14, %s9080_s14 }
  0x46   : > { %p9083_p6 = pnand %p9081_p4, %p9199_p7  ;;  %p9090_p2 = por %p9089_p10, %p9088_p9 }
  0x48   : > { %p9084_p8 = pneg %p9083_p6 }
  0x4a   : > { %p9091_p3 = pnand %p9090_p2, %p9084_p8 }
  0x4c   : > { %9094 = shalt.err (!%p9091_p3)
}
  0x4d   : > { %8842 = dma.hbm_to_vmem [thread:$0]  (!%p9185_p5), %s12443_s6, 128, %s251_s11, [#allocation5]  }
  0x4e   : > { %p12454_p11 = scmp.ne.s32.totalorder %s12451_s29, 0 }
  0x50   : > { %272 = sbr.rel (%p12454_p11) target bundleno = 2423 (0x977), region = 48 }
  0x57   : > { %p12455_p12 = scmp.ne.s32.totalorder %s12450_s28, 0 }
  0x59   : > { %9100 = dma.done.wait (%p12455_p12), [#allocation3], 1152  }
  0x5a   : > { %9102 = vsyncadd (%p12455_p12), [#allocation3], 4294966144 }
  0x5b   : > { %9104 = dma.done.wait (%p12455_p12), [#allocation5], 3200  }
  0x5c   : > { %9106 = vsyncadd (%p12455_p12), [#allocation5], 4294964096  ;;  %s7475_s9 = sshll.u32 %s7464_s27, 7  ;;  %v12448_v0 = vmov 0   ;;  %v8865_v1 = vld [vmem:[#allocation2 + $0x4] ss:$8 sps:$4 sm:$0xff]  }
  0x5d   : > { %1059 = vmatprep.mubr.bf16.mxu0 %v12448_v0  ;;  %p313_p2 = scmp.lt.s32.totalorder %s7475_s9, 383  ;;  %1539 = vmatprep.mubr.bf16.mxu1 %v12448_v0  ;;  %v8867_v2 = vld [vmem:[#allocation2] ss:$8 sps:$4 sm:$0xff]   ;;  %v8868_v3 = vld [vmem:[#allocation2 + $0x14] ss:$8 sps:$4 sm:$0xff]   ;;  %vm1020_vm0 = vcmask 1040384  }
  0x5e   : > { %1027 = vmatprep.subr.bf16.mxu0 %v8865_v1  ;;  %8811 = vmatprep.subr.bf16.mxu1 %v8865_v1  ;;  %v8870_v4 = vld [vmem:[#allocation2 + $0x10] ss:$8 sps:$4 sm:$0xff]   ;;  %v8871_v5 = vld [vmem:[#allocation2 + $0x24] ss:$8 sps:$4 sm:$0xff]   ;;  %v8873_v6 = vld [vmem:[#allocation2 + $0x20] ss:$8 sps:$4 sm:$0xff]  }
  0x5f   : > { %s12981_s9 = smov (!%p313_p2, %s7475_s9), 383  ;;  %1028 = vmatpush1.bf16.msra.mxu0 %v8867_v2  ;;  %8816 = vmatpush1.bf16.msra.mxu1 %v8867_v2  ;;  %v8874_v7 = vld [vmem:[#allocation2 + $0x34] ss:$8 sps:$4 sm:$0xff]   ;;  %v461_v8 = vld [vmem:[#allocation2 + $0x40] sm:$0x11]  ;;  %vm827_vm1 = vcmask 539648  }
  0x60   : > { %s7476_s29 = sshll.u32 %s12981_s9, 2  ;;  %1029 = vmatprep.subr.bf16.mxu0 %v8868_v3  ;;  %8812 = vmatprep.subr.bf16.mxu1 %v8868_v3  ;;  %v8876_v9 = vld [vmem:[#allocation2 + $0x30] ss:$8 sps:$4 sm:$0xff]   ;;  %v7552_v10 = vcombine.high %v461_v8, %v461_v8  ;;  %v7551_v11 = vcombine.low %v461_v8, %v461_v8  ;;  %v8917_v31 = vld [vmem:[#allocation4] sm:$0xff]   ;;  %v8922_v36 = vld [vmem:[#allocation4 + $0x18] sm:$0xff]   ;;  %vm6377_vm2 = vcmask 523264  }
  0x61   : > { %s9282_s11 = scalar_lea.vmem %s12437_s0, %s7476_s29  ;;  %v8918_v32 = vld [vmem:[#allocation4 + $0x8] sm:$0xff]   ;;  %v8921_v35 = vld [vmem:[#allocation4 + $0x10] sm:$0xff]   ;;  %v8925_v39 = vld [vmem:[#allocation4 + $0x20] sm:$0xff]   ;;  %s7478_s14 = sshll.u32 %s12981_s9, 3  ;;  %vm7248_vm3 = vcmask 31744  }
  0x62   : > { %v1022_v12 = vsel %vm1020_vm0, %v7551_v11, 0  ;;  %v8879_v13 = vld [vmem:[%s9282_s11] sm:$0xff]   ;;  %v8880_v15 = vld [vmem:[%s9282_s11 + $0x8] sm:$0xff]   ;;  %v8881_v17 = vld [vmem:[%s9282_s11 + $0x10] sm:$0xff]   ;;  %s11907_s29 = scalar_lea.vmem %s12444_s7, %s7478_s14 }
  0x63   : > { %1030 = vmatpush1.bf16.msra.mxu0 %v8870_v4  ;;  %8817 = vmatpush1.bf16.msra.mxu1 %v8870_v4  ;;  %v8892_v14 = vld [vmem:[%s9282_s11 + $0x180] sm:$0xff]   ;;  %v8894_v16 = vld [vmem:[%s9282_s11 + $0x188] sm:$0xff]   ;;  %v8896_v18 = vld [vmem:[%s9282_s11 + $0x190] sm:$0xff]  }
  0x64   : > { %1031 = vmatprep.subr.bf16.mxu0 %v8871_v5  ;;  %8813 = vmatprep.subr.bf16.mxu1 %v8871_v5  ;;  %v8882_v19 = vld [vmem:[%s9282_s11 + $0x18] sm:$0xff]   ;;  %v8883_v21 = vld [vmem:[%s9282_s11 + $0x20] sm:$0xff]   ;;  %v8884_v23 = vld [vmem:[%s9282_s11 + $0x28] sm:$0xff]  }
  0x65   : > { %v8898_v20 = vld [vmem:[%s9282_s11 + $0x198] sm:$0xff]   ;;  %v8900_v22 = vld [vmem:[%s9282_s11 + $0x1a0] sm:$0xff]   ;;  %v8902_v24 = vld [vmem:[%s9282_s11 + $0x1a8] sm:$0xff]  }
  0x66   : > { %v8885_v25 = vld [vmem:[%s9282_s11 + $0x30] sm:$0xff]   ;;  %v8886_v27 = vld [vmem:[%s9282_s11 + $0x38] sm:$0xff]   ;;  %v8887_v29 = vld [vmem:[%s9282_s11 + $0x40] sm:$0xff]  }
  0x67   : > { %1032 = vmatpush1.bf16.msra.mxu0 %v8873_v6  ;;  %8818 = vmatpush1.bf16.msra.mxu1 %v8873_v6  ;;  %v8904_v26 = vld [vmem:[%s9282_s11 + $0x1b0] sm:$0xff]   ;;  %v8906_v28 = vld [vmem:[%s9282_s11 + $0x1b8] sm:$0xff]   ;;  %v8908_v30 = vld [vmem:[%s9282_s11 + $0x1c0] sm:$0xff]  }
  0x68   : > { %1033 = vmatprep.subr.bf16.mxu0 %v8874_v7  ;;  %8814 = vmatprep.subr.bf16.mxu1 %v8874_v7  ;;  %v8888_v33 = vld [vmem:[%s9282_s11 + $0x48] sm:$0xff]   ;;  %v8889_v37 = vld [vmem:[%s9282_s11 + $0x50] sm:$0xff]   ;;  %v8890_v40 = vld [vmem:[%s9282_s11 + $0x58] sm:$0xff]  }
  0x69   : > { %v8910_v34 = vld [vmem:[%s9282_s11 + $0x1c8] sm:$0xff]   ;;  %v8912_v38 = vld [vmem:[%s9282_s11 + $0x1d0] sm:$0xff]   ;;  %v8914_v41 = vld [vmem:[%s9282_s11 + $0x1d8] sm:$0xff]  }
  0x6a   : > { %v8926_v42 = vld [vmem:[#allocation4 + $0x28] sm:$0xff]   ;;  %v8929_v43 = vld [vmem:[#allocation4 + $0x30] sm:$0xff]   ;;  %v8891_v44 = vld [vmem:[%s9282_s11 + $0x60] sm:$0xff]  }
  0x6b   : > { %1034 = vmatpush1.bf16.msra.mxu0 %v8876_v9  ;;  %8819 = vmatpush1.bf16.msra.mxu1 %v8876_v9  ;;  %v8916_v45 = vld [vmem:[%s9282_s11 + $0x1e0] sm:$0xff]   ;;  %v8893_v47 = vld [vmem:[%s9282_s11 + $0x68] sm:$0xff]   ;;  %v8895_v49 = vld [vmem:[%s9282_s11 + $0x70] sm:$0xff]  }
  0x6c   : > { %7553 = vmatprep.subr.msk.bf16.mxu0 %vm1020_vm0, %v7552_v10  ;;  %8815 = vmatprep.subr.msk.bf16.mxu1 %vm1020_vm0, %v7552_v10  ;;  %v8930_v46 = vld [vmem:[#allocation4 + $0x38] sm:$0xff]   ;;  %v8920_v48 = vld [vmem:[%s9282_s11 + $0x1e8] sm:$0xff]   ;;  %v8924_v50 = vld [vmem:[%s9282_s11 + $0x1f0] sm:$0xff]  }
  0x6d   : > { %v8897_v51 = vld [vmem:[%s9282_s11 + $0x78] sm:$0xff]   ;;  %v8899_v53 = vld [vmem:[%s9282_s11 + $0x80] sm:$0xff]   ;;  %v8901_v54 = vld [vmem:[%s9282_s11 + $0x88] sm:$0xff]  }
  0x6e   : > { %v8928_v52 = vld [vmem:[%s9282_s11 + $0x1f8] sm:$0xff]   ;;  %v8903_v55 = vld [vmem:[%s9282_s11 + $0x90] sm:$0xff]   ;;  %v8907_v57 = vld [vmem:[%s9282_s11 + $0xa0] sm:$0xff]  }
  0x6f   : > { %1036 = vmatpush1.bf16.msra.mxu0 %v1022_v12  ;;  %8820 = vmatpush1.bf16.msra.mxu1 %v1022_v12  ;;  %v8905_v56 = vld [vmem:[%s9282_s11 + $0x98] sm:$0xff]   ;;  %v8909_v58 = vld [vmem:[%s9282_s11 + $0xa8] sm:$0xff]   ;;  %v8911_v59 = vld [vmem:[%s9282_s11 + $0xb0] sm:$0xff]  }
  0x70   : > { %8099 = vmatprep.subr.bf16.mxu1 %v8917_v31  ;;  %v8913_v60 = vld [vmem:[%s9282_s11 + $0xb8] sm:$0xff]   ;;  %v8915_v61 = vld [vmem:[%s9282_s11 + $0xc0] sm:$0xff]   ;;  %v8919_v62 = vld [vmem:[%s9282_s11 + $0xc8] sm:$0xff]  }
  0x71   : > { %v8923_v63 = vld [vmem:[%s9282_s11 + $0xd0] sm:$0xff]   ;;  %v9412_v2 = vld [vmem:[#allocation6] ss:$0 sm:$0xff]  ;;  %v8927_v4 = vld [vmem:[%s9282_s11 + $0xd8] sm:$0xff]  }
  0x72   : > { %7554 = vmatmul.mubr.msk.bf16.vlgmr.msra.gmra.mrb[0].mxu0 %vm827_vm1, %v8879_v13  ;;  %7602 = vmatmul.mubr.msk.bf16.vlgmr.msra.gmra.mrb[0].mxu1 %vm827_vm1, %v8892_v14  ;;  %v8931_v12 = vld [vmem:[%s9282_s11 + $0xe0] sm:$0xff]  }
  0x73   : > { %1069 = vmatprep.mubr.bf16.mxu0 %v12448_v0  ;;  %1549 = vmatprep.mubr.bf16.mxu1 %v12448_v0 }
  0x74   : > { %8100 = vmatpush3.bf16.msra.mxu1 %v8917_v31 }
  0x75   : > { %8101 = vmatprep.subr.bf16.mxu1 %v8918_v32 }
  0x78   : > { %8102 = vmatpush3.bf16.msra.mxu1 %v8918_v32 }
  0x79   : > { %8103 = vmatprep.subr.bf16.mxu1 %v8921_v35 }
  0x7a   : > { %7555 = vmatmul.mubr.msk.bf16.gmra.mrb[4].mxu0 %vm827_vm1, %v8880_v15  ;;  %7603 = vmatmul.mubr.msk.bf16.gmra.mrb[4].mxu1 %vm827_vm1, %v8894_v16 }
  0x7b   : > { %1079 = vmatprep.mubr.bf16.mxu0 %v12448_v0  ;;  %1559 = vmatprep.mubr.bf16.mxu1 %v12448_v0 }
  0x7c   : > { %8104 = vmatpush3.bf16.msra.mxu1 %v8921_v35 }
  0x7d   : > { %8105 = vmatprep.subr.bf16.mxu1 %v8922_v36 }
  0x80   : > { %8106 = vmatpush3.bf16.msra.mxu1 %v8922_v36  ;;  %v8934_v36 = vld [vmem:[%s9282_s11 + $0xf8] sm:$0xff]  }
  0x81   : > { %8107 = vmatprep.subr.bf16.mxu1 %v8925_v39 }
  0x82   : > { %7556 = vmatmul.mubr.msk.bf16.gmra.mrb[8].mxu0 %vm827_vm1, %v8881_v17  ;;  %7604 = vmatmul.mubr.msk.bf16.gmra.mrb[8].mxu1 %vm827_vm1, %v8896_v18 }
  0x83   : > { %1089 = vmatprep.mubr.bf16.mxu0 %v12448_v0  ;;  %1569 = vmatprep.mubr.bf16.mxu1 %v12448_v0 }
  0x84   : > { %8108 = vmatpush3.bf16.msra.mxu1 %v8925_v39 }
  0x85   : > { %8109 = vmatprep.subr.bf16.mxu1 %v8926_v42 }
  0x88   : > { %8110 = vmatpush3.bf16.msra.mxu1 %v8926_v42 }
  0x89   : > { %8111 = vmatprep.subr.bf16.mxu1 %v8929_v43 }
  0x8a   : > { %7557 = vmatmul.mubr.msk.bf16.gmra.mrb[12].mxu0 %vm827_vm1, %v8882_v19  ;;  %7605 = vmatmul.mubr.msk.bf16.gmra.mrb[12].mxu1 %vm827_vm1, %v8898_v20  ;;  %v8932_v20 = vld [vmem:[%s9282_s11 + $0xe8] sm:$0xff]  }
  0x8b   : > { %1099 = vmatprep.mubr.bf16.mxu0 %v12448_v0  ;;  %1579 = vmatprep.mubr.bf16.mxu1 %v12448_v0 }
  0x8c   : > { %8112 = vmatpush3.bf16.msra.mxu1 %v8929_v43 }
  0x8d   : > { %8113 = vmatprep.subr.bf16.mxu1 %v8930_v46 }
  0x90   : > { %8114 = vmatpush3.bf16.msra.mxu1 %v8930_v46 }
  0x92   : > { %7558 = vmatmul.mubr.msk.bf16.gmra.mrb[16].mxu0 %vm827_vm1, %v8883_v21  ;;  %7606 = vmatmul.mubr.msk.bf16.gmra.mrb[16].mxu1 %vm827_vm1, %v8900_v22 }
  0x93   : > { %1109 = vmatprep.mubr.bf16.mxu0 %v12448_v0  ;;  %1589 = vmatprep.mubr.bf16.mxu1 %v12448_v0 }
  0x9a   : > { %7559 = vmatmul.mubr.msk.bf16.gmra.mrb[20].mxu0 %vm827_vm1, %v8884_v23  ;;  %7607 = vmatmul.mubr.msk.bf16.gmra.mrb[20].mxu1 %vm827_vm1, %v8902_v24 }
  0x9b   : > { %1119 = vmatprep.mubr.bf16.mxu0 %v12448_v0  ;;  %1599 = vmatprep.mubr.bf16.mxu1 %v12448_v0 }
  0xa2   : > { %7560 = vmatmul.mubr.msk.bf16.gmra.mrb[24].mxu0 %vm827_vm1, %v8885_v25  ;;  %7608 = vmatmul.mubr.msk.bf16.gmra.mrb[24].mxu1 %vm827_vm1, %v8904_v26 }
  0xa3   : > { %1129 = vmatprep.mubr.bf16.mxu0 %v12448_v0  ;;  %1609 = vmatprep.mubr.bf16.mxu1 %v12448_v0 }
  0xaa   : > { %7561 = vmatmul.mubr.msk.bf16.gmra.mrb[28].mxu0 %vm827_vm1, %v8886_v27  ;;  %7609 = vmatmul.mubr.msk.bf16.gmra.mrb[28].mxu1 %vm827_vm1, %v8906_v28  ;;  %v8933_v28 = vld [vmem:[%s9282_s11 + $0xf0] sm:$0xff]  }
  0xab   : > { %1139 = vmatprep.mubr.bf16.mxu0 %v12448_v0  ;;  %1619 = vmatprep.mubr.bf16.mxu1 %v12448_v0 }
  0xb2   : > { %7562 = vmatmul.mubr.msk.bf16.gmra.mrb[32].mxu0 %vm827_vm1, %v8887_v29  ;;  %7610 = vmatmul.mubr.msk.bf16.gmra.mrb[32].mxu1 %vm827_vm1, %v8908_v30 }
  0xb3   : > { %1149 = vmatprep.mubr.bf16.mxu0 %v12448_v0  ;;  %1629 = vmatprep.mubr.bf16.mxu1 %v12448_v0 }
  0xba   : > { %7563 = vmatmul.mubr.msk.bf16.gmra.mrb[36].mxu0 %vm827_vm1, %v8888_v33  ;;  %7611 = vmatmul.mubr.msk.bf16.gmra.mrb[36].mxu1 %vm827_vm1, %v8910_v34 }
  0xbb   : > { %1159 = vmatprep.mubr.bf16.mxu0 %v12448_v0  ;;  %1639 = vmatprep.mubr.bf16.mxu1 %v12448_v0 }
  0xc2   : > { %7564 = vmatmul.mubr.msk.bf16.gmra.mrb[40].mxu0 %vm827_vm1, %v8889_v37  ;;  %7612 = vmatmul.mubr.msk.bf16.gmra.mrb[40].mxu1 %vm827_vm1, %v8912_v38 }
  0xc3   : > { %1169 = vmatprep.mubr.bf16.mxu0 %v12448_v0  ;;  %1649 = vmatprep.mubr.bf16.mxu1 %v12448_v0 }
  0xca   : > { %7565 = vmatmul.mubr.msk.bf16.gmra.mrb[44].mxu0 %vm827_vm1, %v8890_v40  ;;  %7613 = vmatmul.mubr.msk.bf16.gmra.mrb[44].mxu1 %vm827_vm1, %v8914_v41 }
  0xcb   : > { %1179 = vmatprep.mubr.bf16.mxu0 %v12448_v0  ;;  %1659 = vmatprep.mubr.bf16.mxu1 %v12448_v0 }
  0xd2   : > { %7566 = vmatmul.mubr.msk.bf16.gmra.mrb[48].mxu0 %vm827_vm1, %v8891_v44  ;;  %7614 = vmatmul.mubr.msk.bf16.gmra.mrb[48].mxu1 %vm827_vm1, %v8916_v45 }
  0xd3   : > { %1189 = vmatprep.mubr.bf16.mxu0 %v12448_v0  ;;  %1669 = vmatprep.mubr.bf16.mxu1 %v12448_v0 }
  0xda   : > { %7567 = vmatmul.mubr.msk.bf16.gmra.mrb[52].mxu0 %vm827_vm1, %v8893_v47  ;;  %7615 = vmatmul.mubr.msk.bf16.gmra.mrb[52].mxu1 %vm827_vm1, %v8920_v48 }
  0xdb   : > { %1199 = vmatprep.mubr.bf16.mxu0 %v12448_v0  ;;  %1679 = vmatprep.mubr.bf16.mxu1 %v12448_v0 }
  0xe2   : > { %7568 = vmatmul.mubr.msk.bf16.gmra.mrb[56].mxu0 %vm827_vm1, %v8895_v49  ;;  %7616 = vmatmul.mubr.msk.bf16.gmra.mrb[56].mxu1 %vm827_vm1, %v8924_v50 }
  0xe3   : > { %1209 = vmatprep.mubr.bf16.mxu0 %v12448_v0  ;;  %1689 = vmatprep.mubr.bf16.mxu1 %v12448_v0 }
  0xea   : > { %7569 = vmatmul.mubr.msk.bf16.gmra.mrb[60].mxu0 %vm827_vm1, %v8897_v51  ;;  %7617 = vmatmul.mubr.msk.bf16.gmra.mrb[60].mxu1 %vm827_vm1, %v8928_v52  ;;  %v8935_v51 = vld [vmem:[%s9282_s11 + $0x100] sm:$0xff]  }
  0xeb   : > { %1219 = vmatprep.mubr.bf16.mxu0 %v12448_v0 }
  0xf2   : > { %7570 = vmatmul.mubr.msk.bf16.gmra.mrb[64].mxu0 %vm827_vm1, %v8899_v53 }
  0xf3   : > { %1229 = vmatprep.mubr.bf16.mxu0 %v12448_v0 }
  0xfa   : > { %7571 = vmatmul.mubr.msk.bf16.gmra.mrb[68].mxu0 %vm827_vm1, %v8901_v54 }
  0xfb   : > { %1239 = vmatprep.mubr.bf16.mxu0 %v12448_v0 }
 0x102   : > { %7572 = vmatmul.mubr.msk.bf16.gmra.mrb[72].mxu0 %vm827_vm1, %v8903_v55 }
 0x103   : > { %1249 = vmatprep.mubr.bf16.mxu0 %v12448_v0 }
 0x10a   : > { %7573 = vmatmul.mubr.msk.bf16.gmra.mrb[76].mxu0 %vm827_vm1, %v8905_v56 }
 0x10b   : > { %1259 = vmatprep.mubr.bf16.mxu0 %v12448_v0 }
 0x112   : > { %7574 = vmatmul.mubr.msk.bf16.gmra.mrb[80].mxu0 %vm827_vm1, %v8907_v57 }
 0x113   : > { %1269 = vmatprep.mubr.bf16.mxu0 %v12448_v0 }
 0x11a   : > { %7575 = vmatmul.mubr.msk.bf16.gmra.mrb[84].mxu0 %vm827_vm1, %v8909_v58 }
 0x11b   : > { %1279 = vmatprep.mubr.bf16.mxu0 %v12448_v0 }
 0x122   : > { %7576 = vmatmul.mubr.msk.bf16.gmra.mrb[88].mxu0 %vm827_vm1, %v8911_v59 }
 0x123   : > { %1289 = vmatprep.mubr.bf16.mxu0 %v12448_v0 }
 0x12a   : > { %7577 = vmatmul.mubr.msk.bf16.gmra.mrb[92].mxu0 %vm827_vm1, %v8913_v60 }
 0x12b   : > { %1299 = vmatprep.mubr.bf16.mxu0 %v12448_v0 }
 0x132   : > { %7578 = vmatmul.mubr.msk.bf16.gmra.mrb[96].mxu0 %vm827_vm1, %v8915_v61 }
 0x133   : > { %1309 = vmatprep.mubr.bf16.mxu0 %v12448_v0 }
 0x13a   : > { %7579 = vmatmul.mubr.msk.bf16.gmra.mrb[100].mxu0 %vm827_vm1, %v8919_v62 }
 0x13b   : > { %1319 = vmatprep.mubr.bf16.mxu0 %v12448_v0 }
 0x142   : > { %7580 = vmatmul.mubr.msk.bf16.gmra.mrb[104].mxu0 %vm827_vm1, %v8923_v63 }
 0x143   : > { %1329 = vmatprep.mubr.bf16.mxu0 %v12448_v0 }
 0x145   : > { %v1061_v1 = vpop.f32.mrb[0].mxu0  ;;  %v9453_v38 = vpop.f32.mrb[0].mxu1 }
 0x146   : > { %v9414_v3 = vpop.f32.mrb[1].mxu0  ;;  %v1705_v6 = vadd.f32 %v9412_v2, %v1061_v1  ;;  %v9459_v42 = vpop.f32.mrb[1].mxu1 }
 0x147   : > { %12456 = vst [vmem:[#allocation9_spill] sm:$0xff] %v9414_v3  ;;  %v1065_v5 = vpop.f32.mrb[2].mxu0  ;;  %12466 = vst [vmem:[#allocation19_spill] sm:$0xff] %v9459_v42  ;;  %v9461_v43 = vpop.f32.mrb[2].mxu1 }
 0x148   : > { %v1706_v7 = vadd.f32 %v9412_v2, %v1065_v5  ;;  %v9419_v8 = vpop.f32.mrb[3].mxu0  ;;  %v9464_v45 = vpop.f32.mrb[3].mxu1 }
 0x149   : > { %12457 = vst [vmem:[#allocation10_spill] sm:$0xff] %v9419_v8  ;;  %12467 = vst [vmem:[#allocation20_spill] sm:$0xff] %v9464_v45  ;;  %v8942_v45 = vld [vmem:[%s9282_s11 + $0x138] sm:$0xff]   ;;  %v8961_v8 = vld [vmem:[#allocation4 + $0x78] sm:$0xff]  }
 0x14a   : > { %7581 = vmatmul.mubr.msk.bf16.gmra.mrb[108].mxu0 %vm827_vm1, %v8927_v4  ;;  %v1833_v9 = vpack.c.bf16 %v1706_v7, %v1705_v6  ;;  %v8936_v6 = vld [vmem:[%s9282_s11 + $0x108] sm:$0xff]  }
 0x14b   : > { %1339 = vmatprep.mubr.bf16.mxu0 %v12448_v0 }
 0x14c   : > { %8115 = vmatprep.mubr.bf16.mxu1 %v1833_v9 }
 0x14d   : > { %v1071_v10 = vpop.f32.mrb[4].mxu0  ;;  %v9467_v46 = vpop.f32.mrb[4].mxu1 }
 0x14e   : > { %v9423_v11 = vpop.f32.mrb[5].mxu0  ;;  %v1707_v14 = vadd.f32 %v9412_v2, %v1071_v10  ;;  %v9469_v47 = vpop.f32.mrb[5].mxu1 }
 0x14f   : > { %12458 = vst [vmem:[#allocation11_spill] sm:$0xff] %v9423_v11  ;;  %v1075_v13 = vpop.f32.mrb[6].mxu0  ;;  %12468 = vst [vmem:[#allocation21_spill] sm:$0xff] %v9469_v47  ;;  %v9471_v49 = vpop.f32.mrb[6].mxu1 }
 0x150   : > { %v1708_v15 = vadd.f32 %v9412_v2, %v1075_v13  ;;  %v9428_v16 = vpop.f32.mrb[7].mxu0  ;;  %v9476_v52 = vpop.f32.mrb[7].mxu1 }
 0x151   : > { %12459 = vst [vmem:[#allocation12_spill] sm:$0xff] %v9428_v16  ;;  %12470 = vst [vmem:[#allocation23_spill] sm:$0xff] %v9476_v52 }
 0x152   : > { %v1834_v17 = vpack.c.bf16 %v1708_v15, %v1707_v14  ;;  %7582 = vmatmul.mubr.msk.bf16.gmra.mrb[112].mxu0 %vm827_vm1, %v8931_v12 }
 0x153   : > { %1349 = vmatprep.mubr.bf16.mxu0 %v12448_v0 }
 0x154   : > { %8116 = vmatmul.mubr.bf16.vlgmr.msra.gmra.mrb[64].mxu1 %v1834_v17 }
 0x155   : > { %v1081_v18 = vpop.f32.mrb[8].mxu0  ;;  %v9478_v54 = vpop.f32.mrb[8].mxu1 }
 0x156   : > { %v9432_v19 = vpop.f32.mrb[9].mxu0  ;;  %v1709_v22 = vadd.f32 %v9412_v2, %v1081_v18  ;;  %v9484_v58 = vpop.f32.mrb[9].mxu1 }
 0x157   : > { %12460 = vst [vmem:[#allocation13_spill] sm:$0xff] %v9432_v19  ;;  %v1085_v21 = vpop.f32.mrb[10].mxu0  ;;  %12472 = vst [vmem:[#allocation25_spill] sm:$0xff] %v9484_v58  ;;  %v9486_v59 = vpop.f32.mrb[10].mxu1 }
 0x158   : > { %v1710_v23 = vadd.f32 %v9412_v2, %v1085_v21  ;;  %v9437_v24 = vpop.f32.mrb[11].mxu0  ;;  %v9489_v61 = vpop.f32.mrb[11].mxu1 }
 0x159   : > { %12461 = vst [vmem:[#allocation14_spill] sm:$0xff] %v9437_v24  ;;  %12473 = vst [vmem:[#allocation26_spill] sm:$0xff] %v9489_v61  ;;  %v8941_v61 = vld [vmem:[%s9282_s11 + $0x130] sm:$0xff]   ;;  %v8960_v24 = vld [vmem:[#allocation4 + $0x70] sm:$0xff]  }
 0x15a   : > { %7583 = vmatmul.mubr.msk.bf16.gmra.mrb[116].mxu0 %vm827_vm1, %v8932_v20  ;;  %v1835_v25 = vpack.c.bf16 %v1710_v23, %v1709_v22 }
 0x15b   : > { %1359 = vmatprep.mubr.bf16.mxu0 %v12448_v0 }
 0x15c   : > { %8119 = vmatprep.mubr.bf16.mxu1 %v1835_v25 }
 0x15d   : > { %v1091_v26 = vpop.f32.mrb[12].mxu0  ;;  %v9492_v62 = vpop.f32.mrb[12].mxu1 }
 0x15e   : > { %v9441_v27 = vpop.f32.mrb[13].mxu0  ;;  %v1711_v30 = vadd.f32 %v9412_v2, %v1091_v26  ;;  %v9494_v63 = vpop.f32.mrb[13].mxu1 }
 0x15f   : > { %12462 = vst [vmem:[#allocation15_spill] sm:$0xff] %v9441_v27  ;;  %v1095_v29 = vpop.f32.mrb[14].mxu0  ;;  %12474 = vst [vmem:[#allocation27_spill] sm:$0xff] %v9494_v63  ;;  %v9496_v4 = vpop.f32.mrb[14].mxu1 }
 0x160   : > { %v1712_v31 = vadd.f32 %v9412_v2, %v1095_v29  ;;  %v9446_v32 = vpop.f32.mrb[15].mxu0  ;;  %v9501_v7 = vpop.f32.mrb[15].mxu1 }
 0x161   : > { %12463 = vst [vmem:[#allocation16_spill] sm:$0xff] %v9446_v32  ;;  %12476 = vst [vmem:[#allocation29_spill] sm:$0xff] %v9501_v7 }
 0x162   : > { %7584 = vmatmul.mubr.msk.bf16.gmra.mrb[120].mxu0 %vm827_vm1, %v8933_v28  ;;  %v1836_v33 = vpack.c.bf16 %v1712_v31, %v1711_v30  ;;  %v8937_v28 = vld [vmem:[%s9282_s11 + $0x110] sm:$0xff]  }
 0x163   : > { %1369 = vmatprep.mubr.bf16.mxu0 %v12448_v0 }
 0x164   : > { %8120 = vmatmul.mubr.bf16.gmra.mrb[68].mxu1 %v1836_v33 }
 0x165   : > { %v1101_v34 = vpop.f32.mrb[16].mxu0  ;;  %v9503_v10 = vpop.f32.mrb[16].mxu1 }
 0x166   : > { %v9450_v35 = vpop.f32.mrb[17].mxu0  ;;  %v1713_v39 = vadd.f32 %v9412_v2, %v1101_v34  ;;  %v9509_v15 = vpop.f32.mrb[17].mxu1 }
 0x167   : > { %12464 = vst [vmem:[#allocation17_spill] sm:$0xff] %v9450_v35  ;;  %v1105_v37 = vpop.f32.mrb[18].mxu0  ;;  %12478 = vst [vmem:[#allocation31_spill] sm:$0xff] %v9509_v15  ;;  %v9511_v17 = vpop.f32.mrb[18].mxu1 }
 0x168   : > { %v1714_v40 = vadd.f32 %v9412_v2, %v1105_v37  ;;  %v9457_v41 = vpop.f32.mrb[19].mxu0  ;;  %v9514_v20 = vpop.f32.mrb[19].mxu1 }
 0x169   : > { %12465 = vst [vmem:[#allocation18_spill] sm:$0xff] %v9457_v41  ;;  %12479 = vst [vmem:[#allocation32_spill] sm:$0xff] %v9514_v20  ;;  %v8940_v20 = vld [vmem:[%s9282_s11 + $0x128] sm:$0xff]  }
 0x16a   : > { %7585 = vmatmul.mubr.msk.bf16.gmra.mrb[124].mxu0 %vm827_vm1, %v8934_v36  ;;  %v1837_v44 = vpack.c.bf16 %v1714_v40, %v1713_v39 }
 0x16b   : > { %1379 = vmatprep.mubr.bf16.mxu0 %v12448_v0 }
 0x16c   : > { %8123 = vmatprep.mubr.bf16.mxu1 %v1837_v44 }
 0x16d   : > { %v1111_v48 = vpop.f32.mrb[20].mxu0  ;;  %v9517_v21 = vpop.f32.mrb[20].mxu1 }
 0x16e   : > { %v9473_v50 = vpop.f32.mrb[21].mxu0  ;;  %v1715_v55 = vadd.f32 %v9412_v2, %v1111_v48  ;;  %v9519_v22 = vpop.f32.mrb[21].mxu1 }
 0x16f   : > { %12469 = vst [vmem:[#allocation22_spill] sm:$0xff] %v9473_v50  ;;  %v1115_v53 = vpop.f32.mrb[22].mxu0  ;;  %12480 = vst [vmem:[#allocation33_spill] sm:$0xff] %v9519_v22  ;;  %v9521_v25 = vpop.f32.mrb[22].mxu1 }
 0x170   : > { %v1716_v56 = vadd.f32 %v9412_v2, %v1115_v53  ;;  %v9482_v57 = vpop.f32.mrb[23].mxu0  ;;  %v9526_v29 = vpop.f32.mrb[23].mxu1 }
 0x171   : > { %12471 = vst [vmem:[#allocation24_spill] sm:$0xff] %v9482_v57  ;;  %12482 = vst [vmem:[#allocation35_spill] sm:$0xff] %v9526_v29 }
 0x172   : > { %7586 = vmatmul.mubr.msk.bf16.gmra.mrb[128].mxu0 %vm827_vm1, %v8935_v51  ;;  %v1838_v60 = vpack.c.bf16 %v1716_v56, %v1715_v55 }
 0x173   : > { %1389 = vmatprep.mubr.bf16.mxu0 %v12448_v0 }
 0x174   : > { %8124 = vmatmul.mubr.bf16.gmra.mrb[72].mxu1 %v1838_v60  ;;  %v8938_v60 = vld [vmem:[%s9282_s11 + $0x118] sm:$0xff]  }
 0x175   : > { %v1121_v1 = vpop.f32.mrb[24].mxu0  ;;  %v9528_v31 = vpop.f32.mrb[24].mxu1 }
 0x176   : > { %v9498_v5 = vpop.f32.mrb[25].mxu0  ;;  %v1717_v12 = vadd.f32 %v9412_v2, %v1121_v1  ;;  %v9534_v37 = vpop.f32.mrb[25].mxu1 }
 0x177   : > { %12475 = vst [vmem:[#allocation28_spill] sm:$0xff] %v9498_v5  ;;  %v1125_v9 = vpop.f32.mrb[26].mxu0  ;;  %12484 = vst [vmem:[#allocation37_spill] sm:$0xff] %v9534_v37  ;;  %v9536_v39 = vpop.f32.mrb[26].mxu1 }
 0x178   : > { %v1718_v13 = vadd.f32 %v9412_v2, %v1125_v9  ;;  %v9507_v14 = vpop.f32.mrb[27].mxu0  ;;  %v9539_v44 = vpop.f32.mrb[27].mxu1 }
 0x179   : > { %12477 = vst [vmem:[#allocation30_spill] sm:$0xff] %v9507_v14  ;;  %12485 = vst [vmem:[#allocation38_spill] sm:$0xff] %v9539_v44 }
 0x17a   : > { %7587 = vmatmul.mubr.msk.bf16.gmra.mrb[132].mxu0 %vm827_vm1, %v8936_v6  ;;  %v1839_v18 = vpack.c.bf16 %v1718_v13, %v1717_v12 }
 0x17b   : > { %1399 = vmatprep.mubr.bf16.mxu0 %v12448_v0 }
 0x17c   : > { %8127 = vmatprep.mubr.bf16.mxu1 %v1839_v18 }
 0x17d   : > { %v1131_v23 = vpop.f32.mrb[28].mxu0  ;;  %v9542_v48 = vpop.f32.mrb[28].mxu1 }
 0x17e   : > { %v9523_v26 = vpop.f32.mrb[29].mxu0  ;;  %v1719_v33 = vadd.f32 %v9412_v2, %v1131_v23  ;;  %v9544_v51 = vpop.f32.mrb[29].mxu1 }
 0x17f   : > { %12481 = vst [vmem:[#allocation34_spill] sm:$0xff] %v9523_v26  ;;  %v1135_v30 = vpop.f32.mrb[30].mxu0  ;;  %12486 = vst [vmem:[#allocation39_spill] sm:$0xff] %v9544_v51  ;;  %v9546_v55 = vpop.f32.mrb[30].mxu1 }
 0x180   : > { %v1720_v34 = vadd.f32 %v9412_v2, %v1135_v30  ;;  %v9532_v36 = vpop.f32.mrb[31].mxu0  ;;  %v9551_v1 = vpop.f32.mrb[31].mxu1 }
 0x181   : > { %12483 = vst [vmem:[#allocation36_spill] sm:$0xff] %v9532_v36  ;;  %12488 = vst [vmem:[#allocation41_spill] sm:$0xff] %v9551_v1 }
 0x182   : > { %7588 = vmatmul.mubr.msk.bf16.gmra.mrb[136].mxu0 %vm827_vm1, %v8937_v28  ;;  %v1840_v40 = vpack.c.bf16 %v1720_v34, %v1719_v33  ;;  %v8951_v28 = vld [vmem:[#allocation4 + $0x40] sm:$0xff]  }
 0x183   : > { %1409 = vmatprep.mubr.bf16.mxu0 %v12448_v0  ;;  %8243 = vmatprep.subr.bf16.mxu1 %v8951_v28 }
 0x184   : > { %8128 = vmatmul.mubr.bf16.gmra.mrb[76].mxu1 %v1840_v40 }
 0x185   : > { %v1141_v53 = vpop.f32.mrb[32].mxu0  ;;  %v9553_v9 = vpop.f32.mrb[32].mxu1  ;;  %8244 = vmatpush3.bf16.msra.mxu1 %v8951_v28 }
 0x186   : > { %v9548_v56 = vpop.f32.mrb[33].mxu0  ;;  %v1721_v12 = vadd.f32 %v9412_v2, %v1141_v53  ;;  %v9559_v23 = vpop.f32.mrb[33].mxu1 }
 0x187   : > { %12487 = vst [vmem:[#allocation40_spill] sm:$0xff] %v9548_v56  ;;  %v1145_v6 = vpop.f32.mrb[34].mxu0  ;;  %12490 = vst [vmem:[#allocation43_spill] sm:$0xff] %v9559_v23  ;;  %v9561_v30 = vpop.f32.mrb[34].mxu1  ;;  %v8939_v23 = vld [vmem:[%s9282_s11 + $0x120] sm:$0xff]  }
 0x188   : > { %v1722_v13 = vadd.f32 %v9412_v2, %v1145_v6  ;;  %v9557_v18 = vpop.f32.mrb[35].mxu0  ;;  %v9564_v34 = vpop.f32.mrb[35].mxu1 }
 0x189   : > { %12489 = vst [vmem:[#allocation42_spill] sm:$0xff] %v9557_v18  ;;  %12491 = vst [vmem:[#allocation44_spill] sm:$0xff] %v9564_v34 }
 0x18a   : > { %7589 = vmatmul.mubr.msk.bf16.gmra.mrb[140].mxu0 %vm827_vm1, %v8938_v60  ;;  %v1841_v33 = vpack.c.bf16 %v1722_v13, %v1721_v12 }
 0x18b   : > { %1419 = vmatprep.mubr.bf16.mxu0 %v12448_v0 }
 0x18c   : > { %8131 = vmatprep.mubr.bf16.mxu1 %v1841_v33 }
 0x18d   : > { %v1151_v40 = vpop.f32.mrb[36].mxu0  ;;  %v9567_v53 = vpop.f32.mrb[36].mxu1 }
 0x18e   : > { %v9569_v6 = vpop.f32.mrb[37].mxu0  ;;  %v9572_v44 = vpop.f32.mrb[37].mxu1  ;;  %v1723_v60 = vadd.f32 %v9412_v2, %v1151_v40 }
 0x18f   : > { %12492 = vst [vmem:[#allocation45_spill] sm:$0xff] %v9569_v6  ;;  %12493 = vst [vmem:[#allocation46_spill] sm:$0xff] %v9572_v44  ;;  %v1155_v1 = vpop.f32.mrb[38].mxu0  ;;  %v9574_v37 = vpop.f32.mrb[38].mxu1 }
 0x190   : > { %v1724_v12 = vadd.f32 %v9412_v2, %v1155_v1  ;;  %v9578_v13 = vpop.f32.mrb[39].mxu0  ;;  %v9580_v28 = vpop.f32.mrb[39].mxu1 }
 0x191   : > { %12494 = vst [vmem:[#allocation47_spill] sm:$0xff] %v9578_v13  ;;  %12495 = vst [vmem:[#allocation48_spill] sm:$0xff] %v9580_v28 }
 0x192   : > { %7590 = vmatmul.mubr.msk.bf16.gmra.mrb[144].mxu0 %vm827_vm1, %v8939_v23  ;;  %v1842_v33 = vpack.c.bf16 %v1724_v12, %v1723_v60 }
 0x193   : > { %1429 = vmatprep.mubr.bf16.mxu0 %v12448_v0 }
 0x194   : > { %8132 = vmatmul.mubr.bf16.gmra.mrb[80].mxu1 %v1842_v33 }
 0x195   : > { %v1161_v34 = vpop.f32.mrb[40].mxu0  ;;  %v9584_v51 = vpop.f32.mrb[40].mxu1 }
 0x196   : > { %v9586_v44 = vpop.f32.mrb[41].mxu0  ;;  %v9589_v40 = vpop.f32.mrb[41].mxu1  ;;  %v1725_v28 = vadd.f32 %v9412_v2, %v1161_v34 }
 0x197   : > { %12496 = vst [vmem:[#allocation49_spill] sm:$0xff] %v9586_v44  ;;  %12497 = vst [vmem:[#allocation50_spill] sm:$0xff] %v9589_v40  ;;  %v1165_v1 = vpop.f32.mrb[42].mxu0  ;;  %v9591_v29 = vpop.f32.mrb[42].mxu1 }
 0x198   : > { %v1726_v23 = vadd.f32 %v9412_v2, %v1165_v1  ;;  %v9595_v60 = vpop.f32.mrb[43].mxu0  ;;  %v9597_v12 = vpop.f32.mrb[43].mxu1 }
 0x199   : > { %12498 = vst [vmem:[#allocation51_spill] sm:$0xff] %v9595_v60  ;;  %12499 = vst [vmem:[#allocation52_spill] sm:$0xff] %v9597_v12 }
 0x19a   : > { %7591 = vmatmul.mubr.msk.bf16.gmra.mrb[148].mxu0 %vm827_vm1, %v8940_v20  ;;  %v1843_v33 = vpack.c.bf16 %v1726_v23, %v1725_v28 }
 0x19b   : > { %1439 = vmatprep.mubr.bf16.mxu0 %v12448_v0 }
 0x19c   : > { %8135 = vmatprep.mubr.bf16.mxu1 %v1843_v33 }
 0x19d   : > { %v1171_v15 = vpop.f32.mrb[44].mxu0  ;;  %v9601_v22 = vpop.f32.mrb[44].mxu1 }
 0x19e   : > { %v9603_v40 = vpop.f32.mrb[45].mxu0  ;;  %v9606_v34 = vpop.f32.mrb[45].mxu1  ;;  %v1727_v12 = vadd.f32 %v9412_v2, %v1171_v15 }
 0x19f   : > { %12500 = vst [vmem:[#allocation53_spill] sm:$0xff] %v9603_v40  ;;  %12501 = vst [vmem:[#allocation54_spill] sm:$0xff] %v9606_v34  ;;  %v1175_v1 = vpop.f32.mrb[46].mxu0  ;;  %v9608_v7 = vpop.f32.mrb[46].mxu1  ;;  %v8945_v40 = vld [vmem:[%s9282_s11 + $0x150] sm:$0xff]  }
 0x1a0   : > { %v1728_v20 = vadd.f32 %v9412_v2, %v1175_v1  ;;  %v9612_v28 = vpop.f32.mrb[47].mxu0  ;;  %v9614_v23 = vpop.f32.mrb[47].mxu1 }
 0x1a1   : > { %12502 = vst [vmem:[#allocation55_spill] sm:$0xff] %v9612_v28  ;;  %12503 = vst [vmem:[#allocation56_spill] sm:$0xff] %v9614_v23 }
 0x1a2   : > { %7592 = vmatmul.mubr.msk.bf16.gmra.mrb[152].mxu0 %vm827_vm1, %v8941_v61  ;;  %v1844_v33 = vpack.c.bf16 %v1728_v20, %v1727_v12 }
 0x1a3   : > { %1449 = vmatprep.mubr.bf16.mxu0 %v12448_v0 }
 0x1a4   : > { %8136 = vmatmul.mubr.bf16.gmra.mrb[84].mxu1 %v1844_v33 }
 0x1a5   : > { %v1181_v58 = vpop.f32.mrb[48].mxu0  ;;  %v9618_v63 = vpop.f32.mrb[48].mxu1 }
 0x1a6   : > { %v9620_v34 = vpop.f32.mrb[49].mxu0  ;;  %v9623_v15 = vpop.f32.mrb[49].mxu1  ;;  %v1729_v23 = vadd.f32 %v9412_v2, %v1181_v58  ;;  %v8952_v58 = vld [vmem:[#allocation4 + $0x48] sm:$0xff]  }
 0x1a7   : > { %12504 = vst [vmem:[#allocation57_spill] sm:$0xff] %v9620_v34  ;;  %12505 = vst [vmem:[#allocation58_spill] sm:$0xff] %v9623_v15  ;;  %v1185_v1 = vpop.f32.mrb[50].mxu0  ;;  %v9625_v52 = vpop.f32.mrb[50].mxu1  ;;  %v8943_v34 = vld [vmem:[%s9282_s11 + $0x140] sm:$0xff]   ;;  %8245 = vmatprep.subr.bf16.mxu1 %v8952_v58 }
 0x1a8   : > { %v1730_v61 = vadd.f32 %v9412_v2, %v1185_v1  ;;  %v9629_v12 = vpop.f32.mrb[51].mxu0  ;;  %v9631_v20 = vpop.f32.mrb[51].mxu1  ;;  %8246 = vmatpush3.bf16.msra.mxu1 %v8952_v58 }
 0x1a9   : > { %12506 = vst [vmem:[#allocation59_spill] sm:$0xff] %v9629_v12  ;;  %12507 = vst [vmem:[#allocation60_spill] sm:$0xff] %v9631_v20 }
 0x1aa   : > { %7593 = vmatmul.mubr.msk.bf16.gmra.mrb[156].mxu0 %vm827_vm1, %v8942_v45  ;;  %v1845_v33 = vpack.c.bf16 %v1730_v61, %v1729_v23 }
 0x1ab   : > { %1459 = vmatprep.mubr.bf16.mxu0 %v12448_v0 }
 0x1ac   : > { %8139 = vmatprep.mubr.bf16.mxu1 %v1845_v33 }
 0x1ad   : > { %v1191_v42 = vpop.f32.mrb[52].mxu0  ;;  %v9635_v47 = vpop.f32.mrb[52].mxu1 }
 0x1ae   : > { %v9637_v15 = vpop.f32.mrb[53].mxu0  ;;  %v9640_v60 = vpop.f32.mrb[53].mxu1  ;;  %v1731_v20 = vadd.f32 %v9412_v2, %v1191_v42  ;;  %v8944_v42 = vld [vmem:[%s9282_s11 + $0x148] sm:$0xff]  }
 0x1af   : > { %12508 = vst [vmem:[#allocation61_spill] sm:$0xff] %v9637_v15  ;;  %12509 = vst [vmem:[#allocation62_spill] sm:$0xff] %v9640_v60  ;;  %v1195_v1 = vpop.f32.mrb[54].mxu0  ;;  %v9642_v12 = vpop.f32.mrb[54].mxu1 }
 0x1b0   : > { %v1732_v45 = vadd.f32 %v9412_v2, %v1195_v1  ;;  %v9646_v23 = vpop.f32.mrb[55].mxu0  ;;  %v9648_v61 = vpop.f32.mrb[55].mxu1 }
 0x1b1   : > { %12510 = vst [vmem:[#allocation63_spill] sm:$0xff] %v9646_v23  ;;  %12511 = vst [vmem:[#allocation64_spill] sm:$0xff] %v9648_v61 }
 0x1b2   : > { %7594 = vmatmul.mubr.msk.bf16.gmra.mrb[160].mxu0 %vm827_vm1, %v8943_v34  ;;  %v1846_v33 = vpack.c.bf16 %v1732_v45, %v1731_v20 }
 0x1b3   : > { %1469 = vmatprep.mubr.bf16.mxu0 %v12448_v0 }
 0x1b4   : > { %8140 = vmatmul.mubr.bf16.gmra.mrb[88].mxu1 %v1846_v33 }
 0x1b5   : > { %v1201_v60 = vpop.f32.mrb[56].mxu0  ;;  %v9652_v15 = vpop.f32.mrb[56].mxu1 }
 0x1b6   : > { %v9654_v28 = vpop.f32.mrb[57].mxu0  ;;  %v9657_v1 = vpop.f32.mrb[57].mxu1  ;;  %v1733_v58 = vadd.f32 %v9412_v2, %v1201_v60 }
 0x1b7   : > { %12512 = vst [vmem:[#allocation65_spill] sm:$0xff] %v9654_v28  ;;  %12513 = vst [vmem:[#allocation66_spill] sm:$0xff] %v9657_v1  ;;  %v1205_v23 = vpop.f32.mrb[58].mxu0  ;;  %v9659_v44 = vpop.f32.mrb[58].mxu1 }
 0x1b8   : > { %v1734_v34 = vadd.f32 %v9412_v2, %v1205_v23  ;;  %v9663_v20 = vpop.f32.mrb[59].mxu0  ;;  %v9665_v45 = vpop.f32.mrb[59].mxu1 }
 0x1b9   : > { %12514 = vst [vmem:[#allocation67_spill] sm:$0xff] %v9663_v20  ;;  %12515 = vst [vmem:[#allocation68_spill] sm:$0xff] %v9665_v45 }
 0x1ba   : > { %7595 = vmatmul.mubr.msk.bf16.gmra.mrb[164].mxu0 %vm827_vm1, %v8944_v42  ;;  %v1847_v33 = vpack.c.bf16 %v1734_v34, %v1733_v58 }
 0x1bb   : > { %1479 = vmatprep.mubr.bf16.mxu0 %v12448_v0 }
 0x1bc   : > { %8143 = vmatprep.mubr.bf16.mxu1 %v1847_v33 }
 0x1bd   : > { %v1211_v61 = vpop.f32.mrb[60].mxu0  ;;  %v9669_v28 = vpop.f32.mrb[60].mxu1 }
 0x1be   : > { %v9671_v1 = vpop.f32.mrb[61].mxu0  ;;  %v9674_v60 = vpop.f32.mrb[61].mxu1  ;;  %v1735_v45 = vadd.f32 %v9412_v2, %v1211_v61 }
 0x1bf   : > { %12516 = vst [vmem:[#allocation69_spill] sm:$0xff] %v9671_v1  ;;  %12517 = vst [vmem:[#allocation70_spill] sm:$0xff] %v9674_v60  ;;  %v1215_v23 = vpop.f32.mrb[62].mxu0  ;;  %v9676_v18 = vpop.f32.mrb[62].mxu1  ;;  %v8946_v1 = vld [vmem:[%s9282_s11 + $0x158] sm:$0xff]  }
 0x1c0   : > { %v1736_v42 = vadd.f32 %v9412_v2, %v1215_v23  ;;  %v9680_v58 = vpop.f32.mrb[63].mxu0  ;;  %v9682_v34 = vpop.f32.mrb[63].mxu1 }
 0x1c1   : > { %12518 = vst [vmem:[#allocation71_spill] sm:$0xff] %v9680_v58  ;;  %12519 = vst [vmem:[#allocation72_spill] sm:$0xff] %v9682_v34 }
 0x1c2   : > { %7596 = vmatmul.mubr.msk.bf16.gmra.mrb[168].mxu0 %vm827_vm1, %v8945_v40  ;;  %v1848_v33 = vpack.c.bf16 %v1736_v42, %v1735_v45  ;;  %v8953_v45 = vld [vmem:[#allocation4 + $0x50] sm:$0xff]  }
 0x1c3   : > { %1489 = vmatprep.mubr.bf16.mxu0 %v12448_v0  ;;  %8247 = vmatprep.subr.bf16.mxu1 %v8953_v45 }
 0x1c4   : > { %8144 = vmatmul.mubr.bf16.gmra.mrb[92].mxu1 %v1848_v33  ;;  %v8947_v33 = vld [vmem:[%s9282_s11 + $0x160] sm:$0xff]  }
 0x1c5   : > { %v1221_v20 = vpop.f32.mrb[64].mxu0  ;;  %8248 = vmatpush3.bf16.msra.mxu1 %v8953_v45 }
 0x1c6   : > { %v9686_v60 = vpop.f32.mrb[65].mxu0  ;;  %v1737_v61 = vadd.f32 %v9412_v2, %v1221_v20 }
 0x1c7   : > { %12520 = vst [vmem:[#allocation73_spill] sm:$0xff] %v9686_v60  ;;  %v1225_v13 = vpop.f32.mrb[66].mxu0 }
 0x1c8   : > { %v1738_v23 = vadd.f32 %v9412_v2, %v1225_v13  ;;  %v9691_v56 = vpop.f32.mrb[67].mxu0 }
 0x1c9   : > { %12521 = vst [vmem:[#allocation74_spill] sm:$0xff] %v9691_v56 }
 0x1ca   : > { %7597 = vmatmul.mubr.msk.bf16.gmra.mrb[172].mxu0 %vm827_vm1, %v8946_v1  ;;  %v1849_v34 = vpack.c.bf16 %v1738_v23, %v1737_v61  ;;  %v8948_v23 = vld [vmem:[%s9282_s11 + $0x168] sm:$0xff]  }
 0x1cb   : > { %1499 = vmatprep.mubr.bf16.mxu0 %v12448_v0 }
 0x1cc   : > { %8147 = vmatprep.mubr.bf16.mxu1 %v1849_v34 }
 0x1cd   : > { %v1231_v40 = vpop.f32.mrb[68].mxu0 }
 0x1ce   : > { %v9695_v42 = vpop.f32.mrb[69].mxu0  ;;  %v1739_v20 = vadd.f32 %v9412_v2, %v1231_v40 }
 0x1cf   : > { %12522 = vst [vmem:[#allocation75_spill] sm:$0xff] %v9695_v42  ;;  %v1235_v60 = vpop.f32.mrb[70].mxu0 }
 0x1d0   : > { %v1740_v13 = vadd.f32 %v9412_v2, %v1235_v60  ;;  %v9700_v58 = vpop.f32.mrb[71].mxu0 }
 0x1d1   : > { %12523 = vst [vmem:[#allocation76_spill] sm:$0xff] %v9700_v58 }
 0x1d2   : > { %7598 = vmatmul.mubr.msk.bf16.gmra.mrb[176].mxu0 %vm827_vm1, %v8947_v33  ;;  %v1850_v1 = vpack.c.bf16 %v1740_v13, %v1739_v20  ;;  %v8949_v13 = vld [vmem:[%s9282_s11 + $0x170] sm:$0xff]  }
 0x1d3   : > { %1509 = vmatprep.mubr.bf16.mxu0 %v12448_v0 }
 0x1d4   : > { %8148 = vmatmul.mubr.bf16.gmra.mrb[96].mxu1 %v1850_v1  ;;  %v9718_v1 = vadd.f32 %v9412_v2, %v9453_v38 }
 0x1d5   : > { %v1241_v34 = vpop.f32.mrb[72].mxu0 }
 0x1d6   : > { %v9704_v61 = vpop.f32.mrb[73].mxu0  ;;  %v1741_v42 = vadd.f32 %v9412_v2, %v1241_v34 }
 0x1d7   : > { %12524 = vst [vmem:[#allocation77_spill] sm:$0xff] %v9704_v61  ;;  %v1245_v56 = vpop.f32.mrb[74].mxu0 }
 0x1d8   : > { %v1742_v40 = vadd.f32 %v9412_v2, %v1245_v56  ;;  %v9709_v60 = vpop.f32.mrb[75].mxu0  ;;  %v9722_v56 = vadd.f32 %v9412_v2, %v9461_v43  ;;  %v8950_v43 = vld [vmem:[%s9282_s11 + $0x178] sm:$0xff]  }
 0x1d9   : > { %12525 = vst [vmem:[#allocation78_spill] sm:$0xff] %v9709_v60  ;;  %v12528_v60 = vmov 0  }
 0x1da   : > { %7599 = vmatmul.mubr.msk.bf16.gmra.mrb[180].mxu0 %vm827_vm1, %v8948_v23  ;;  %v1851_v45 = vpack.c.bf16 %v1742_v40, %v1741_v42 }
 0x1db   : > { %1519 = vmatprep.mubr.bf16.mxu0 %v12448_v0 }
 0x1dc   : > { %8151 = vmatprep.mubr.bf16.mxu1 %v1851_v45 }
 0x1dd   : > { %v1251_v33 = vpop.f32.mrb[76].mxu0 }
 0x1de   : > { %v9713_v20 = vpop.f32.mrb[77].mxu0  ;;  %v1743_v23 = vadd.f32 %v9412_v2, %v1251_v33  ;;  %v9737_v33 = vadd.f32 %v9412_v2, %v9467_v46  ;;  %v8954_v46 = vld [vmem:[#allocation4 + $0x80] sm:$0xff]  }
 0x1df   : > { %12526 = vst [vmem:[#allocation79_spill] sm:$0xff] %v9713_v20  ;;  %v1255_v34 = vpop.f32.mrb[78].mxu0  ;;  %v8955_v20 = vld [vmem:[#allocation4 + $0x58] sm:$0xff]   ;;  %8387 = vmatprep.subr.bf16.mxu0 %v8954_v46 }
 0x1e0   : > { %v1744_v42 = vadd.f32 %v9412_v2, %v1255_v34  ;;  %v9726_v40 = vpop.f32.mrb[79].mxu0  ;;  %v9741_v34 = vadd.f32 %v9412_v2, %v9471_v49  ;;  %v9754_v49 = vadd.f32 %v9412_v2, %v9478_v54  ;;  %8388 = vmatpush3.bf16.msra.mxu0 %v8954_v46  ;;  %8249 = vmatprep.subr.bf16.mxu1 %v8955_v20 }
 0x1e1   : > { %12527 = vst [vmem:[#allocation80_spill] sm:$0xff] %v9726_v40  ;;  %8250 = vmatpush3.bf16.msra.mxu1 %v8955_v20  ;;  %v9772_v46 = vadd.f32 %v9412_v2, %v9496_v4  ;;  %v9784_v54 = vadd.f32 %v9412_v2, %v9503_v10  ;;  %v9788_v4 = vadd.f32 %v9412_v2, %v9511_v17 }
 0x1e2   : > { %7600 = vmatmul.mubr.msk.bf16.gmra.mrb[184].mxu0 %vm827_vm1, %v8949_v13  ;;  %v1852_v45 = vpack.c.bf16 %v1744_v42, %v1743_v23  ;;  %v9804_v17 = vadd.f32 %v9412_v2, %v9521_v25  ;;  %v9816_v25 = vadd.f32 %v9412_v2, %v9528_v31 }
 0x1e3   : > { %1529 = vmatprep.mubr.bf16.mxu0 %v12528_v60 }
 0x1e4   : > { %8152 = vmatmul.mubr.bf16.gmra.mrb[100].mxu1 %v1852_v45 }
 0x1e5   : > { %v1261_v38 = vpop.f32.mrb[80].mxu0 }
 0x1e6   : > { %v9732_v61 = vpop.f32.mrb[81].mxu0  ;;  %v1745_v23 = vadd.f32 %v9412_v2, %v1261_v38  ;;  %v9758_v38 = vadd.f32 %v9412_v2, %v9486_v59  ;;  %v9768_v59 = vadd.f32 %v9412_v2, %v9492_v62 }
 0x1e7   : > { %12529 = vst [vmem:[#allocation81_spill] sm:$0xff] %v9732_v61  ;;  %v1265_v13 = vpop.f32.mrb[82].mxu0 }
 0x1e8   : > { %v1746_v42 = vadd.f32 %v9412_v2, %v1265_v13  ;;  %v9745_v0 = vpop.f32.mrb[83].mxu0 }
 0x1e9   : > { %12530 = vst [vmem:[#allocation82_spill] sm:$0xff] %v9745_v0 }
 0x1ea   : > { %7601 = vmatmul.mubr.msk.bf16.gmra.mrb[188].mxu0 %vm827_vm1, %v8950_v43  ;;  %v1853_v45 = vpack.c.bf16 %v1746_v42, %v1745_v23 }
 0x1ec   : > { %8155 = vmatprep.mubr.bf16.mxu1 %v1853_v45 }
 0x1ed   : > { %v1271_v40 = vpop.f32.mrb[84].mxu0 }
 0x1ee   : > { %v9750_v58 = vpop.f32.mrb[85].mxu0  ;;  %v1747_v13 = vadd.f32 %v9412_v2, %v1271_v40 }
 0x1ef   : > { %12531 = vst [vmem:[#allocation83_spill] sm:$0xff] %v9750_v58  ;;  %v1275_v43 = vpop.f32.mrb[86].mxu0 }
 0x1f0   : > { %v1748_v23 = vadd.f32 %v9412_v2, %v1275_v43  ;;  %v9762_v42 = vpop.f32.mrb[87].mxu0 }
 0x1f1   : > { %12532 = vst [vmem:[#allocation84_spill] sm:$0xff] %v9762_v42  ;;  %v9862_v42 = vld [vmem:[#allocation6 + $0x1] ss:$0 sm:$0xff] }
 0x1f2   : > { %v1854_v45 = vpack.c.bf16 %v1748_v23, %v1747_v13 }
 0x1f4   : > { %8156 = vmatmul.mubr.bf16.gmra.mrb[104].mxu1 %v1854_v45 }
 0x1f5   : > { %v1281_v61 = vpop.f32.mrb[88].mxu0 }
 0x1f6   : > { %v9774_v40 = vpop.f32.mrb[89].mxu0  ;;  %v1749_v0 = vadd.f32 %v9412_v2, %v1281_v61 }
 0x1f7   : > { %12533 = vst [vmem:[#allocation85_spill] sm:$0xff] %v9774_v40  ;;  %v1285_v43 = vpop.f32.mrb[90].mxu0 }
 0x1f8   : > { %v1750_v20 = vadd.f32 %v9412_v2, %v1285_v43  ;;  %v9778_v13 = vpop.f32.mrb[91].mxu0 }
 0x1f9   : > { %12534 = vst [vmem:[#allocation86_spill] sm:$0xff] %v9778_v13  ;;  %v9800_v13 = vadd.f32 %v9412_v2, %v9517_v21 }
 0x1fa   : > { %v1855_v23 = vpack.c.bf16 %v1750_v20, %v1749_v0 }
 0x1fc   : > { %8159 = vmatprep.mubr.bf16.mxu1 %v1855_v23 }
 0x1fd   : > { %v1291_v62 = vpop.f32.mrb[92].mxu0 }
 0x1fe   : > { %v9790_v40 = vpop.f32.mrb[93].mxu0  ;;  %v1751_v43 = vadd.f32 %v9412_v2, %v1291_v62 }
 0x1ff   : > { %12535 = vst [vmem:[#allocation87_spill] sm:$0xff] %v9790_v40  ;;  %v1295_v61 = vpop.f32.mrb[94].mxu0 }
 0x200   : > { %v1752_v0 = vadd.f32 %v9412_v2, %v1295_v61  ;;  %v9794_v20 = vpop.f32.mrb[95].mxu0 }
 0x201   : > { %12536 = vst [vmem:[#allocation88_spill] sm:$0xff] %v9794_v20  ;;  %v8956_v20 = vld [vmem:[#allocation4 + $0x60] sm:$0xff]  }
 0x202   : > { %v1856_v45 = vpack.c.bf16 %v1752_v0, %v1751_v43  ;;  %8251 = vmatprep.subr.bf16.mxu1 %v8956_v20 }
 0x203   : > { %8252 = vmatpush3.bf16.msra.mxu1 %v8956_v20 }
 0x204   : > { %8160 = vmatmul.mubr.bf16.gmra.mrb[108].mxu1 %v1856_v45 }
 0x205   : > { %v1301_v10 = vpop.f32.mrb[96].mxu0 }
 0x206   : > { %v9806_v40 = vpop.f32.mrb[97].mxu0  ;;  %v1753_v61 = vadd.f32 %v9412_v2, %v1301_v10 }
 0x207   : > { %12537 = vst [vmem:[#allocation89_spill] sm:$0xff] %v9806_v40  ;;  %v1305_v62 = vpop.f32.mrb[98].mxu0  ;;  %v9820_v40 = vadd.f32 %v9412_v2, %v9536_v39  ;;  %v9832_v39 = vadd.f32 %v9412_v2, %v9542_v48  ;;  %v8957_v48 = vld [vmem:[#allocation4 + $0x88] sm:$0xff]  }
 0x208   : > { %v1754_v43 = vadd.f32 %v9412_v2, %v1305_v62  ;;  %v9810_v0 = vpop.f32.mrb[99].mxu0  ;;  %8389 = vmatprep.subr.bf16.mxu0 %v8957_v48 }
 0x209   : > { %12538 = vst [vmem:[#allocation90_spill] sm:$0xff] %v9810_v0  ;;  %8390 = vmatpush3.bf16.msra.mxu0 %v8957_v48  ;;  %v9870_v48 = vadd.f32 %v9412_v2, %v9574_v37 }
 0x20a   : > { %v1857_v23 = vpack.c.bf16 %v1754_v43, %v1753_v61 }
 0x20c   : > { %8163 = vmatprep.mubr.bf16.mxu1 %v1857_v23 }
 0x20d   : > { %v1311_v21 = vpop.f32.mrb[100].mxu0 }
 0x20e   : > { %v9822_v10 = vpop.f32.mrb[101].mxu0  ;;  %v1755_v61 = vadd.f32 %v9412_v2, %v1311_v21 }
 0x20f   : > { %12539 = vst [vmem:[#allocation91_spill] sm:$0xff] %v9822_v10  ;;  %v1315_v62 = vpop.f32.mrb[102].mxu0  ;;  %v9836_v10 = vadd.f32 %v9412_v2, %v9546_v55  ;;  %v9848_v55 = vadd.f32 %v9412_v2, %v9553_v9 }
 0x210   : > { %v1756_v43 = vadd.f32 %v9412_v2, %v1315_v62  ;;  %v9826_v45 = vpop.f32.mrb[103].mxu0 }
 0x211   : > { %12540 = vst [vmem:[#allocation92_spill] sm:$0xff] %v9826_v45 }
 0x212   : > { %v1858_v23 = vpack.c.bf16 %v1756_v43, %v1755_v61 }
 0x214   : > { %8164 = vmatmul.mubr.bf16.gmra.mrb[112].mxu1 %v1858_v23 }
 0x215   : > { %v1321_v0 = vpop.f32.mrb[104].mxu0 }
 0x216   : > { %v9838_v21 = vpop.f32.mrb[105].mxu0  ;;  %v1757_v45 = vadd.f32 %v9412_v2, %v1321_v0 }
 0x217   : > { %12541 = vst [vmem:[#allocation93_spill] sm:$0xff] %v9838_v21  ;;  %v1325_v62 = vpop.f32.mrb[106].mxu0  ;;  %v9852_v21 = vadd.f32 %v9412_v2, %v9561_v30  ;;  %v9866_v30 = vadd.f32 %v9412_v2, %v9567_v53 }
 0x218   : > { %v1758_v20 = vadd.f32 %v9412_v2, %v1325_v62  ;;  %v9842_v61 = vpop.f32.mrb[107].mxu0 }
 0x219   : > { %12542 = vst [vmem:[#allocation94_spill] sm:$0xff] %v9842_v61 }
 0x21a   : > { %v1859_v43 = vpack.c.bf16 %v1758_v20, %v1757_v45 }
 0x21c   : > { %8167 = vmatprep.mubr.bf16.mxu1 %v1859_v43 }
 0x21d   : > { %v1331_v31 = vpop.f32.mrb[108].mxu0 }
 0x21e   : > { %v9854_v0 = vpop.f32.mrb[109].mxu0  ;;  %v1759_v45 = vadd.f32 %v9412_v2, %v1331_v31 }
 0x21f   : > { %12543 = vst [vmem:[#allocation95_spill] sm:$0xff] %v9854_v0  ;;  %v1335_v62 = vpop.f32.mrb[110].mxu0 }
 0x220   : > { %v1760_v20 = vadd.f32 %v9412_v2, %v1335_v62  ;;  %v9858_v43 = vpop.f32.mrb[111].mxu0 }
 0x221   : > { %12544 = vst [vmem:[#allocation96_spill] sm:$0xff] %v9858_v43 }
 0x222   : > { %v1860_v23 = vpack.c.bf16 %v1760_v20, %v1759_v45 }
 0x224   : > { %8168 = vmatmul.mubr.bf16.gmra.mrb[116].mxu1 %v1860_v23 }
 0x225   : > { %v1341_v61 = vpop.f32.mrb[112].mxu0 }
 0x226   : > { %v9872_v31 = vpop.f32.mrb[113].mxu0  ;;  %v1761_v45 = vadd.f32 %v9412_v2, %v1341_v61 }
 0x227   : > { %12545 = vst [vmem:[#allocation97_spill] sm:$0xff] %v9872_v31  ;;  %v1345_v62 = vpop.f32.mrb[114].mxu0  ;;  %v8117_v43 = vpop.f32.mrb[64].mxu1 }
 0x228   : > { %v1762_v20 = vadd.f32 %v9412_v2, %v1345_v62  ;;  %v2009_v23 = vadd.f32 %v8117_v43, %v9862_v42  ;;  %v9877_v9 = vpop.f32.mrb[115].mxu0  ;;  %v2000_v0 = vpop.f32.mrb[65].mxu1 }
 0x229   : > { %12546 = vst [vmem:[#allocation98_spill] sm:$0xff] %v9877_v9  ;;  %v2001_v53 = vadd.f32 %v9862_v42, %v2000_v0  ;;  %v8118_v58 = vpop.f32.mrb[66].mxu1  ;;  %v8958_v9 = vld [vmem:[#allocation4 + $0x68] sm:$0xff]   ;;  %v9886_v0 = vadd.f32 %v9412_v2, %v9584_v51 }
 0x22a   : > { %v2012_v6 = vadd.f32 %v8118_v58, %v9862_v42  ;;  %v2003_v37 = vpop.f32.mrb[67].mxu1  ;;  %v1861_v14 = vpack.c.bf16 %v1762_v20, %v1761_v45  ;;  %v2513_v61 = vmax.f32 %v2009_v23, 0.0  ;;  %v9890_v58 = vadd.f32 %v9412_v2, %v9591_v29  ;;  %8253 = vmatprep.subr.bf16.mxu1 %v8958_v9 }
 0x22b   : > { %v2004_v36 = vadd.f32 %v9862_v42, %v2003_v37  ;;  %v2511_v62 = vmax.f32 %v2001_v53, 0.0  ;;  %8254 = vmatpush3.bf16.msra.mxu1 %v8958_v9  ;;  %v9906_v53 = vadd.f32 %v9412_v2, %v9601_v22 }
 0x22c   : > { %v2514_v5 = vmax.f32 %v2012_v6, 0.0  ;;  %8171 = vmatprep.mubr.bf16.mxu1 %v1861_v14  ;;  %8255 = vmatprep.subr.bf16.mxu1 %v8960_v24 }
 0x22d   : > { %v2512_v43 = vmax.f32 %v2004_v36, 0.0  ;;  %v1351_v26 = vpop.f32.mrb[116].mxu0 }
 0x22e   : > { %v9892_v45 = vpack.c.bf16 %v2514_v5, %v2513_v61  ;;  %v9894_v20 = vpop.f32.mrb[117].mxu0  ;;  %v1763_v14 = vadd.f32 %v9412_v2, %v1351_v26  ;;  %v9910_v61 = vadd.f32 %v9412_v2, %v9608_v7 }
 0x22f   : > { %12547 = vst [vmem:[#allocation99_spill] sm:$0xff] %v9894_v20  ;;  %v1355_v37 = vpop.f32.mrb[118].mxu0  ;;  %v9896_v6 = vpack.c.bf16 %v2512_v43, %v2511_v62  ;;  %8256 = vmatpush3.bf16.msra.mxu1 %v8960_v24 }
 0x230   : > { %v1764_v36 = vadd.f32 %v9412_v2, %v1355_v37  ;;  %v9900_v23 = vpop.f32.mrb[119].mxu0  ;;  %8257 = vmatprep.subr.bf16.mxu1 %v8961_v8 }
 0x231   : > { %12548 = vst [vmem:[#allocation100_spill] sm:$0xff] %v9900_v23 }
 0x232   : > { %v1862_v51 = vpack.c.bf16 %v1764_v36, %v1763_v14 }
 0x233   : > { %8258 = vmatpush3.bf16.msra.mxu1 %v8961_v8 }
 0x234   : > { %8172 = vmatmul.mubr.bf16.gmra.mrb[120].mxu1 %v1862_v51 }
 0x235   : > { %v1361_v5 = vpop.f32.mrb[120].mxu0 }
 0x236   : > { %v9912_v26 = vpop.f32.mrb[121].mxu0  ;;  %v1765_v9 = vadd.f32 %v9412_v2, %v1361_v5 }
 0x237   : > { %12549 = vst [vmem:[#allocation101_spill] sm:$0xff] %v9912_v26  ;;  %v1365_v62 = vpop.f32.mrb[122].mxu0  ;;  %v8121_v43 = vpop.f32.mrb[68].mxu1 }
 0x238   : > { %v1766_v37 = vadd.f32 %v9412_v2, %v1365_v62  ;;  %v2025_v14 = vadd.f32 %v8121_v43, %v9862_v42  ;;  %v9917_v36 = vpop.f32.mrb[123].mxu0  ;;  %v2016_v51 = vpop.f32.mrb[69].mxu1 }
 0x239   : > { %12550 = vst [vmem:[#allocation102_spill] sm:$0xff] %v9917_v36  ;;  %v2017_v22 = vadd.f32 %v9862_v42, %v2016_v51  ;;  %v8122_v29 = vpop.f32.mrb[70].mxu1  ;;  %v9926_v36 = vadd.f32 %v9412_v2, %v9618_v63 }
 0x23a   : > { %v2028_v31 = vadd.f32 %v8122_v29, %v9862_v42  ;;  %v2019_v7 = vpop.f32.mrb[71].mxu1  ;;  %v1863_v23 = vpack.c.bf16 %v1766_v37, %v1765_v9  ;;  %v2517_v5 = vmax.f32 %v2025_v14, 0.0  ;;  %v9930_v29 = vadd.f32 %v9412_v2, %v9625_v52 }
 0x23b   : > { %v2020_v20 = vadd.f32 %v9862_v42, %v2019_v7  ;;  %v2515_v62 = vmax.f32 %v2017_v22, 0.0  ;;  %v9946_v22 = vadd.f32 %v9412_v2, %v9635_v47 }
 0x23c   : > { %v2518_v41 = vmax.f32 %v2028_v31, 0.0  ;;  %8175 = vmatprep.mubr.bf16.mxu1 %v1863_v23 }
 0x23d   : > { %v2516_v43 = vmax.f32 %v2020_v20, 0.0  ;;  %v1371_v57 = vpop.f32.mrb[124].mxu0 }
 0x23e   : > { %v9932_v9 = vpop.f32.mrb[125].mxu0  ;;  %v9934_v37 = vpack.c.bf16 %v2518_v41, %v2517_v5  ;;  %v1767_v31 = vadd.f32 %v9412_v2, %v1371_v57  ;;  %v9950_v41 = vadd.f32 %v9412_v2, %v9642_v12 }
 0x23f   : > { %12551 = vst [vmem:[#allocation103_spill] sm:$0xff] %v9932_v9  ;;  %v1375_v51 = vpop.f32.mrb[126].mxu0  ;;  %v9936_v7 = vpack.c.bf16 %v2516_v43, %v2515_v62 }
 0x240   : > { %v1768_v20 = vadd.f32 %v9412_v2, %v1375_v51  ;;  %v9940_v23 = vpop.f32.mrb[127].mxu0 }
 0x241   : > { %12552 = vst [vmem:[#allocation104_spill] sm:$0xff] %v9940_v23 }
 0x242   : > { %v1864_v14 = vpack.c.bf16 %v1768_v20, %v1767_v31 }
 0x244   : > { %8176 = vmatmul.mubr.bf16.gmra.mrb[124].mxu1 %v1864_v14 }
 0x245   : > { %v1381_v52 = vpop.f32.mrb[128].mxu0 }
 0x246   : > { %v9952_v5 = vpop.f32.mrb[129].mxu0  ;;  %v1769_v43 = vadd.f32 %v9412_v2, %v1381_v52 }
 0x247   : > { %12553 = vst [vmem:[#allocation105_spill] sm:$0xff] %v9952_v5  ;;  %v1385_v57 = vpop.f32.mrb[130].mxu0  ;;  %v8125_v62 = vpop.f32.mrb[72].mxu1 }
 0x248   : > { %v1770_v51 = vadd.f32 %v9412_v2, %v1385_v57  ;;  %v2041_v31 = vadd.f32 %v8125_v62, %v9862_v42  ;;  %v9957_v20 = vpop.f32.mrb[131].mxu0  ;;  %v2032_v14 = vpop.f32.mrb[73].mxu1  ;;  %v8959_v57 = vld [vmem:[#allocation4 + $0x90] sm:$0xff]  }
 0x249   : > { %12554 = vst [vmem:[#allocation106_spill] sm:$0xff] %v9957_v20  ;;  %v2033_v47 = vadd.f32 %v9862_v42, %v2032_v14  ;;  %v8126_v63 = vpop.f32.mrb[74].mxu1  ;;  %v9966_v14 = vadd.f32 %v9412_v2, %v9652_v15  ;;  %8391 = vmatprep.subr.bf16.mxu0 %v8959_v57 }
 0x24a   : > { %v2044_v26 = vadd.f32 %v8126_v63, %v9862_v42  ;;  %v2035_v12 = vpop.f32.mrb[75].mxu1  ;;  %v1865_v23 = vpack.c.bf16 %v1770_v51, %v1769_v43  ;;  %v2521_v52 = vmax.f32 %v2041_v31, 0.0  ;;  %v9970_v63 = vadd.f32 %v9412_v2, %v9659_v44  ;;  %8392 = vmatpush3.bf16.msra.mxu0 %v8959_v57 }
 0x24b   : > { %v2036_v9 = vadd.f32 %v9862_v42, %v2035_v12  ;;  %v2519_v62 = vmax.f32 %v2033_v47, 0.0 }
 0x24c   : > { %v2522_v35 = vmax.f32 %v2044_v26, 0.0  ;;  %8179 = vmatprep.mubr.bf16.mxu1 %v1865_v23 }
 0x24d   : > { %v2520_v50 = vmax.f32 %v2036_v9, 0.0  ;;  %v1391_v20 = vpop.f32.mrb[132].mxu0 }
 0x24e   : > { %v9972_v43 = vpop.f32.mrb[133].mxu0  ;;  %v9974_v51 = vpack.c.bf16 %v2522_v35, %v2521_v52  ;;  %v1771_v9 = vadd.f32 %v9412_v2, %v1391_v20  ;;  %v9984_v35 = vld [vmem:[#allocation6] ss:$0 sm:$0xff] }
 0x24f   : > { %12555 = vst [vmem:[#allocation107_spill] sm:$0xff] %v9972_v43  ;;  %v1395_v26 = vpop.f32.mrb[134].mxu0  ;;  %v9976_v23 = vpack.c.bf16 %v2520_v50, %v2519_v62  ;;  %v9988_v52 = vadd.f32 %v9984_v35, %v9669_v28  ;;  %v9992_v50 = vadd.f32 %v9984_v35, %v9676_v18 }
 0x250   : > { %v1772_v31 = vadd.f32 %v9412_v2, %v1395_v26  ;;  %v9980_v15 = vpop.f32.mrb[135].mxu0 }
 0x251   : > { %12556 = vst [vmem:[#allocation108_spill] sm:$0xff] %v9980_v15 }
 0x252   : > { %v1866_v47 = vpack.c.bf16 %v1772_v31, %v1771_v9 }
 0x254   : > { %8180 = vmatmul.mubr.bf16.gmra.mrb[128].mxu1 %v1866_v47 }
 0x255   : > { %v1401_v12 = vpop.f32.mrb[136].mxu0 }
 0x256   : > { %v9994_v2 = vpop.f32.mrb[137].mxu0  ;;  %v1773_v57 = vadd.f32 %v9984_v35, %v1401_v12 }
 0x257   : > { %12557 = vst [vmem:[#allocation109_spill] sm:$0xff] %v9994_v2  ;;  %v1405_v20 = vpop.f32.mrb[138].mxu0  ;;  %v8129_v24 = vpop.f32.mrb[76].mxu1 }
 0x258   : > { %v1774_v62 = vadd.f32 %v9984_v35, %v1405_v20  ;;  %v2057_v26 = vadd.f32 %v8129_v24, %v9862_v42  ;;  %v9999_v9 = vpop.f32.mrb[139].mxu0  ;;  %v2048_v31 = vpop.f32.mrb[77].mxu1 }
 0x259   : > { %12558 = vst [vmem:[#allocation110_spill] sm:$0xff] %v9999_v9  ;;  %v2049_v28 = vadd.f32 %v9862_v42, %v2048_v31  ;;  %v8130_v47 = vpop.f32.mrb[78].mxu1 }
 0x25a   : > { %v2060_v44 = vadd.f32 %v8130_v47, %v9862_v42  ;;  %v2051_v18 = vpop.f32.mrb[79].mxu1  ;;  %v1867_v5 = vpack.c.bf16 %v1774_v62, %v1773_v57  ;;  %v2525_v12 = vmax.f32 %v2057_v26, 0.0 }
 0x25b   : > { %v2052_v15 = vadd.f32 %v9862_v42, %v2051_v18  ;;  %v2523_v20 = vmax.f32 %v2049_v28, 0.0 }
 0x25c   : > { %v2526_v43 = vmax.f32 %v2060_v44, 0.0  ;;  %8183 = vmatprep.mubr.bf16.mxu1 %v1867_v5 }
 0x25d   : > { %v2524_v24 = vmax.f32 %v2052_v15, 0.0  ;;  %v1411_v32 = vpop.f32.mrb[140].mxu0 }
 0x25e   : > { %v10006_v9 = vpop.f32.mrb[141].mxu0  ;;  %v10008_v19 = vpack.c.bf16 %v2526_v43, %v2525_v12  ;;  %v1775_v57 = vadd.f32 %v9984_v35, %v1411_v32 }
 0x25f   : > { %12559 = vst [vmem:[#allocation111_spill] sm:$0xff] %v10006_v9  ;;  %v1415_v31 = vpop.f32.mrb[142].mxu0  ;;  %v10010_v27 = vpack.c.bf16 %v2524_v24, %v2523_v20 }
 0x260   : > { %v1776_v62 = vadd.f32 %v9984_v35, %v1415_v31  ;;  %v10014_v47 = vpop.f32.mrb[143].mxu0 }
 0x261   : > { %12560 = vst [vmem:[#allocation112_spill] sm:$0xff] %v10014_v47 }
 0x262   : > { %v1868_v18 = vpack.c.bf16 %v1776_v62, %v1775_v57 }
 0x264   : > { %8184 = vmatmul.mubr.bf16.gmra.mrb[132].mxu1 %v1868_v18 }
 0x265   : > { %v1421_v44 = vpop.f32.mrb[144].mxu0 }
 0x266   : > { %v10016_v5 = vpop.f32.mrb[145].mxu0  ;;  %v1777_v28 = vadd.f32 %v9984_v35, %v1421_v44 }
 0x267   : > { %12561 = vst [vmem:[#allocation113_spill] sm:$0xff] %v10016_v5  ;;  %v1425_v15 = vpop.f32.mrb[146].mxu0  ;;  %v8133_v26 = vpop.f32.mrb[80].mxu1 }
 0x268   : > { %v1778_v43 = vadd.f32 %v9984_v35, %v1425_v15  ;;  %v2073_v12 = vadd.f32 %v8133_v26, %v9862_v42  ;;  %v10021_v20 = vpop.f32.mrb[147].mxu0  ;;  %v2064_v32 = vpop.f32.mrb[81].mxu1 }
 0x269   : > { %12562 = vst [vmem:[#allocation114_spill] sm:$0xff] %v10021_v20  ;;  %v2065_v24 = vadd.f32 %v9862_v42, %v2064_v32  ;;  %v8134_v31 = vpop.f32.mrb[82].mxu1 }
 0x26a   : > { %v2076_v57 = vadd.f32 %v8134_v31, %v9862_v42  ;;  %v2067_v62 = vpop.f32.mrb[83].mxu1  ;;  %v1869_v18 = vpack.c.bf16 %v1778_v43, %v1777_v28  ;;  %v2529_v5 = vmax.f32 %v2073_v12, 0.0 }
 0x26b   : > { %v2068_v2 = vadd.f32 %v9862_v42, %v2067_v62  ;;  %v2527_v44 = vmax.f32 %v2065_v24, 0.0 }
 0x26c   : > { %v2530_v47 = vmax.f32 %v2076_v57, 0.0  ;;  %8187 = vmatprep.mubr.bf16.mxu1 %v1869_v18 }
 0x26d   : > { %v2528_v9 = vmax.f32 %v2068_v2, 0.0  ;;  %v1431_v15 = vpop.f32.mrb[148].mxu0 }
 0x26e   : > { %v10026_v26 = vpop.f32.mrb[149].mxu0  ;;  %v10028_v20 = vpack.c.bf16 %v2530_v47, %v2529_v5  ;;  %v1779_v31 = vadd.f32 %v9984_v35, %v1431_v15 }
 0x26f   : > { %12563 = vst [vmem:[#allocation115_spill] sm:$0xff] %v10026_v26  ;;  %v1435_v16 = vpop.f32.mrb[150].mxu0  ;;  %v10030_v32 = vpack.c.bf16 %v2528_v9, %v2527_v44 }
 0x270   : > { %v1780_v28 = vadd.f32 %v9984_v35, %v1435_v16  ;;  %v10034_v43 = vpop.f32.mrb[151].mxu0 }
 0x271   : > { %12564 = vst [vmem:[#allocation116_spill] sm:$0xff] %v10034_v43 }
 0x272   : > { %v1870_v12 = vpack.c.bf16 %v1780_v28, %v1779_v31 }
 0x274   : > { %8188 = vmatmul.mubr.bf16.gmra.mrb[136].mxu1 %v1870_v12 }
 0x275   : > { %v1441_v2 = vpop.f32.mrb[152].mxu0 }
 0x276   : > { %v10036_v24 = vpop.f32.mrb[153].mxu0  ;;  %v1781_v47 = vadd.f32 %v9984_v35, %v1441_v2  ;;  %v8962_v2 = vld [vmem:[#allocation4 + $0x98] sm:$0xff]  }
 0x277   : > { %12565 = vst [vmem:[#allocation117_spill] sm:$0xff] %v10036_v24  ;;  %v1445_v57 = vpop.f32.mrb[154].mxu0  ;;  %v8137_v62 = vpop.f32.mrb[84].mxu1  ;;  %8393 = vmatprep.subr.bf16.mxu0 %v8962_v2 }
 0x278   : > { %v1782_v5 = vadd.f32 %v9984_v35, %v1445_v57  ;;  %v2089_v9 = vadd.f32 %v8137_v62, %v9862_v42  ;;  %v10041_v18 = vpop.f32.mrb[155].mxu0  ;;  %v2080_v44 = vpop.f32.mrb[85].mxu1  ;;  %8394 = vmatpush3.bf16.msra.mxu0 %v8962_v2 }
 0x279   : > { %12566 = vst [vmem:[#allocation118_spill] sm:$0xff] %v10041_v18  ;;  %v2081_v16 = vadd.f32 %v9862_v42, %v2080_v44  ;;  %v8138_v15 = vpop.f32.mrb[86].mxu1 }
 0x27a   : > { %v2092_v8 = vadd.f32 %v8138_v15, %v9862_v42  ;;  %v2083_v31 = vpop.f32.mrb[87].mxu1  ;;  %v1871_v28 = vpack.c.bf16 %v1782_v5, %v1781_v47  ;;  %v2533_v24 = vmax.f32 %v2089_v9, 0.0 }
 0x27b   : > { %v2084_v12 = vadd.f32 %v9862_v42, %v2083_v31  ;;  %v2531_v26 = vmax.f32 %v2081_v16, 0.0 }
 0x27c   : > { %v2534_v43 = vmax.f32 %v2092_v8, 0.0  ;;  %8191 = vmatprep.mubr.bf16.mxu1 %v1871_v28 }
 0x27d   : > { %v2532_v57 = vmax.f32 %v2084_v12, 0.0  ;;  %v1451_v3 = vpop.f32.mrb[156].mxu0 }
 0x27e   : > { %v10046_v62 = vpop.f32.mrb[157].mxu0  ;;  %v10048_v18 = vpack.c.bf16 %v2534_v43, %v2533_v24  ;;  %v1783_v47 = vadd.f32 %v9984_v35, %v1451_v3 }
 0x27f   : > { %12567 = vst [vmem:[#allocation119_spill] sm:$0xff] %v10046_v62  ;;  %v1455_v44 = vpop.f32.mrb[158].mxu0  ;;  %v10050_v11 = vpack.c.bf16 %v2532_v57, %v2531_v26 }
 0x280   : > { %12568 = vst [vmem:[#allocation120_spill] sm:$0xff] %v10048_v18  ;;  %v1784_v5 = vadd.f32 %v9984_v35, %v1455_v44  ;;  %v10054_v9 = vpop.f32.mrb[159].mxu0 }
 0x281   : > { %12569 = vst [vmem:[#allocation121_spill] sm:$0xff] %v10054_v9 }
 0x282   : > { %v1872_v15 = vpack.c.bf16 %v1784_v5, %v1783_v47 }
 0x284   : > { %8192 = vmatmul.mubr.bf16.gmra.mrb[140].mxu1 %v1872_v15 }
 0x285   : > { %v1461_v16 = vpop.f32.mrb[160].mxu0 }
 0x286   : > { %v10056_v8 = vpop.f32.mrb[161].mxu0  ;;  %v1785_v43 = vadd.f32 %v9984_v35, %v1461_v16 }
 0x287   : > { %12570 = vst [vmem:[#allocation122_spill] sm:$0xff] %v10056_v8  ;;  %v1465_v31 = vpop.f32.mrb[162].mxu0  ;;  %v8141_v28 = vpop.f32.mrb[88].mxu1 }
 0x288   : > { %v1786_v24 = vadd.f32 %v9984_v35, %v1465_v31  ;;  %v2105_v26 = vadd.f32 %v8141_v28, %v9862_v42  ;;  %v10061_v12 = vpop.f32.mrb[163].mxu0  ;;  %v2096_v3 = vpop.f32.mrb[89].mxu1 }
 0x289   : > { %12571 = vst [vmem:[#allocation123_spill] sm:$0xff] %v10061_v12  ;;  %v2097_v2 = vadd.f32 %v9862_v42, %v2096_v3  ;;  %v8142_v57 = vpop.f32.mrb[90].mxu1 }
 0x28a   : > { %v2108_v44 = vadd.f32 %v8142_v57, %v9862_v42  ;;  %v2099_v47 = vpop.f32.mrb[91].mxu1  ;;  %v1873_v5 = vpack.c.bf16 %v1786_v24, %v1785_v43  ;;  %v2537_v8 = vmax.f32 %v2105_v26, 0.0 }
 0x28b   : > { %v2100_v15 = vadd.f32 %v9862_v42, %v2099_v47  ;;  %v2535_v16 = vmax.f32 %v2097_v2, 0.0 }
 0x28c   : > { %v2538_v9 = vmax.f32 %v2108_v44, 0.0  ;;  %8195 = vmatprep.mubr.bf16.mxu1 %v1873_v5 }
 0x28d   : > { %v2536_v62 = vmax.f32 %v2100_v15, 0.0  ;;  %v1471_v31 = vpop.f32.mrb[164].mxu0 }
 0x28e   : > { %v10066_v60 = vpop.f32.mrb[165].mxu0  ;;  %v10068_v28 = vpack.c.bf16 %v2538_v9, %v2537_v8  ;;  %v1787_v3 = vadd.f32 %v9984_v35, %v1471_v31 }
 0x28f   : > { %12572 = vst [vmem:[#allocation124_spill] sm:$0xff] %v10066_v60  ;;  %v1475_v12 = vpop.f32.mrb[166].mxu0  ;;  %v10070_v18 = vpack.c.bf16 %v2536_v62, %v2535_v16 }
 0x290   : > { %12573 = vst [vmem:[#allocation125_spill] sm:$0xff] %v10068_v28  ;;  %v1788_v57 = vadd.f32 %v9984_v35, %v1475_v12  ;;  %v10074_v43 = vpop.f32.mrb[167].mxu0 }
 0x291   : > { %12574 = vst [vmem:[#allocation126_spill] sm:$0xff] %v10070_v18  ;;  %12575 = vst [vmem:[#allocation127_spill] sm:$0xff] %v10074_v43 }
 0x292   : > { %v1874_v24 = vpack.c.bf16 %v1788_v57, %v1787_v3 }
 0x294   : > { %8196 = vmatmul.mubr.bf16.gmra.mrb[144].mxu1 %v1874_v24 }
 0x295   : > { %v1481_v26 = vpop.f32.mrb[168].mxu0 }
 0x296   : > { %v10076_v44 = vpop.f32.mrb[169].mxu0  ;;  %v1789_v5 = vadd.f32 %v9984_v35, %v1481_v26 }
 0x297   : > { %12576 = vst [vmem:[#allocation128_spill] sm:$0xff] %v10076_v44  ;;  %v1485_v2 = vpop.f32.mrb[170].mxu0  ;;  %v8145_v47 = vpop.f32.mrb[92].mxu1 }
 0x298   : > { %v1790_v9 = vadd.f32 %v9984_v35, %v1485_v2  ;;  %v2121_v62 = vadd.f32 %v8145_v47, %v9862_v42  ;;  %v10081_v8 = vpop.f32.mrb[171].mxu0  ;;  %v2112_v15 = vpop.f32.mrb[93].mxu1 }
 0x299   : > { %12577 = vst [vmem:[#allocation129_spill] sm:$0xff] %v10081_v8  ;;  %v2113_v12 = vadd.f32 %v9862_v42, %v2112_v15  ;;  %v8146_v16 = vpop.f32.mrb[94].mxu1 }
 0x29a   : > { %v2124_v31 = vadd.f32 %v8146_v16, %v9862_v42  ;;  %v2115_v3 = vpop.f32.mrb[95].mxu1  ;;  %v1875_v57 = vpack.c.bf16 %v1790_v9, %v1789_v5  ;;  %v2541_v44 = vmax.f32 %v2121_v62, 0.0 }
 0x29b   : > { %v2116_v24 = vadd.f32 %v9862_v42, %v2115_v3  ;;  %v2539_v26 = vmax.f32 %v2113_v12, 0.0 }
 0x29c   : > { %v2542_v43 = vmax.f32 %v2124_v31, 0.0  ;;  %8199 = vmatprep.mubr.bf16.mxu1 %v1875_v57 }
 0x29d   : > { %v2540_v60 = vmax.f32 %v2116_v24, 0.0  ;;  %v1491_v2 = vpop.f32.mrb[172].mxu0 }
 0x29e   : > { %v10086_v28 = vpop.f32.mrb[173].mxu0  ;;  %v10088_v47 = vpack.c.bf16 %v2542_v43, %v2541_v44  ;;  %v1791_v15 = vadd.f32 %v9984_v35, %v1491_v2 }
 0x29f   : > { %12578 = vst [vmem:[#allocation130_spill] sm:$0xff] %v10086_v28  ;;  %v1495_v8 = vpop.f32.mrb[174].mxu0  ;;  %v10090_v18 = vpack.c.bf16 %v2540_v60, %v2539_v26 }
 0x2a0   : > { %12579 = vst [vmem:[#allocation131_spill] sm:$0xff] %v10088_v47  ;;  %v1792_v16 = vadd.f32 %v9984_v35, %v1495_v8  ;;  %v10094_v5 = vpop.f32.mrb[175].mxu0 }
 0x2a1   : > { %12580 = vst [vmem:[#allocation132_spill] sm:$0xff] %v10090_v18  ;;  %12581 = vst [vmem:[#allocation133_spill] sm:$0xff] %v10094_v5 }
 0x2a2   : > { %v1876_v9 = vpack.c.bf16 %v1792_v16, %v1791_v15 }
 0x2a4   : > { %8200 = vmatmul.mubr.bf16.gmra.mrb[148].mxu1 %v1876_v9 }
 0x2a5   : > { %v1501_v62 = vpop.f32.mrb[176].mxu0 }
 0x2a6   : > { %v10096_v31 = vpop.f32.mrb[177].mxu0  ;;  %v1793_v57 = vadd.f32 %v9984_v35, %v1501_v62 }
 0x2a7   : > { %12582 = vst [vmem:[#allocation134_spill] sm:$0xff] %v10096_v31  ;;  %v1505_v12 = vpop.f32.mrb[178].mxu0  ;;  %v8149_v3 = vpop.f32.mrb[96].mxu1 }
 0x2a8   : > { %v1794_v43 = vadd.f32 %v9984_v35, %v1505_v12  ;;  %v2137_v60 = vadd.f32 %v8149_v3, %v9862_v42  ;;  %v10101_v44 = vpop.f32.mrb[179].mxu0  ;;  %v2128_v24 = vpop.f32.mrb[97].mxu1  ;;  %v8963_v3 = vld [vmem:[#allocation4 + $0xa0] sm:$0xff]  }
 0x2a9   : > { %12583 = vst [vmem:[#allocation135_spill] sm:$0xff] %v10101_v44  ;;  %v2129_v8 = vadd.f32 %v9862_v42, %v2128_v24  ;;  %v8150_v26 = vpop.f32.mrb[98].mxu1  ;;  %8395 = vmatprep.subr.bf16.mxu0 %v8963_v3 }
 0x2aa   : > { %v2140_v2 = vadd.f32 %v8150_v26, %v9862_v42  ;;  %v2131_v15 = vpop.f32.mrb[99].mxu1  ;;  %v1877_v16 = vpack.c.bf16 %v1794_v43, %v1793_v57  ;;  %v2545_v31 = vmax.f32 %v2137_v60, 0.0  ;;  %8396 = vmatpush3.bf16.msra.mxu0 %v8963_v3 }
 0x2ab   : > { %v2132_v9 = vadd.f32 %v9862_v42, %v2131_v15  ;;  %v2543_v62 = vmax.f32 %v2129_v8, 0.0 }
 0x2ac   : > { %v2546_v5 = vmax.f32 %v2140_v2, 0.0  ;;  %8203 = vmatprep.mubr.bf16.mxu1 %v1877_v16 }
 0x2ad   : > { %v2544_v28 = vmax.f32 %v2132_v9, 0.0  ;;  %v1511_v12 = vpop.f32.mrb[180].mxu0 }
 0x2ae   : > { %v10106_v47 = vpop.f32.mrb[181].mxu0  ;;  %v10108_v44 = vpack.c.bf16 %v2546_v5, %v2545_v31  ;;  %v1795_v26 = vadd.f32 %v9984_v35, %v1511_v12 }
 0x2af   : > { %12584 = vst [vmem:[#allocation136_spill] sm:$0xff] %v10106_v47  ;;  %v1515_v18 = vpop.f32.mrb[182].mxu0  ;;  %v10110_v24 = vpack.c.bf16 %v2544_v28, %v2543_v62 }
 0x2b0   : > { %12585 = vst [vmem:[#allocation137_spill] sm:$0xff] %v10108_v44  ;;  %v1796_v57 = vadd.f32 %v9984_v35, %v1515_v18  ;;  %v10114_v43 = vpop.f32.mrb[183].mxu0 }
 0x2b1   : > { %12586 = vst [vmem:[#allocation138_spill] sm:$0xff] %v10110_v24  ;;  %12587 = vst [vmem:[#allocation139_spill] sm:$0xff] %v10114_v43 }
 0x2b2   : > { %v1878_v60 = vpack.c.bf16 %v1796_v57, %v1795_v26 }
 0x2b4   : > { %8204 = vmatmul.mubr.bf16.gmra.mrb[152].mxu1 %v1878_v60 }
 0x2b5   : > { %v1521_v8 = vpop.f32.mrb[184].mxu0 }
 0x2b6   : > { %v10116_v2 = vpop.f32.mrb[185].mxu0  ;;  %v1797_v5 = vadd.f32 %v9984_v35, %v1521_v8 }
 0x2b7   : > { %12588 = vst [vmem:[#allocation140_spill] sm:$0xff] %v10116_v2  ;;  %v1525_v15 = vpop.f32.mrb[186].mxu0  ;;  %v8153_v16 = vpop.f32.mrb[100].mxu1 }
 0x2b8   : > { %v1798_v28 = vadd.f32 %v9984_v35, %v1525_v15  ;;  %v2153_v31 = vadd.f32 %v8153_v16, %v9862_v42  ;;  %v10121_v9 = vpop.f32.mrb[187].mxu0  ;;  %v2144_v18 = vpop.f32.mrb[101].mxu1 }
 0x2b9   : > { %12589 = vst [vmem:[#allocation141_spill] sm:$0xff] %v10121_v9  ;;  %v2145_v62 = vadd.f32 %v9862_v42, %v2144_v18  ;;  %v8154_v12 = vpop.f32.mrb[102].mxu1 }
 0x2ba   : > { %v2156_v3 = vadd.f32 %v8154_v12, %v9862_v42  ;;  %v2147_v26 = vpop.f32.mrb[103].mxu1  ;;  %v1879_v57 = vpack.c.bf16 %v1798_v28, %v1797_v5  ;;  %v2549_v2 = vmax.f32 %v2153_v31, 0.0  ;;  %v12590_v31 = vpack.c.bf16 %v9722_v56, %v9718_v1 }
 0x2bb   : > { %v2148_v60 = vadd.f32 %v9862_v42, %v2147_v26  ;;  %v2547_v8 = vmax.f32 %v2145_v62, 0.0 }
 0x2bc   : > { %v2550_v43 = vmax.f32 %v2156_v3, 0.0  ;;  %8207 = vmatprep.mubr.bf16.mxu1 %v1879_v57 }
 0x2bd   : > { %v2548_v47 = vmax.f32 %v2148_v60, 0.0  ;;  %v1531_v15 = vpop.f32.mrb[188].mxu0 }
 0x2be   : > { %v10126_v44 = vpop.f32.mrb[189].mxu0  ;;  %v10128_v16 = vpack.c.bf16 %v2550_v43, %v2549_v2  ;;  %v1799_v18 = vadd.f32 %v9984_v35, %v1531_v15  ;;  %v12592_v15 = vpack.c.bf16 %v9758_v38, %v9754_v49 }
 0x2bf   : > { %v1535_v9 = vpop.f32.mrb[190].mxu0  ;;  %v10130_v24 = vpack.c.bf16 %v2548_v47, %v2547_v8  ;;  %v12591_v8 = vpack.c.bf16 %v9741_v34, %v9737_v33 }
 0x2c0   : > { %v1800_v12 = vadd.f32 %v9984_v35, %v1535_v9  ;;  %v10134_v5 = vpop.f32.mrb[191].mxu0 }
 0x2c2   : > { %v1880_v28 = vpack.c.bf16 %v1800_v12, %v1799_v18 }
 0x2c4   : > { %8208 = vmatmul.mubr.bf16.gmra.mrb[156].mxu1 %v1880_v28  ;;  %v12593_v28 = vpack.c.bf16 %v9772_v46, %v9768_v59  ;;  %v12595_v59 = vpack.c.bf16 %v9804_v17, %v9800_v13  ;;  %v12598_v13 = vpack.c.bf16 %v9852_v21, %v9848_v55  ;;  %v12600_v55 = vpack.c.bf16 %v9890_v58, %v9886_v0 }
 0x2c5   : > { %8211 = vmatprep.mubr.bf16.mxu1 %v12590_v31  ;;  %v12594_v31 = vpack.c.bf16 %v9788_v4, %v9784_v54  ;;  %v12596_v4 = vpack.c.bf16 %v9820_v40, %v9816_v25 }
 0x2c7   : > { %v8157_v62 = vpop.f32.mrb[104].mxu1 }
 0x2c8   : > { %v2169_v3 = vadd.f32 %v8157_v62, %v9862_v42  ;;  %v2160_v43 = vpop.f32.mrb[105].mxu1 }
 0x2c9   : > { %v2161_v2 = vadd.f32 %v9862_v42, %v2160_v43  ;;  %v8158_v47 = vpop.f32.mrb[106].mxu1 }
 0x2ca   : > { %v2172_v26 = vadd.f32 %v8158_v47, %v9862_v42  ;;  %v2163_v57 = vpop.f32.mrb[107].mxu1  ;;  %v2553_v9 = vmax.f32 %v2169_v3, 0.0 }
 0x2cb   : > { %v2164_v35 = vadd.f32 %v9862_v42, %v2163_v57  ;;  %v2551_v1 = vmax.f32 %v2161_v2, 0.0  ;;  %v8964_v57 = vld [vmem:[#allocation4 + $0xa8] sm:$0xff]  }
 0x2cc   : > { %v2554_v60 = vmax.f32 %v2172_v26, 0.0  ;;  %8212 = vmatmul.mubr.bf16.gmra.mrb[160].mxu1 %v12591_v8  ;;  %8397 = vmatprep.subr.bf16.mxu0 %v8964_v57 }
 0x2cd   : > { %v2552_v56 = vmax.f32 %v2164_v35, 0.0  ;;  %8215 = vmatprep.mubr.bf16.mxu1 %v12592_v15  ;;  %8398 = vmatpush3.bf16.msra.mxu0 %v8964_v57 }
 0x2ce   : > { %v10149_v18 = vpack.c.bf16 %v2554_v60, %v2553_v9  ;;  %v12597_v60 = vpack.c.bf16 %v9836_v10, %v9832_v39  ;;  %v12599_v10 = vpack.c.bf16 %v9870_v48, %v9866_v30 }
 0x2cf   : > { %v10151_v12 = vpack.c.bf16 %v2552_v56, %v2551_v1 }
 0x2d4   : > { %8216 = vmatmul.mubr.bf16.gmra.mrb[164].mxu1 %v12593_v28 }
 0x2d5   : > { %8219 = vmatprep.mubr.bf16.mxu1 %v12594_v31 }
 0x2d7   : > { %v8161_v33 = vpop.f32.mrb[108].mxu1 }
 0x2d8   : > { %v2185_v34 = vadd.f32 %v8161_v33, %v9862_v42  ;;  %v2176_v62 = vpop.f32.mrb[109].mxu1 }
 0x2d9   : > { %v2177_v3 = vadd.f32 %v9862_v42, %v2176_v62  ;;  %v8162_v49 = vpop.f32.mrb[110].mxu1 }
 0x2da   : > { %v2188_v38 = vadd.f32 %v8162_v49, %v9862_v42  ;;  %v2179_v43 = vpop.f32.mrb[111].mxu1  ;;  %v2557_v47 = vmax.f32 %v2185_v34, 0.0  ;;  %v12602_v49 = vpack.c.bf16 %v9930_v29, %v9926_v36  ;;  %v12604_v29 = vpack.c.bf16 %v9970_v63, %v9966_v14 }
 0x2db   : > { %v2180_v2 = vadd.f32 %v9862_v42, %v2179_v43  ;;  %v2555_v54 = vmax.f32 %v2177_v3, 0.0  ;;  %v12601_v3 = vpack.c.bf16 %v9910_v61, %v9906_v53  ;;  %v12603_v53 = vpack.c.bf16 %v9950_v41, %v9946_v22 }
 0x2dc   : > { %v2558_v26 = vmax.f32 %v2188_v38, 0.0  ;;  %8220 = vmatmul.mubr.bf16.gmra.mrb[168].mxu1 %v12595_v59 }
 0x2dd   : > { %v2556_v46 = vmax.f32 %v2180_v2, 0.0  ;;  %8223 = vmatprep.mubr.bf16.mxu1 %v12596_v4  ;;  %v12605_v4 = vpack.c.bf16 %v9992_v50, %v9988_v52 }
 0x2de   : > { %v10169_v35 = vpack.c.bf16 %v2558_v26, %v2557_v47 }
 0x2df   : > { %v10171_v9 = vpack.c.bf16 %v2556_v46, %v2555_v54 }
 0x2e4   : > { %8224 = vmatmul.mubr.bf16.gmra.mrb[172].mxu1 %v12597_v60 }
 0x2e5   : > { %8227 = vmatprep.mubr.bf16.mxu1 %v12598_v13 }
 0x2e7   : > { %v8165_v17 = vpop.f32.mrb[112].mxu1 }
 0x2e8   : > { %v2201_v8 = vadd.f32 %v8165_v17, %v9862_v42  ;;  %v2192_v40 = vpop.f32.mrb[113].mxu1 }
 0x2e9   : > { %v2193_v25 = vadd.f32 %v9862_v42, %v2192_v40  ;;  %v8166_v1 = vpop.f32.mrb[114].mxu1 }
 0x2ea   : > { %v2204_v56 = vadd.f32 %v8166_v1, %v9862_v42  ;;  %v2195_v15 = vpop.f32.mrb[115].mxu1  ;;  %v2561_v31 = vmax.f32 %v2201_v8, 0.0 }
 0x2eb   : > { %v2196_v28 = vadd.f32 %v9862_v42, %v2195_v15  ;;  %v2559_v39 = vmax.f32 %v2193_v25, 0.0  ;;  %v8965_v25 = vld [vmem:[#allocation4 + $0xb0] sm:$0xff]  }
 0x2ec   : > { %v2562_v33 = vmax.f32 %v2204_v56, 0.0  ;;  %8228 = vmatmul.mubr.bf16.gmra.mrb[176].mxu1 %v12599_v10  ;;  %8399 = vmatprep.subr.bf16.mxu0 %v8965_v25 }
 0x2ed   : > { %v2560_v21 = vmax.f32 %v2196_v28, 0.0  ;;  %8231 = vmatprep.mubr.bf16.mxu1 %v12600_v55  ;;  %8400 = vmatpush3.bf16.msra.mxu0 %v8965_v25  ;;  %v12611_v25 = vld [vmem:[#allocation138_spill] sm:$0xff] }
 0x2ee   : > { %v10189_v34 = vpack.c.bf16 %v2562_v33, %v2561_v31 }
 0x2ef   : > { %v10191_v62 = vpack.c.bf16 %v2560_v21, %v2559_v39 }
 0x2f4   : > { %8232 = vmatmul.mubr.bf16.gmra.mrb[180].mxu1 %v12601_v3 }
 0x2f5   : > { %8235 = vmatprep.mubr.bf16.mxu1 %v12602_v49 }
 0x2f7   : > { %v8169_v30 = vpop.f32.mrb[116].mxu1 }
 0x2f8   : > { %v2217_v48 = vadd.f32 %v8169_v30, %v9862_v42  ;;  %v2208_v38 = vpop.f32.mrb[117].mxu1 }
 0x2f9   : > { %v2209_v43 = vadd.f32 %v9862_v42, %v2208_v38  ;;  %v8170_v0 = vpop.f32.mrb[118].mxu1 }
 0x2fa   : > { %v2220_v58 = vadd.f32 %v8170_v0, %v9862_v42  ;;  %v2211_v2 = vpop.f32.mrb[119].mxu1  ;;  %v2565_v26 = vmax.f32 %v2217_v48, 0.0 }
 0x2fb   : > { %v2212_v47 = vadd.f32 %v9862_v42, %v2211_v2  ;;  %v2563_v61 = vmax.f32 %v2209_v43, 0.0 }
 0x2fc   : > { %v2566_v59 = vmax.f32 %v2220_v58, 0.0  ;;  %8236 = vmatmul.mubr.bf16.gmra.mrb[184].mxu1 %v12603_v53  ;;  %v12607_v53 = vld [vmem:[#allocation126_spill] sm:$0xff] }
 0x2fd   : > { %v2564_v36 = vmax.f32 %v2212_v47, 0.0  ;;  %8239 = vmatprep.mubr.bf16.mxu1 %v12604_v29 }
 0x2fe   : > { %v10209_v54 = vpack.c.bf16 %v2566_v59, %v2565_v26  ;;  %v12606_v59 = vld [vmem:[#allocation120_spill] sm:$0xff] }
 0x2ff   : > { %v10211_v46 = vpack.c.bf16 %v2564_v36, %v2563_v61 }
 0x304   : > { %8240 = vmatmul.mubr.bf16.gmra.mrb[188].mxu1 %v12605_v4 }
 0x305   : > { %8259 = vmatprep.mubr.bf16.mxu1 %v9896_v6 }
 0x307   : > { %v8173_v57 = vpop.f32.mrb[120].mxu1 }
 0x308   : > { %v2233_v22 = vadd.f32 %v8173_v57, %v9862_v42  ;;  %v2224_v41 = vpop.f32.mrb[121].mxu1 }
 0x309   : > { %v2225_v60 = vadd.f32 %v9862_v42, %v2224_v41  ;;  %v8174_v13 = vpop.f32.mrb[122].mxu1 }
 0x30a   : > { %v2236_v14 = vadd.f32 %v8174_v13, %v9862_v42  ;;  %v2227_v63 = vpop.f32.mrb[123].mxu1  ;;  %v2569_v8 = vmax.f32 %v2233_v22, 0.0  ;;  %v12608_v13 = vld [vmem:[#allocation125_spill] sm:$0xff] }
 0x30b   : > { %v2228_v17 = vadd.f32 %v9862_v42, %v2227_v63  ;;  %v2567_v52 = vmax.f32 %v2225_v60, 0.0 }
 0x30c   : > { %v2570_v40 = vmax.f32 %v2236_v14, 0.0  ;;  %8260 = vmatmul.mubr.bf16.vlgmr.msra.gmra.mrb[192].mxu1 %v9892_v45 }
 0x30d   : > { %v2568_v50 = vmax.f32 %v2228_v17, 0.0  ;;  %8263 = vmatprep.mubr.bf16.mxu1 %v9936_v7  ;;  %v12609_v17 = vld [vmem:[#allocation132_spill] sm:$0xff] }
 0x30e   : > { %v10223_v6 = vpack.c.bf16 %v2570_v40, %v2569_v8  ;;  %v8966_v40 = vld [vmem:[#allocation4 + $0xb8] sm:$0xff]  }
 0x30f   : > { %v10225_v1 = vpack.c.bf16 %v2568_v50, %v2567_v52  ;;  %8401 = vmatprep.subr.bf16.mxu0 %v8966_v40  ;;  %v12610_v50 = vld [vmem:[#allocation131_spill] sm:$0xff] }
 0x310   : > { %8402 = vmatpush3.bf16.msra.mxu0 %v8966_v40 }
 0x314   : > { %8264 = vmatmul.mubr.bf16.gmra.mrb[196].mxu1 %v9934_v37 }
 0x315   : > { %8267 = vmatprep.mubr.bf16.mxu1 %v9976_v23 }
 0x317   : > { %v8177_v56 = vpop.f32.mrb[124].mxu1 }
 0x318   : > { %v2249_v15 = vadd.f32 %v8177_v56, %v9862_v42  ;;  %v2240_v28 = vpop.f32.mrb[125].mxu1  ;;  %v8967_v56 = vld [vmem:[%s12440_s3] ss:$8 sps:$4 sm:$0xff]  }
 0x319   : > { %v2241_v45 = vadd.f32 %v9862_v42, %v2240_v28  ;;  %v8178_v31 = vpop.f32.mrb[126].mxu1 }
 0x31a   : > { %v2252_v7 = vadd.f32 %v8178_v31, %v9862_v42  ;;  %v2243_v33 = vpop.f32.mrb[127].mxu1  ;;  %v2573_v39 = vmax.f32 %v2249_v15, 0.0  ;;  %v8969_v15 = vld [vmem:[%s12440_s3 + $0x4] ss:$8 sps:$4 sm:$0xff]  }
 0x31b   : > { %v2244_v10 = vadd.f32 %v9862_v42, %v2243_v33  ;;  %v2571_v55 = vmax.f32 %v2241_v45, 0.0  ;;  %4413 = vmatprep.subr.bf16.mxu1 %v8969_v15 }
 0x31c   : > { %v2574_v21 = vmax.f32 %v2252_v7, 0.0  ;;  %8268 = vmatmul.mubr.bf16.gmra.mrb[200].mxu1 %v9974_v51 }
 0x31d   : > { %v2572_v37 = vmax.f32 %v2244_v10, 0.0  ;;  %8271 = vmatprep.mubr.bf16.mxu1 %v10010_v27  ;;  %4414 = vmatpush1.bf16.msra.mxu1 %v8967_v56 }
 0x31e   : > { %v10235_v23 = vpack.c.bf16 %v2574_v21, %v2573_v39 }
 0x31f   : > { %v10237_v3 = vpack.c.bf16 %v2572_v37, %v2571_v55 }
 0x324   : > { %8272 = vmatmul.mubr.bf16.gmra.mrb[204].mxu1 %v10008_v19 }
 0x325   : > { %8275 = vmatprep.mubr.bf16.mxu1 %v10030_v32 }
 0x327   : > { %v8181_v49 = vpop.f32.mrb[128].mxu1 }
 0x328   : > { %v2265_v30 = vadd.f32 %v8181_v49, %v9862_v42  ;;  %v2256_v48 = vpop.f32.mrb[129].mxu1  ;;  %v12612_v49 = vld [vmem:[#allocation137_spill] sm:$0xff] }
 0x329   : > { %v2257_v38 = vadd.f32 %v9862_v42, %v2256_v48  ;;  %v8182_v43 = vpop.f32.mrb[130].mxu1 }
 0x32a   : > { %v2268_v51 = vadd.f32 %v8182_v43, %v9862_v42  ;;  %v2259_v0 = vpop.f32.mrb[131].mxu1  ;;  %v2577_v58 = vmax.f32 %v2265_v30, 0.0 }
 0x32b   : > { %v2260_v27 = vadd.f32 %v9862_v42, %v2259_v0  ;;  %v2575_v47 = vmax.f32 %v2257_v38, 0.0  ;;  %v10283_v0 = vld [vmem:[#allocation6 + $0x1] ss:$0 sm:$0xff] }
 0x32c   : > { %v2578_v2 = vmax.f32 %v2268_v51, 0.0  ;;  %8276 = vmatmul.mubr.bf16.gmra.mrb[208].mxu1 %v10028_v20 }
 0x32d   : > { %v2576_v19 = vmax.f32 %v2260_v27, 0.0  ;;  %8279 = vmatprep.mubr.bf16.mxu1 %v10050_v11 }
 0x32e   : > { %v10247_v32 = vpack.c.bf16 %v2578_v2, %v2577_v58 }
 0x32f   : > { %v10249_v26 = vpack.c.bf16 %v2576_v19, %v2575_v47 }
 0x334   : > { %8280 = vmatmul.mubr.bf16.gmra.mrb[212].mxu1 %v12606_v59 }
 0x335   : > { %8283 = vmatprep.mubr.bf16.mxu1 %v12607_v53 }
 0x337   : > { %v8185_v61 = vpop.f32.mrb[132].mxu1 }
 0x338   : > { %v2281_v36 = vadd.f32 %v8185_v61, %v9862_v42  ;;  %v2272_v29 = vpop.f32.mrb[133].mxu1 }
 0x339   : > { %v2273_v4 = vadd.f32 %v9862_v42, %v2272_v29  ;;  %v8186_v57 = vpop.f32.mrb[134].mxu1  ;;  %v8970_v29 = vld [vmem:[%s12440_s3 + $0x10] ss:$8 sps:$4 sm:$0xff]  }
 0x33a   : > { %v2284_v20 = vadd.f32 %v8186_v57, %v9862_v42  ;;  %v2275_v22 = vpop.f32.mrb[135].mxu1  ;;  %v2581_v41 = vmax.f32 %v2281_v36, 0.0 }
 0x33b   : > { %v2276_v11 = vadd.f32 %v9862_v42, %v2275_v22  ;;  %v2579_v14 = vmax.f32 %v2273_v4, 0.0 }
 0x33c   : > { %v2582_v60 = vmax.f32 %v2284_v20, 0.0  ;;  %8284 = vmatmul.mubr.bf16.gmra.mrb[216].mxu1 %v12608_v13 }
 0x33d   : > { %v2580_v63 = vmax.f32 %v2276_v11, 0.0  ;;  %8287 = vmatprep.mubr.bf16.mxu1 %v12609_v17 }
 0x33e   : > { %v10259_v8 = vpack.c.bf16 %v2582_v60, %v2581_v41 }
 0x33f   : > { %v10261_v52 = vpack.c.bf16 %v2580_v63, %v2579_v14 }
 0x344   : > { %8288 = vmatmul.mubr.bf16.gmra.mrb[220].mxu1 %v12610_v50 }
 0x345   : > { %8291 = vmatprep.mubr.bf16.mxu1 %v12611_v25 }
 0x347   : > { %v8189_v28 = vpop.f32.mrb[136].mxu1 }
 0x348   : > { %v2297_v45 = vadd.f32 %v8189_v28, %v9862_v42  ;;  %v2288_v31 = vpop.f32.mrb[137].mxu1 }
 0x349   : > { %v2289_v7 = vadd.f32 %v9862_v42, %v2288_v31  ;;  %v8190_v33 = vpop.f32.mrb[138].mxu1 }
 0x34a   : > { %v2300_v10 = vadd.f32 %v8190_v33, %v9862_v42  ;;  %v2291_v39 = vpop.f32.mrb[139].mxu1  ;;  %v2585_v55 = vmax.f32 %v2297_v45, 0.0 }
 0x34b   : > { %v2292_v21 = vadd.f32 %v9862_v42, %v2291_v39  ;;  %v2583_v30 = vmax.f32 %v2289_v7, 0.0 }
 0x34c   : > { %v2586_v37 = vmax.f32 %v2300_v10, 0.0  ;;  %8292 = vmatmul.mubr.bf16.gmra.mrb[224].mxu1 %v12612_v49  ;;  %v8973_v10 = vld [vmem:[%s12440_s3 + $0x20] ss:$8 sps:$4 sm:$0xff]  }
 0x34d   : > { %v2584_v48 = vmax.f32 %v2292_v21, 0.0  ;;  %8295 = vmatprep.mubr.bf16.mxu1 %v10130_v24 }
 0x34e   : > { %v10277_v38 = vpack.c.bf16 %v2586_v37, %v2585_v55 }
 0x34f   : > { %v10279_v43 = vpack.c.bf16 %v2584_v48, %v2583_v30 }
 0x354   : > { %8296 = vmatmul.mubr.bf16.gmra.mrb[228].mxu1 %v10128_v16 }
 0x355   : > { %8299 = vmatprep.mubr.bf16.mxu1 %v10151_v12 }
 0x357   : > { %v8193_v51 = vpop.f32.mrb[140].mxu1 }
 0x358   : > { %v2313_v42 = vadd.f32 %v10283_v0, %v8193_v51  ;;  %v2304_v27 = vpop.f32.mrb[141].mxu1 }
 0x359   : > { %v2305_v58 = vadd.f32 %v10283_v0, %v2304_v27  ;;  %v8194_v2 = vpop.f32.mrb[142].mxu1 }
 0x35a   : > { %v2316_v47 = vadd.f32 %v10283_v0, %v8194_v2  ;;  %v2307_v24 = vpop.f32.mrb[143].mxu1  ;;  %v2589_v59 = vmax.f32 %v2313_v42, 0.0 }
 0x35b   : > { %v2308_v19 = vadd.f32 %v10283_v0, %v2307_v24  ;;  %v2587_v16 = vmax.f32 %v2305_v58, 0.0 }
 0x35c   : > { %v2590_v53 = vmax.f32 %v2316_v47, 0.0  ;;  %8300 = vmatmul.mubr.bf16.gmra.mrb[232].mxu1 %v10149_v18  ;;  %v8972_v18 = vld [vmem:[%s12440_s3 + $0x14] ss:$8 sps:$4 sm:$0xff]  }
 0x35d   : > { %v2588_v12 = vmax.f32 %v2308_v19, 0.0  ;;  %8303 = vmatprep.mubr.bf16.mxu1 %v10171_v9  ;;  %4415 = vmatprep.subr.bf16.mxu1 %v8972_v18 }
 0x35e   : > { %v10291_v61 = vpack.c.bf16 %v2590_v53, %v2589_v59  ;;  %4416 = vmatpush1.bf16.msra.mxu1 %v8970_v29 }
 0x35f   : > { %v10293_v36 = vpack.c.bf16 %v2588_v12, %v2587_v16 }
 0x364   : > { %8304 = vmatmul.mubr.bf16.gmra.mrb[236].mxu1 %v10169_v35 }
 0x365   : > { %8307 = vmatprep.mubr.bf16.mxu1 %v10191_v62 }
 0x367   : > { %v8197_v4 = vpop.f32.mrb[144].mxu1 }
 0x368   : > { %v2329_v57 = vadd.f32 %v10283_v0, %v8197_v4  ;;  %v2320_v9 = vpop.f32.mrb[145].mxu1 }
 0x369   : > { %v2321_v20 = vadd.f32 %v10283_v0, %v2320_v9  ;;  %v8198_v22 = vpop.f32.mrb[146].mxu1 }
 0x36a   : > { %v2332_v35 = vadd.f32 %v10283_v0, %v8198_v22  ;;  %v2323_v62 = vpop.f32.mrb[147].mxu1  ;;  %v2593_v41 = vmax.f32 %v2329_v57, 0.0 }
 0x36b   : > { %v2324_v11 = vadd.f32 %v10283_v0, %v2323_v62  ;;  %v2591_v13 = vmax.f32 %v2321_v20, 0.0 }
 0x36c   : > { %v2594_v60 = vmax.f32 %v2332_v35, 0.0  ;;  %8308 = vmatmul.mubr.bf16.gmra.mrb[240].mxu1 %v10189_v34 }
 0x36d   : > { %v2592_v14 = vmax.f32 %v2324_v11, 0.0  ;;  %8311 = vmatprep.mubr.bf16.mxu1 %v10211_v46 }
 0x36e   : > { %v10309_v63 = vpack.c.bf16 %v2594_v60, %v2593_v41 }
 0x36f   : > { %v10311_v17 = vpack.c.bf16 %v2592_v14, %v2591_v13  ;;  %v8976_v13 = vld [vmem:[%s12440_s3 + $0x30] ss:$8 sps:$4 sm:$0xff]   ;;  %v8978_v14 = vld [vmem:[%s12440_s3 + $0x34] ss:$8 sps:$4 sm:$0xff]  }
 0x374   : > { %8312 = vmatmul.mubr.bf16.gmra.mrb[244].mxu1 %v10209_v54 }
 0x375   : > { %8315 = vmatprep.mubr.bf16.mxu1 %v10225_v1 }
 0x377   : > { %v8201_v40 = vpop.f32.mrb[148].mxu1 }
 0x378   : > { %v2345_v50 = vadd.f32 %v10283_v0, %v8201_v40  ;;  %v2336_v25 = vpop.f32.mrb[149].mxu1 }
 0x379   : > { %v2337_v56 = vadd.f32 %v10283_v0, %v2336_v25  ;;  %v8202_v15 = vpop.f32.mrb[150].mxu1 }
 0x37a   : > { %v2348_v34 = vadd.f32 %v10283_v0, %v8202_v15  ;;  %v2339_v28 = vpop.f32.mrb[151].mxu1  ;;  %v2597_v45 = vmax.f32 %v2345_v50, 0.0 }
 0x37b   : > { %v2340_v46 = vadd.f32 %v10283_v0, %v2339_v28  ;;  %v2595_v7 = vmax.f32 %v2337_v56, 0.0 }
 0x37c   : > { %v2598_v31 = vmax.f32 %v2348_v34, 0.0  ;;  %8316 = vmatmul.mubr.bf16.gmra.mrb[248].mxu1 %v10223_v6  ;;  %v8975_v6 = vld [vmem:[%s12440_s3 + $0x24] ss:$8 sps:$4 sm:$0xff]  }
 0x37d   : > { %v2596_v54 = vmax.f32 %v2340_v46, 0.0  ;;  %8319 = vmatprep.mubr.bf16.mxu1 %v10237_v3  ;;  %4417 = vmatprep.subr.bf16.mxu1 %v8975_v6 }
 0x37e   : > { %v10321_v1 = vpack.c.bf16 %v2598_v31, %v2597_v45  ;;  %4418 = vmatpush1.bf16.msra.mxu1 %v8973_v10 }
 0x37f   : > { %v10323_v33 = vpack.c.bf16 %v2596_v54, %v2595_v7  ;;  %4419 = vmatprep.subr.bf16.mxu1 %v8978_v14 }
 0x382   : > { %4420 = vmatpush1.bf16.msra.mxu1 %v8976_v13 }
 0x384   : > { %8320 = vmatmul.mubr.bf16.gmra.mrb[252].mxu1 %v10235_v23 }
 0x385   : > { %8323 = vmatprep.mubr.bf16.mxu1 %v10249_v26 }
 0x387   : > { %v8205_v39 = vpop.f32.mrb[152].mxu1 }
 0x388   : > { %v2361_v3 = vadd.f32 %v10283_v0, %v8205_v39  ;;  %v2352_v21 = vpop.f32.mrb[153].mxu1 }
 0x389   : > { %v2353_v55 = vadd.f32 %v10283_v0, %v2352_v21  ;;  %v8206_v37 = vpop.f32.mrb[154].mxu1 }
 0x38a   : > { %v2364_v23 = vadd.f32 %v10283_v0, %v8206_v37  ;;  %v2355_v26 = vpop.f32.mrb[155].mxu1  ;;  %v2601_v30 = vmax.f32 %v2361_v3, 0.0 }
 0x38b   : > { %v2356_v49 = vadd.f32 %v10283_v0, %v2355_v26  ;;  %v2599_v51 = vmax.f32 %v2353_v55, 0.0 }
 0x38c   : > { %v2602_v48 = vmax.f32 %v2364_v23, 0.0  ;;  %8324 = vmatmul.mubr.bf16.gmra.mrb[0].mxu1 %v10247_v32 }
 0x38d   : > { %v2600_v42 = vmax.f32 %v2356_v49, 0.0  ;;  %8327 = vmatprep.mubr.bf16.mxu1 %v10261_v52 }
 0x38e   : > { %v10339_v27 = vpack.c.bf16 %v2602_v48, %v2601_v30 }
 0x38f   : > { %v10341_v58 = vpack.c.bf16 %v2600_v42, %v2599_v51 }
 0x394   : > { %8328 = vmatmul.mubr.bf16.gmra.mrb[4].mxu1 %v10259_v8 }
 0x395   : > { %8331 = vmatprep.mubr.bf16.mxu1 %v10279_v43 }
 0x397   : > { %v8209_v2 = vpop.f32.mrb[156].mxu1 }
 0x398   : > { %v2377_v47 = vadd.f32 %v10283_v0, %v8209_v2  ;;  %v2368_v24 = vpop.f32.mrb[157].mxu1 }
 0x399   : > { %v2369_v19 = vadd.f32 %v10283_v0, %v2368_v24  ;;  %v8210_v59 = vpop.f32.mrb[158].mxu1 }
 0x39a   : > { %v2380_v32 = vadd.f32 %v10283_v0, %v8210_v59  ;;  %v2371_v53 = vpop.f32.mrb[159].mxu1  ;;  %v2605_v16 = vmax.f32 %v2377_v47, 0.0 }
 0x39b   : > { %v2372_v52 = vadd.f32 %v10283_v0, %v2371_v53  ;;  %v2603_v29 = vmax.f32 %v2369_v19, 0.0 }
 0x39c   : > { %v2606_v12 = vmax.f32 %v2380_v32, 0.0  ;;  %8332 = vmatmul.mubr.bf16.gmra.mrb[8].mxu1 %v10277_v38 }
 0x39d   : > { %v2604_v8 = vmax.f32 %v2372_v52, 0.0  ;;  %8335 = vmatprep.mubr.bf16.mxu1 %v10293_v36 }
 0x39e   : > { %v10351_v43 = vpack.c.bf16 %v2606_v12, %v2605_v16 }
 0x39f   : > { %v8213_v18 = vpop.f32.mrb[160].mxu1  ;;  %v10353_v4 = vpack.c.bf16 %v2604_v8, %v2603_v29 }
 0x3a0   : > { %v2393_v57 = vadd.f32 %v10283_v0, %v8213_v18  ;;  %v2384_v9 = vpop.f32.mrb[161].mxu1 }
 0x3a1   : > { %v2385_v20 = vadd.f32 %v10283_v0, %v2384_v9  ;;  %v8214_v22 = vpop.f32.mrb[162].mxu1 }
 0x3a2   : > { %v2396_v35 = vadd.f32 %v10283_v0, %v8214_v22  ;;  %v2387_v62 = vpop.f32.mrb[163].mxu1  ;;  %v2609_v11 = vmax.f32 %v2393_v57, 0.0 }
 0x3a3   : > { %v2388_v38 = vadd.f32 %v10283_v0, %v2387_v62  ;;  %v2607_v36 = vmax.f32 %v2385_v20, 0.0 }
 0x3a4   : > { %v2610_v41 = vmax.f32 %v2396_v35, 0.0  ;;  %8336 = vmatmul.mubr.bf16.gmra.mrb[12].mxu1 %v10291_v61 }
 0x3a5   : > { %v2608_v60 = vmax.f32 %v2388_v38, 0.0  ;;  %8339 = vmatprep.mubr.bf16.mxu1 %v10311_v17 }
 0x3a6   : > { %v10367_v40 = vpack.c.bf16 %v2610_v41, %v2609_v11 }
 0x3a7   : > { %v8217_v50 = vpop.f32.mrb[164].mxu1  ;;  %v2687_v25 = vpack.c.bf16 %v2608_v60, %v2607_v36  ;;  %v8979_v36 = vld [vmem:[%s12440_s3 + $0x40] ss:$8 sps:$4 sm:$0xff]   ;;  %v8981_v60 = vld [vmem:[%s12440_s3 + $0x44] ss:$8 sps:$4 sm:$0xff]  }
 0x3a8   : > { %v2409_v56 = vadd.f32 %v10283_v0, %v8217_v50  ;;  %v2400_v61 = vpop.f32.mrb[165].mxu1  ;;  %4421 = vmatprep.subr.bf16.mxu1 %v8981_v60 }
 0x3a9   : > { %v2401_v15 = vadd.f32 %v10283_v0, %v2400_v61  ;;  %v8218_v17 = vpop.f32.mrb[166].mxu1  ;;  %4422 = vmatpush1.bf16.msra.mxu1 %v8979_v36  ;;  %v8984_v36 = vld [vmem:[%s12440_s3 + $0x54] ss:$8 sps:$4 sm:$0xff]  }
 0x3aa   : > { %v2412_v34 = vadd.f32 %v10283_v0, %v8218_v17  ;;  %v2403_v28 = vpop.f32.mrb[167].mxu1  ;;  %v2613_v45 = vmax.f32 %v2409_v56, 0.0  ;;  %4423 = vmatprep.subr.bf16.mxu1 %v8984_v36 }
 0x3ab   : > { %v2404_v46 = vadd.f32 %v10283_v0, %v2403_v28  ;;  %v2611_v7 = vmax.f32 %v2401_v15, 0.0 }
 0x3ac   : > { %v2614_v31 = vmax.f32 %v2412_v34, 0.0  ;;  %8340 = vmatmul.mubr.bf16.gmra.mrb[16].mxu1 %v10309_v63 }
 0x3ad   : > { %v2612_v54 = vmax.f32 %v2404_v46, 0.0  ;;  %8343 = vmatprep.mubr.bf16.mxu1 %v10323_v33 }
 0x3ae   : > { %v10375_v10 = vpack.c.bf16 %v2614_v31, %v2613_v45 }
 0x3af   : > { %v8221_v6 = vpop.f32.mrb[168].mxu1  ;;  %v10377_v39 = vpack.c.bf16 %v2612_v54, %v2611_v7 }
 0x3b0   : > { %v2425_v3 = vadd.f32 %v10283_v0, %v8221_v6  ;;  %v2416_v21 = vpop.f32.mrb[169].mxu1 }
 0x3b1   : > { %v2417_v55 = vadd.f32 %v10283_v0, %v2416_v21  ;;  %v8222_v37 = vpop.f32.mrb[170].mxu1 }
 0x3b2   : > { %v2428_v23 = vadd.f32 %v10283_v0, %v8222_v37  ;;  %v2419_v26 = vpop.f32.mrb[171].mxu1  ;;  %v2617_v49 = vmax.f32 %v2425_v3, 0.0 }
 0x3b3   : > { %v2420_v63 = vadd.f32 %v10283_v0, %v2419_v26  ;;  %v2615_v33 = vmax.f32 %v2417_v55, 0.0 }
 0x3b4   : > { %v2618_v30 = vmax.f32 %v2428_v23, 0.0  ;;  %8344 = vmatmul.mubr.bf16.gmra.mrb[20].mxu1 %v10321_v1 }
 0x3b5   : > { %v2616_v48 = vmax.f32 %v2420_v63, 0.0  ;;  %8347 = vmatprep.mubr.bf16.mxu1 %v10341_v58 }
 0x3b6   : > { %v10385_v51 = vpack.c.bf16 %v2618_v30, %v2617_v49 }
 0x3b7   : > { %v8225_v42 = vpop.f32.mrb[172].mxu1  ;;  %v10387_v2 = vpack.c.bf16 %v2616_v48, %v2615_v33 }
 0x3b8   : > { %v2441_v47 = vadd.f32 %v10283_v0, %v8225_v42  ;;  %v2432_v24 = vpop.f32.mrb[173].mxu1 }
 0x3b9   : > { %v2433_v19 = vadd.f32 %v10283_v0, %v2432_v24  ;;  %v8226_v59 = vpop.f32.mrb[174].mxu1 }
 0x3ba   : > { %v2444_v32 = vadd.f32 %v10283_v0, %v8226_v59  ;;  %v2435_v53 = vpop.f32.mrb[175].mxu1  ;;  %v2621_v52 = vmax.f32 %v2441_v47, 0.0 }
 0x3bb   : > { %v2436_v1 = vadd.f32 %v10283_v0, %v2435_v53  ;;  %v2619_v58 = vmax.f32 %v2433_v19, 0.0 }
 0x3bc   : > { %v2622_v16 = vmax.f32 %v2444_v32, 0.0  ;;  %8348 = vmatmul.mubr.bf16.gmra.mrb[24].mxu1 %v10339_v27 }
 0x3bd   : > { %v2620_v12 = vmax.f32 %v2436_v1, 0.0  ;;  %8351 = vmatprep.mubr.bf16.mxu1 %v10353_v4 }
 0x3be   : > { %v10395_v29 = vpack.c.bf16 %v2622_v16, %v2621_v52 }
 0x3bf   : > { %v8229_v8 = vpop.f32.mrb[176].mxu1  ;;  %v10397_v18 = vpack.c.bf16 %v2620_v12, %v2619_v58  ;;  %v10440_v58 = vld [vmem:[#allocation6 + $0x2] ss:$0 sm:$0xff] }
 0x3c0   : > { %v2457_v57 = vadd.f32 %v10283_v0, %v8229_v8  ;;  %v2448_v9 = vpop.f32.mrb[177].mxu1 }
 0x3c1   : > { %v2449_v20 = vadd.f32 %v10283_v0, %v2448_v9  ;;  %v8230_v22 = vpop.f32.mrb[178].mxu1 }
 0x3c2   : > { %v2460_v35 = vadd.f32 %v10283_v0, %v8230_v22  ;;  %v2451_v62 = vpop.f32.mrb[179].mxu1  ;;  %v2625_v38 = vmax.f32 %v2457_v57, 0.0 }
 0x3c3   : > { %v2452_v27 = vadd.f32 %v10283_v0, %v2451_v62  ;;  %v2623_v4 = vmax.f32 %v2449_v20, 0.0 }
 0x3c4   : > { %v2626_v11 = vmax.f32 %v2460_v35, 0.0  ;;  %8352 = vmatmul.mubr.bf16.gmra.mrb[28].mxu1 %v10351_v43 }
 0x3c5   : > { %v2624_v41 = vmax.f32 %v2452_v27, 0.0  ;;  %8355 = vmatprep.mubr.bf16.mxu1 %v2687_v25 }
 0x3c6   : > { %v10410_v13 = vpack.c.bf16 %v2626_v11, %v2625_v38 }
 0x3c7   : > { %v8233_v14 = vpop.f32.mrb[180].mxu1  ;;  %v10412_v50 = vpack.c.bf16 %v2624_v41, %v2623_v4  ;;  %v8982_v41 = vld [vmem:[%s12440_s3 + $0x50] ss:$8 sps:$4 sm:$0xff]  }
 0x3c8   : > { %v2473_v56 = vadd.f32 %v10283_v0, %v8233_v14  ;;  %v2464_v43 = vpop.f32.mrb[181].mxu1  ;;  %4424 = vmatpush1.bf16.msra.mxu1 %v8982_v41  ;;  %v8987_v41 = vld [vmem:[%s12440_s3 + $0x64] ss:$8 sps:$4 sm:$0xff]  }
 0x3c9   : > { %v2465_v25 = vadd.f32 %v10283_v0, %v2464_v43  ;;  %v8234_v61 = vpop.f32.mrb[182].mxu1  ;;  %4425 = vmatprep.subr.bf16.mxu1 %v8987_v41 }
 0x3ca   : > { %v2476_v15 = vadd.f32 %v10283_v0, %v8234_v61  ;;  %v2467_v17 = vpop.f32.mrb[183].mxu1  ;;  %v2629_v28 = vmax.f32 %v2473_v56, 0.0 }
 0x3cb   : > { %v2468_v34 = vadd.f32 %v10283_v0, %v2467_v17  ;;  %v2627_v45 = vmax.f32 %v2465_v25, 0.0 }
 0x3cc   : > { %v2630_v46 = vmax.f32 %v2476_v15, 0.0  ;;  %8356 = vmatmul.mubr.bf16.gmra.mrb[32].mxu1 %v10367_v40 }
 0x3cd   : > { %v2628_v31 = vmax.f32 %v2468_v34, 0.0  ;;  %8359 = vmatprep.mubr.bf16.mxu1 %v10377_v39 }
 0x3ce   : > { %v10420_v7 = vpack.c.bf16 %v2630_v46, %v2629_v28 }
 0x3cf   : > { %v8237_v54 = vpop.f32.mrb[184].mxu1  ;;  %v10422_v6 = vpack.c.bf16 %v2628_v31, %v2627_v45 }
 0x3d0   : > { %v2489_v3 = vadd.f32 %v10283_v0, %v8237_v54  ;;  %v2480_v21 = vpop.f32.mrb[185].mxu1 }
 0x3d1   : > { %v2481_v55 = vadd.f32 %v10283_v0, %v2480_v21  ;;  %v8238_v37 = vpop.f32.mrb[186].mxu1 }
 0x3d2   : > { %v2492_v23 = vadd.f32 %v10283_v0, %v8238_v37  ;;  %v2483_v26 = vpop.f32.mrb[187].mxu1  ;;  %v2633_v63 = vmax.f32 %v2489_v3, 0.0 }
 0x3d3   : > { %v2484_v40 = vadd.f32 %v10283_v0, %v2483_v26  ;;  %v2631_v39 = vmax.f32 %v2481_v55, 0.0 }
 0x3d4   : > { %v2634_v49 = vmax.f32 %v2492_v23, 0.0  ;;  %8360 = vmatmul.mubr.bf16.gmra.mrb[36].mxu1 %v10375_v10 }
 0x3d5   : > { %v2632_v30 = vmax.f32 %v2484_v40, 0.0  ;;  %8363 = vmatprep.mubr.bf16.mxu1 %v10387_v2 }
 0x3d6   : > { %v10430_v33 = vpack.c.bf16 %v2634_v49, %v2633_v63 }
 0x3d7   : > { %v8241_v48 = vpop.f32.mrb[188].mxu1  ;;  %v10432_v42 = vpack.c.bf16 %v2632_v30, %v2631_v39 }
 0x3d8   : > { %v2505_v47 = vadd.f32 %v10283_v0, %v8241_v48  ;;  %v2496_v24 = vpop.f32.mrb[189].mxu1 }
 0x3d9   : > { %v2497_v19 = vadd.f32 %v10283_v0, %v2496_v24  ;;  %v8242_v59 = vpop.f32.mrb[190].mxu1 }
 0x3da   : > { %v2508_v32 = vadd.f32 %v10283_v0, %v8242_v59  ;;  %v2499_v53 = vpop.f32.mrb[191].mxu1  ;;  %v2637_v1 = vmax.f32 %v2505_v47, 0.0 }
 0x3db   : > { %v2500_v10 = vadd.f32 %v10283_v0, %v2499_v53  ;;  %v2635_v2 = vmax.f32 %v2497_v19, 0.0 }
 0x3dc   : > { %v2638_v52 = vmax.f32 %v2508_v32, 0.0  ;;  %8364 = vmatmul.mubr.bf16.gmra.mrb[40].mxu1 %v10385_v51 }
 0x3dd   : > { %v2636_v16 = vmax.f32 %v2500_v10, 0.0  ;;  %8367 = vmatprep.mubr.bf16.mxu1 %v10397_v18 }
 0x3de   : > { %v10442_v12 = vpack.c.bf16 %v2638_v52, %v2637_v1 }
 0x3df   : > { %v8261_v8 = vpop.f32.mrb[192].mxu1  ;;  %v10444_v57 = vpack.c.bf16 %v2636_v16, %v2635_v2 }
 0x3e0   : > { %v2816_v9 = vadd.f32 %v8261_v8, %v10440_v58  ;;  %v2807_v20 = vpop.f32.mrb[193].mxu1 }
 0x3e1   : > { %v2808_v0 = vadd.f32 %v10440_v58, %v2807_v20  ;;  %v8262_v22 = vpop.f32.mrb[194].mxu1 }
 0x3e2   : > { %v2819_v35 = vadd.f32 %v8262_v22, %v10440_v58  ;;  %v2810_v51 = vpop.f32.mrb[195].mxu1  ;;  %v3320_v27 = vmax.f32 %v2816_v9, 0.0 }
 0x3e3   : > { %v2811_v62 = vadd.f32 %v10440_v58, %v2810_v51  ;;  %v3318_v38 = vmax.f32 %v2808_v0, 0.0 }
 0x3e4   : > { %v3321_v18 = vmax.f32 %v2819_v35, 0.0  ;;  %8368 = vmatmul.mubr.bf16.gmra.mrb[44].mxu1 %v10395_v29 }
 0x3e5   : > { %v3319_v11 = vmax.f32 %v2811_v62, 0.0  ;;  %8371 = vmatprep.mubr.bf16.mxu1 %v10412_v50 }
 0x3e6   : > { %v3447_v4 = vpack.c.bf16 %v3321_v18, %v3320_v27 }
 0x3e7   : > { %v8265_v60 = vpop.f32.mrb[196].mxu1  ;;  %v3446_v14 = vpack.c.bf16 %v3319_v11, %v3318_v38  ;;  %v12613_v38 = vmov 0  }
 0x3e8   : > { %v2832_v56 = vadd.f32 %v8265_v60, %v10440_v58  ;;  %v2823_v43 = vpop.f32.mrb[197].mxu1 }
 0x3e9   : > { %v2824_v29 = vadd.f32 %v10440_v58, %v2823_v43  ;;  %v8266_v25 = vpop.f32.mrb[198].mxu1  ;;  %8403 = vmatprep.mubr.bf16.mxu0 %v3446_v14 }
 0x3ea   : > { %v2835_v50 = vadd.f32 %v8266_v25, %v10440_v58  ;;  %v2826_v61 = vpop.f32.mrb[199].mxu1  ;;  %8404 = vmatmul.mubr.bf16.vlgmr.msra.gmra.mrb[192].mxu0 %v3447_v4  ;;  %v3324_v17 = vmax.f32 %v2832_v56, 0.0  ;;  %v8985_v4 = vld [vmem:[%s12440_s3 + $0x60] ss:$8 sps:$4 sm:$0xff]  }
 0x3eb   : > { %v2827_v15 = vadd.f32 %v10440_v58, %v2826_v61  ;;  %v3322_v28 = vmax.f32 %v2824_v29, 0.0  ;;  %4426 = vmatpush1.bf16.msra.mxu1 %v8985_v4 }
 0x3ec   : > { %v3325_v34 = vmax.f32 %v2835_v50, 0.0  ;;  %8372 = vmatmul.mubr.bf16.gmra.mrb[48].mxu1 %v10410_v13 }
 0x3ed   : > { %v3323_v46 = vmax.f32 %v2827_v15, 0.0  ;;  %8375 = vmatprep.mubr.bf16.mxu1 %v10422_v6 }
 0x3ee   : > { %v3449_v45 = vpack.c.bf16 %v3325_v34, %v3324_v17 }
 0x3ef   : > { %v8269_v31 = vpop.f32.mrb[200].mxu1  ;;  %v3448_v54 = vpack.c.bf16 %v3323_v46, %v3322_v28 }
 0x3f0   : > { %v2848_v3 = vadd.f32 %v8269_v31, %v10440_v58  ;;  %v2839_v21 = vpop.f32.mrb[201].mxu1 }
 0x3f1   : > { %v2840_v55 = vadd.f32 %v10440_v58, %v2839_v21  ;;  %v8270_v37 = vpop.f32.mrb[202].mxu1  ;;  %8407 = vmatprep.mubr.bf16.mxu0 %v3448_v54 }
 0x3f2   : > { %v2851_v23 = vadd.f32 %v8270_v37, %v10440_v58  ;;  %v2842_v26 = vpop.f32.mrb[203].mxu1  ;;  %8408 = vmatmul.mubr.bf16.gmra.mrb[196].mxu0 %v3449_v45  ;;  %v3328_v40 = vmax.f32 %v2848_v3, 0.0 }
 0x3f3   : > { %v2843_v13 = vadd.f32 %v10440_v58, %v2842_v26  ;;  %v3326_v6 = vmax.f32 %v2840_v55, 0.0 }
 0x3f4   : > { %v3329_v63 = vmax.f32 %v2851_v23, 0.0  ;;  %8376 = vmatmul.mubr.bf16.gmra.mrb[52].mxu1 %v10420_v7 }
 0x3f5   : > { %v3327_v49 = vmax.f32 %v2843_v13, 0.0  ;;  %8379 = vmatprep.mubr.bf16.mxu1 %v10432_v42 }
 0x3f6   : > { %v3451_v39 = vpack.c.bf16 %v3329_v63, %v3328_v40 }
 0x3f7   : > { %v8273_v30 = vpop.f32.mrb[204].mxu1  ;;  %v3450_v48 = vpack.c.bf16 %v3327_v49, %v3326_v6 }
 0x3f8   : > { %v2864_v47 = vadd.f32 %v8273_v30, %v10440_v58  ;;  %v2855_v24 = vpop.f32.mrb[205].mxu1 }
 0x3f9   : > { %v2856_v19 = vadd.f32 %v10440_v58, %v2855_v24  ;;  %v8274_v59 = vpop.f32.mrb[206].mxu1  ;;  %8411 = vmatprep.mubr.bf16.mxu0 %v3450_v48 }
 0x3fa   : > { %v2867_v32 = vadd.f32 %v8274_v59, %v10440_v58  ;;  %v2858_v53 = vpop.f32.mrb[207].mxu1  ;;  %8412 = vmatmul.mubr.bf16.gmra.mrb[200].mxu0 %v3451_v39  ;;  %v3332_v10 = vmax.f32 %v2864_v47, 0.0 }
 0x3fb   : > { %v2859_v7 = vadd.f32 %v10440_v58, %v2858_v53  ;;  %v3330_v42 = vmax.f32 %v2856_v19, 0.0 }
 0x3fc   : > { %v3333_v1 = vmax.f32 %v2867_v32, 0.0  ;;  %8380 = vmatmul.mubr.bf16.gmra.mrb[56].mxu1 %v10430_v33 }
 0x3fd   : > { %v3331_v52 = vmax.f32 %v2859_v7, 0.0  ;;  %8383 = vmatprep.mubr.bf16.mxu1 %v10444_v57 }
 0x3fe   : > { %v3453_v2 = vpack.c.bf16 %v3333_v1, %v3332_v10 }
 0x3ff   : > { %v8277_v16 = vpop.f32.mrb[208].mxu1  ;;  %v3452_v8 = vpack.c.bf16 %v3331_v52, %v3330_v42 }
 0x400   : > { %v2880_v9 = vadd.f32 %v8277_v16, %v10440_v58  ;;  %v2871_v20 = vpop.f32.mrb[209].mxu1 }
 0x401   : > { %v2872_v0 = vadd.f32 %v10440_v58, %v2871_v20  ;;  %v8278_v22 = vpop.f32.mrb[210].mxu1  ;;  %8415 = vmatprep.mubr.bf16.mxu0 %v3452_v8 }
 0x402   : > { %v2883_v35 = vadd.f32 %v8278_v22, %v10440_v58  ;;  %v2874_v51 = vpop.f32.mrb[211].mxu1  ;;  %8416 = vmatmul.mubr.bf16.gmra.mrb[204].mxu0 %v3453_v2  ;;  %v3336_v62 = vmax.f32 %v2880_v9, 0.0 }
 0x403   : > { %v2875_v33 = vadd.f32 %v10440_v58, %v2874_v51  ;;  %v3334_v57 = vmax.f32 %v2872_v0, 0.0 }
 0x404   : > { %v3337_v27 = vmax.f32 %v2883_v35, 0.0  ;;  %8384 = vmatmul.mubr.bf16.gmra.mrb[60].mxu1 %v10442_v12 }
 0x405   : > { %v3335_v18 = vmax.f32 %v2875_v33, 0.0  ;;  %4445 = vmatprep.mubr.bf16.mxu1 %v12613_v38 }
 0x406   : > { %v3455_v11 = vpack.c.bf16 %v3337_v27, %v3336_v62 }
 0x407   : > { %v8281_v36 = vpop.f32.mrb[212].mxu1  ;;  %v3454_v60 = vpack.c.bf16 %v3335_v18, %v3334_v57  ;;  %v8988_v18 = vld [vmem:[%s12440_s3 + $0x70] ss:$8 sps:$4 sm:$0xff]  }
 0x408   : > { %v2896_v14 = vadd.f32 %v8281_v36, %v10440_v58  ;;  %v2887_v56 = vpop.f32.mrb[213].mxu1 }
 0x409   : > { %v2888_v12 = vadd.f32 %v10440_v58, %v2887_v56  ;;  %v8282_v43 = vpop.f32.mrb[214].mxu1  ;;  %8419 = vmatprep.mubr.bf16.mxu0 %v3454_v60 }
 0x40a   : > { %v2899_v29 = vadd.f32 %v8282_v43, %v10440_v58  ;;  %v2890_v25 = vpop.f32.mrb[215].mxu1  ;;  %8420 = vmatmul.mubr.bf16.gmra.mrb[208].mxu0 %v3455_v11  ;;  %v3340_v61 = vmax.f32 %v2896_v14, 0.0  ;;  %v8990_v11 = vld [vmem:[%s12440_s3 + $0x74] ss:$8 sps:$4 sm:$0xff]  }
 0x40b   : > { %v2891_v50 = vadd.f32 %v10440_v58, %v2890_v25  ;;  %v3338_v17 = vmax.f32 %v2888_v12, 0.0  ;;  %4427 = vmatprep.subr.bf16.mxu1 %v8990_v11 }
 0x40c   : > { %v3341_v15 = vmax.f32 %v2899_v29, 0.0  ;;  %4428 = vmatpush1.bf16.msra.mxu1 %v8988_v18 }
 0x40d   : > { %v3339_v34 = vmax.f32 %v2891_v50, 0.0 }
 0x40e   : > { %v3457_v28 = vpack.c.bf16 %v3341_v15, %v3340_v61 }
 0x40f   : > { %v8285_v46 = vpop.f32.mrb[216].mxu1  ;;  %v3456_v45 = vpack.c.bf16 %v3339_v34, %v3338_v17 }
 0x410   : > { %v2912_v31 = vadd.f32 %v8285_v46, %v10440_v58  ;;  %v2903_v54 = vpop.f32.mrb[217].mxu1 }
 0x411   : > { %v2904_v3 = vadd.f32 %v10440_v58, %v2903_v54  ;;  %v8286_v21 = vpop.f32.mrb[218].mxu1  ;;  %8423 = vmatprep.mubr.bf16.mxu0 %v3456_v45 }
 0x412   : > { %v2915_v55 = vadd.f32 %v8286_v21, %v10440_v58  ;;  %v2906_v37 = vpop.f32.mrb[219].mxu1  ;;  %8424 = vmatmul.mubr.bf16.gmra.mrb[212].mxu0 %v3457_v28  ;;  %v3344_v26 = vmax.f32 %v2912_v31, 0.0 }
 0x413   : > { %v2907_v23 = vadd.f32 %v10440_v58, %v2906_v37  ;;  %v3342_v40 = vmax.f32 %v2904_v3, 0.0 }
 0x414   : > { %v3345_v13 = vmax.f32 %v2915_v55, 0.0 }
 0x415   : > { %v3343_v63 = vmax.f32 %v2907_v23, 0.0 }
 0x416   : > { %v3459_v6 = vpack.c.bf16 %v3345_v13, %v3344_v26 }
 0x417   : > { %v8289_v49 = vpop.f32.mrb[220].mxu1  ;;  %v3458_v39 = vpack.c.bf16 %v3343_v63, %v3342_v40 }
 0x418   : > { %v2928_v30 = vadd.f32 %v8289_v49, %v10440_v58  ;;  %v2919_v48 = vpop.f32.mrb[221].mxu1 }
 0x419   : > { %v2920_v47 = vadd.f32 %v10440_v58, %v2919_v48  ;;  %v8290_v24 = vpop.f32.mrb[222].mxu1  ;;  %8427 = vmatprep.mubr.bf16.mxu0 %v3458_v39 }
 0x41a   : > { %v2931_v19 = vadd.f32 %v8290_v24, %v10440_v58  ;;  %v2922_v59 = vpop.f32.mrb[223].mxu1  ;;  %8428 = vmatmul.mubr.bf16.gmra.mrb[216].mxu0 %v3459_v6  ;;  %v3348_v53 = vmax.f32 %v2928_v30, 0.0 }
 0x41b   : > { %v2923_v32 = vadd.f32 %v10440_v58, %v2922_v59  ;;  %v3346_v10 = vmax.f32 %v2920_v47, 0.0 }
 0x41c   : > { %v3349_v7 = vmax.f32 %v2931_v19, 0.0 }
 0x41d   : > { %v3347_v1 = vmax.f32 %v2923_v32, 0.0 }
 0x41e   : > { %v3461_v42 = vpack.c.bf16 %v3349_v7, %v3348_v53 }
 0x41f   : > { %v8293_v52 = vpop.f32.mrb[224].mxu1  ;;  %v3460_v2 = vpack.c.bf16 %v3347_v1, %v3346_v10 }
 0x420   : > { %v2944_v16 = vadd.f32 %v8293_v52, %v10440_v58  ;;  %v2935_v8 = vpop.f32.mrb[225].mxu1 }
 0x421   : > { %v2936_v9 = vadd.f32 %v10440_v58, %v2935_v8  ;;  %v8294_v20 = vpop.f32.mrb[226].mxu1  ;;  %8431 = vmatprep.mubr.bf16.mxu0 %v3460_v2 }
 0x422   : > { %v2947_v0 = vadd.f32 %v8294_v20, %v10440_v58  ;;  %v2938_v22 = vpop.f32.mrb[227].mxu1  ;;  %8432 = vmatmul.mubr.bf16.gmra.mrb[220].mxu0 %v3461_v42  ;;  %v3352_v51 = vmax.f32 %v2944_v16, 0.0 }
 0x423   : > { %v2939_v35 = vadd.f32 %v10440_v58, %v2938_v22  ;;  %v3350_v62 = vmax.f32 %v2936_v9, 0.0 }
 0x424   : > { %v3353_v33 = vmax.f32 %v2947_v0, 0.0 }
 0x425   : > { %v3351_v27 = vmax.f32 %v2939_v35, 0.0 }
 0x426   : > { %v3463_v57 = vpack.c.bf16 %v3353_v33, %v3352_v51 }
 0x427   : > { %v8297_v4 = vpop.f32.mrb[228].mxu1  ;;  %v3462_v41 = vpack.c.bf16 %v3351_v27, %v3350_v62 }
 0x428   : > { %v2960_v36 = vadd.f32 %v8297_v4, %v10440_v58  ;;  %v2951_v60 = vpop.f32.mrb[229].mxu1 }
 0x429   : > { %v2952_v14 = vadd.f32 %v10440_v58, %v2951_v60  ;;  %v8298_v56 = vpop.f32.mrb[230].mxu1  ;;  %8435 = vmatprep.mubr.bf16.mxu0 %v3462_v41 }
 0x42a   : > { %v2963_v12 = vadd.f32 %v8298_v56, %v10440_v58  ;;  %v2954_v43 = vpop.f32.mrb[231].mxu1  ;;  %8436 = vmatmul.mubr.bf16.gmra.mrb[224].mxu0 %v3463_v57  ;;  %v3356_v25 = vmax.f32 %v2960_v36, 0.0 }
 0x42b   : > { %v2955_v29 = vadd.f32 %v10440_v58, %v2954_v43  ;;  %v3354_v61 = vmax.f32 %v2952_v14, 0.0 }
 0x42c   : > { %v3357_v50 = vmax.f32 %v2963_v12, 0.0 }
 0x42d   : > { %v3355_v15 = vmax.f32 %v2955_v29, 0.0 }
 0x42e   : > { %v3465_v17 = vpack.c.bf16 %v3357_v50, %v3356_v25 }
 0x42f   : > { %v8301_v34 = vpop.f32.mrb[232].mxu1  ;;  %v3464_v28 = vpack.c.bf16 %v3355_v15, %v3354_v61 }
 0x430   : > { %v2976_v46 = vadd.f32 %v8301_v34, %v10440_v58  ;;  %v2967_v45 = vpop.f32.mrb[233].mxu1 }
 0x431   : > { %v2968_v31 = vadd.f32 %v10440_v58, %v2967_v45  ;;  %v8302_v54 = vpop.f32.mrb[234].mxu1  ;;  %8439 = vmatprep.mubr.bf16.mxu0 %v3464_v28 }
 0x432   : > { %v2979_v3 = vadd.f32 %v8302_v54, %v10440_v58  ;;  %v2970_v21 = vpop.f32.mrb[235].mxu1  ;;  %8440 = vmatmul.mubr.bf16.gmra.mrb[228].mxu0 %v3465_v17  ;;  %v3360_v37 = vmax.f32 %v2976_v46, 0.0 }
 0x433   : > { %v2971_v55 = vadd.f32 %v10440_v58, %v2970_v21  ;;  %v3358_v26 = vmax.f32 %v2968_v31, 0.0 }
 0x434   : > { %v3361_v23 = vmax.f32 %v2979_v3, 0.0 }
 0x435   : > { %v3359_v13 = vmax.f32 %v2971_v55, 0.0 }
 0x436   : > { %v3467_v40 = vpack.c.bf16 %v3361_v23, %v3360_v37 }
 0x437   : > { %v8305_v63 = vpop.f32.mrb[236].mxu1  ;;  %v3466_v6 = vpack.c.bf16 %v3359_v13, %v3358_v26 }
 0x438   : > { %v2992_v49 = vadd.f32 %v8305_v63, %v10440_v58  ;;  %v2983_v39 = vpop.f32.mrb[237].mxu1 }
 0x439   : > { %v2984_v30 = vadd.f32 %v10440_v58, %v2983_v39  ;;  %v8306_v48 = vpop.f32.mrb[238].mxu1  ;;  %8443 = vmatprep.mubr.bf16.mxu0 %v3466_v6 }
 0x43a   : > { %v2995_v47 = vadd.f32 %v8306_v48, %v10440_v58  ;;  %v2986_v24 = vpop.f32.mrb[239].mxu1  ;;  %8444 = vmatmul.mubr.bf16.gmra.mrb[232].mxu0 %v3467_v40  ;;  %v3364_v59 = vmax.f32 %v2992_v49, 0.0 }
 0x43b   : > { %v2987_v19 = vadd.f32 %v10440_v58, %v2986_v24  ;;  %v3362_v53 = vmax.f32 %v2984_v30, 0.0 }
 0x43c   : > { %v3365_v32 = vmax.f32 %v2995_v47, 0.0 }
 0x43d   : > { %v3363_v7 = vmax.f32 %v2987_v19, 0.0 }
 0x43e   : > { %v3469_v10 = vpack.c.bf16 %v3365_v32, %v3364_v59 }
 0x43f   : > { %v8309_v1 = vpop.f32.mrb[240].mxu1  ;;  %v3468_v42 = vpack.c.bf16 %v3363_v7, %v3362_v53 }
 0x440   : > { %v3008_v52 = vadd.f32 %v8309_v1, %v10440_v58  ;;  %v2999_v2 = vpop.f32.mrb[241].mxu1 }
 0x441   : > { %v3000_v16 = vadd.f32 %v10440_v58, %v2999_v2  ;;  %v8310_v8 = vpop.f32.mrb[242].mxu1  ;;  %8447 = vmatprep.mubr.bf16.mxu0 %v3468_v42 }
 0x442   : > { %v3011_v9 = vadd.f32 %v8310_v8, %v10440_v58  ;;  %v3002_v20 = vpop.f32.mrb[243].mxu1  ;;  %8448 = vmatmul.mubr.bf16.gmra.mrb[236].mxu0 %v3469_v10  ;;  %v3368_v22 = vmax.f32 %v3008_v52, 0.0 }
 0x443   : > { %v3003_v0 = vadd.f32 %v10440_v58, %v3002_v20  ;;  %v3366_v51 = vmax.f32 %v3000_v16, 0.0 }
 0x444   : > { %v3369_v35 = vmax.f32 %v3011_v9, 0.0 }
 0x445   : > { %v3367_v33 = vmax.f32 %v3003_v0, 0.0 }
 0x446   : > { %v3471_v62 = vpack.c.bf16 %v3369_v35, %v3368_v22 }
 0x447   : > { %v8313_v27 = vpop.f32.mrb[244].mxu1  ;;  %v3470_v57 = vpack.c.bf16 %v3367_v33, %v3366_v51 }
 0x448   : > { %v3024_v18 = vadd.f32 %v8313_v27, %v10440_v58  ;;  %v3015_v11 = vpop.f32.mrb[245].mxu1 }
 0x449   : > { %v3016_v4 = vadd.f32 %v10440_v58, %v3015_v11  ;;  %v8314_v41 = vpop.f32.mrb[246].mxu1  ;;  %8451 = vmatprep.mubr.bf16.mxu0 %v3470_v57 }
 0x44a   : > { %v3027_v36 = vadd.f32 %v8314_v41, %v10440_v58  ;;  %v3018_v60 = vpop.f32.mrb[247].mxu1  ;;  %8452 = vmatmul.mubr.bf16.gmra.mrb[240].mxu0 %v3471_v62  ;;  %v3372_v56 = vmax.f32 %v3024_v18, 0.0 }
 0x44b   : > { %v3019_v14 = vadd.f32 %v10440_v58, %v3018_v60  ;;  %v3370_v43 = vmax.f32 %v3016_v4, 0.0 }
 0x44c   : > { %v3373_v12 = vmax.f32 %v3027_v36, 0.0 }
 0x44d   : > { %v3371_v29 = vmax.f32 %v3019_v14, 0.0 }
 0x44e   : > { %v3473_v25 = vpack.c.bf16 %v3373_v12, %v3372_v56 }
 0x44f   : > { %v8317_v50 = vpop.f32.mrb[248].mxu1  ;;  %v3472_v61 = vpack.c.bf16 %v3371_v29, %v3370_v43 }
 0x450   : > { %v3040_v15 = vadd.f32 %v8317_v50, %v10440_v58  ;;  %v3031_v17 = vpop.f32.mrb[249].mxu1 }
 0x451   : > { %v3032_v34 = vadd.f32 %v10440_v58, %v3031_v17  ;;  %v8318_v28 = vpop.f32.mrb[250].mxu1  ;;  %8455 = vmatprep.mubr.bf16.mxu0 %v3472_v61 }
 0x452   : > { %v3043_v46 = vadd.f32 %v8318_v28, %v10440_v58  ;;  %v3034_v45 = vpop.f32.mrb[251].mxu1  ;;  %8456 = vmatmul.mubr.bf16.gmra.mrb[244].mxu0 %v3473_v25  ;;  %v3376_v54 = vmax.f32 %v3040_v15, 0.0 }
 0x453   : > { %v3035_v31 = vadd.f32 %v10440_v58, %v3034_v45  ;;  %v3374_v21 = vmax.f32 %v3032_v34, 0.0 }
 0x454   : > { %v3377_v3 = vmax.f32 %v3043_v46, 0.0 }
 0x455   : > { %v3375_v55 = vmax.f32 %v3035_v31, 0.0 }
 0x456   : > { %v3475_v37 = vpack.c.bf16 %v3377_v3, %v3376_v54 }
 0x457   : > { %v8321_v23 = vpop.f32.mrb[252].mxu1  ;;  %v3474_v26 = vpack.c.bf16 %v3375_v55, %v3374_v21 }
 0x458   : > { %v3056_v13 = vadd.f32 %v8321_v23, %v10440_v58  ;;  %v3047_v40 = vpop.f32.mrb[253].mxu1 }
 0x459   : > { %v3048_v63 = vadd.f32 %v10440_v58, %v3047_v40  ;;  %v8322_v6 = vpop.f32.mrb[254].mxu1  ;;  %8459 = vmatprep.mubr.bf16.mxu0 %v3474_v26 }
 0x45a   : > { %v3059_v49 = vadd.f32 %v8322_v6, %v10440_v58  ;;  %v3050_v39 = vpop.f32.mrb[255].mxu1  ;;  %8460 = vmatmul.mubr.bf16.gmra.mrb[248].mxu0 %v3475_v37  ;;  %v3380_v48 = vmax.f32 %v3056_v13, 0.0 }
 0x45b   : > { %v3051_v30 = vadd.f32 %v10440_v58, %v3050_v39  ;;  %v3378_v24 = vmax.f32 %v3048_v63, 0.0 }
 0x45c   : > { %v3381_v47 = vmax.f32 %v3059_v49, 0.0 }
 0x45d   : > { %v3379_v19 = vmax.f32 %v3051_v30, 0.0 }
 0x45e   : > { %v3477_v59 = vpack.c.bf16 %v3381_v47, %v3380_v48 }
 0x45f   : > { %v8325_v32 = vpop.f32.mrb[0].mxu1  ;;  %v3476_v53 = vpack.c.bf16 %v3379_v19, %v3378_v24 }
 0x460   : > { %v3072_v7 = vadd.f32 %v8325_v32, %v10440_v58  ;;  %v3063_v10 = vpop.f32.mrb[1].mxu1 }
 0x461   : > { %v3064_v1 = vadd.f32 %v10440_v58, %v3063_v10  ;;  %v8326_v42 = vpop.f32.mrb[2].mxu1  ;;  %8463 = vmatprep.mubr.bf16.mxu0 %v3476_v53 }
 0x462   : > { %v3075_v52 = vadd.f32 %v8326_v42, %v10440_v58  ;;  %v3066_v2 = vpop.f32.mrb[3].mxu1  ;;  %8464 = vmatmul.mubr.bf16.gmra.mrb[252].mxu0 %v3477_v59  ;;  %v3384_v8 = vmax.f32 %v3072_v7, 0.0 }
 0x463   : > { %v3067_v16 = vadd.f32 %v10440_v58, %v3066_v2  ;;  %v3382_v20 = vmax.f32 %v3064_v1, 0.0 }
 0x464   : > { %v3385_v9 = vmax.f32 %v3075_v52, 0.0 }
 0x465   : > { %v3383_v0 = vmax.f32 %v3067_v16, 0.0 }
 0x466   : > { %v3479_v22 = vpack.c.bf16 %v3385_v9, %v3384_v8 }
 0x467   : > { %v8329_v35 = vpop.f32.mrb[4].mxu1  ;;  %v3478_v51 = vpack.c.bf16 %v3383_v0, %v3382_v20 }
 0x468   : > { %v3088_v33 = vadd.f32 %v8329_v35, %v10440_v58  ;;  %v3079_v62 = vpop.f32.mrb[5].mxu1 }
 0x469   : > { %v3080_v27 = vadd.f32 %v10440_v58, %v3079_v62  ;;  %v8330_v57 = vpop.f32.mrb[6].mxu1  ;;  %8467 = vmatprep.mubr.bf16.mxu0 %v3478_v51 }
 0x46a   : > { %v3091_v18 = vadd.f32 %v8330_v57, %v10440_v58  ;;  %v3082_v11 = vpop.f32.mrb[7].mxu1  ;;  %8468 = vmatmul.mubr.bf16.gmra.mrb[0].mxu0 %v3479_v22  ;;  %v3388_v41 = vmax.f32 %v3088_v33, 0.0 }
 0x46b   : > { %v3083_v4 = vadd.f32 %v10440_v58, %v3082_v11  ;;  %v3386_v60 = vmax.f32 %v3080_v27, 0.0 }
 0x46c   : > { %v3389_v36 = vmax.f32 %v3091_v18, 0.0 }
 0x46d   : > { %v3387_v14 = vmax.f32 %v3083_v4, 0.0 }
 0x46e   : > { %v3481_v56 = vpack.c.bf16 %v3389_v36, %v3388_v41 }
 0x46f   : > { %v8333_v12 = vpop.f32.mrb[8].mxu1  ;;  %v3480_v43 = vpack.c.bf16 %v3387_v14, %v3386_v60 }
 0x470   : > { %v3104_v29 = vadd.f32 %v8333_v12, %v10440_v58  ;;  %v3095_v25 = vpop.f32.mrb[9].mxu1 }
 0x471   : > { %v3096_v50 = vadd.f32 %v10440_v58, %v3095_v25  ;;  %v8334_v61 = vpop.f32.mrb[10].mxu1  ;;  %8471 = vmatprep.mubr.bf16.mxu0 %v3480_v43 }
 0x472   : > { %v3107_v15 = vadd.f32 %v8334_v61, %v10440_v58  ;;  %v3098_v17 = vpop.f32.mrb[11].mxu1  ;;  %8472 = vmatmul.mubr.bf16.gmra.mrb[4].mxu0 %v3481_v56  ;;  %v3392_v28 = vmax.f32 %v3104_v29, 0.0 }
 0x473   : > { %v3099_v34 = vadd.f32 %v10440_v58, %v3098_v17  ;;  %v3390_v45 = vmax.f32 %v3096_v50, 0.0 }
 0x474   : > { %v3393_v46 = vmax.f32 %v3107_v15, 0.0 }
 0x475   : > { %v3391_v31 = vmax.f32 %v3099_v34, 0.0 }
 0x476   : > { %v3483_v54 = vpack.c.bf16 %v3393_v46, %v3392_v28 }
 0x477   : > { %v8337_v3 = vpop.f32.mrb[12].mxu1  ;;  %v3482_v21 = vpack.c.bf16 %v3391_v31, %v3390_v45 }
 0x478   : > { %v3120_v55 = vadd.f32 %v8337_v3, %v10440_v58  ;;  %v3111_v37 = vpop.f32.mrb[13].mxu1 }
 0x479   : > { %v3112_v23 = vadd.f32 %v10440_v58, %v3111_v37  ;;  %v8338_v26 = vpop.f32.mrb[14].mxu1  ;;  %8475 = vmatprep.mubr.bf16.mxu0 %v3482_v21 }
 0x47a   : > { %v3123_v13 = vadd.f32 %v8338_v26, %v10440_v58  ;;  %v3114_v40 = vpop.f32.mrb[15].mxu1  ;;  %8476 = vmatmul.mubr.bf16.gmra.mrb[8].mxu0 %v3483_v54  ;;  %v3396_v6 = vmax.f32 %v3120_v55, 0.0 }
 0x47b   : > { %v3115_v63 = vadd.f32 %v10440_v58, %v3114_v40  ;;  %v3394_v39 = vmax.f32 %v3112_v23, 0.0 }
 0x47c   : > { %v3397_v49 = vmax.f32 %v3123_v13, 0.0 }
 0x47d   : > { %v3395_v30 = vmax.f32 %v3115_v63, 0.0 }
 0x47e   : > { %v3485_v48 = vpack.c.bf16 %v3397_v49, %v3396_v6 }
 0x47f   : > { %v8341_v47 = vpop.f32.mrb[16].mxu1  ;;  %v3484_v24 = vpack.c.bf16 %v3395_v30, %v3394_v39 }
 0x480   : > { %v3136_v19 = vadd.f32 %v8341_v47, %v10440_v58  ;;  %v3127_v59 = vpop.f32.mrb[17].mxu1 }
 0x481   : > { %v3128_v32 = vadd.f32 %v10440_v58, %v3127_v59  ;;  %v8342_v53 = vpop.f32.mrb[18].mxu1  ;;  %8479 = vmatprep.mubr.bf16.mxu0 %v3484_v24 }
 0x482   : > { %v3139_v7 = vadd.f32 %v8342_v53, %v10440_v58  ;;  %v3130_v10 = vpop.f32.mrb[19].mxu1  ;;  %8480 = vmatmul.mubr.bf16.gmra.mrb[12].mxu0 %v3485_v48  ;;  %v3400_v42 = vmax.f32 %v3136_v19, 0.0 }
 0x483   : > { %v3131_v1 = vadd.f32 %v10440_v58, %v3130_v10  ;;  %v3398_v2 = vmax.f32 %v3128_v32, 0.0 }
 0x484   : > { %v3401_v52 = vmax.f32 %v3139_v7, 0.0 }
 0x485   : > { %v3399_v16 = vmax.f32 %v3131_v1, 0.0 }
 0x486   : > { %v3487_v8 = vpack.c.bf16 %v3401_v52, %v3400_v42 }
 0x487   : > { %v8345_v9 = vpop.f32.mrb[20].mxu1  ;;  %v3486_v20 = vpack.c.bf16 %v3399_v16, %v3398_v2 }
 0x488   : > { %v3152_v0 = vadd.f32 %v8345_v9, %v10440_v58  ;;  %v3143_v22 = vpop.f32.mrb[21].mxu1 }
 0x489   : > { %v3144_v35 = vadd.f32 %v10440_v58, %v3143_v22  ;;  %v8346_v51 = vpop.f32.mrb[22].mxu1  ;;  %8483 = vmatprep.mubr.bf16.mxu0 %v3486_v20 }
 0x48a   : > { %v3155_v33 = vadd.f32 %v8346_v51, %v10440_v58  ;;  %v3146_v62 = vpop.f32.mrb[23].mxu1  ;;  %8484 = vmatmul.mubr.bf16.gmra.mrb[16].mxu0 %v3487_v8  ;;  %v3404_v57 = vmax.f32 %v3152_v0, 0.0 }
 0x48b   : > { %v3147_v27 = vadd.f32 %v10440_v58, %v3146_v62  ;;  %v3402_v11 = vmax.f32 %v3144_v35, 0.0 }
 0x48c   : > { %v3405_v18 = vmax.f32 %v3155_v33, 0.0 }
 0x48d   : > { %v3403_v4 = vmax.f32 %v3147_v27, 0.0 }
 0x48e   : > { %v3489_v41 = vpack.c.bf16 %v3405_v18, %v3404_v57 }
 0x48f   : > { %v8349_v36 = vpop.f32.mrb[24].mxu1  ;;  %v3488_v60 = vpack.c.bf16 %v3403_v4, %v3402_v11 }
 0x490   : > { %v3168_v14 = vadd.f32 %v8349_v36, %v10440_v58  ;;  %v3159_v56 = vpop.f32.mrb[25].mxu1 }
 0x491   : > { %v3160_v12 = vadd.f32 %v10440_v58, %v3159_v56  ;;  %v8350_v43 = vpop.f32.mrb[26].mxu1  ;;  %8487 = vmatprep.mubr.bf16.mxu0 %v3488_v60 }
 0x492   : > { %v3171_v29 = vadd.f32 %v8350_v43, %v10440_v58  ;;  %v3162_v25 = vpop.f32.mrb[27].mxu1  ;;  %8488 = vmatmul.mubr.bf16.gmra.mrb[20].mxu0 %v3489_v41  ;;  %v3408_v61 = vmax.f32 %v3168_v14, 0.0 }
 0x493   : > { %v3163_v50 = vadd.f32 %v10440_v58, %v3162_v25  ;;  %v3406_v17 = vmax.f32 %v3160_v12, 0.0 }
 0x494   : > { %v3409_v15 = vmax.f32 %v3171_v29, 0.0 }
 0x495   : > { %v3407_v34 = vmax.f32 %v3163_v50, 0.0 }
 0x496   : > { %v3491_v28 = vpack.c.bf16 %v3409_v15, %v3408_v61 }
 0x497   : > { %v8353_v46 = vpop.f32.mrb[28].mxu1  ;;  %v3490_v45 = vpack.c.bf16 %v3407_v34, %v3406_v17 }
 0x498   : > { %v3184_v31 = vadd.f32 %v8353_v46, %v10440_v58  ;;  %v3175_v54 = vpop.f32.mrb[29].mxu1 }
 0x499   : > { %v3176_v3 = vadd.f32 %v10440_v58, %v3175_v54  ;;  %v8354_v21 = vpop.f32.mrb[30].mxu1  ;;  %8491 = vmatprep.mubr.bf16.mxu0 %v3490_v45 }
 0x49a   : > { %v3187_v55 = vadd.f32 %v8354_v21, %v10440_v58  ;;  %v3178_v37 = vpop.f32.mrb[31].mxu1  ;;  %8492 = vmatmul.mubr.bf16.gmra.mrb[24].mxu0 %v3491_v28  ;;  %v3412_v26 = vmax.f32 %v3184_v31, 0.0  ;;  %v10586_v21 = vld [vmem:[#allocation6 + $0x3] ss:$0 sm:$0xff] }
 0x49b   : > { %v3179_v23 = vadd.f32 %v10440_v58, %v3178_v37  ;;  %v3410_v40 = vmax.f32 %v3176_v3, 0.0 }
 0x49c   : > { %v3413_v13 = vmax.f32 %v3187_v55, 0.0 }
 0x49d   : > { %v3411_v63 = vmax.f32 %v3179_v23, 0.0 }
 0x49e   : > { %v3493_v6 = vpack.c.bf16 %v3413_v13, %v3412_v26 }
 0x49f   : > { %v8357_v49 = vpop.f32.mrb[32].mxu1  ;;  %v3492_v39 = vpack.c.bf16 %v3411_v63, %v3410_v40 }
 0x4a0   : > { %v3200_v30 = vadd.f32 %v8357_v49, %v10440_v58  ;;  %v3191_v48 = vpop.f32.mrb[33].mxu1 }
 0x4a1   : > { %v3192_v47 = vadd.f32 %v10440_v58, %v3191_v48  ;;  %v8358_v24 = vpop.f32.mrb[34].mxu1  ;;  %8495 = vmatprep.mubr.bf16.mxu0 %v3492_v39 }
 0x4a2   : > { %v3203_v19 = vadd.f32 %v8358_v24, %v10440_v58  ;;  %v3194_v59 = vpop.f32.mrb[35].mxu1  ;;  %8496 = vmatmul.mubr.bf16.gmra.mrb[28].mxu0 %v3493_v6  ;;  %v3416_v53 = vmax.f32 %v3200_v30, 0.0 }
 0x4a3   : > { %v3195_v32 = vadd.f32 %v10440_v58, %v3194_v59  ;;  %v3414_v10 = vmax.f32 %v3192_v47, 0.0 }
 0x4a4   : > { %v3417_v7 = vmax.f32 %v3203_v19, 0.0 }
 0x4a5   : > { %v3415_v1 = vmax.f32 %v3195_v32, 0.0 }
 0x4a6   : > { %v3495_v42 = vpack.c.bf16 %v3417_v7, %v3416_v53 }
 0x4a7   : > { %v8361_v52 = vpop.f32.mrb[36].mxu1  ;;  %v3494_v2 = vpack.c.bf16 %v3415_v1, %v3414_v10 }
 0x4a8   : > { %v3216_v16 = vadd.f32 %v8361_v52, %v10440_v58  ;;  %v3207_v8 = vpop.f32.mrb[37].mxu1 }
 0x4a9   : > { %v3208_v9 = vadd.f32 %v10440_v58, %v3207_v8  ;;  %v8362_v20 = vpop.f32.mrb[38].mxu1  ;;  %8499 = vmatprep.mubr.bf16.mxu0 %v3494_v2 }
 0x4aa   : > { %v3219_v0 = vadd.f32 %v8362_v20, %v10440_v58  ;;  %v3210_v22 = vpop.f32.mrb[39].mxu1  ;;  %8500 = vmatmul.mubr.bf16.gmra.mrb[32].mxu0 %v3495_v42  ;;  %v3420_v51 = vmax.f32 %v3216_v16, 0.0 }
 0x4ab   : > { %v3211_v35 = vadd.f32 %v10440_v58, %v3210_v22  ;;  %v3418_v62 = vmax.f32 %v3208_v9, 0.0 }
 0x4ac   : > { %v3421_v33 = vmax.f32 %v3219_v0, 0.0 }
 0x4ad   : > { %v3419_v27 = vmax.f32 %v3211_v35, 0.0 }
 0x4ae   : > { %v3497_v57 = vpack.c.bf16 %v3421_v33, %v3420_v51 }
 0x4af   : > { %v8365_v18 = vpop.f32.mrb[40].mxu1  ;;  %v3496_v11 = vpack.c.bf16 %v3419_v27, %v3418_v62 }
 0x4b0   : > { %v3232_v4 = vadd.f32 %v8365_v18, %v10440_v58  ;;  %v3223_v41 = vpop.f32.mrb[41].mxu1 }
 0x4b1   : > { %v3224_v36 = vadd.f32 %v10440_v58, %v3223_v41  ;;  %v8366_v60 = vpop.f32.mrb[42].mxu1  ;;  %8503 = vmatprep.mubr.bf16.mxu0 %v3496_v11 }
 0x4b2   : > { %v3235_v14 = vadd.f32 %v8366_v60, %v10440_v58  ;;  %v3226_v56 = vpop.f32.mrb[43].mxu1  ;;  %8504 = vmatmul.mubr.bf16.gmra.mrb[36].mxu0 %v3497_v57  ;;  %v3424_v43 = vmax.f32 %v3232_v4, 0.0 }
 0x4b3   : > { %v3227_v12 = vadd.f32 %v10440_v58, %v3226_v56  ;;  %v3422_v25 = vmax.f32 %v3224_v36, 0.0 }
 0x4b4   : > { %v3425_v29 = vmax.f32 %v3235_v14, 0.0 }
 0x4b5   : > { %v3423_v50 = vmax.f32 %v3227_v12, 0.0  ;;  %v10601_v12 = vld [vmem:[#allocation6 + $0x2] ss:$0 sm:$0xff] }
 0x4b6   : > { %v3499_v61 = vpack.c.bf16 %v3425_v29, %v3424_v43 }
 0x4b7   : > { %v8369_v15 = vpop.f32.mrb[44].mxu1  ;;  %v3498_v17 = vpack.c.bf16 %v3423_v50, %v3422_v25 }
 0x4b8   : > { %v3248_v34 = vadd.f32 %v8369_v15, %v10440_v58  ;;  %v3239_v28 = vpop.f32.mrb[45].mxu1 }
 0x4b9   : > { %v3240_v46 = vadd.f32 %v10440_v58, %v3239_v28  ;;  %v8370_v45 = vpop.f32.mrb[46].mxu1  ;;  %8507 = vmatprep.mubr.bf16.mxu0 %v3498_v17 }
 0x4ba   : > { %v3251_v31 = vadd.f32 %v8370_v45, %v10440_v58  ;;  %v3242_v54 = vpop.f32.mrb[47].mxu1  ;;  %8508 = vmatmul.mubr.bf16.gmra.mrb[40].mxu0 %v3499_v61  ;;  %v3428_v55 = vmax.f32 %v3248_v34, 0.0 }
 0x4bb   : > { %v3243_v3 = vadd.f32 %v10440_v58, %v3242_v54  ;;  %v3426_v23 = vmax.f32 %v3240_v46, 0.0 }
 0x4bc   : > { %v3429_v37 = vmax.f32 %v3251_v31, 0.0 }
 0x4bd   : > { %v3427_v26 = vmax.f32 %v3243_v3, 0.0  ;;  %v8405_v13 = vpop.f32.mrb[192].mxu0 }
 0x4be   : > { %v3501_v40 = vpack.c.bf16 %v3429_v37, %v3428_v55  ;;  %v3623_v63 = vadd.f32 %v8405_v13, %v10586_v21  ;;  %v3614_v6 = vpop.f32.mrb[193].mxu0 }
 0x4bf   : > { %v3615_v49 = vadd.f32 %v10586_v21, %v3614_v6  ;;  %v8373_v39 = vpop.f32.mrb[48].mxu1  ;;  %v8406_v30 = vpop.f32.mrb[194].mxu0  ;;  %v3500_v48 = vpack.c.bf16 %v3427_v26, %v3426_v23 }
 0x4c0   : > { %v3264_v47 = vadd.f32 %v8373_v39, %v10440_v58  ;;  %v3626_v24 = vadd.f32 %v8406_v30, %v10586_v21  ;;  %v3255_v19 = vpop.f32.mrb[49].mxu1  ;;  %v3617_v59 = vpop.f32.mrb[195].mxu0  ;;  %v4127_v10 = vmax.f32 %v3623_v63, 0.0 }
 0x4c1   : > { %v3256_v32 = vadd.f32 %v10440_v58, %v3255_v19  ;;  %v3618_v53 = vadd.f32 %v10586_v21, %v3617_v59  ;;  %v8374_v7 = vpop.f32.mrb[50].mxu1  ;;  %8511 = vmatprep.mubr.bf16.mxu0 %v3500_v48  ;;  %v4125_v2 = vmax.f32 %v3615_v49, 0.0 }
 0x4c2   : > { %v4128_v1 = vmax.f32 %v3626_v24, 0.0  ;;  %v3267_v42 = vadd.f32 %v8374_v7, %v10440_v58  ;;  %v3258_v52 = vpop.f32.mrb[51].mxu1  ;;  %8512 = vmatmul.mubr.bf16.gmra.mrb[44].mxu0 %v3501_v40  ;;  %v3432_v9 = vmax.f32 %v3264_v47, 0.0 }
 0x4c3   : > { %v4126_v16 = vmax.f32 %v3618_v53, 0.0  ;;  %v3259_v8 = vadd.f32 %v10440_v58, %v3258_v52  ;;  %v3430_v22 = vmax.f32 %v3256_v32, 0.0 }
 0x4c4   : > { %v4254_v20 = vpack.c.bf16 %v4128_v1, %v4127_v10  ;;  %v3433_v0 = vmax.f32 %v3267_v42, 0.0 }
 0x4c5   : > { %v4253_v35 = vpack.c.bf16 %v4126_v16, %v4125_v2  ;;  %v3431_v51 = vmax.f32 %v3259_v8, 0.0  ;;  %v8409_v33 = vpop.f32.mrb[196].mxu0 }
 0x4c6   : > { %v3503_v62 = vpack.c.bf16 %v3433_v0, %v3432_v9  ;;  %v3639_v27 = vadd.f32 %v8409_v33, %v10586_v21  ;;  %v3630_v57 = vpop.f32.mrb[197].mxu0 }
 0x4c7   : > { %v3631_v18 = vadd.f32 %v10586_v21, %v3630_v57  ;;  %v8377_v11 = vpop.f32.mrb[52].mxu1  ;;  %v8410_v4 = vpop.f32.mrb[198].mxu0  ;;  %4446 = vmatmul.mubr.bf16.vlgmr.msra.gmra.mrb[64].mxu1 %v4253_v35  ;;  %v3502_v41 = vpack.c.bf16 %v3431_v51, %v3430_v22 }
 0x4c8   : > { %v3280_v36 = vadd.f32 %v8377_v11, %v10440_v58  ;;  %v3642_v60 = vadd.f32 %v8410_v4, %v10586_v21  ;;  %v3271_v14 = vpop.f32.mrb[53].mxu1  ;;  %v3633_v56 = vpop.f32.mrb[199].mxu0  ;;  %4455 = vmatprep.mubr.bf16.mxu1 %v12613_v38  ;;  %v4131_v50 = vmax.f32 %v3639_v27, 0.0 }
 0x4c9   : > { %v3272_v43 = vadd.f32 %v10601_v12, %v3271_v14  ;;  %v3634_v29 = vadd.f32 %v10586_v21, %v3633_v56  ;;  %v8378_v25 = vpop.f32.mrb[54].mxu1  ;;  %8515 = vmatprep.mubr.bf16.mxu0 %v3502_v41  ;;  %v4129_v58 = vmax.f32 %v3631_v18, 0.0 }
 0x4ca   : > { %v4132_v61 = vmax.f32 %v3642_v60, 0.0  ;;  %v3283_v15 = vadd.f32 %v10601_v12, %v8378_v25  ;;  %v3274_v17 = vpop.f32.mrb[55].mxu1  ;;  %8516 = vmatmul.mubr.bf16.gmra.mrb[48].mxu0 %v3503_v62  ;;  %v3436_v46 = vmax.f32 %v3280_v36, 0.0 }
 0x4cb   : > { %v4130_v34 = vmax.f32 %v3634_v29, 0.0  ;;  %v3275_v28 = vadd.f32 %v10601_v12, %v3274_v17  ;;  %v3434_v54 = vmax.f32 %v3272_v43, 0.0 }
 0x4cc   : > { %v10607_v45 = vpack.c.bf16 %v4132_v61, %v4131_v50  ;;  %v3437_v31 = vmax.f32 %v3283_v15, 0.0 }
 0x4cd   : > { %v4255_v3 = vpack.c.bf16 %v4130_v34, %v4129_v58  ;;  %v3435_v55 = vmax.f32 %v3275_v28, 0.0  ;;  %v8413_v37 = vpop.f32.mrb[200].mxu0 }
 0x4ce   : > { %v3505_v23 = vpack.c.bf16 %v3437_v31, %v3436_v46  ;;  %v3655_v26 = vadd.f32 %v8413_v37, %v10586_v21  ;;  %v3646_v13 = vpop.f32.mrb[201].mxu0 }
 0x4cf   : > { %v3647_v40 = vadd.f32 %v10586_v21, %v3646_v13  ;;  %v8381_v63 = vpop.f32.mrb[56].mxu1  ;;  %v8414_v6 = vpop.f32.mrb[202].mxu0  ;;  %4456 = vmatmul.mubr.bf16.gmra.mrb[68].mxu1 %v4254_v20  ;;  %v3504_v49 = vpack.c.bf16 %v3435_v55, %v3434_v54 }
 0x4d0   : > { %v3296_v39 = vadd.f32 %v10601_v12, %v8381_v63  ;;  %v3658_v30 = vadd.f32 %v8414_v6, %v10586_v21  ;;  %v3287_v48 = vpop.f32.mrb[57].mxu1  ;;  %v3649_v47 = vpop.f32.mrb[203].mxu0  ;;  %4465 = vmatprep.mubr.bf16.mxu1 %v12613_v38  ;;  %v4135_v32 = vmax.f32 %v3655_v26, 0.0 }
 0x4d1   : > { %v3288_v24 = vadd.f32 %v10601_v12, %v3287_v48  ;;  %v3650_v19 = vadd.f32 %v10586_v21, %v3649_v47  ;;  %v8382_v59 = vpop.f32.mrb[58].mxu1  ;;  %8519 = vmatprep.mubr.bf16.mxu0 %v3504_v49  ;;  %v4133_v1 = vmax.f32 %v3647_v40, 0.0 }
 0x4d2   : > { %v4136_v53 = vmax.f32 %v3658_v30, 0.0  ;;  %v3299_v7 = vadd.f32 %v10601_v12, %v8382_v59  ;;  %v3290_v10 = vpop.f32.mrb[59].mxu1  ;;  %8520 = vmatmul.mubr.bf16.gmra.mrb[52].mxu0 %v3505_v23  ;;  %v3440_v2 = vmax.f32 %v3296_v39, 0.0 }
 0x4d3   : > { %v4134_v42 = vmax.f32 %v3650_v19, 0.0  ;;  %v3291_v52 = vadd.f32 %v10601_v12, %v3290_v10  ;;  %v3438_v9 = vmax.f32 %v3288_v24, 0.0 }
 0x4d4   : > { %v10618_v16 = vpack.c.bf16 %v4136_v53, %v4135_v32  ;;  %v3441_v8 = vmax.f32 %v3299_v7, 0.0 }
 0x4d5   : > { %v4257_v20 = vpack.c.bf16 %v4134_v42, %v4133_v1  ;;  %v3439_v0 = vmax.f32 %v3291_v52, 0.0  ;;  %v8417_v22 = vpop.f32.mrb[204].mxu0 }
 0x4d6   : > { %v3507_v35 = vpack.c.bf16 %v3441_v8, %v3440_v2  ;;  %v3671_v51 = vadd.f32 %v8417_v22, %v10586_v21  ;;  %v3662_v33 = vpop.f32.mrb[205].mxu0 }
 0x4d7   : > { %v3663_v62 = vadd.f32 %v10586_v21, %v3662_v33  ;;  %v8385_v27 = vpop.f32.mrb[60].mxu1  ;;  %v8418_v57 = vpop.f32.mrb[206].mxu0  ;;  %4466 = vmatmul.mubr.bf16.gmra.mrb[72].mxu1 %v4255_v3  ;;  %v3506_v18 = vpack.c.bf16 %v3439_v0, %v3438_v9 }
 0x4d8   : > { %v3312_v11 = vadd.f32 %v10601_v12, %v8385_v27  ;;  %v3674_v4 = vadd.f32 %v8418_v57, %v10586_v21  ;;  %v3303_v41 = vpop.f32.mrb[61].mxu1  ;;  %v3665_v36 = vpop.f32.mrb[207].mxu0  ;;  %4475 = vmatprep.mubr.bf16.mxu1 %v12613_v38  ;;  %v4139_v43 = vmax.f32 %v3671_v51, 0.0 }
 0x4d9   : > { %v3304_v60 = vadd.f32 %v10601_v12, %v3303_v41  ;;  %v3666_v14 = vadd.f32 %v10586_v21, %v3665_v36  ;;  %v8386_v56 = vpop.f32.mrb[62].mxu1  ;;  %8523 = vmatprep.mubr.bf16.mxu0 %v3506_v18  ;;  %v4137_v61 = vmax.f32 %v3663_v62, 0.0 }
 0x4da   : > { %v4140_v29 = vmax.f32 %v3674_v4, 0.0  ;;  %v3315_v25 = vadd.f32 %v10601_v12, %v8386_v56  ;;  %v3306_v50 = vpop.f32.mrb[63].mxu1  ;;  %8524 = vmatmul.mubr.bf16.gmra.mrb[56].mxu0 %v3507_v35  ;;  %v3444_v58 = vmax.f32 %v3312_v11, 0.0 }
 0x4db   : > { %v4138_v15 = vmax.f32 %v3666_v14, 0.0  ;;  %v3307_v17 = vadd.f32 %v10601_v12, %v3306_v50  ;;  %v3442_v46 = vmax.f32 %v3304_v60, 0.0 }
 0x4dc   : > { %v10629_v34 = vpack.c.bf16 %v4140_v29, %v4139_v43  ;;  %v3445_v28 = vmax.f32 %v3315_v25, 0.0 }
 0x4dd   : > { %v4259_v31 = vpack.c.bf16 %v4138_v15, %v4137_v61  ;;  %v3443_v54 = vmax.f32 %v3307_v17, 0.0  ;;  %v8421_v3 = vpop.f32.mrb[208].mxu0 }
 0x4de   : > { %v3509_v55 = vpack.c.bf16 %v3445_v28, %v3444_v58  ;;  %v3687_v37 = vadd.f32 %v8421_v3, %v10586_v21  ;;  %v3678_v23 = vpop.f32.mrb[209].mxu0 }
 0x4df   : > { %v3679_v26 = vadd.f32 %v10586_v21, %v3678_v23  ;;  %v8422_v13 = vpop.f32.mrb[210].mxu0  ;;  %4476 = vmatmul.mubr.bf16.gmra.mrb[76].mxu1 %v10607_v45  ;;  %v3508_v40 = vpack.c.bf16 %v3443_v54, %v3442_v46 }
 0x4e0   : > { %v3690_v12 = vadd.f32 %v8422_v13, %v10586_v21  ;;  %v3681_v63 = vpop.f32.mrb[211].mxu0  ;;  %4485 = vmatprep.mubr.bf16.mxu1 %v12613_v38  ;;  %v4143_v49 = vmax.f32 %v3687_v37, 0.0 }
 0x4e1   : > { %v3682_v6 = vadd.f32 %v10586_v21, %v3681_v63  ;;  %8527 = vmatprep.mubr.bf16.mxu0 %v3508_v40  ;;  %v4141_v30 = vmax.f32 %v3679_v26, 0.0 }
 0x4e2   : > { %v4144_v39 = vmax.f32 %v3690_v12, 0.0  ;;  %8528 = vmatmul.mubr.bf16.gmra.mrb[60].mxu0 %v3509_v55 }
 0x4e3   : > { %v4142_v48 = vmax.f32 %v3682_v6, 0.0 }
 0x4e4   : > { %v10637_v47 = vpack.c.bf16 %v4144_v39, %v4143_v49 }
 0x4e5   : > { %v10639_v24 = vpack.c.bf16 %v4142_v48, %v4141_v30  ;;  %v8425_v19 = vpop.f32.mrb[212].mxu0 }
 0x4e6   : > { %v3703_v45 = vadd.f32 %v8425_v19, %v10586_v21  ;;  %v3694_v59 = vpop.f32.mrb[213].mxu0 }
 0x4e7   : > { %v3695_v32 = vadd.f32 %v10586_v21, %v3694_v59  ;;  %v8426_v53 = vpop.f32.mrb[214].mxu0  ;;  %4486 = vmatmul.mubr.bf16.gmra.mrb[80].mxu1 %v4257_v20 }
 0x4e8   : > { %v3706_v7 = vadd.f32 %v8426_v53, %v10586_v21  ;;  %v3697_v10 = vpop.f32.mrb[215].mxu0  ;;  %4495 = vmatprep.mubr.bf16.mxu1 %v12613_v38  ;;  %v4147_v42 = vmax.f32 %v3703_v45, 0.0 }
 0x4e9   : > { %v3698_v1 = vadd.f32 %v10586_v21, %v3697_v10  ;;  %v4145_v2 = vmax.f32 %v3695_v32, 0.0  ;;  %v8991_v10 = vld [vmem:[%s12441_s4] sm:$0xff]  }
 0x4ea   : > { %v4148_v52 = vmax.f32 %v3706_v7, 0.0  ;;  %8531 = vmatprep.subr.bf16.mxu0 %v8991_v10 }
 0x4eb   : > { %v4146_v8 = vmax.f32 %v3698_v1, 0.0  ;;  %8532 = vmatpush3.bf16.msra.mxu0 %v8991_v10 }
 0x4ec   : > { %v10646_v9 = vpack.c.bf16 %v4148_v52, %v4147_v42 }
 0x4ed   : > { %v10648_v0 = vpack.c.bf16 %v4146_v8, %v4145_v2  ;;  %v8429_v22 = vpop.f32.mrb[216].mxu0 }
 0x4ee   : > { %v3719_v35 = vadd.f32 %v8429_v22, %v10586_v21  ;;  %v3710_v51 = vpop.f32.mrb[217].mxu0 }
 0x4ef   : > { %v3711_v20 = vadd.f32 %v10586_v21, %v3710_v51  ;;  %v8430_v33 = vpop.f32.mrb[218].mxu0  ;;  %4496 = vmatmul.mubr.bf16.gmra.mrb[84].mxu1 %v10618_v16 }
 0x4f0   : > { %v3722_v62 = vadd.f32 %v8430_v33, %v10586_v21  ;;  %v3713_v27 = vpop.f32.mrb[219].mxu0  ;;  %4505 = vmatprep.mubr.bf16.mxu1 %v12613_v38  ;;  %v4151_v18 = vmax.f32 %v3719_v35, 0.0  ;;  %v8992_v35 = vld [vmem:[%s12441_s4 + $0x8] sm:$0xff]  }
 0x4f1   : > { %v3714_v57 = vadd.f32 %v10586_v21, %v3713_v27  ;;  %v4149_v4 = vmax.f32 %v3711_v20, 0.0  ;;  %8533 = vmatprep.subr.bf16.mxu0 %v8992_v35 }
 0x4f2   : > { %v4152_v11 = vmax.f32 %v3722_v62, 0.0  ;;  %8534 = vmatpush3.bf16.msra.mxu0 %v8992_v35 }
 0x4f3   : > { %v4150_v41 = vmax.f32 %v3714_v57, 0.0 }
 0x4f4   : > { %v10656_v36 = vpack.c.bf16 %v4152_v11, %v4151_v18  ;;  %v8993_v11 = vld [vmem:[%s12441_s4 + $0x10] sm:$0xff]  }
 0x4f5   : > { %v10658_v60 = vpack.c.bf16 %v4150_v41, %v4149_v4  ;;  %v8433_v14 = vpop.f32.mrb[220].mxu0  ;;  %8535 = vmatprep.subr.bf16.mxu0 %v8993_v11 }
 0x4f6   : > { %v3735_v56 = vadd.f32 %v8433_v14, %v10586_v21  ;;  %v3726_v43 = vpop.f32.mrb[221].mxu0  ;;  %8536 = vmatpush3.bf16.msra.mxu0 %v8993_v11 }
 0x4f7   : > { %v3727_v16 = vadd.f32 %v10586_v21, %v3726_v43  ;;  %v8434_v29 = vpop.f32.mrb[222].mxu0  ;;  %4506 = vmatmul.mubr.bf16.gmra.mrb[88].mxu1 %v4259_v31 }
 0x4f8   : > { %v3738_v25 = vadd.f32 %v8434_v29, %v10586_v21  ;;  %v3729_v50 = vpop.f32.mrb[223].mxu0  ;;  %4515 = vmatprep.mubr.bf16.mxu1 %v12613_v38  ;;  %v4155_v15 = vmax.f32 %v3735_v56, 0.0  ;;  %v8994_v29 = vld [vmem:[%s12441_s4 + $0x18] sm:$0xff]  }
 0x4f9   : > { %v3730_v61 = vadd.f32 %v10586_v21, %v3729_v50  ;;  %v4153_v58 = vmax.f32 %v3727_v16, 0.0  ;;  %8537 = vmatprep.subr.bf16.mxu0 %v8994_v29 }
 0x4fa   : > { %v4156_v17 = vmax.f32 %v3738_v25, 0.0  ;;  %8538 = vmatpush3.bf16.msra.mxu0 %v8994_v29 }
 0x4fb   : > { %v4154_v28 = vmax.f32 %v3730_v61, 0.0 }
 0x4fc   : > { %v10665_v46 = vpack.c.bf16 %v4156_v17, %v4155_v15 }
 0x4fd   : > { %v10667_v54 = vpack.c.bf16 %v4154_v28, %v4153_v58  ;;  %v8437_v3 = vpop.f32.mrb[224].mxu0 }
 0x4fe   : > { %v3751_v55 = vadd.f32 %v8437_v3, %v10586_v21  ;;  %v3742_v37 = vpop.f32.mrb[225].mxu0  ;;  %v8995_v3 = vld [vmem:[%s12441_s4 + $0x20] sm:$0xff]  }
 0x4ff   : > { %v3743_v31 = vadd.f32 %v10586_v21, %v3742_v37  ;;  %v8438_v23 = vpop.f32.mrb[226].mxu0  ;;  %4516 = vmatmul.mubr.bf16.gmra.mrb[92].mxu1 %v10629_v34  ;;  %8539 = vmatprep.subr.bf16.mxu0 %v8995_v3 }
 0x500   : > { %v3754_v26 = vadd.f32 %v8438_v23, %v10586_v21  ;;  %v3745_v13 = vpop.f32.mrb[227].mxu0  ;;  %4525 = vmatprep.mubr.bf16.mxu1 %v12613_v38  ;;  %v4159_v12 = vmax.f32 %v3751_v55, 0.0  ;;  %8540 = vmatpush3.bf16.msra.mxu0 %v8995_v3 }
 0x501   : > { %v3746_v40 = vadd.f32 %v10586_v21, %v3745_v13  ;;  %v4157_v6 = vmax.f32 %v3743_v31, 0.0 }
 0x502   : > { %v4160_v63 = vmax.f32 %v3754_v26, 0.0 }
 0x503   : > { %v4158_v49 = vmax.f32 %v3746_v40, 0.0  ;;  %v8996_v40 = vld [vmem:[%s12441_s4 + $0x28] sm:$0xff]  }
 0x504   : > { %v10675_v39 = vpack.c.bf16 %v4160_v63, %v4159_v12  ;;  %8541 = vmatprep.subr.bf16.mxu0 %v8996_v40 }
 0x505   : > { %v10677_v30 = vpack.c.bf16 %v4158_v49, %v4157_v6  ;;  %v8441_v48 = vpop.f32.mrb[228].mxu0  ;;  %8542 = vmatpush3.bf16.msra.mxu0 %v8996_v40 }
 0x506   : > { %v3767_v19 = vadd.f32 %v8441_v48, %v10586_v21  ;;  %v3758_v45 = vpop.f32.mrb[229].mxu0 }
 0x507   : > { %v3759_v34 = vadd.f32 %v10586_v21, %v3758_v45  ;;  %v8442_v59 = vpop.f32.mrb[230].mxu0  ;;  %4526 = vmatmul.mubr.bf16.gmra.mrb[96].mxu1 %v10639_v24 }
 0x508   : > { %v3770_v32 = vadd.f32 %v8442_v59, %v10586_v21  ;;  %v3761_v53 = vpop.f32.mrb[231].mxu0  ;;  %4535 = vmatprep.mubr.bf16.mxu1 %v12613_v38  ;;  %v4163_v1 = vmax.f32 %v3767_v19, 0.0 }
 0x509   : > { %v3762_v7 = vadd.f32 %v10586_v21, %v3761_v53  ;;  %v4161_v52 = vmax.f32 %v3759_v34, 0.0  ;;  %v8997_v34 = vld [vmem:[%s12441_s4 + $0x30] sm:$0xff]  }
 0x50a   : > { %v4164_v42 = vmax.f32 %v3770_v32, 0.0  ;;  %8543 = vmatprep.subr.bf16.mxu0 %v8997_v34 }
 0x50b   : > { %v4162_v2 = vmax.f32 %v3762_v7, 0.0  ;;  %8544 = vmatpush3.bf16.msra.mxu0 %v8997_v34 }
 0x50c   : > { %v10688_v8 = vpack.c.bf16 %v4164_v42, %v4163_v1  ;;  %v8998_v42 = vld [vmem:[%s12441_s4 + $0x38] sm:$0xff]  }
 0x50d   : > { %v10690_v24 = vpack.c.bf16 %v4162_v2, %v4161_v52  ;;  %v8445_v22 = vpop.f32.mrb[232].mxu0  ;;  %8545 = vmatprep.subr.bf16.mxu0 %v8998_v42 }
 0x50e   : > { %v3783_v51 = vadd.f32 %v8445_v22, %v10586_v21  ;;  %v3774_v20 = vpop.f32.mrb[233].mxu0 }
 0x50f   : > { %v3775_v33 = vadd.f32 %v10586_v21, %v3774_v20  ;;  %v8446_v62 = vpop.f32.mrb[234].mxu0  ;;  %4536 = vmatmul.mubr.bf16.gmra.mrb[100].mxu1 %v10637_v47  ;;  %8546 = vmatpush3.bf16.msra.mxu0 %v8998_v42 }
 0x510   : > { %v3786_v27 = vadd.f32 %v8446_v62, %v10586_v21  ;;  %v3777_v57 = vpop.f32.mrb[235].mxu0  ;;  %4545 = vmatprep.mubr.bf16.mxu1 %v12613_v38  ;;  %v4167_v4 = vmax.f32 %v3783_v51, 0.0 }
 0x511   : > { %v3778_v18 = vadd.f32 %v10586_v21, %v3777_v57  ;;  %v4165_v14 = vmax.f32 %v3775_v33, 0.0 }
 0x512   : > { %v4168_v41 = vmax.f32 %v3786_v27, 0.0 }
 0x513   : > { %v4166_v56 = vmax.f32 %v3778_v18, 0.0 }
 0x514   : > { %v10704_v43 = vpack.c.bf16 %v4168_v41, %v4167_v4 }
 0x515   : > { %v10706_v47 = vpack.c.bf16 %v4166_v56, %v4165_v14  ;;  %v8449_v16 = vpop.f32.mrb[236].mxu0 }
 0x516   : > { %v3799_v25 = vadd.f32 %v8449_v16, %v10586_v21  ;;  %v3790_v50 = vpop.f32.mrb[237].mxu0 }
 0x517   : > { %v3791_v61 = vadd.f32 %v10586_v21, %v3790_v50  ;;  %v8450_v15 = vpop.f32.mrb[238].mxu0  ;;  %4546 = vmatmul.mubr.bf16.gmra.mrb[104].mxu1 %v10648_v0 }
 0x518   : > { %v3802_v17 = vadd.f32 %v8450_v15, %v10586_v21  ;;  %v3793_v58 = vpop.f32.mrb[239].mxu0  ;;  %4555 = vmatprep.mubr.bf16.mxu1 %v12613_v38  ;;  %v4171_v55 = vmax.f32 %v3799_v25, 0.0 }
 0x519   : > { %v3794_v28 = vadd.f32 %v10586_v21, %v3793_v58  ;;  %v4169_v31 = vmax.f32 %v3791_v61, 0.0 }
 0x51a   : > { %v4172_v37 = vmax.f32 %v3802_v17, 0.0 }
 0x51b   : > { %v4170_v23 = vmax.f32 %v3794_v28, 0.0 }
 0x51c   : > { %v10720_v26 = vpack.c.bf16 %v4172_v37, %v4171_v55 }
 0x51d   : > { %v10722_v0 = vpack.c.bf16 %v4170_v23, %v4169_v31  ;;  %v8453_v13 = vpop.f32.mrb[240].mxu0 }
 0x51e   : > { %v3815_v12 = vadd.f32 %v8453_v13, %v10586_v21  ;;  %v3806_v63 = vpop.f32.mrb[241].mxu0 }
 0x51f   : > { %v3807_v6 = vadd.f32 %v10586_v21, %v3806_v63  ;;  %v8454_v49 = vpop.f32.mrb[242].mxu0  ;;  %4556 = vmatmul.mubr.bf16.gmra.mrb[108].mxu1 %v10646_v9 }
 0x520   : > { %v3818_v48 = vadd.f32 %v8454_v49, %v10586_v21  ;;  %v3809_v19 = vpop.f32.mrb[243].mxu0  ;;  %4565 = vmatprep.mubr.bf16.mxu1 %v12613_v38  ;;  %v4175_v59 = vmax.f32 %v3815_v12, 0.0 }
 0x521   : > { %v3810_v45 = vadd.f32 %v10586_v21, %v3809_v19  ;;  %v4173_v53 = vmax.f32 %v3807_v6, 0.0 }
 0x522   : > { %v4176_v32 = vmax.f32 %v3818_v48, 0.0 }
 0x523   : > { %v4174_v7 = vmax.f32 %v3810_v45, 0.0 }
 0x524   : > { %v10736_v10 = vpack.c.bf16 %v4176_v32, %v4175_v59 }
 0x525   : > { %v10738_v9 = vpack.c.bf16 %v4174_v7, %v4173_v53  ;;  %v8457_v1 = vpop.f32.mrb[244].mxu0 }
 0x526   : > { %v3831_v52 = vadd.f32 %v8457_v1, %v10586_v21  ;;  %v3822_v2 = vpop.f32.mrb[245].mxu0 }
 0x527   : > { %v3823_v22 = vadd.f32 %v10586_v21, %v3822_v2  ;;  %v8458_v35 = vpop.f32.mrb[246].mxu0  ;;  %4566 = vmatmul.mubr.bf16.gmra.mrb[112].mxu1 %v10658_v60 }
 0x528   : > { %v3834_v51 = vadd.f32 %v8458_v35, %v10586_v21  ;;  %v3825_v20 = vpop.f32.mrb[247].mxu0  ;;  %4575 = vmatprep.mubr.bf16.mxu1 %v12613_v38  ;;  %v4179_v62 = vmax.f32 %v3831_v52, 0.0 }
 0x529   : > { %v3826_v33 = vadd.f32 %v10586_v21, %v3825_v20  ;;  %v4177_v57 = vmax.f32 %v3823_v22, 0.0 }
 0x52a   : > { %v4180_v27 = vmax.f32 %v3834_v51, 0.0 }
 0x52b   : > { %v4178_v18 = vmax.f32 %v3826_v33, 0.0 }
 0x52c   : > { %v10749_v11 = vpack.c.bf16 %v4180_v27, %v4179_v62 }
 0x52d   : > { %v10751_v4 = vpack.c.bf16 %v4178_v18, %v4177_v57  ;;  %v8461_v41 = vpop.f32.mrb[248].mxu0 }
 0x52e   : > { %v3847_v60 = vadd.f32 %v8461_v41, %v10586_v21  ;;  %v3838_v14 = vpop.f32.mrb[249].mxu0 }
 0x52f   : > { %v3839_v56 = vadd.f32 %v10586_v21, %v3838_v14  ;;  %v8462_v16 = vpop.f32.mrb[250].mxu0  ;;  %4576 = vmatmul.mubr.bf16.gmra.mrb[116].mxu1 %v10656_v36 }
 0x530   : > { %v3850_v29 = vadd.f32 %v8462_v16, %v10586_v21  ;;  %v3841_v25 = vpop.f32.mrb[251].mxu0  ;;  %4585 = vmatprep.mubr.bf16.mxu1 %v12613_v38  ;;  %v4183_v61 = vmax.f32 %v3847_v60, 0.0 }
 0x531   : > { %v3842_v50 = vadd.f32 %v10586_v21, %v3841_v25  ;;  %v4181_v17 = vmax.f32 %v3839_v56, 0.0 }
 0x532   : > { %v4184_v15 = vmax.f32 %v3850_v29, 0.0 }
 0x533   : > { %v4182_v58 = vmax.f32 %v3842_v50, 0.0 }
 0x534   : > { %v10759_v28 = vpack.c.bf16 %v4184_v15, %v4183_v61 }
 0x535   : > { %v10761_v3 = vpack.c.bf16 %v4182_v58, %v4181_v17  ;;  %v8465_v55 = vpop.f32.mrb[252].mxu0 }
 0x536   : > { %v3863_v37 = vadd.f32 %v8465_v55, %v10586_v21  ;;  %v3854_v31 = vpop.f32.mrb[253].mxu0 }
 0x537   : > { %v3855_v36 = vadd.f32 %v10586_v21, %v3854_v31  ;;  %v8466_v23 = vpop.f32.mrb[254].mxu0  ;;  %4586 = vmatmul.mubr.bf16.gmra.mrb[120].mxu1 %v10667_v54 }
 0x538   : > { %v3866_v13 = vadd.f32 %v8466_v23, %v10586_v21  ;;  %v3857_v40 = vpop.f32.mrb[255].mxu0  ;;  %4595 = vmatprep.mubr.bf16.mxu1 %v12613_v38  ;;  %v4187_v63 = vmax.f32 %v3863_v37, 0.0 }
 0x539   : > { %v3858_v12 = vadd.f32 %v10586_v21, %v3857_v40  ;;  %v4185_v49 = vmax.f32 %v3855_v36, 0.0 }
 0x53a   : > { %v4188_v6 = vmax.f32 %v3866_v13, 0.0 }
 0x53b   : > { %v4186_v48 = vmax.f32 %v3858_v12, 0.0 }
 0x53c   : > { %v10769_v19 = vpack.c.bf16 %v4188_v6, %v4187_v63 }
 0x53d   : > { %v10771_v45 = vpack.c.bf16 %v4186_v48, %v4185_v49  ;;  %v8469_v34 = vpop.f32.mrb[0].mxu0 }
 0x53e   : > { %v3879_v59 = vadd.f32 %v8469_v34, %v10586_v21  ;;  %v3870_v32 = vpop.f32.mrb[1].mxu0 }
 0x53f   : > { %v3871_v54 = vadd.f32 %v10586_v21, %v3870_v32  ;;  %v8470_v53 = vpop.f32.mrb[2].mxu0  ;;  %4596 = vmatmul.mubr.bf16.gmra.mrb[124].mxu1 %v10665_v46 }
 0x540   : > { %v3882_v7 = vadd.f32 %v8470_v53, %v10586_v21  ;;  %v3873_v1 = vpop.f32.mrb[3].mxu0  ;;  %4605 = vmatprep.mubr.bf16.mxu1 %v12613_v38  ;;  %v4191_v52 = vmax.f32 %v3879_v59, 0.0 }
 0x541   : > { %v3874_v42 = vadd.f32 %v10586_v21, %v3873_v1  ;;  %v4189_v22 = vmax.f32 %v3871_v54, 0.0 }
 0x542   : > { %v4192_v2 = vmax.f32 %v3882_v7, 0.0 }
 0x543   : > { %v4190_v35 = vmax.f32 %v3874_v42, 0.0 }
 0x544   : > { %v10779_v51 = vpack.c.bf16 %v4192_v2, %v4191_v52 }
 0x545   : > { %v10781_v20 = vpack.c.bf16 %v4190_v35, %v4189_v22  ;;  %v8473_v33 = vpop.f32.mrb[4].mxu0 }
 0x546   : > { %v3895_v62 = vadd.f32 %v8473_v33, %v10586_v21  ;;  %v3886_v27 = vpop.f32.mrb[5].mxu0 }
 0x547   : > { %v3887_v46 = vadd.f32 %v10586_v21, %v3886_v27  ;;  %v8474_v57 = vpop.f32.mrb[6].mxu0  ;;  %4606 = vmatmul.mubr.bf16.gmra.mrb[128].mxu1 %v10677_v30 }
 0x548   : > { %v3898_v18 = vadd.f32 %v8474_v57, %v10586_v21  ;;  %v3889_v41 = vpop.f32.mrb[7].mxu0  ;;  %4615 = vmatprep.mubr.bf16.mxu1 %v12613_v38  ;;  %v4195_v14 = vmax.f32 %v3895_v62, 0.0 }
 0x549   : > { %v3890_v60 = vadd.f32 %v10586_v21, %v3889_v41  ;;  %v4193_v16 = vmax.f32 %v3887_v46, 0.0 }
 0x54a   : > { %v4196_v56 = vmax.f32 %v3898_v18, 0.0 }
 0x54b   : > { %v4194_v29 = vmax.f32 %v3890_v60, 0.0 }
 0x54c   : > { %v10789_v25 = vpack.c.bf16 %v4196_v56, %v4195_v14 }
 0x54d   : > { %v10791_v50 = vpack.c.bf16 %v4194_v29, %v4193_v16  ;;  %v8477_v61 = vpop.f32.mrb[8].mxu0 }
 0x54e   : > { %v3911_v15 = vadd.f32 %v8477_v61, %v10586_v21  ;;  %v3902_v17 = vpop.f32.mrb[9].mxu0 }
 0x54f   : > { %v3903_v30 = vadd.f32 %v10586_v21, %v3902_v17  ;;  %v8478_v58 = vpop.f32.mrb[10].mxu0  ;;  %4616 = vmatmul.mubr.bf16.gmra.mrb[132].mxu1 %v10675_v39 }
 0x550   : > { %v3914_v55 = vadd.f32 %v8478_v58, %v10586_v21  ;;  %v3905_v37 = vpop.f32.mrb[11].mxu0  ;;  %4625 = vmatprep.mubr.bf16.mxu1 %v12613_v38  ;;  %v4199_v36 = vmax.f32 %v3911_v15, 0.0 }
 0x551   : > { %v3906_v31 = vadd.f32 %v10586_v21, %v3905_v37  ;;  %v4197_v13 = vmax.f32 %v3903_v30, 0.0 }
 0x552   : > { %v4200_v23 = vmax.f32 %v3914_v55, 0.0 }
 0x553   : > { %v4198_v40 = vmax.f32 %v3906_v31, 0.0 }
 0x554   : > { %v10799_v12 = vpack.c.bf16 %v4200_v23, %v4199_v36 }
 0x555   : > { %v10801_v63 = vpack.c.bf16 %v4198_v40, %v4197_v13  ;;  %v8481_v6 = vpop.f32.mrb[12].mxu0 }
 0x556   : > { %v3927_v49 = vadd.f32 %v8481_v6, %v10586_v21  ;;  %v3918_v48 = vpop.f32.mrb[13].mxu0 }
 0x557   : > { %v3919_v39 = vadd.f32 %v10586_v21, %v3918_v48  ;;  %v8482_v34 = vpop.f32.mrb[14].mxu0  ;;  %4626 = vmatmul.mubr.bf16.gmra.mrb[136].mxu1 %v10690_v24 }
 0x558   : > { %v3930_v59 = vadd.f32 %v8482_v34, %v10586_v21  ;;  %v3921_v32 = vpop.f32.mrb[15].mxu0  ;;  %4635 = vmatprep.mubr.bf16.mxu1 %v12613_v38  ;;  %v4203_v53 = vmax.f32 %v3927_v49, 0.0 }
 0x559   : > { %v3922_v54 = vadd.f32 %v10586_v21, %v3921_v32  ;;  %v4201_v1 = vmax.f32 %v3919_v39, 0.0 }
 0x55a   : > { %v4204_v7 = vmax.f32 %v3930_v59, 0.0 }
 0x55b   : > { %v4202_v42 = vmax.f32 %v3922_v54, 0.0 }
 0x55c   : > { %v10809_v52 = vpack.c.bf16 %v4204_v7, %v4203_v53 }
 0x55d   : > { %v10811_v2 = vpack.c.bf16 %v4202_v42, %v4201_v1  ;;  %v8485_v22 = vpop.f32.mrb[16].mxu0 }
 0x55e   : > { %v3943_v35 = vadd.f32 %v8485_v22, %v10586_v21  ;;  %v3934_v33 = vpop.f32.mrb[17].mxu0 }
 0x55f   : > { %v3935_v24 = vadd.f32 %v10586_v21, %v3934_v33  ;;  %v8486_v62 = vpop.f32.mrb[18].mxu0  ;;  %4636 = vmatmul.mubr.bf16.gmra.mrb[140].mxu1 %v10688_v8 }
 0x560   : > { %v3946_v27 = vadd.f32 %v8486_v62, %v10586_v21  ;;  %v3937_v46 = vpop.f32.mrb[19].mxu0  ;;  %4645 = vmatprep.mubr.bf16.mxu1 %v12613_v38  ;;  %v4207_v18 = vmax.f32 %v3943_v35, 0.0 }
 0x561   : > { %v3938_v57 = vadd.f32 %v10586_v21, %v3937_v46  ;;  %v4205_v60 = vmax.f32 %v3935_v24, 0.0 }
 0x562   : > { %v4208_v41 = vmax.f32 %v3946_v27, 0.0 }
 0x563   : > { %v4206_v14 = vmax.f32 %v3938_v57, 0.0 }
 0x564   : > { %v10819_v56 = vpack.c.bf16 %v4208_v41, %v4207_v18 }
 0x565   : > { %v10821_v16 = vpack.c.bf16 %v4206_v14, %v4205_v60  ;;  %v8489_v29 = vpop.f32.mrb[20].mxu0 }
 0x566   : > { %v3959_v61 = vadd.f32 %v8489_v29, %v10586_v21  ;;  %v3950_v15 = vpop.f32.mrb[21].mxu0 }
 0x567   : > { %v3951_v8 = vadd.f32 %v10586_v21, %v3950_v15  ;;  %v8490_v17 = vpop.f32.mrb[22].mxu0  ;;  %4646 = vmatmul.mubr.bf16.gmra.mrb[144].mxu1 %v10706_v47 }
 0x568   : > { %v3962_v30 = vadd.f32 %v8490_v17, %v10586_v21  ;;  %v3953_v58 = vpop.f32.mrb[23].mxu0  ;;  %4655 = vmatprep.mubr.bf16.mxu1 %v12613_v38  ;;  %v4211_v37 = vmax.f32 %v3959_v61, 0.0 }
 0x569   : > { %v3954_v55 = vadd.f32 %v10586_v21, %v3953_v58  ;;  %v4209_v36 = vmax.f32 %v3951_v8, 0.0 }
 0x56a   : > { %v4212_v31 = vmax.f32 %v3962_v30, 0.0 }
 0x56b   : > { %v4210_v23 = vmax.f32 %v3954_v55, 0.0 }
 0x56c   : > { %v10829_v13 = vpack.c.bf16 %v4212_v31, %v4211_v37 }
 0x56d   : > { %v10831_v40 = vpack.c.bf16 %v4210_v23, %v4209_v36  ;;  %v8493_v6 = vpop.f32.mrb[24].mxu0 }
 0x56e   : > { %v3975_v49 = vadd.f32 %v8493_v6, %v10586_v21  ;;  %v3966_v48 = vpop.f32.mrb[25].mxu0 }
 0x56f   : > { %v3967_v47 = vadd.f32 %v10586_v21, %v3966_v48  ;;  %v8494_v39 = vpop.f32.mrb[26].mxu0  ;;  %4656 = vmatmul.mubr.bf16.gmra.mrb[148].mxu1 %v10704_v43 }
 0x570   : > { %v3978_v34 = vadd.f32 %v8494_v39, %v10586_v21  ;;  %v3969_v59 = vpop.f32.mrb[27].mxu0  ;;  %4665 = vmatprep.mubr.bf16.mxu1 %v12613_v38  ;;  %v4215_v54 = vmax.f32 %v3975_v49, 0.0 }
 0x571   : > { %v3970_v32 = vadd.f32 %v10586_v21, %v3969_v59  ;;  %v4213_v7 = vmax.f32 %v3967_v47, 0.0 }
 0x572   : > { %v4216_v53 = vmax.f32 %v3978_v34, 0.0 }
 0x573   : > { %v4214_v1 = vmax.f32 %v3970_v32, 0.0 }
 0x574   : > { %v10839_v42 = vpack.c.bf16 %v4216_v53, %v4215_v54 }
 0x575   : > { %v10841_v22 = vpack.c.bf16 %v4214_v1, %v4213_v7  ;;  %v8497_v35 = vpop.f32.mrb[28].mxu0 }
 0x576   : > { %v3991_v33 = vadd.f32 %v8497_v35, %v10586_v21  ;;  %v3982_v24 = vpop.f32.mrb[29].mxu0 }
 0x577   : > { %v3983_v43 = vadd.f32 %v10586_v21, %v3982_v24  ;;  %v8498_v62 = vpop.f32.mrb[30].mxu0  ;;  %4666 = vmatmul.mubr.bf16.gmra.mrb[152].mxu1 %v10722_v0 }
 0x578   : > { %v3994_v27 = vadd.f32 %v8498_v62, %v10586_v21  ;;  %v3985_v46 = vpop.f32.mrb[31].mxu0  ;;  %4675 = vmatprep.mubr.bf16.mxu1 %v12613_v38  ;;  %v4219_v18 = vmax.f32 %v3991_v33, 0.0 }
 0x579   : > { %v3986_v57 = vadd.f32 %v10586_v21, %v3985_v46  ;;  %v4217_v60 = vmax.f32 %v3983_v43, 0.0 }
 0x57a   : > { %v4220_v41 = vmax.f32 %v3994_v27, 0.0  ;;  %v10873_v27 = vld [vmem:[#allocation6 + $0x3] ss:$0 sm:$0xff] }
 0x57b   : > { %v4218_v14 = vmax.f32 %v3986_v57, 0.0 }
 0x57c   : > { %v10849_v29 = vpack.c.bf16 %v4220_v41, %v4219_v18 }
 0x57d   : > { %v10851_v61 = vpack.c.bf16 %v4218_v14, %v4217_v60  ;;  %v8501_v15 = vpop.f32.mrb[32].mxu0 }
 0x57e   : > { %v4007_v8 = vadd.f32 %v8501_v15, %v10586_v21  ;;  %v3998_v17 = vpop.f32.mrb[33].mxu0 }
 0x57f   : > { %v3999_v0 = vadd.f32 %v10586_v21, %v3998_v17  ;;  %v8502_v30 = vpop.f32.mrb[34].mxu0  ;;  %4676 = vmatmul.mubr.bf16.gmra.mrb[156].mxu1 %v10720_v26 }
 0x580   : > { %v4010_v58 = vadd.f32 %v8502_v30, %v10586_v21  ;;  %v4001_v55 = vpop.f32.mrb[35].mxu0  ;;  %4685 = vmatprep.mubr.bf16.mxu1 %v12613_v38  ;;  %v4223_v31 = vmax.f32 %v4007_v8, 0.0 }
 0x581   : > { %v4002_v37 = vadd.f32 %v10586_v21, %v4001_v55  ;;  %v4221_v23 = vmax.f32 %v3999_v0, 0.0 }
 0x582   : > { %v4224_v36 = vmax.f32 %v4010_v58, 0.0 }
 0x583   : > { %v4222_v6 = vmax.f32 %v4002_v37, 0.0 }
 0x584   : > { %v10859_v49 = vpack.c.bf16 %v4224_v36, %v4223_v31 }
 0x585   : > { %v10861_v48 = vpack.c.bf16 %v4222_v6, %v4221_v23  ;;  %v8505_v47 = vpop.f32.mrb[36].mxu0  ;;  %v10889_v6 = vld [vmem:[#allocation6 + $0x4] ss:$0 sm:$0xff] }
 0x586   : > { %v4023_v39 = vadd.f32 %v8505_v47, %v10586_v21  ;;  %v4014_v34 = vpop.f32.mrb[37].mxu0 }
 0x587   : > { %v4015_v26 = vadd.f32 %v10586_v21, %v4014_v34  ;;  %v8506_v59 = vpop.f32.mrb[38].mxu0  ;;  %4686 = vmatmul.mubr.bf16.gmra.mrb[160].mxu1 %v10738_v9 }
 0x588   : > { %v4026_v32 = vadd.f32 %v8506_v59, %v10586_v21  ;;  %v4017_v54 = vpop.f32.mrb[39].mxu0  ;;  %4695 = vmatprep.mubr.bf16.mxu1 %v12613_v38  ;;  %v4227_v7 = vmax.f32 %v4023_v39, 0.0 }
 0x589   : > { %v4018_v53 = vadd.f32 %v10586_v21, %v4017_v54  ;;  %v4225_v35 = vmax.f32 %v4015_v26, 0.0 }
 0x58a   : > { %v4228_v1 = vmax.f32 %v4026_v32, 0.0 }
 0x58b   : > { %v4226_v33 = vmax.f32 %v4018_v53, 0.0 }
 0x58c   : > { %v10869_v24 = vpack.c.bf16 %v4228_v1, %v4227_v7 }
 0x58d   : > { %v10871_v43 = vpack.c.bf16 %v4226_v33, %v4225_v35  ;;  %v8509_v62 = vpop.f32.mrb[40].mxu0 }
 0x58e   : > { %v4039_v9 = vadd.f32 %v10873_v27, %v8509_v62  ;;  %v4030_v46 = vpop.f32.mrb[41].mxu0 }
 0x58f   : > { %v4031_v57 = vadd.f32 %v10873_v27, %v4030_v46  ;;  %v8510_v18 = vpop.f32.mrb[42].mxu0  ;;  %4696 = vmatmul.mubr.bf16.gmra.mrb[164].mxu1 %v10736_v10 }
 0x590   : > { %v4042_v21 = vadd.f32 %v10873_v27, %v8510_v18  ;;  %v4033_v41 = vpop.f32.mrb[43].mxu0  ;;  %4705 = vmatprep.mubr.bf16.mxu1 %v12613_v38  ;;  %v4231_v14 = vmax.f32 %v4039_v9, 0.0 }
 0x591   : > { %v4034_v60 = vadd.f32 %v10873_v27, %v4033_v41  ;;  %v4229_v8 = vmax.f32 %v4031_v57, 0.0 }
 0x592   : > { %v4232_v15 = vmax.f32 %v4042_v21, 0.0 }
 0x593   : > { %v4230_v17 = vmax.f32 %v4034_v60, 0.0 }
 0x594   : > { %v10881_v0 = vpack.c.bf16 %v4232_v15, %v4231_v14 }
 0x595   : > { %v10883_v30 = vpack.c.bf16 %v4230_v17, %v4229_v8  ;;  %v8513_v58 = vpop.f32.mrb[44].mxu0 }
 0x596   : > { %v4055_v55 = vadd.f32 %v10873_v27, %v8513_v58  ;;  %v4046_v37 = vpop.f32.mrb[45].mxu0 }
 0x597   : > { %v4047_v10 = vadd.f32 %v10873_v27, %v4046_v37  ;;  %v8514_v31 = vpop.f32.mrb[46].mxu0  ;;  %4706 = vmatmul.mubr.bf16.gmra.mrb[168].mxu1 %v10751_v4 }
 0x598   : > { %v4058_v36 = vadd.f32 %v10873_v27, %v8514_v31  ;;  %v4049_v23 = vpop.f32.mrb[47].mxu0  ;;  %4715 = vmatprep.mubr.bf16.mxu1 %v12613_v38  ;;  %v4235_v39 = vmax.f32 %v4055_v55, 0.0 }
 0x599   : > { %v4050_v47 = vadd.f32 %v10873_v27, %v4049_v23  ;;  %v4233_v59 = vmax.f32 %v4047_v10, 0.0 }
 0x59a   : > { %v4236_v34 = vmax.f32 %v4058_v36, 0.0  ;;  %v4447_v26 = vpop.f32.mrb[64].mxu1 }
 0x59b   : > { %v4234_v32 = vmax.f32 %v4050_v47, 0.0  ;;  %v5091_v54 = vadd.f32 %v10889_v6, %v4447_v26  ;;  %v10894_v53 = vpop.f32.mrb[65].mxu1 }
 0x59c   : > { %v10896_v7 = vpack.c.bf16 %v4236_v34, %v4235_v39  ;;  %v4451_v4 = vpop.f32.mrb[66].mxu1 }
 0x59d   : > { %v10898_v1 = vpack.c.bf16 %v4234_v32, %v4233_v59  ;;  %v5092_v35 = vadd.f32 %v10889_v6, %v4451_v4  ;;  %v8517_v33 = vpop.f32.mrb[48].mxu0  ;;  %v10901_v62 = vpop.f32.mrb[67].mxu1  ;;  %v5219_v57 = vmax.f32 %v5091_v54, 0.0 }
 0x59e   : > { %v4071_v9 = vadd.f32 %v10873_v27, %v8517_v33  ;;  %v4062_v46 = vpop.f32.mrb[49].mxu0 }
 0x59f   : > { %v5220_v18 = vmax.f32 %v5092_v35, 0.0  ;;  %v4063_v21 = vadd.f32 %v10873_v27, %v4062_v46  ;;  %v8518_v41 = vpop.f32.mrb[50].mxu0  ;;  %4716 = vmatmul.mubr.bf16.gmra.mrb[172].mxu1 %v10749_v11 }
 0x5a0   : > { %v4074_v60 = vadd.f32 %v10873_v27, %v8518_v41  ;;  %v4065_v14 = vpop.f32.mrb[51].mxu0  ;;  %4725 = vmatprep.mubr.bf16.mxu1 %v12613_v38  ;;  %v4239_v17 = vmax.f32 %v4071_v9, 0.0 }
 0x5a1   : > { %v5347_v15 = vpack.c.bf16 %v5220_v18, %v5219_v57  ;;  %v4066_v8 = vadd.f32 %v10873_v27, %v4065_v14  ;;  %v4237_v37 = vmax.f32 %v4063_v21, 0.0 }
 0x5a2   : > { %v4240_v58 = vmax.f32 %v4074_v60, 0.0  ;;  %v4457_v55 = vpop.f32.mrb[68].mxu1 }
 0x5a3   : > { %v4238_v10 = vmax.f32 %v4066_v8, 0.0  ;;  %v5093_v31 = vadd.f32 %v10889_v6, %v4457_v55  ;;  %v10910_v36 = vpop.f32.mrb[69].mxu1  ;;  %8547 = vmatprep.mubr.bf16.mxu0 %v5347_v15 }
 0x5a4   : > { %v10912_v23 = vpack.c.bf16 %v4240_v58, %v4239_v17  ;;  %v4461_v11 = vpop.f32.mrb[70].mxu1 }
 0x5a5   : > { %v10914_v47 = vpack.c.bf16 %v4238_v10, %v4237_v37  ;;  %v5094_v39 = vadd.f32 %v10889_v6, %v4461_v11  ;;  %v8521_v34 = vpop.f32.mrb[52].mxu0  ;;  %v10917_v26 = vpop.f32.mrb[71].mxu1  ;;  %v5221_v54 = vmax.f32 %v5093_v31, 0.0 }
 0x5a6   : > { %v4087_v59 = vadd.f32 %v10873_v27, %v8521_v34  ;;  %v4078_v32 = vpop.f32.mrb[53].mxu0 }
 0x5a7   : > { %v5222_v4 = vmax.f32 %v5094_v39, 0.0  ;;  %v4079_v35 = vadd.f32 %v10873_v27, %v4078_v32  ;;  %v8522_v33 = vpop.f32.mrb[54].mxu0  ;;  %4726 = vmatmul.mubr.bf16.gmra.mrb[176].mxu1 %v10761_v3 }
 0x5a8   : > { %v4090_v9 = vadd.f32 %v10873_v27, %v8522_v33  ;;  %v4081_v46 = vpop.f32.mrb[55].mxu0  ;;  %4735 = vmatprep.mubr.bf16.mxu1 %v12613_v38  ;;  %v4243_v21 = vmax.f32 %v4087_v59, 0.0 }
 0x5a9   : > { %v5348_v57 = vpack.c.bf16 %v5222_v4, %v5221_v54  ;;  %v4082_v18 = vadd.f32 %v10873_v27, %v4081_v46  ;;  %v4241_v14 = vmax.f32 %v4079_v35, 0.0 }
 0x5aa   : > { %v4244_v41 = vmax.f32 %v4090_v9, 0.0  ;;  %v4467_v60 = vpop.f32.mrb[72].mxu1 }
 0x5ab   : > { %v4242_v15 = vmax.f32 %v4082_v18, 0.0  ;;  %v5095_v8 = vadd.f32 %v10889_v6, %v4467_v60  ;;  %v10926_v17 = vpop.f32.mrb[73].mxu1  ;;  %8548 = vmatmul.mubr.bf16.vlgmr.msra.gmra.mrb[64].mxu0 %v5348_v57 }
 0x5ac   : > { %v10928_v58 = vpack.c.bf16 %v4244_v41, %v4243_v21  ;;  %v4471_v3 = vpop.f32.mrb[74].mxu1 }
 0x5ad   : > { %v10930_v55 = vpack.c.bf16 %v4242_v15, %v4241_v14  ;;  %v5096_v37 = vadd.f32 %v10889_v6, %v4471_v3  ;;  %v8525_v10 = vpop.f32.mrb[56].mxu0  ;;  %v10933_v31 = vpop.f32.mrb[75].mxu1  ;;  %v5223_v34 = vmax.f32 %v5095_v8, 0.0 }
 0x5ae   : > { %12614 = vst [vmem:[#allocation120_spill] sm:$0xff] %v10933_v31  ;;  %v4103_v11 = vadd.f32 %v10873_v27, %v8525_v10  ;;  %v4094_v39 = vpop.f32.mrb[57].mxu0 }
 0x5af   : > { %v5224_v59 = vmax.f32 %v5096_v37, 0.0  ;;  %v4095_v32 = vadd.f32 %v10873_v27, %v4094_v39  ;;  %v8526_v54 = vpop.f32.mrb[58].mxu0  ;;  %4736 = vmatmul.mubr.bf16.gmra.mrb[180].mxu1 %v10759_v28 }
 0x5b0   : > { %v4106_v4 = vadd.f32 %v10873_v27, %v8526_v54  ;;  %v4097_v35 = vpop.f32.mrb[59].mxu0  ;;  %4745 = vmatprep.mubr.bf16.mxu1 %v12613_v38  ;;  %v4247_v46 = vmax.f32 %v4103_v11, 0.0 }
 0x5b1   : > { %v5349_v33 = vpack.c.bf16 %v5224_v59, %v5223_v34  ;;  %v4098_v9 = vadd.f32 %v10873_v27, %v4097_v35  ;;  %v4245_v21 = vmax.f32 %v4095_v32, 0.0 }
 0x5b2   : > { %v4248_v57 = vmax.f32 %v4106_v4, 0.0  ;;  %v4477_v18 = vpop.f32.mrb[76].mxu1 }
 0x5b3   : > { %v4246_v41 = vmax.f32 %v4098_v9, 0.0  ;;  %v5097_v60 = vadd.f32 %v10889_v6, %v4477_v18  ;;  %v10942_v14 = vpop.f32.mrb[77].mxu1  ;;  %8551 = vmatprep.mubr.bf16.mxu0 %v5349_v33 }
 0x5b4   : > { %v10944_v15 = vpack.c.bf16 %v4248_v57, %v4247_v46  ;;  %v4481_v28 = vpop.f32.mrb[78].mxu1 }
 0x5b5   : > { %v10946_v8 = vpack.c.bf16 %v4246_v41, %v4245_v21  ;;  %v5098_v3 = vadd.f32 %v10889_v6, %v4481_v28  ;;  %v8529_v37 = vpop.f32.mrb[60].mxu0  ;;  %v10949_v10 = vpop.f32.mrb[79].mxu1  ;;  %v5225_v34 = vmax.f32 %v5097_v60, 0.0 }
 0x5b6   : > { %12615 = vst [vmem:[#allocation126_spill] sm:$0xff] %v10949_v10  ;;  %v4119_v11 = vadd.f32 %v10873_v27, %v8529_v37  ;;  %v4110_v39 = vpop.f32.mrb[61].mxu0 }
 0x5b7   : > { %v5226_v59 = vmax.f32 %v5098_v3, 0.0  ;;  %v4111_v32 = vadd.f32 %v10873_v27, %v4110_v39  ;;  %v8530_v54 = vpop.f32.mrb[62].mxu0  ;;  %4746 = vmatmul.mubr.bf16.gmra.mrb[184].mxu1 %v10771_v45 }
 0x5b8   : > { %v4122_v4 = vadd.f32 %v10873_v27, %v8530_v54  ;;  %v4113_v35 = vpop.f32.mrb[63].mxu0  ;;  %4755 = vmatprep.mubr.bf16.mxu1 %v12613_v38  ;;  %v4251_v46 = vmax.f32 %v4119_v11, 0.0 }
 0x5b9   : > { %v5350_v33 = vpack.c.bf16 %v5226_v59, %v5225_v34  ;;  %v4114_v9 = vadd.f32 %v10873_v27, %v4113_v35  ;;  %v4249_v21 = vmax.f32 %v4111_v32, 0.0 }
 0x5ba   : > { %v4252_v57 = vmax.f32 %v4122_v4, 0.0  ;;  %v4487_v18 = vpop.f32.mrb[80].mxu1 }
 0x5bb   : > { %v4250_v41 = vmax.f32 %v4114_v9, 0.0  ;;  %v5099_v60 = vadd.f32 %v10889_v6, %v4487_v18  ;;  %v10958_v28 = vpop.f32.mrb[81].mxu1  ;;  %8552 = vmatmul.mubr.bf16.gmra.mrb[68].mxu0 %v5350_v33 }
 0x5bc   : > { %12616 = vst [vmem:[#allocation125_spill] sm:$0xff] %v10958_v28  ;;  %v10960_v3 = vpack.c.bf16 %v4252_v57, %v4251_v46  ;;  %v4491_v45 = vpop.f32.mrb[82].mxu1 }
 0x5bd   : > { %v10962_v37 = vpack.c.bf16 %v4250_v41, %v4249_v21  ;;  %v5100_v39 = vadd.f32 %v10889_v6, %v4491_v45  ;;  %v10965_v34 = vpop.f32.mrb[83].mxu1  ;;  %v5227_v27 = vmax.f32 %v5099_v60, 0.0 }
 0x5be   : > { %12617 = vst [vmem:[#allocation132_spill] sm:$0xff] %v10965_v34 }
 0x5bf   : > { %v5228_v11 = vmax.f32 %v5100_v39, 0.0  ;;  %4756 = vmatmul.mubr.bf16.gmra.mrb[188].mxu1 %v10769_v19 }
 0x5c0   : > { %4765 = vmatprep.mubr.bf16.mxu1 %v12613_v38 }
 0x5c1   : > { %v5351_v59 = vpack.c.bf16 %v5228_v11, %v5227_v27 }
 0x5c2   : > { %v4497_v32 = vpop.f32.mrb[84].mxu1 }
 0x5c3   : > { %v5101_v54 = vadd.f32 %v10889_v6, %v4497_v32  ;;  %v10970_v4 = vpop.f32.mrb[85].mxu1  ;;  %8555 = vmatprep.mubr.bf16.mxu0 %v5351_v59 }
 0x5c4   : > { %12618 = vst [vmem:[#allocation131_spill] sm:$0xff] %v10970_v4  ;;  %v4501_v35 = vpop.f32.mrb[86].mxu1 }
 0x5c5   : > { %v5102_v33 = vadd.f32 %v10889_v6, %v4501_v35  ;;  %v10973_v9 = vpop.f32.mrb[87].mxu1  ;;  %v5229_v46 = vmax.f32 %v5101_v54, 0.0 }
 0x5c6   : > { %12619 = vst [vmem:[#allocation138_spill] sm:$0xff] %v10973_v9 }
 0x5c7   : > { %v5230_v57 = vmax.f32 %v5102_v33, 0.0  ;;  %4766 = vmatmul.mubr.bf16.gmra.mrb[192].mxu1 %v10781_v20 }
 0x5c8   : > { %4775 = vmatprep.mubr.bf16.mxu1 %v12613_v38 }
 0x5c9   : > { %v5352_v19 = vpack.c.bf16 %v5230_v57, %v5229_v46 }
 0x5ca   : > { %v4507_v18 = vpop.f32.mrb[88].mxu1 }
 0x5cb   : > { %v5103_v21 = vadd.f32 %v10889_v6, %v4507_v18  ;;  %v10978_v41 = vpop.f32.mrb[89].mxu1  ;;  %8556 = vmatmul.mubr.bf16.gmra.mrb[72].mxu0 %v5352_v19 }
 0x5cc   : > { %12620 = vst [vmem:[#allocation137_spill] sm:$0xff] %v10978_v41  ;;  %v4511_v60 = vpop.f32.mrb[90].mxu1 }
 0x5cd   : > { %v5104_v45 = vadd.f32 %v10889_v6, %v4511_v60  ;;  %v10981_v39 = vpop.f32.mrb[91].mxu1  ;;  %v5231_v27 = vmax.f32 %v5103_v21, 0.0 }
 0x5ce   : > { %12621 = vst [vmem:[#allocation142_spill] sm:$0xff] %v10981_v39 }
 0x5cf   : > { %v5232_v11 = vmax.f32 %v5104_v45, 0.0  ;;  %4776 = vmatmul.mubr.bf16.gmra.mrb[196].mxu1 %v10779_v51 }
 0x5d0   : > { %4785 = vmatprep.mubr.bf16.mxu1 %v12613_v38 }
 0x5d1   : > { %v5353_v20 = vpack.c.bf16 %v5232_v11, %v5231_v27 }
 0x5d2   : > { %v4517_v59 = vpop.f32.mrb[92].mxu1 }
 0x5d3   : > { %v5105_v32 = vadd.f32 %v10889_v6, %v4517_v59  ;;  %v10986_v54 = vpop.f32.mrb[93].mxu1  ;;  %8559 = vmatprep.mubr.bf16.mxu0 %v5353_v20 }
 0x5d4   : > { %12622 = vst [vmem:[#allocation143_spill] sm:$0xff] %v10986_v54  ;;  %v4521_v35 = vpop.f32.mrb[94].mxu1 }
 0x5d5   : > { %v5106_v33 = vadd.f32 %v10889_v6, %v4521_v35  ;;  %v10989_v46 = vpop.f32.mrb[95].mxu1  ;;  %v5233_v57 = vmax.f32 %v5105_v32, 0.0 }
 0x5d6   : > { %12623 = vst [vmem:[#allocation144_spill] sm:$0xff] %v10989_v46 }
 0x5d7   : > { %v5234_v19 = vmax.f32 %v5106_v33, 0.0  ;;  %4786 = vmatmul.mubr.bf16.gmra.mrb[200].mxu1 %v10791_v50 }
 0x5d8   : > { %4795 = vmatprep.mubr.bf16.mxu1 %v12613_v38 }
 0x5d9   : > { %v5354_v51 = vpack.c.bf16 %v5234_v19, %v5233_v57 }
 0x5da   : > { %v4527_v18 = vpop.f32.mrb[96].mxu1 }
 0x5db   : > { %v5107_v21 = vadd.f32 %v10889_v6, %v4527_v18  ;;  %v10994_v60 = vpop.f32.mrb[97].mxu1  ;;  %8560 = vmatmul.mubr.bf16.gmra.mrb[76].mxu0 %v5354_v51 }
 0x5dc   : > { %12624 = vst [vmem:[#allocation145_spill] sm:$0xff] %v10994_v60  ;;  %v4531_v45 = vpop.f32.mrb[98].mxu1 }
 0x5dd   : > { %v5108_v27 = vadd.f32 %v10889_v6, %v4531_v45  ;;  %v10997_v11 = vpop.f32.mrb[99].mxu1  ;;  %v5235_v20 = vmax.f32 %v5107_v21, 0.0 }
 0x5de   : > { %12625 = vst [vmem:[#allocation146_spill] sm:$0xff] %v10997_v11 }
 0x5df   : > { %v5236_v59 = vmax.f32 %v5108_v27, 0.0  ;;  %4796 = vmatmul.mubr.bf16.gmra.mrb[204].mxu1 %v10789_v25 }
 0x5e0   : > { %4805 = vmatprep.mubr.bf16.mxu1 %v12613_v38 }
 0x5e1   : > { %v5355_v50 = vpack.c.bf16 %v5236_v59, %v5235_v20 }
 0x5e2   : > { %v4537_v32 = vpop.f32.mrb[100].mxu1 }
 0x5e3   : > { %v5109_v35 = vadd.f32 %v10889_v6, %v4537_v32  ;;  %v11002_v33 = vpop.f32.mrb[101].mxu1  ;;  %8563 = vmatprep.mubr.bf16.mxu0 %v5355_v50 }
 0x5e4   : > { %12626 = vst [vmem:[#allocation147_spill] sm:$0xff] %v11002_v33  ;;  %v4541_v57 = vpop.f32.mrb[102].mxu1 }
 0x5e5   : > { %v5110_v19 = vadd.f32 %v10889_v6, %v4541_v57  ;;  %v11005_v51 = vpop.f32.mrb[103].mxu1  ;;  %v5237_v18 = vmax.f32 %v5109_v35, 0.0 }
 0x5e6   : > { %12627 = vst [vmem:[#allocation148_spill] sm:$0xff] %v11005_v51 }
 0x5e7   : > { %v5238_v45 = vmax.f32 %v5110_v19, 0.0  ;;  %4806 = vmatmul.mubr.bf16.gmra.mrb[208].mxu1 %v10801_v63 }
 0x5e8   : > { %4815 = vmatprep.mubr.bf16.mxu1 %v12613_v38 }
 0x5e9   : > { %v5356_v25 = vpack.c.bf16 %v5238_v45, %v5237_v18 }
 0x5ea   : > { %v4547_v21 = vpop.f32.mrb[104].mxu1 }
 0x5eb   : > { %v5111_v27 = vadd.f32 %v10889_v6, %v4547_v21  ;;  %v11010_v20 = vpop.f32.mrb[105].mxu1  ;;  %8564 = vmatmul.mubr.bf16.gmra.mrb[80].mxu0 %v5356_v25 }
 0x5ec   : > { %12628 = vst [vmem:[#allocation149_spill] sm:$0xff] %v11010_v20  ;;  %v4551_v59 = vpop.f32.mrb[106].mxu1 }
 0x5ed   : > { %v5112_v50 = vadd.f32 %v10889_v6, %v4551_v59  ;;  %v11013_v32 = vpop.f32.mrb[107].mxu1  ;;  %v5239_v57 = vmax.f32 %v5111_v27, 0.0 }
 0x5ee   : > { %12629 = vst [vmem:[#allocation150_spill] sm:$0xff] %v11013_v32 }
 0x5ef   : > { %v5240_v11 = vmax.f32 %v5112_v50, 0.0  ;;  %4816 = vmatmul.mubr.bf16.gmra.mrb[212].mxu1 %v10799_v12 }
 0x5f0   : > { %4825 = vmatprep.mubr.bf16.mxu1 %v12613_v38 }
 0x5f1   : > { %v5357_v63 = vpack.c.bf16 %v5240_v11, %v5239_v57 }
 0x5f2   : > { %v4557_v35 = vpop.f32.mrb[108].mxu1 }
 0x5f3   : > { %v5113_v19 = vadd.f32 %v10889_v6, %v4557_v35  ;;  %v11018_v18 = vpop.f32.mrb[109].mxu1  ;;  %8567 = vmatprep.mubr.bf16.mxu0 %v5357_v63 }
 0x5f4   : > { %12630 = vst [vmem:[#allocation151_spill] sm:$0xff] %v11018_v18  ;;  %v4561_v45 = vpop.f32.mrb[110].mxu1 }
 0x5f5   : > { %v5114_v25 = vadd.f32 %v10889_v6, %v4561_v45  ;;  %v11021_v21 = vpop.f32.mrb[111].mxu1  ;;  %v5241_v59 = vmax.f32 %v5113_v19, 0.0 }
 0x5f6   : > { %12631 = vst [vmem:[#allocation152_spill] sm:$0xff] %v11021_v21 }
 0x5f7   : > { %v5242_v32 = vmax.f32 %v5114_v25, 0.0  ;;  %4826 = vmatmul.mubr.bf16.gmra.mrb[216].mxu1 %v10811_v2 }
 0x5f8   : > { %4835 = vmatprep.mubr.bf16.mxu1 %v12613_v38 }
 0x5f9   : > { %v5358_v12 = vpack.c.bf16 %v5242_v32, %v5241_v59 }
 0x5fa   : > { %v4567_v27 = vpop.f32.mrb[112].mxu1 }
 0x5fb   : > { %v5115_v11 = vadd.f32 %v10889_v6, %v4567_v27  ;;  %v11026_v50 = vpop.f32.mrb[113].mxu1  ;;  %8568 = vmatmul.mubr.bf16.gmra.mrb[84].mxu0 %v5358_v12 }
 0x5fc   : > { %12632 = vst [vmem:[#allocation153_spill] sm:$0xff] %v11026_v50  ;;  %v4571_v57 = vpop.f32.mrb[114].mxu1 }
 0x5fd   : > { %v5116_v63 = vadd.f32 %v10889_v6, %v4571_v57  ;;  %v11029_v35 = vpop.f32.mrb[115].mxu1  ;;  %v5243_v45 = vmax.f32 %v5115_v11, 0.0 }
 0x5fe   : > { %12633 = vst [vmem:[#allocation154_spill] sm:$0xff] %v11029_v35 }
 0x5ff   : > { %v5244_v21 = vmax.f32 %v5116_v63, 0.0  ;;  %4836 = vmatmul.mubr.bf16.gmra.mrb[220].mxu1 %v10809_v52 }
 0x600   : > { %4845 = vmatprep.mubr.bf16.mxu1 %v12613_v38 }
 0x601   : > { %v5359_v2 = vpack.c.bf16 %v5244_v21, %v5243_v45 }
 0x602   : > { %v4577_v19 = vpop.f32.mrb[116].mxu1 }
 0x603   : > { %v5117_v32 = vadd.f32 %v10889_v6, %v4577_v19  ;;  %v11034_v25 = vpop.f32.mrb[117].mxu1  ;;  %8571 = vmatprep.mubr.bf16.mxu0 %v5359_v2 }
 0x604   : > { %12634 = vst [vmem:[#allocation155_spill] sm:$0xff] %v11034_v25  ;;  %v4581_v59 = vpop.f32.mrb[118].mxu1 }
 0x605   : > { %v5118_v12 = vadd.f32 %v10889_v6, %v4581_v59  ;;  %v11037_v27 = vpop.f32.mrb[119].mxu1  ;;  %v5245_v57 = vmax.f32 %v5117_v32, 0.0 }
 0x606   : > { %12635 = vst [vmem:[#allocation156_spill] sm:$0xff] %v11037_v27 }
 0x607   : > { %v5246_v35 = vmax.f32 %v5118_v12, 0.0  ;;  %4846 = vmatmul.mubr.bf16.gmra.mrb[224].mxu1 %v10821_v16 }
 0x608   : > { %4855 = vmatprep.mubr.bf16.mxu1 %v12613_v38 }
 0x609   : > { %v5360_v52 = vpack.c.bf16 %v5246_v35, %v5245_v57 }
 0x60a   : > { %v4587_v11 = vpop.f32.mrb[120].mxu1 }
 0x60b   : > { %v5119_v21 = vadd.f32 %v10889_v6, %v4587_v11  ;;  %v11042_v63 = vpop.f32.mrb[121].mxu1  ;;  %8572 = vmatmul.mubr.bf16.gmra.mrb[88].mxu0 %v5360_v52 }
 0x60c   : > { %12636 = vst [vmem:[#allocation157_spill] sm:$0xff] %v11042_v63  ;;  %v4591_v45 = vpop.f32.mrb[122].mxu1 }
 0x60d   : > { %v5120_v2 = vadd.f32 %v10889_v6, %v4591_v45  ;;  %v11045_v19 = vpop.f32.mrb[123].mxu1  ;;  %v5247_v59 = vmax.f32 %v5119_v21, 0.0 }
 0x60e   : > { %12637 = vst [vmem:[#allocation158_spill] sm:$0xff] %v11045_v19 }
 0x60f   : > { %v5248_v27 = vmax.f32 %v5120_v2, 0.0  ;;  %4856 = vmatmul.mubr.bf16.gmra.mrb[228].mxu1 %v10819_v56 }
 0x610   : > { %4865 = vmatprep.mubr.bf16.mxu1 %v12613_v38 }
 0x611   : > { %v5361_v16 = vpack.c.bf16 %v5248_v27, %v5247_v59 }
 0x612   : > { %v4597_v32 = vpop.f32.mrb[124].mxu1 }
 0x613   : > { %v5121_v35 = vadd.f32 %v10889_v6, %v4597_v32  ;;  %v11050_v12 = vpop.f32.mrb[125].mxu1  ;;  %8575 = vmatprep.mubr.bf16.mxu0 %v5361_v16 }
 0x614   : > { %12638 = vst [vmem:[#allocation159_spill] sm:$0xff] %v11050_v12  ;;  %v4601_v57 = vpop.f32.mrb[126].mxu1 }
 0x615   : > { %v5122_v52 = vadd.f32 %v10889_v6, %v4601_v57  ;;  %v11053_v11 = vpop.f32.mrb[127].mxu1  ;;  %v5249_v45 = vmax.f32 %v5121_v35, 0.0 }
 0x616   : > { %12639 = vst [vmem:[#allocation160_spill] sm:$0xff] %v11053_v11 }
 0x617   : > { %v5250_v19 = vmax.f32 %v5122_v52, 0.0  ;;  %4866 = vmatmul.mubr.bf16.gmra.mrb[232].mxu1 %v10831_v40 }
 0x618   : > { %4875 = vmatprep.mubr.bf16.mxu1 %v12613_v38 }
 0x619   : > { %v5362_v56 = vpack.c.bf16 %v5250_v19, %v5249_v45 }
 0x61a   : > { %v4607_v21 = vpop.f32.mrb[128].mxu1 }
 0x61b   : > { %v5123_v27 = vadd.f32 %v10889_v6, %v4607_v21  ;;  %v11058_v2 = vpop.f32.mrb[129].mxu1  ;;  %8576 = vmatmul.mubr.bf16.gmra.mrb[92].mxu0 %v5362_v56 }
 0x61c   : > { %12640 = vst [vmem:[#allocation161_spill] sm:$0xff] %v11058_v2  ;;  %v4611_v59 = vpop.f32.mrb[130].mxu1 }
 0x61d   : > { %v5124_v16 = vadd.f32 %v10889_v6, %v4611_v59  ;;  %v11061_v32 = vpop.f32.mrb[131].mxu1  ;;  %v5251_v57 = vmax.f32 %v5123_v27, 0.0 }
 0x61e   : > { %12641 = vst [vmem:[#allocation162_spill] sm:$0xff] %v11061_v32 }
 0x61f   : > { %v5252_v11 = vmax.f32 %v5124_v16, 0.0  ;;  %4876 = vmatmul.mubr.bf16.gmra.mrb[236].mxu1 %v10829_v13  ;;  %v8999_v13 = vld [vmem:[%s12442_s5] sm:$0xff]  }
 0x620   : > { %4885 = vmatprep.mubr.bf16.mxu1 %v12613_v38  ;;  %8675 = vmatprep.subr.bf16.mxu0 %v8999_v13 }
 0x621   : > { %v5363_v40 = vpack.c.bf16 %v5252_v11, %v5251_v57  ;;  %8676 = vmatpush3.bf16.msra.mxu0 %v8999_v13 }
 0x622   : > { %v4617_v35 = vpop.f32.mrb[132].mxu1 }
 0x623   : > { %v5125_v19 = vadd.f32 %v10889_v6, %v4617_v35  ;;  %v11066_v52 = vpop.f32.mrb[133].mxu1  ;;  %8579 = vmatprep.mubr.bf16.mxu0 %v5363_v40 }
 0x624   : > { %12642 = vst [vmem:[#allocation163_spill] sm:$0xff] %v11066_v52  ;;  %v4621_v45 = vpop.f32.mrb[134].mxu1 }
 0x625   : > { %v5126_v56 = vadd.f32 %v10889_v6, %v4621_v45  ;;  %v11069_v21 = vpop.f32.mrb[135].mxu1  ;;  %v5253_v59 = vmax.f32 %v5125_v19, 0.0 }
 0x626   : > { %12643 = vst [vmem:[#allocation164_spill] sm:$0xff] %v11069_v21 }
 0x627   : > { %v5254_v32 = vmax.f32 %v5126_v56, 0.0  ;;  %4886 = vmatmul.mubr.bf16.gmra.mrb[240].mxu1 %v10841_v22 }
 0x628   : > { %4895 = vmatprep.mubr.bf16.mxu1 %v12613_v38 }
 0x629   : > { %v5364_v11 = vpack.c.bf16 %v5254_v32, %v5253_v59 }
 0x62a   : > { %v4627_v27 = vpop.f32.mrb[136].mxu1 }
 0x62b   : > { %v5127_v16 = vadd.f32 %v10889_v6, %v4627_v27  ;;  %v11077_v57 = vpop.f32.mrb[137].mxu1  ;;  %8580 = vmatmul.mubr.bf16.gmra.mrb[96].mxu0 %v5364_v11 }
 0x62c   : > { %12644 = vst [vmem:[#allocation165_spill] sm:$0xff] %v11077_v57  ;;  %v4631_v40 = vpop.f32.mrb[138].mxu1 }
 0x62d   : > { %v5128_v35 = vadd.f32 %v10889_v6, %v4631_v40  ;;  %v11080_v19 = vpop.f32.mrb[139].mxu1  ;;  %v5255_v22 = vmax.f32 %v5127_v16, 0.0 }
 0x62e   : > { %12645 = vst [vmem:[#allocation166_spill] sm:$0xff] %v11080_v19 }
 0x62f   : > { %v5256_v45 = vmax.f32 %v5128_v35, 0.0  ;;  %4896 = vmatmul.mubr.bf16.gmra.mrb[244].mxu1 %v10839_v42 }
 0x630   : > { %4905 = vmatprep.mubr.bf16.mxu1 %v12613_v38 }
 0x631   : > { %v5365_v32 = vpack.c.bf16 %v5256_v45, %v5255_v22 }
 0x632   : > { %v4637_v56 = vpop.f32.mrb[140].mxu1 }
 0x633   : > { %v5129_v59 = vadd.f32 %v10889_v6, %v4637_v56  ;;  %v11085_v27 = vpop.f32.mrb[141].mxu1  ;;  %8583 = vmatprep.mubr.bf16.mxu0 %v5365_v32 }
 0x634   : > { %12646 = vst [vmem:[#allocation167_spill] sm:$0xff] %v11085_v27  ;;  %v4641_v11 = vpop.f32.mrb[142].mxu1 }
 0x635   : > { %v5130_v13 = vadd.f32 %v10889_v6, %v4641_v11  ;;  %v11088_v57 = vpop.f32.mrb[143].mxu1  ;;  %v5257_v40 = vmax.f32 %v5129_v59, 0.0 }
 0x636   : > { %12647 = vst [vmem:[#allocation168_spill] sm:$0xff] %v11088_v57 }
 0x637   : > { %v5258_v19 = vmax.f32 %v5130_v13, 0.0  ;;  %4906 = vmatmul.mubr.bf16.gmra.mrb[248].mxu1 %v10851_v61 }
 0x638   : > { %4915 = vmatprep.mubr.bf16.mxu1 %v12613_v38 }
 0x639   : > { %v5366_v42 = vpack.c.bf16 %v5258_v19, %v5257_v40 }
 0x63a   : > { %v4647_v16 = vpop.f32.mrb[144].mxu1 }
 0x63b   : > { %v5131_v35 = vadd.f32 %v10889_v6, %v4647_v16  ;;  %v11093_v22 = vpop.f32.mrb[145].mxu1  ;;  %8584 = vmatmul.mubr.bf16.gmra.mrb[100].mxu0 %v5366_v42 }
 0x63c   : > { %12648 = vst [vmem:[#allocation169_spill] sm:$0xff] %v11093_v22  ;;  %v4651_v45 = vpop.f32.mrb[146].mxu1 }
 0x63d   : > { %v5132_v32 = vadd.f32 %v10889_v6, %v4651_v45  ;;  %v11096_v56 = vpop.f32.mrb[147].mxu1  ;;  %v5259_v11 = vmax.f32 %v5131_v35, 0.0 }
 0x63e   : > { %12649 = vst [vmem:[#allocation170_spill] sm:$0xff] %v11096_v56 }
 0x63f   : > { %v5260_v57 = vmax.f32 %v5132_v32, 0.0  ;;  %4916 = vmatmul.mubr.bf16.gmra.mrb[252].mxu1 %v10849_v29 }
 0x640   : > { %4925 = vmatprep.mubr.bf16.mxu1 %v12613_v38 }
 0x641   : > { %v5367_v61 = vpack.c.bf16 %v5260_v57, %v5259_v11 }
 0x642   : > { %v4657_v59 = vpop.f32.mrb[148].mxu1 }
 0x643   : > { %v5133_v19 = vadd.f32 %v10889_v6, %v4657_v59  ;;  %v11101_v13 = vpop.f32.mrb[149].mxu1  ;;  %8587 = vmatprep.mubr.bf16.mxu0 %v5367_v61 }
 0x644   : > { %12650 = vst [vmem:[#allocation171_spill] sm:$0xff] %v11101_v13  ;;  %v4661_v40 = vpop.f32.mrb[150].mxu1 }
 0x645   : > { %v5134_v42 = vadd.f32 %v10889_v6, %v4661_v40  ;;  %v11104_v16 = vpop.f32.mrb[151].mxu1  ;;  %v5261_v45 = vmax.f32 %v5133_v19, 0.0 }
 0x646   : > { %12651 = vst [vmem:[#allocation172_spill] sm:$0xff] %v11104_v16 }
 0x647   : > { %v5262_v56 = vmax.f32 %v5134_v42, 0.0  ;;  %4926 = vmatmul.mubr.bf16.gmra.mrb[0].mxu1 %v10861_v48 }
 0x648   : > { %4935 = vmatprep.mubr.bf16.mxu1 %v12613_v38 }
 0x649   : > { %v5368_v29 = vpack.c.bf16 %v5262_v56, %v5261_v45 }
 0x64a   : > { %v4667_v35 = vpop.f32.mrb[152].mxu1 }
 0x64b   : > { %v5135_v57 = vadd.f32 %v10889_v6, %v4667_v35  ;;  %v11109_v32 = vpop.f32.mrb[153].mxu1  ;;  %8588 = vmatmul.mubr.bf16.gmra.mrb[104].mxu0 %v5368_v29 }
 0x64c   : > { %12652 = vst [vmem:[#allocation173_spill] sm:$0xff] %v11109_v32  ;;  %v4671_v11 = vpop.f32.mrb[154].mxu1 }
 0x64d   : > { %v5136_v61 = vadd.f32 %v10889_v6, %v4671_v11  ;;  %v11112_v59 = vpop.f32.mrb[155].mxu1  ;;  %v5263_v40 = vmax.f32 %v5135_v57, 0.0 }
 0x64e   : > { %12653 = vst [vmem:[#allocation174_spill] sm:$0xff] %v11112_v59 }
 0x64f   : > { %v5264_v16 = vmax.f32 %v5136_v61, 0.0  ;;  %4936 = vmatmul.mubr.bf16.gmra.mrb[4].mxu1 %v10859_v49 }
 0x650   : > { %4945 = vmatprep.mubr.bf16.mxu1 %v12613_v38 }
 0x651   : > { %v5369_v48 = vpack.c.bf16 %v5264_v16, %v5263_v40 }
 0x652   : > { %v4677_v19 = vpop.f32.mrb[156].mxu1 }
 0x653   : > { %v5137_v56 = vadd.f32 %v10889_v6, %v4677_v19  ;;  %v11117_v42 = vpop.f32.mrb[157].mxu1  ;;  %8591 = vmatprep.mubr.bf16.mxu0 %v5369_v48 }
 0x654   : > { %12654 = vst [vmem:[#allocation175_spill] sm:$0xff] %v11117_v42  ;;  %v4681_v45 = vpop.f32.mrb[158].mxu1 }
 0x655   : > { %v5138_v29 = vadd.f32 %v10889_v6, %v4681_v45  ;;  %v11120_v35 = vpop.f32.mrb[159].mxu1  ;;  %v5265_v11 = vmax.f32 %v5137_v56, 0.0 }
 0x656   : > { %12655 = vst [vmem:[#allocation176_spill] sm:$0xff] %v11120_v35 }
 0x657   : > { %v5266_v59 = vmax.f32 %v5138_v29, 0.0  ;;  %4946 = vmatmul.mubr.bf16.gmra.mrb[8].mxu1 %v10871_v43 }
 0x658   : > { %4955 = vmatprep.mubr.bf16.mxu1 %v12613_v38 }
 0x659   : > { %v5370_v49 = vpack.c.bf16 %v5266_v59, %v5265_v11 }
 0x65a   : > { %v4687_v57 = vpop.f32.mrb[160].mxu1 }
 0x65b   : > { %v5139_v16 = vadd.f32 %v10889_v6, %v4687_v57  ;;  %v11125_v61 = vpop.f32.mrb[161].mxu1  ;;  %8592 = vmatmul.mubr.bf16.gmra.mrb[108].mxu0 %v5370_v49 }
 0x65c   : > { %12656 = vst [vmem:[#allocation177_spill] sm:$0xff] %v11125_v61  ;;  %v4691_v40 = vpop.f32.mrb[162].mxu1 }
 0x65d   : > { %v5140_v48 = vadd.f32 %v10889_v6, %v4691_v40  ;;  %v11128_v19 = vpop.f32.mrb[163].mxu1  ;;  %v5267_v45 = vmax.f32 %v5139_v16, 0.0 }
 0x65e   : > { %12657 = vst [vmem:[#allocation178_spill] sm:$0xff] %v11128_v19 }
 0x65f   : > { %v5268_v35 = vmax.f32 %v5140_v48, 0.0  ;;  %4956 = vmatmul.mubr.bf16.gmra.mrb[12].mxu1 %v10869_v24  ;;  %v9000_v24 = vld [vmem:[%s12442_s5 + $0x8] sm:$0xff]  }
 0x660   : > { %4965 = vmatprep.mubr.bf16.mxu1 %v12613_v38  ;;  %8677 = vmatprep.subr.bf16.mxu0 %v9000_v24 }
 0x661   : > { %v5371_v43 = vpack.c.bf16 %v5268_v35, %v5267_v45  ;;  %8678 = vmatpush3.bf16.msra.mxu0 %v9000_v24 }
 0x662   : > { %v4697_v56 = vpop.f32.mrb[164].mxu1 }
 0x663   : > { %v5141_v59 = vadd.f32 %v10889_v6, %v4697_v56  ;;  %v11133_v29 = vpop.f32.mrb[165].mxu1  ;;  %8595 = vmatprep.mubr.bf16.mxu0 %v5371_v43 }
 0x664   : > { %12658 = vst [vmem:[#allocation179_spill] sm:$0xff] %v11133_v29  ;;  %v4701_v11 = vpop.f32.mrb[166].mxu1 }
 0x665   : > { %v5142_v49 = vadd.f32 %v10889_v6, %v4701_v11  ;;  %v11136_v57 = vpop.f32.mrb[167].mxu1  ;;  %v5269_v40 = vmax.f32 %v5141_v59, 0.0 }
 0x666   : > { %12659 = vst [vmem:[#allocation180_spill] sm:$0xff] %v11136_v57 }
 0x667   : > { %v5270_v19 = vmax.f32 %v5142_v49, 0.0  ;;  %4966 = vmatmul.mubr.bf16.gmra.mrb[16].mxu1 %v10883_v30 }
 0x668   : > { %4975 = vmatprep.mubr.bf16.mxu1 %v12613_v38 }
 0x669   : > { %v5372_v35 = vpack.c.bf16 %v5270_v19, %v5269_v40 }
 0x66a   : > { %v4707_v16 = vpop.f32.mrb[168].mxu1 }
 0x66b   : > { %v5143_v48 = vadd.f32 %v10889_v6, %v4707_v16  ;;  %v11144_v45 = vpop.f32.mrb[169].mxu1  ;;  %8596 = vmatmul.mubr.bf16.gmra.mrb[112].mxu0 %v5372_v35 }
 0x66c   : > { %12660 = vst [vmem:[#allocation181_spill] sm:$0xff] %v11144_v45  ;;  %v4711_v43 = vpop.f32.mrb[170].mxu1 }
 0x66d   : > { %v5144_v56 = vadd.f32 %v10889_v6, %v4711_v43  ;;  %v11147_v59 = vpop.f32.mrb[171].mxu1  ;;  %v5271_v30 = vmax.f32 %v5143_v48, 0.0 }
 0x66e   : > { %12661 = vst [vmem:[#allocation182_spill] sm:$0xff] %v11147_v59 }
 0x66f   : > { %v5272_v11 = vmax.f32 %v5144_v56, 0.0  ;;  %4976 = vmatmul.mubr.bf16.gmra.mrb[20].mxu1 %v10881_v0 }
 0x670   : > { %4985 = vmatprep.mubr.bf16.mxu1 %v12613_v38 }
 0x671   : > { %v5373_v19 = vpack.c.bf16 %v5272_v11, %v5271_v30 }
 0x672   : > { %v4717_v49 = vpop.f32.mrb[172].mxu1 }
 0x673   : > { %v5145_v40 = vadd.f32 %v10889_v6, %v4717_v49  ;;  %v11152_v16 = vpop.f32.mrb[173].mxu1  ;;  %8599 = vmatprep.mubr.bf16.mxu0 %v5373_v19 }
 0x674   : > { %12662 = vst [vmem:[#allocation183_spill] sm:$0xff] %v11152_v16  ;;  %v4721_v35 = vpop.f32.mrb[174].mxu1 }
 0x675   : > { %v5146_v24 = vadd.f32 %v10889_v6, %v4721_v35  ;;  %v11155_v45 = vpop.f32.mrb[175].mxu1  ;;  %v5273_v43 = vmax.f32 %v5145_v40, 0.0 }
 0x676   : > { %12663 = vst [vmem:[#allocation184_spill] sm:$0xff] %v11155_v45  ;;  %v11165_v45 = vld [vmem:[#allocation6 + $0x5] ss:$0 sm:$0xff] }
 0x677   : > { %v5274_v59 = vmax.f32 %v5146_v24, 0.0  ;;  %4986 = vmatmul.mubr.bf16.gmra.mrb[24].mxu1 %v10898_v1  ;;  %v12666_v1 = vld [vmem:[#allocation11_spill] sm:$0xff] }
 0x678   : > { %4995 = vmatprep.mubr.bf16.mxu1 %v12613_v38 }
 0x679   : > { %v5374_v0 = vpack.c.bf16 %v5274_v59, %v5273_v43  ;;  %v12667_v43 = vld [vmem:[#allocation9_spill] sm:$0xff] }
 0x67a   : > { %v4727_v48 = vpop.f32.mrb[176].mxu1 }
 0x67b   : > { %v5147_v56 = vadd.f32 %v10889_v6, %v4727_v48  ;;  %v11160_v30 = vpop.f32.mrb[177].mxu1  ;;  %8600 = vmatmul.mubr.bf16.gmra.mrb[116].mxu0 %v5374_v0 }
 0x67c   : > { %12664 = vst [vmem:[#allocation185_spill] sm:$0xff] %v11160_v30  ;;  %v4731_v11 = vpop.f32.mrb[178].mxu1  ;;  %v12668_v30 = vld [vmem:[#allocation12_spill] sm:$0xff] }
 0x67d   : > { %v5148_v19 = vadd.f32 %v10889_v6, %v4731_v11  ;;  %v11163_v49 = vpop.f32.mrb[179].mxu1  ;;  %v5275_v40 = vmax.f32 %v5147_v56, 0.0  ;;  %v12669_v56 = vld [vmem:[#allocation10_spill] sm:$0xff] }
 0x67e   : > { %12665 = vst [vmem:[#allocation186_spill] sm:$0xff] %v11163_v49  ;;  %v8549_v35 = vpop.f32.mrb[64].mxu0 }
 0x67f   : > { %v5276_v24 = vmax.f32 %v5148_v19, 0.0  ;;  %v5518_v16 = vadd.f32 %v8549_v35, %v12666_v1  ;;  %4996 = vmatmul.mubr.bf16.gmra.mrb[28].mxu1 %v10896_v7  ;;  %v5509_v59 = vpop.f32.mrb[65].mxu0 }
 0x680   : > { %v5510_v48 = vadd.f32 %v5509_v59, %v12667_v43  ;;  %v8550_v57 = vpop.f32.mrb[66].mxu0  ;;  %5005 = vmatprep.mubr.bf16.mxu1 %v12613_v38 }
 0x681   : > { %v5375_v0 = vpack.c.bf16 %v5276_v24, %v5275_v40  ;;  %v6027_v11 = vadd.f32 %v11165_v45, %v5518_v16  ;;  %v5521_v49 = vadd.f32 %v8550_v57, %v12668_v30  ;;  %v5512_v61 = vpop.f32.mrb[67].mxu0 }
 0x682   : > { %v6025_v29 = vadd.f32 %v11165_v45, %v5510_v48  ;;  %v5513_v19 = vadd.f32 %v5512_v61, %v12669_v56  ;;  %v4737_v32 = vpop.f32.mrb[180].mxu1 }
 0x683   : > { %v6028_v35 = vadd.f32 %v11165_v45, %v5521_v49  ;;  %v5149_v7 = vadd.f32 %v10889_v6, %v4737_v32  ;;  %v11177_v1 = vpop.f32.mrb[181].mxu1  ;;  %8603 = vmatprep.mubr.bf16.mxu0 %v5375_v0  ;;  %v6155_v24 = vmax.f32 %v6027_v11, 0.0 }
 0x684   : > { %12670 = vst [vmem:[#allocation11_spill] sm:$0xff] %v11177_v1  ;;  %v6026_v59 = vadd.f32 %v11165_v45, %v5513_v19  ;;  %v4741_v40 = vpop.f32.mrb[182].mxu1  ;;  %v6153_v43 = vmax.f32 %v6025_v29, 0.0 }
 0x685   : > { %v6156_v16 = vmax.f32 %v6028_v35, 0.0  ;;  %v5150_v57 = vadd.f32 %v10889_v6, %v4741_v40  ;;  %v11181_v30 = vpop.f32.mrb[183].mxu1  ;;  %v5277_v56 = vmax.f32 %v5149_v7, 0.0 }
 0x686   : > { %12671 = vst [vmem:[#allocation9_spill] sm:$0xff] %v11181_v30  ;;  %v6154_v48 = vmax.f32 %v6026_v59, 0.0 }
 0x687   : > { %v11183_v61 = vpack.c.bf16 %v6156_v16, %v6155_v24  ;;  %v5278_v49 = vmax.f32 %v5150_v57, 0.0  ;;  %5006 = vmatmul.mubr.bf16.gmra.mrb[32].mxu1 %v10914_v47  ;;  %v12674_v47 = vld [vmem:[#allocation15_spill] sm:$0xff] }
 0x688   : > { %v11186_v32 = vpack.c.bf16 %v6154_v48, %v6153_v43  ;;  %5015 = vmatprep.mubr.bf16.mxu1 %v12613_v38  ;;  %v12675_v48 = vld [vmem:[#allocation13_spill] sm:$0xff] }
 0x689   : > { %v5376_v0 = vpack.c.bf16 %v5278_v49, %v5277_v56 }
 0x68a   : > { %v4747_v19 = vpop.f32.mrb[184].mxu1 }
 0x68b   : > { %v5151_v11 = vadd.f32 %v10889_v6, %v4747_v19  ;;  %v11190_v35 = vpop.f32.mrb[185].mxu1  ;;  %8604 = vmatmul.mubr.bf16.gmra.mrb[120].mxu0 %v5376_v0 }
 0x68c   : > { %12672 = vst [vmem:[#allocation12_spill] sm:$0xff] %v11190_v35  ;;  %v4751_v40 = vpop.f32.mrb[186].mxu1  ;;  %v12676_v35 = vld [vmem:[#allocation16_spill] sm:$0xff] }
 0x68d   : > { %v5152_v29 = vadd.f32 %v10889_v6, %v4751_v40  ;;  %v11193_v59 = vpop.f32.mrb[187].mxu1  ;;  %v5279_v24 = vmax.f32 %v5151_v11, 0.0  ;;  %v12677_v11 = vld [vmem:[#allocation14_spill] sm:$0xff] }
 0x68e   : > { %12673 = vst [vmem:[#allocation10_spill] sm:$0xff] %v11193_v59  ;;  %v8553_v7 = vpop.f32.mrb[68].mxu0 }
 0x68f   : > { %v5280_v16 = vmax.f32 %v5152_v29, 0.0  ;;  %v5534_v57 = vadd.f32 %v8553_v7, %v12674_v47  ;;  %5016 = vmatmul.mubr.bf16.gmra.mrb[36].mxu1 %v10912_v23  ;;  %v5525_v43 = vpop.f32.mrb[69].mxu0 }
 0x690   : > { %v5526_v56 = vadd.f32 %v5525_v43, %v12675_v48  ;;  %v8554_v49 = vpop.f32.mrb[70].mxu0  ;;  %5025 = vmatprep.mubr.bf16.mxu1 %v12613_v38 }
 0x691   : > { %v5377_v19 = vpack.c.bf16 %v5280_v16, %v5279_v24  ;;  %v6031_v0 = vadd.f32 %v11165_v45, %v5534_v57  ;;  %v5537_v40 = vadd.f32 %v8554_v49, %v12676_v35  ;;  %v5528_v30 = vpop.f32.mrb[71].mxu0 }
 0x692   : > { %v6029_v59 = vadd.f32 %v11165_v45, %v5526_v56  ;;  %v5529_v29 = vadd.f32 %v5528_v30, %v12677_v11  ;;  %v4757_v1 = vpop.f32.mrb[188].mxu1 }
 0x693   : > { %v6032_v7 = vadd.f32 %v11165_v45, %v5537_v40  ;;  %v5153_v23 = vadd.f32 %v10889_v6, %v4757_v1  ;;  %v11205_v47 = vpop.f32.mrb[189].mxu1  ;;  %8607 = vmatprep.mubr.bf16.mxu0 %v5377_v19  ;;  %v6159_v16 = vmax.f32 %v6031_v0, 0.0 }
 0x694   : > { %12678 = vst [vmem:[#allocation15_spill] sm:$0xff] %v11205_v47  ;;  %v6030_v43 = vadd.f32 %v11165_v45, %v5529_v29  ;;  %v4761_v24 = vpop.f32.mrb[190].mxu1  ;;  %v6157_v56 = vmax.f32 %v6029_v59, 0.0 }
 0x695   : > { %v6160_v57 = vmax.f32 %v6032_v7, 0.0  ;;  %v5154_v35 = vadd.f32 %v10889_v6, %v4761_v24  ;;  %v11209_v48 = vpop.f32.mrb[191].mxu1  ;;  %v5281_v11 = vmax.f32 %v5153_v23, 0.0 }
 0x696   : > { %12679 = vst [vmem:[#allocation13_spill] sm:$0xff] %v11209_v48  ;;  %v6158_v49 = vmax.f32 %v6030_v43, 0.0 }
 0x697   : > { %v11211_v30 = vpack.c.bf16 %v6160_v57, %v6159_v16  ;;  %v5282_v40 = vmax.f32 %v5154_v35, 0.0  ;;  %5026 = vmatmul.mubr.bf16.gmra.mrb[40].mxu1 %v10930_v55  ;;  %v12682_v55 = vld [vmem:[#allocation22_spill] sm:$0xff] }
 0x698   : > { %v11214_v1 = vpack.c.bf16 %v6158_v49, %v6157_v56  ;;  %5035 = vmatprep.mubr.bf16.mxu1 %v12613_v38  ;;  %v12683_v49 = vld [vmem:[#allocation17_spill] sm:$0xff] }
 0x699   : > { %v5378_v19 = vpack.c.bf16 %v5282_v40, %v5281_v11 }
 0x69a   : > { %v4767_v29 = vpop.f32.mrb[192].mxu1 }
 0x69b   : > { %v5155_v0 = vadd.f32 %v10889_v6, %v4767_v29  ;;  %v11218_v7 = vpop.f32.mrb[193].mxu1  ;;  %8608 = vmatmul.mubr.bf16.gmra.mrb[124].mxu0 %v5378_v19 }
 0x69c   : > { %12680 = vst [vmem:[#allocation16_spill] sm:$0xff] %v11218_v7  ;;  %v4771_v24 = vpop.f32.mrb[194].mxu1  ;;  %v12684_v7 = vld [vmem:[#allocation24_spill] sm:$0xff] }
 0x69d   : > { %v5156_v59 = vadd.f32 %v10889_v6, %v4771_v24  ;;  %v11221_v43 = vpop.f32.mrb[195].mxu1  ;;  %v5283_v16 = vmax.f32 %v5155_v0, 0.0  ;;  %v12685_v0 = vld [vmem:[#allocation18_spill] sm:$0xff] }
 0x69e   : > { %12681 = vst [vmem:[#allocation14_spill] sm:$0xff] %v11221_v43  ;;  %v8557_v23 = vpop.f32.mrb[72].mxu0 }
 0x69f   : > { %v5284_v57 = vmax.f32 %v5156_v59, 0.0  ;;  %v5550_v35 = vadd.f32 %v8557_v23, %v12682_v55  ;;  %5036 = vmatmul.mubr.bf16.gmra.mrb[44].mxu1 %v10928_v58  ;;  %v5541_v56 = vpop.f32.mrb[73].mxu0  ;;  %v11232_v58 = vld [vmem:[#allocation6 + $0x4] ss:$0 sm:$0xff] }
 0x6a0   : > { %v5542_v11 = vadd.f32 %v5541_v56, %v12683_v49  ;;  %v8558_v40 = vpop.f32.mrb[74].mxu0  ;;  %5045 = vmatprep.mubr.bf16.mxu1 %v12613_v38 }
 0x6a1   : > { %v5379_v29 = vpack.c.bf16 %v5284_v57, %v5283_v16  ;;  %v6035_v19 = vadd.f32 %v11165_v45, %v5550_v35  ;;  %v5553_v6 = vadd.f32 %v8558_v40, %v12684_v7  ;;  %v5544_v24 = vpop.f32.mrb[75].mxu0 }
 0x6a2   : > { %v6033_v43 = vadd.f32 %v11165_v45, %v5542_v11  ;;  %v5545_v59 = vadd.f32 %v5544_v24, %v12685_v0  ;;  %v4777_v48 = vpop.f32.mrb[196].mxu1 }
 0x6a3   : > { %v6036_v23 = vadd.f32 %v11165_v45, %v5553_v6  ;;  %v5157_v55 = vadd.f32 %v11232_v58, %v4777_v48  ;;  %v11235_v56 = vpop.f32.mrb[197].mxu1  ;;  %8611 = vmatprep.mubr.bf16.mxu0 %v5379_v29  ;;  %v6163_v35 = vmax.f32 %v6035_v19, 0.0  ;;  %v9001_v29 = vld [vmem:[%s12442_s5 + $0x10] sm:$0xff]  }
 0x6a4   : > { %12686 = vst [vmem:[#allocation22_spill] sm:$0xff] %v11235_v56  ;;  %v6034_v16 = vadd.f32 %v11165_v45, %v5545_v59  ;;  %v4781_v57 = vpop.f32.mrb[198].mxu1  ;;  %v6161_v40 = vmax.f32 %v6033_v43, 0.0  ;;  %8679 = vmatprep.subr.bf16.mxu0 %v9001_v29 }
 0x6a5   : > { %v6164_v7 = vmax.f32 %v6036_v23, 0.0  ;;  %v5158_v49 = vadd.f32 %v11232_v58, %v4781_v57  ;;  %v11239_v11 = vpop.f32.mrb[199].mxu1  ;;  %v5285_v6 = vmax.f32 %v5157_v55, 0.0  ;;  %8680 = vmatpush3.bf16.msra.mxu0 %v9001_v29 }
 0x6a6   : > { %12687 = vst [vmem:[#allocation17_spill] sm:$0xff] %v11239_v11  ;;  %v6162_v24 = vmax.f32 %v6034_v16, 0.0 }
 0x6a7   : > { %v11241_v0 = vpack.c.bf16 %v6164_v7, %v6163_v35  ;;  %v5286_v47 = vmax.f32 %v5158_v49, 0.0  ;;  %5046 = vmatmul.mubr.bf16.gmra.mrb[48].mxu1 %v10946_v8  ;;  %v12690_v49 = vld [vmem:[#allocation34_spill] sm:$0xff] }
 0x6a8   : > { %v11244_v48 = vpack.c.bf16 %v6162_v24, %v6161_v40  ;;  %5055 = vmatprep.mubr.bf16.mxu1 %v12613_v38  ;;  %v12691_v24 = vld [vmem:[#allocation28_spill] sm:$0xff] }
 0x6a9   : > { %v5380_v19 = vpack.c.bf16 %v5286_v47, %v5285_v6 }
 0x6aa   : > { %v4787_v59 = vpop.f32.mrb[200].mxu1 }
 0x6ab   : > { %v5159_v43 = vadd.f32 %v11232_v58, %v4787_v59  ;;  %v11251_v23 = vpop.f32.mrb[201].mxu1  ;;  %8612 = vmatmul.mubr.bf16.gmra.mrb[128].mxu0 %v5380_v19 }
 0x6ac   : > { %12688 = vst [vmem:[#allocation24_spill] sm:$0xff] %v11251_v23  ;;  %v4791_v55 = vpop.f32.mrb[202].mxu1  ;;  %v12692_v23 = vld [vmem:[#allocation36_spill] sm:$0xff] }
 0x6ad   : > { %v5160_v8 = vadd.f32 %v11232_v58, %v4791_v55  ;;  %v11254_v16 = vpop.f32.mrb[203].mxu1  ;;  %v5287_v35 = vmax.f32 %v5159_v43, 0.0  ;;  %v12693_v43 = vld [vmem:[#allocation30_spill] sm:$0xff] }
 0x6ae   : > { %12689 = vst [vmem:[#allocation18_spill] sm:$0xff] %v11254_v16  ;;  %v8561_v57 = vpop.f32.mrb[76].mxu0 }
 0x6af   : > { %v5288_v7 = vmax.f32 %v5160_v8, 0.0  ;;  %v5566_v40 = vadd.f32 %v8561_v57, %v12690_v49  ;;  %5056 = vmatmul.mubr.bf16.gmra.mrb[52].mxu1 %v10944_v15  ;;  %v5557_v47 = vpop.f32.mrb[77].mxu0 }
 0x6b0   : > { %v5558_v6 = vadd.f32 %v5557_v47, %v12691_v24  ;;  %v8562_v59 = vpop.f32.mrb[78].mxu0  ;;  %5065 = vmatprep.mubr.bf16.mxu1 %v12613_v38 }
 0x6b1   : > { %v5381_v19 = vpack.c.bf16 %v5288_v7, %v5287_v35  ;;  %v6039_v29 = vadd.f32 %v11165_v45, %v5566_v40  ;;  %v5569_v55 = vadd.f32 %v8562_v59, %v12692_v23  ;;  %v5560_v11 = vpop.f32.mrb[79].mxu0 }
 0x6b2   : > { %v6037_v16 = vadd.f32 %v11165_v45, %v5558_v6  ;;  %v5561_v8 = vadd.f32 %v5560_v11, %v12693_v43  ;;  %v4797_v56 = vpop.f32.mrb[204].mxu1 }
 0x6b3   : > { %v6040_v57 = vadd.f32 %v11165_v45, %v5569_v55  ;;  %v5161_v15 = vadd.f32 %v11232_v58, %v4797_v56  ;;  %v11266_v49 = vpop.f32.mrb[205].mxu1  ;;  %8615 = vmatprep.mubr.bf16.mxu0 %v5381_v19  ;;  %v6167_v7 = vmax.f32 %v6039_v29, 0.0 }
 0x6b4   : > { %12694 = vst [vmem:[#allocation34_spill] sm:$0xff] %v11266_v49  ;;  %v6038_v47 = vadd.f32 %v11165_v45, %v5561_v8  ;;  %v4801_v35 = vpop.f32.mrb[206].mxu1  ;;  %v6165_v6 = vmax.f32 %v6037_v16, 0.0 }
 0x6b5   : > { %v6168_v40 = vmax.f32 %v6040_v57, 0.0  ;;  %v5162_v23 = vadd.f32 %v11232_v58, %v4801_v35  ;;  %v11270_v24 = vpop.f32.mrb[207].mxu1  ;;  %v5289_v43 = vmax.f32 %v5161_v15, 0.0 }
 0x6b6   : > { %12695 = vst [vmem:[#allocation28_spill] sm:$0xff] %v11270_v24  ;;  %v6166_v59 = vmax.f32 %v6038_v47, 0.0 }
 0x6b7   : > { %v11272_v11 = vpack.c.bf16 %v6168_v40, %v6167_v7  ;;  %v5290_v55 = vmax.f32 %v5162_v23, 0.0  ;;  %5066 = vmatmul.mubr.bf16.gmra.mrb[56].mxu1 %v10962_v37  ;;  %v12698_v37 = vld [vmem:[#allocation45_spill] sm:$0xff] }
 0x6b8   : > { %v11275_v56 = vpack.c.bf16 %v6166_v59, %v6165_v6  ;;  %5075 = vmatprep.mubr.bf16.mxu1 %v12613_v38  ;;  %v12699_v6 = vld [vmem:[#allocation40_spill] sm:$0xff] }
 0x6b9   : > { %v5382_v19 = vpack.c.bf16 %v5290_v55, %v5289_v43 }
 0x6ba   : > { %v4807_v8 = vpop.f32.mrb[208].mxu1 }
 0x6bb   : > { %v5163_v29 = vadd.f32 %v11232_v58, %v4807_v8  ;;  %v11279_v57 = vpop.f32.mrb[209].mxu1  ;;  %8616 = vmatmul.mubr.bf16.gmra.mrb[132].mxu0 %v5382_v19  ;;  %v12700_v19 = vld [vmem:[#allocation47_spill] sm:$0xff] }
 0x6bc   : > { %12696 = vst [vmem:[#allocation36_spill] sm:$0xff] %v11279_v57  ;;  %v4811_v35 = vpop.f32.mrb[210].mxu1 }
 0x6bd   : > { %v5164_v16 = vadd.f32 %v11232_v58, %v4811_v35  ;;  %v11282_v47 = vpop.f32.mrb[211].mxu1  ;;  %v5291_v7 = vmax.f32 %v5163_v29, 0.0 }
 0x6be   : > { %12697 = vst [vmem:[#allocation30_spill] sm:$0xff] %v11282_v47  ;;  %v8565_v15 = vpop.f32.mrb[80].mxu0  ;;  %v12701_v47 = vld [vmem:[#allocation42_spill] sm:$0xff] }
 0x6bf   : > { %v5292_v40 = vmax.f32 %v5164_v16, 0.0  ;;  %v5582_v23 = vadd.f32 %v8565_v15, %v12698_v37  ;;  %5076 = vmatmul.mubr.bf16.gmra.mrb[60].mxu1 %v10960_v3  ;;  %v5573_v38 = vpop.f32.mrb[81].mxu0 }
 0x6c0   : > { %v5574_v59 = vadd.f32 %v5573_v38, %v12699_v6  ;;  %v8566_v43 = vpop.f32.mrb[82].mxu0 }
 0x6c1   : > { %v5383_v55 = vpack.c.bf16 %v5292_v40, %v5291_v7  ;;  %v6043_v8 = vadd.f32 %v11165_v45, %v5582_v23  ;;  %v5585_v57 = vadd.f32 %v8566_v43, %v12700_v19  ;;  %v5576_v24 = vpop.f32.mrb[83].mxu0 }
 0x6c2   : > { %v6041_v35 = vadd.f32 %v11165_v45, %v5574_v59  ;;  %v5577_v49 = vadd.f32 %v5576_v24, %v12701_v47  ;;  %v4817_v29 = vpop.f32.mrb[212].mxu1 }
 0x6c3   : > { %v6044_v16 = vadd.f32 %v11165_v45, %v5585_v57  ;;  %v5165_v15 = vadd.f32 %v11232_v58, %v4817_v29  ;;  %v11293_v3 = vpop.f32.mrb[213].mxu1  ;;  %8619 = vmatprep.mubr.bf16.mxu0 %v5383_v55  ;;  %v6171_v40 = vmax.f32 %v6043_v8, 0.0 }
 0x6c4   : > { %12702 = vst [vmem:[#allocation45_spill] sm:$0xff] %v11293_v3  ;;  %v6042_v37 = vadd.f32 %v11165_v45, %v5577_v49  ;;  %v4821_v7 = vpop.f32.mrb[214].mxu1  ;;  %v6169_v59 = vmax.f32 %v6041_v35, 0.0 }
 0x6c5   : > { %v6172_v23 = vmax.f32 %v6044_v16, 0.0  ;;  %v5166_v38 = vadd.f32 %v11232_v58, %v4821_v7  ;;  %v11297_v6 = vpop.f32.mrb[215].mxu1  ;;  %v5293_v47 = vmax.f32 %v5165_v15, 0.0 }
 0x6c6   : > { %12703 = vst [vmem:[#allocation40_spill] sm:$0xff] %v11297_v6  ;;  %v6170_v43 = vmax.f32 %v6042_v37, 0.0  ;;  %v12708_v6 = vld [vmem:[#allocation55_spill] sm:$0xff] }
 0x6c7   : > { %v11299_v24 = vpack.c.bf16 %v6172_v23, %v6171_v40  ;;  %v5294_v57 = vmax.f32 %v5166_v38, 0.0  ;;  %v12706_v23 = vld [vmem:[#allocation53_spill] sm:$0xff] }
 0x6c8   : > { %v11301_v19 = vpack.c.bf16 %v6170_v43, %v6169_v59  ;;  %v12707_v59 = vld [vmem:[#allocation49_spill] sm:$0xff] }
 0x6c9   : > { %v5384_v29 = vpack.c.bf16 %v5294_v57, %v5293_v47 }
 0x6ca   : > { %v4827_v3 = vpop.f32.mrb[216].mxu1 }
 0x6cb   : > { %v5167_v55 = vadd.f32 %v11232_v58, %v4827_v3  ;;  %v11304_v49 = vpop.f32.mrb[217].mxu1  ;;  %8620 = vmatmul.mubr.bf16.gmra.mrb[136].mxu0 %v5384_v29 }
 0x6cc   : > { %12704 = vst [vmem:[#allocation47_spill] sm:$0xff] %v11304_v49  ;;  %v4831_v8 = vpop.f32.mrb[218].mxu1 }
 0x6cd   : > { %v5168_v16 = vadd.f32 %v11232_v58, %v4831_v8  ;;  %v11307_v7 = vpop.f32.mrb[219].mxu1  ;;  %v5295_v37 = vmax.f32 %v5167_v55, 0.0  ;;  %v12709_v8 = vld [vmem:[#allocation51_spill] sm:$0xff] }
 0x6ce   : > { %12705 = vst [vmem:[#allocation42_spill] sm:$0xff] %v11307_v7  ;;  %v8569_v35 = vpop.f32.mrb[84].mxu0 }
 0x6cf   : > { %v5296_v40 = vmax.f32 %v5168_v16, 0.0  ;;  %v5598_v15 = vadd.f32 %v8569_v35, %v12706_v23  ;;  %v5589_v38 = vpop.f32.mrb[85].mxu0 }
 0x6d0   : > { %v5590_v43 = vadd.f32 %v5589_v38, %v12707_v59  ;;  %v8570_v47 = vpop.f32.mrb[86].mxu0 }
 0x6d1   : > { %v5385_v57 = vpack.c.bf16 %v5296_v40, %v5295_v37  ;;  %v6047_v3 = vadd.f32 %v11165_v45, %v5598_v15  ;;  %v5601_v49 = vadd.f32 %v8570_v47, %v12708_v6  ;;  %v5592_v29 = vpop.f32.mrb[87].mxu0 }
 0x6d2   : > { %v6045_v42 = vadd.f32 %v11165_v45, %v5590_v43  ;;  %v5593_v22 = vadd.f32 %v5592_v29, %v12709_v8  ;;  %v4837_v7 = vpop.f32.mrb[220].mxu1 }
 0x6d3   : > { %v6048_v55 = vadd.f32 %v11165_v45, %v5601_v49  ;;  %v5169_v16 = vadd.f32 %v11232_v58, %v4837_v7  ;;  %v11317_v35 = vpop.f32.mrb[221].mxu1  ;;  %8623 = vmatprep.mubr.bf16.mxu0 %v5385_v57  ;;  %v6175_v40 = vmax.f32 %v6047_v3, 0.0 }
 0x6d4   : > { %12710 = vst [vmem:[#allocation53_spill] sm:$0xff] %v11317_v35  ;;  %v6046_v23 = vadd.f32 %v11165_v45, %v5593_v22  ;;  %v4841_v37 = vpop.f32.mrb[222].mxu1  ;;  %v6173_v59 = vmax.f32 %v6045_v42, 0.0 }
 0x6d5   : > { %v6176_v15 = vmax.f32 %v6048_v55, 0.0  ;;  %v5170_v6 = vadd.f32 %v11232_v58, %v4841_v37  ;;  %v11321_v38 = vpop.f32.mrb[223].mxu1  ;;  %v5297_v29 = vmax.f32 %v5169_v16, 0.0 }
 0x6d6   : > { %12711 = vst [vmem:[#allocation49_spill] sm:$0xff] %v11321_v38  ;;  %v6174_v43 = vmax.f32 %v6046_v23, 0.0  ;;  %v12716_v38 = vld [vmem:[#allocation63_spill] sm:$0xff] }
 0x6d7   : > { %v11323_v47 = vpack.c.bf16 %v6176_v15, %v6175_v40  ;;  %v5298_v49 = vmax.f32 %v5170_v6, 0.0  ;;  %v12714_v15 = vld [vmem:[#allocation61_spill] sm:$0xff] }
 0x6d8   : > { %v11325_v8 = vpack.c.bf16 %v6174_v43, %v6173_v59  ;;  %v12715_v59 = vld [vmem:[#allocation57_spill] sm:$0xff] }
 0x6d9   : > { %v5386_v7 = vpack.c.bf16 %v5298_v49, %v5297_v29 }
 0x6da   : > { %v4847_v35 = vpop.f32.mrb[224].mxu1 }
 0x6db   : > { %v5171_v57 = vadd.f32 %v11232_v58, %v4847_v35  ;;  %v11328_v22 = vpop.f32.mrb[225].mxu1  ;;  %8624 = vmatmul.mubr.bf16.gmra.mrb[140].mxu0 %v5386_v7 }
 0x6dc   : > { %12712 = vst [vmem:[#allocation55_spill] sm:$0xff] %v11328_v22  ;;  %v4851_v3 = vpop.f32.mrb[226].mxu1 }
 0x6dd   : > { %v5172_v55 = vadd.f32 %v11232_v58, %v4851_v3  ;;  %v11331_v37 = vpop.f32.mrb[227].mxu1  ;;  %v5299_v23 = vmax.f32 %v5171_v57, 0.0  ;;  %v12717_v3 = vld [vmem:[#allocation59_spill] sm:$0xff] }
 0x6de   : > { %12713 = vst [vmem:[#allocation51_spill] sm:$0xff] %v11331_v37  ;;  %v8573_v42 = vpop.f32.mrb[88].mxu0 }
 0x6df   : > { %v5300_v40 = vmax.f32 %v5172_v55, 0.0  ;;  %v5614_v16 = vadd.f32 %v8573_v42, %v12714_v15  ;;  %v5605_v6 = vpop.f32.mrb[89].mxu0 }
 0x6e0   : > { %v5606_v43 = vadd.f32 %v5605_v6, %v12715_v59  ;;  %v8574_v29 = vpop.f32.mrb[90].mxu0 }
 0x6e1   : > { %v5387_v49 = vpack.c.bf16 %v5300_v40, %v5299_v23  ;;  %v6051_v35 = vadd.f32 %v11165_v45, %v5614_v16  ;;  %v5617_v22 = vadd.f32 %v8574_v29, %v12716_v38  ;;  %v5608_v7 = vpop.f32.mrb[91].mxu0 }
 0x6e2   : > { %v6049_v13 = vadd.f32 %v11165_v45, %v5606_v43  ;;  %v5609_v27 = vadd.f32 %v5608_v7, %v12717_v3  ;;  %v4857_v37 = vpop.f32.mrb[228].mxu1 }
 0x6e3   : > { %v6052_v57 = vadd.f32 %v11165_v45, %v5617_v22  ;;  %v5173_v55 = vadd.f32 %v11232_v58, %v4857_v37  ;;  %v11341_v42 = vpop.f32.mrb[229].mxu1  ;;  %8627 = vmatprep.mubr.bf16.mxu0 %v5387_v49  ;;  %v6179_v40 = vmax.f32 %v6051_v35, 0.0  ;;  %v9002_v37 = vld [vmem:[%s12442_s5 + $0x18] sm:$0xff]  }
 0x6e4   : > { %12718 = vst [vmem:[#allocation61_spill] sm:$0xff] %v11341_v42  ;;  %v6050_v15 = vadd.f32 %v11165_v45, %v5609_v27  ;;  %v4861_v23 = vpop.f32.mrb[230].mxu1  ;;  %v6177_v59 = vmax.f32 %v6049_v13, 0.0  ;;  %8681 = vmatprep.subr.bf16.mxu0 %v9002_v37 }
 0x6e5   : > { %v6180_v16 = vmax.f32 %v6052_v57, 0.0  ;;  %v5174_v38 = vadd.f32 %v11232_v58, %v4861_v23  ;;  %v11345_v6 = vpop.f32.mrb[231].mxu1  ;;  %v5301_v7 = vmax.f32 %v5173_v55, 0.0  ;;  %8682 = vmatpush3.bf16.msra.mxu0 %v9002_v37 }
 0x6e6   : > { %12719 = vst [vmem:[#allocation57_spill] sm:$0xff] %v11345_v6  ;;  %v6178_v43 = vmax.f32 %v6050_v15, 0.0 }
 0x6e7   : > { %v11347_v29 = vpack.c.bf16 %v6180_v16, %v6179_v40  ;;  %v5302_v22 = vmax.f32 %v5174_v38, 0.0  ;;  %v12722_v38 = vld [vmem:[#allocation69_spill] sm:$0xff] }
 0x6e8   : > { %v11349_v3 = vpack.c.bf16 %v6178_v43, %v6177_v59 }
 0x6e9   : > { %v5388_v27 = vpack.c.bf16 %v5302_v22, %v5301_v7  ;;  %v12723_v7 = vld [vmem:[#allocation65_spill] sm:$0xff] }
 0x6ea   : > { %v4867_v49 = vpop.f32.mrb[232].mxu1 }
 0x6eb   : > { %v5175_v35 = vadd.f32 %v11232_v58, %v4867_v49  ;;  %v11355_v57 = vpop.f32.mrb[233].mxu1  ;;  %8628 = vmatmul.mubr.bf16.gmra.mrb[144].mxu0 %v5388_v27 }
 0x6ec   : > { %12720 = vst [vmem:[#allocation63_spill] sm:$0xff] %v11355_v57  ;;  %v4871_v13 = vpop.f32.mrb[234].mxu1  ;;  %v12724_v57 = vld [vmem:[#allocation71_spill] sm:$0xff] }
 0x6ed   : > { %v5176_v15 = vadd.f32 %v11232_v58, %v4871_v13  ;;  %v11358_v55 = vpop.f32.mrb[235].mxu1  ;;  %v5303_v40 = vmax.f32 %v5175_v35, 0.0  ;;  %v12725_v13 = vld [vmem:[#allocation67_spill] sm:$0xff] }
 0x6ee   : > { %12721 = vst [vmem:[#allocation59_spill] sm:$0xff] %v11358_v55  ;;  %v8577_v23 = vpop.f32.mrb[92].mxu0 }
 0x6ef   : > { %v5304_v16 = vmax.f32 %v5176_v15, 0.0  ;;  %v5630_v59 = vadd.f32 %v8577_v23, %v12722_v38  ;;  %v5621_v43 = vpop.f32.mrb[93].mxu0 }
 0x6f0   : > { %v5622_v22 = vadd.f32 %v5621_v43, %v12723_v7  ;;  %v8578_v6 = vpop.f32.mrb[94].mxu0 }
 0x6f1   : > { %v5389_v42 = vpack.c.bf16 %v5304_v16, %v5303_v40  ;;  %v6055_v49 = vadd.f32 %v11165_v45, %v5630_v59  ;;  %v5633_v27 = vadd.f32 %v8578_v6, %v12724_v57  ;;  %v5624_v21 = vpop.f32.mrb[95].mxu0 }
 0x6f2   : > { %v6053_v37 = vadd.f32 %v11165_v45, %v5622_v22  ;;  %v5625_v2 = vadd.f32 %v5624_v21, %v12725_v13  ;;  %v4877_v55 = vpop.f32.mrb[236].mxu1 }
 0x6f3   : > { %v6056_v35 = vadd.f32 %v11165_v45, %v5633_v27  ;;  %v5177_v15 = vadd.f32 %v11232_v58, %v4877_v55  ;;  %v11368_v23 = vpop.f32.mrb[237].mxu1  ;;  %8631 = vmatprep.mubr.bf16.mxu0 %v5389_v42  ;;  %v6183_v16 = vmax.f32 %v6055_v49, 0.0 }
 0x6f4   : > { %12726 = vst [vmem:[#allocation69_spill] sm:$0xff] %v11368_v23  ;;  %v6054_v38 = vadd.f32 %v11165_v45, %v5625_v2  ;;  %v4881_v40 = vpop.f32.mrb[238].mxu1  ;;  %v6181_v43 = vmax.f32 %v6053_v37, 0.0 }
 0x6f5   : > { %v6184_v59 = vmax.f32 %v6056_v35, 0.0  ;;  %v5178_v6 = vadd.f32 %v11232_v58, %v4881_v40  ;;  %v11372_v57 = vpop.f32.mrb[239].mxu1  ;;  %v5305_v22 = vmax.f32 %v5177_v15, 0.0 }
 0x6f6   : > { %12727 = vst [vmem:[#allocation65_spill] sm:$0xff] %v11372_v57  ;;  %v6182_v7 = vmax.f32 %v6054_v38, 0.0  ;;  %v12732_v57 = vld [vmem:[#allocation76_spill] sm:$0xff] }
 0x6f7   : > { %v11374_v21 = vpack.c.bf16 %v6184_v59, %v6183_v16  ;;  %v5306_v27 = vmax.f32 %v5178_v6, 0.0  ;;  %v12730_v59 = vld [vmem:[#allocation75_spill] sm:$0xff] }
 0x6f8   : > { %v11376_v13 = vpack.c.bf16 %v6182_v7, %v6181_v43  ;;  %v12731_v43 = vld [vmem:[#allocation73_spill] sm:$0xff] }
 0x6f9   : > { %v5390_v55 = vpack.c.bf16 %v5306_v27, %v5305_v22 }
 0x6fa   : > { %v4887_v23 = vpop.f32.mrb[240].mxu1 }
 0x6fb   : > { %v5179_v42 = vadd.f32 %v11232_v58, %v4887_v23  ;;  %v11379_v2 = vpop.f32.mrb[241].mxu1  ;;  %8632 = vmatmul.mubr.bf16.gmra.mrb[148].mxu0 %v5390_v55 }
 0x6fc   : > { %12728 = vst [vmem:[#allocation71_spill] sm:$0xff] %v11379_v2  ;;  %v4891_v49 = vpop.f32.mrb[242].mxu1 }
 0x6fd   : > { %v5180_v35 = vadd.f32 %v11232_v58, %v4891_v49  ;;  %v11382_v40 = vpop.f32.mrb[243].mxu1  ;;  %v5307_v38 = vmax.f32 %v5179_v42, 0.0  ;;  %v12733_v49 = vld [vmem:[#allocation74_spill] sm:$0xff] }
 0x6fe   : > { %12729 = vst [vmem:[#allocation67_spill] sm:$0xff] %v11382_v40  ;;  %v8581_v37 = vpop.f32.mrb[96].mxu0 }
 0x6ff   : > { %v5308_v16 = vmax.f32 %v5180_v35, 0.0  ;;  %v5646_v15 = vadd.f32 %v8581_v37, %v12730_v59  ;;  %v5637_v6 = vpop.f32.mrb[97].mxu0 }
 0x700   : > { %v5638_v7 = vadd.f32 %v5637_v6, %v12731_v43  ;;  %v8582_v22 = vpop.f32.mrb[98].mxu0 }
 0x701   : > { %v5391_v27 = vpack.c.bf16 %v5308_v16, %v5307_v38  ;;  %v6059_v23 = vadd.f32 %v11165_v45, %v5646_v15  ;;  %v5649_v2 = vadd.f32 %v8582_v22, %v12732_v57  ;;  %v5640_v55 = vpop.f32.mrb[99].mxu0 }
 0x702   : > { %v6057_v52 = vadd.f32 %v11165_v45, %v5638_v7  ;;  %v5641_v63 = vadd.f32 %v5640_v55, %v12733_v49  ;;  %v4897_v40 = vpop.f32.mrb[244].mxu1 }
 0x703   : > { %v6060_v42 = vadd.f32 %v11165_v45, %v5649_v2  ;;  %v5181_v35 = vadd.f32 %v11232_v58, %v4897_v40  ;;  %v11392_v37 = vpop.f32.mrb[245].mxu1  ;;  %8635 = vmatprep.mubr.bf16.mxu0 %v5391_v27  ;;  %v6187_v16 = vmax.f32 %v6059_v23, 0.0 }
 0x704   : > { %12734 = vst [vmem:[#allocation75_spill] sm:$0xff] %v11392_v37  ;;  %v6058_v59 = vadd.f32 %v11165_v45, %v5641_v63  ;;  %v4901_v38 = vpop.f32.mrb[246].mxu1  ;;  %v6185_v43 = vmax.f32 %v6057_v52, 0.0 }
 0x705   : > { %v6188_v15 = vmax.f32 %v6060_v42, 0.0  ;;  %v5182_v57 = vadd.f32 %v11232_v58, %v4901_v38  ;;  %v11396_v6 = vpop.f32.mrb[247].mxu1  ;;  %v5309_v55 = vmax.f32 %v5181_v35, 0.0 }
 0x706   : > { %12735 = vst [vmem:[#allocation73_spill] sm:$0xff] %v11396_v6  ;;  %v6186_v7 = vmax.f32 %v6058_v59, 0.0  ;;  %v12740_v6 = vld [vmem:[#allocation80_spill] sm:$0xff] }
 0x707   : > { %v11398_v22 = vpack.c.bf16 %v6188_v15, %v6187_v16  ;;  %v5310_v2 = vmax.f32 %v5182_v57, 0.0  ;;  %v12738_v15 = vld [vmem:[#allocation79_spill] sm:$0xff] }
 0x708   : > { %v11400_v49 = vpack.c.bf16 %v6186_v7, %v6185_v43  ;;  %v12739_v43 = vld [vmem:[#allocation77_spill] sm:$0xff] }
 0x709   : > { %v5392_v40 = vpack.c.bf16 %v5310_v2, %v5309_v55 }
 0x70a   : > { %v4907_v37 = vpop.f32.mrb[248].mxu1 }
 0x70b   : > { %v5183_v27 = vadd.f32 %v11232_v58, %v4907_v37  ;;  %v11403_v63 = vpop.f32.mrb[249].mxu1  ;;  %8636 = vmatmul.mubr.bf16.gmra.mrb[152].mxu0 %v5392_v40 }
 0x70c   : > { %12736 = vst [vmem:[#allocation76_spill] sm:$0xff] %v11403_v63  ;;  %v4911_v23 = vpop.f32.mrb[250].mxu1 }
 0x70d   : > { %v5184_v42 = vadd.f32 %v11232_v58, %v4911_v23  ;;  %v11406_v38 = vpop.f32.mrb[251].mxu1  ;;  %v5311_v59 = vmax.f32 %v5183_v27, 0.0  ;;  %v12741_v23 = vld [vmem:[#allocation78_spill] sm:$0xff] }
 0x70e   : > { %12737 = vst [vmem:[#allocation74_spill] sm:$0xff] %v11406_v38  ;;  %v8585_v52 = vpop.f32.mrb[100].mxu0 }
 0x70f   : > { %v5312_v16 = vmax.f32 %v5184_v42, 0.0  ;;  %v5662_v35 = vadd.f32 %v8585_v52, %v12738_v15  ;;  %v5653_v57 = vpop.f32.mrb[101].mxu0 }
 0x710   : > { %v5654_v7 = vadd.f32 %v5653_v57, %v12739_v43  ;;  %v8586_v55 = vpop.f32.mrb[102].mxu0 }
 0x711   : > { %v5393_v2 = vpack.c.bf16 %v5312_v16, %v5311_v59  ;;  %v6063_v37 = vadd.f32 %v11165_v45, %v5662_v35  ;;  %v5665_v63 = vadd.f32 %v8586_v55, %v12740_v6  ;;  %v5656_v40 = vpop.f32.mrb[103].mxu0 }
 0x712   : > { %v6061_v12 = vadd.f32 %v11165_v45, %v5654_v7  ;;  %v5657_v50 = vadd.f32 %v5656_v40, %v12741_v23  ;;  %v4917_v38 = vpop.f32.mrb[252].mxu1 }
 0x713   : > { %v6064_v27 = vadd.f32 %v11165_v45, %v5665_v63  ;;  %v5185_v42 = vadd.f32 %v11232_v58, %v4917_v38  ;;  %v11416_v52 = vpop.f32.mrb[253].mxu1  ;;  %8639 = vmatprep.mubr.bf16.mxu0 %v5393_v2  ;;  %v6191_v16 = vmax.f32 %v6063_v37, 0.0 }
 0x714   : > { %12742 = vst [vmem:[#allocation79_spill] sm:$0xff] %v11416_v52  ;;  %v6062_v15 = vadd.f32 %v11165_v45, %v5657_v50  ;;  %v4921_v59 = vpop.f32.mrb[254].mxu1  ;;  %v6189_v43 = vmax.f32 %v6061_v12, 0.0 }
 0x715   : > { %v6192_v35 = vmax.f32 %v6064_v27, 0.0  ;;  %v5186_v6 = vadd.f32 %v11232_v58, %v4921_v59  ;;  %v11420_v57 = vpop.f32.mrb[255].mxu1  ;;  %v5313_v40 = vmax.f32 %v5185_v42, 0.0 }
 0x716   : > { %12743 = vst [vmem:[#allocation77_spill] sm:$0xff] %v11420_v57  ;;  %v6190_v7 = vmax.f32 %v6062_v15, 0.0  ;;  %v12748_v57 = vld [vmem:[#allocation84_spill] sm:$0xff] }
 0x717   : > { %v11422_v55 = vpack.c.bf16 %v6192_v35, %v6191_v16  ;;  %v5314_v63 = vmax.f32 %v5186_v6, 0.0  ;;  %v12746_v35 = vld [vmem:[#allocation83_spill] sm:$0xff] }
 0x718   : > { %v11424_v23 = vpack.c.bf16 %v6190_v7, %v6189_v43  ;;  %v12747_v43 = vld [vmem:[#allocation81_spill] sm:$0xff] }
 0x719   : > { %v5394_v38 = vpack.c.bf16 %v5314_v63, %v5313_v40 }
 0x71a   : > { %v4927_v52 = vpop.f32.mrb[0].mxu1 }
 0x71b   : > { %v5187_v2 = vadd.f32 %v11232_v58, %v4927_v52  ;;  %v11427_v50 = vpop.f32.mrb[1].mxu1  ;;  %8640 = vmatmul.mubr.bf16.gmra.mrb[156].mxu0 %v5394_v38 }
 0x71c   : > { %12744 = vst [vmem:[#allocation80_spill] sm:$0xff] %v11427_v50  ;;  %v4931_v37 = vpop.f32.mrb[2].mxu1 }
 0x71d   : > { %v5188_v27 = vadd.f32 %v11232_v58, %v4931_v37  ;;  %v11430_v59 = vpop.f32.mrb[3].mxu1  ;;  %v5315_v15 = vmax.f32 %v5187_v2, 0.0  ;;  %v12749_v37 = vld [vmem:[#allocation82_spill] sm:$0xff] }
 0x71e   : > { %12745 = vst [vmem:[#allocation78_spill] sm:$0xff] %v11430_v59  ;;  %v8589_v12 = vpop.f32.mrb[104].mxu0 }
 0x71f   : > { %v5316_v16 = vmax.f32 %v5188_v27, 0.0  ;;  %v5678_v42 = vadd.f32 %v8589_v12, %v12746_v35  ;;  %v5669_v6 = vpop.f32.mrb[105].mxu0 }
 0x720   : > { %v5670_v7 = vadd.f32 %v5669_v6, %v12747_v43  ;;  %v8590_v40 = vpop.f32.mrb[106].mxu0 }
 0x721   : > { %v5395_v63 = vpack.c.bf16 %v5316_v16, %v5315_v15  ;;  %v6067_v52 = vadd.f32 %v11165_v45, %v5678_v42  ;;  %v5681_v50 = vadd.f32 %v8590_v40, %v12748_v57  ;;  %v5672_v38 = vpop.f32.mrb[107].mxu0 }
 0x722   : > { %v6065_v25 = vadd.f32 %v11165_v45, %v5670_v7  ;;  %v5673_v20 = vadd.f32 %v5672_v38, %v12749_v37  ;;  %v4937_v59 = vpop.f32.mrb[4].mxu1 }
 0x723   : > { %v6068_v2 = vadd.f32 %v11165_v45, %v5681_v50  ;;  %v5189_v27 = vadd.f32 %v11232_v58, %v4937_v59  ;;  %v11440_v12 = vpop.f32.mrb[5].mxu1  ;;  %8643 = vmatprep.mubr.bf16.mxu0 %v5395_v63  ;;  %v6195_v16 = vmax.f32 %v6067_v52, 0.0 }
 0x724   : > { %12750 = vst [vmem:[#allocation83_spill] sm:$0xff] %v11440_v12  ;;  %v6066_v35 = vadd.f32 %v11165_v45, %v5673_v20  ;;  %v4941_v15 = vpop.f32.mrb[6].mxu1  ;;  %v6193_v43 = vmax.f32 %v6065_v25, 0.0 }
 0x725   : > { %v6196_v42 = vmax.f32 %v6068_v2, 0.0  ;;  %v5190_v57 = vadd.f32 %v11232_v58, %v4941_v15  ;;  %v11444_v6 = vpop.f32.mrb[7].mxu1  ;;  %v5317_v38 = vmax.f32 %v5189_v27, 0.0 }
 0x726   : > { %12751 = vst [vmem:[#allocation81_spill] sm:$0xff] %v11444_v6  ;;  %v6194_v7 = vmax.f32 %v6066_v35, 0.0  ;;  %v12756_v6 = vld [vmem:[#allocation88_spill] sm:$0xff] }
 0x727   : > { %v11446_v40 = vpack.c.bf16 %v6196_v42, %v6195_v16  ;;  %v5318_v50 = vmax.f32 %v5190_v57, 0.0  ;;  %v12754_v42 = vld [vmem:[#allocation87_spill] sm:$0xff] }
 0x728   : > { %v11448_v37 = vpack.c.bf16 %v6194_v7, %v6193_v43  ;;  %v12755_v43 = vld [vmem:[#allocation85_spill] sm:$0xff] }
 0x729   : > { %v5396_v59 = vpack.c.bf16 %v5318_v50, %v5317_v38 }
 0x72a   : > { %v4947_v12 = vpop.f32.mrb[8].mxu1 }
 0x72b   : > { %v5191_v63 = vadd.f32 %v11232_v58, %v4947_v12  ;;  %v11451_v20 = vpop.f32.mrb[9].mxu1  ;;  %8644 = vmatmul.mubr.bf16.gmra.mrb[160].mxu0 %v5396_v59 }
 0x72c   : > { %12752 = vst [vmem:[#allocation84_spill] sm:$0xff] %v11451_v20  ;;  %v4951_v52 = vpop.f32.mrb[10].mxu1 }
 0x72d   : > { %v5192_v2 = vadd.f32 %v11232_v58, %v4951_v52  ;;  %v11454_v15 = vpop.f32.mrb[11].mxu1  ;;  %v5319_v35 = vmax.f32 %v5191_v63, 0.0  ;;  %v12757_v52 = vld [vmem:[#allocation86_spill] sm:$0xff] }
 0x72e   : > { %12753 = vst [vmem:[#allocation82_spill] sm:$0xff] %v11454_v15  ;;  %v8593_v25 = vpop.f32.mrb[108].mxu0 }
 0x72f   : > { %v5320_v16 = vmax.f32 %v5192_v2, 0.0  ;;  %v5694_v27 = vadd.f32 %v8593_v25, %v12754_v42  ;;  %v5685_v57 = vpop.f32.mrb[109].mxu0 }
 0x730   : > { %v5686_v7 = vadd.f32 %v5685_v57, %v12755_v43  ;;  %v8594_v38 = vpop.f32.mrb[110].mxu0 }
 0x731   : > { %v5397_v50 = vpack.c.bf16 %v5320_v16, %v5319_v35  ;;  %v6071_v12 = vadd.f32 %v11165_v45, %v5694_v27  ;;  %v5697_v20 = vadd.f32 %v8594_v38, %v12756_v6  ;;  %v5688_v59 = vpop.f32.mrb[111].mxu0 }
 0x732   : > { %v6069_v18 = vadd.f32 %v11165_v45, %v5686_v7  ;;  %v5689_v51 = vadd.f32 %v5688_v59, %v12757_v52  ;;  %v4957_v15 = vpop.f32.mrb[12].mxu1 }
 0x733   : > { %v6072_v63 = vadd.f32 %v11165_v45, %v5697_v20  ;;  %v5193_v2 = vadd.f32 %v11232_v58, %v4957_v15  ;;  %v11464_v25 = vpop.f32.mrb[13].mxu1  ;;  %8647 = vmatprep.mubr.bf16.mxu0 %v5397_v50  ;;  %v6199_v16 = vmax.f32 %v6071_v12, 0.0 }
 0x734   : > { %12758 = vst [vmem:[#allocation87_spill] sm:$0xff] %v11464_v25  ;;  %v6070_v42 = vadd.f32 %v11165_v45, %v5689_v51  ;;  %v4961_v35 = vpop.f32.mrb[14].mxu1  ;;  %v6197_v43 = vmax.f32 %v6069_v18, 0.0 }
 0x735   : > { %v6200_v27 = vmax.f32 %v6072_v63, 0.0  ;;  %v5194_v6 = vadd.f32 %v11232_v58, %v4961_v35  ;;  %v11468_v57 = vpop.f32.mrb[15].mxu1  ;;  %v5321_v59 = vmax.f32 %v5193_v2, 0.0 }
 0x736   : > { %12759 = vst [vmem:[#allocation85_spill] sm:$0xff] %v11468_v57  ;;  %v6198_v7 = vmax.f32 %v6070_v42, 0.0  ;;  %v12764_v57 = vld [vmem:[#allocation92_spill] sm:$0xff] }
 0x737   : > { %v11470_v38 = vpack.c.bf16 %v6200_v27, %v6199_v16  ;;  %v5322_v20 = vmax.f32 %v5194_v6, 0.0  ;;  %v12762_v27 = vld [vmem:[#allocation91_spill] sm:$0xff] }
 0x738   : > { %v11472_v52 = vpack.c.bf16 %v6198_v7, %v6197_v43  ;;  %v12763_v43 = vld [vmem:[#allocation89_spill] sm:$0xff] }
 0x739   : > { %v5398_v15 = vpack.c.bf16 %v5322_v20, %v5321_v59 }
 0x73a   : > { %v4967_v25 = vpop.f32.mrb[16].mxu1 }
 0x73b   : > { %v5195_v50 = vadd.f32 %v11232_v58, %v4967_v25  ;;  %v11475_v51 = vpop.f32.mrb[17].mxu1  ;;  %8648 = vmatmul.mubr.bf16.gmra.mrb[164].mxu0 %v5398_v15 }
 0x73c   : > { %12760 = vst [vmem:[#allocation88_spill] sm:$0xff] %v11475_v51  ;;  %v4971_v12 = vpop.f32.mrb[18].mxu1 }
 0x73d   : > { %v5196_v63 = vadd.f32 %v11232_v58, %v4971_v12  ;;  %v11478_v35 = vpop.f32.mrb[19].mxu1  ;;  %v5323_v42 = vmax.f32 %v5195_v50, 0.0  ;;  %v12765_v12 = vld [vmem:[#allocation90_spill] sm:$0xff] }
 0x73e   : > { %12761 = vst [vmem:[#allocation86_spill] sm:$0xff] %v11478_v35  ;;  %v8597_v18 = vpop.f32.mrb[112].mxu0 }
 0x73f   : > { %v5324_v16 = vmax.f32 %v5196_v63, 0.0  ;;  %v5710_v2 = vadd.f32 %v8597_v18, %v12762_v27  ;;  %v5701_v6 = vpop.f32.mrb[113].mxu0 }
 0x740   : > { %v5702_v7 = vadd.f32 %v5701_v6, %v12763_v43  ;;  %v8598_v59 = vpop.f32.mrb[114].mxu0 }
 0x741   : > { %v5399_v20 = vpack.c.bf16 %v5324_v16, %v5323_v42  ;;  %v6075_v25 = vadd.f32 %v11165_v45, %v5710_v2  ;;  %v5713_v51 = vadd.f32 %v8598_v59, %v12764_v57  ;;  %v5704_v15 = vpop.f32.mrb[115].mxu0 }
 0x742   : > { %v6073_v60 = vadd.f32 %v11165_v45, %v5702_v7  ;;  %v5705_v33 = vadd.f32 %v5704_v15, %v12765_v12  ;;  %v4977_v35 = vpop.f32.mrb[20].mxu1 }
 0x743   : > { %v6076_v50 = vadd.f32 %v11165_v45, %v5713_v51  ;;  %v5197_v63 = vadd.f32 %v11232_v58, %v4977_v35  ;;  %v11488_v18 = vpop.f32.mrb[21].mxu1  ;;  %8651 = vmatprep.mubr.bf16.mxu0 %v5399_v20  ;;  %v6203_v16 = vmax.f32 %v6075_v25, 0.0 }
 0x744   : > { %12766 = vst [vmem:[#allocation91_spill] sm:$0xff] %v11488_v18  ;;  %v6074_v27 = vadd.f32 %v11165_v45, %v5705_v33  ;;  %v4981_v42 = vpop.f32.mrb[22].mxu1  ;;  %v6201_v43 = vmax.f32 %v6073_v60, 0.0 }
 0x745   : > { %v6204_v2 = vmax.f32 %v6076_v50, 0.0  ;;  %v5198_v57 = vadd.f32 %v11232_v58, %v4981_v42  ;;  %v11492_v6 = vpop.f32.mrb[23].mxu1  ;;  %v5325_v15 = vmax.f32 %v5197_v63, 0.0 }
 0x746   : > { %12767 = vst [vmem:[#allocation89_spill] sm:$0xff] %v11492_v6  ;;  %v6202_v7 = vmax.f32 %v6074_v27, 0.0 }
 0x747   : > { %v11494_v59 = vpack.c.bf16 %v6204_v2, %v6203_v16  ;;  %v5326_v51 = vmax.f32 %v5198_v57, 0.0  ;;  %v12770_v16 = vld [vmem:[#allocation95_spill] sm:$0xff]  ;;  %v12771_v57 = vld [vmem:[#allocation93_spill] sm:$0xff] }
 0x748   : > { %v11496_v12 = vpack.c.bf16 %v6202_v7, %v6201_v43 }
 0x749   : > { %v5400_v35 = vpack.c.bf16 %v5326_v51, %v5325_v15  ;;  %v11506_v51 = vld [vmem:[#allocation6 + $0x5] ss:$0 sm:$0xff] }
 0x74a   : > { %v4987_v18 = vpop.f32.mrb[24].mxu1 }
 0x74b   : > { %v5199_v20 = vadd.f32 %v11232_v58, %v4987_v18  ;;  %v11499_v33 = vpop.f32.mrb[25].mxu1  ;;  %8652 = vmatmul.mubr.bf16.gmra.mrb[168].mxu0 %v5400_v35  ;;  %v12772_v35 = vld [vmem:[#allocation96_spill] sm:$0xff] }
 0x74c   : > { %12768 = vst [vmem:[#allocation92_spill] sm:$0xff] %v11499_v33  ;;  %v4991_v45 = vpop.f32.mrb[26].mxu1 }
 0x74d   : > { %v5200_v25 = vadd.f32 %v11232_v58, %v4991_v45  ;;  %v11502_v50 = vpop.f32.mrb[27].mxu1  ;;  %v5327_v27 = vmax.f32 %v5199_v20, 0.0 }
 0x74e   : > { %12769 = vst [vmem:[#allocation90_spill] sm:$0xff] %v11502_v50  ;;  %v8601_v60 = vpop.f32.mrb[116].mxu0  ;;  %v12773_v50 = vld [vmem:[#allocation94_spill] sm:$0xff] }
 0x74f   : > { %v5328_v42 = vmax.f32 %v5200_v25, 0.0  ;;  %v5726_v63 = vadd.f32 %v8601_v60, %v12770_v16  ;;  %v5717_v2 = vpop.f32.mrb[117].mxu0 }
 0x750   : > { %v5718_v43 = vadd.f32 %v5717_v2, %v12771_v57  ;;  %v8602_v7 = vpop.f32.mrb[118].mxu0 }
 0x751   : > { %v5401_v15 = vpack.c.bf16 %v5328_v42, %v5327_v27  ;;  %v6079_v18 = vadd.f32 %v11506_v51, %v5726_v63  ;;  %v5729_v33 = vadd.f32 %v8602_v7, %v12772_v35  ;;  %v5720_v6 = vpop.f32.mrb[119].mxu0 }
 0x752   : > { %v6077_v45 = vadd.f32 %v11506_v51, %v5718_v43  ;;  %v5721_v39 = vadd.f32 %v5720_v6, %v12773_v50  ;;  %v4997_v20 = vpop.f32.mrb[28].mxu1 }
 0x753   : > { %v6080_v25 = vadd.f32 %v11506_v51, %v5729_v33  ;;  %v5201_v60 = vadd.f32 %v11232_v58, %v4997_v20  ;;  %v11514_v16 = vpop.f32.mrb[29].mxu1  ;;  %8655 = vmatprep.mubr.bf16.mxu0 %v5401_v15  ;;  %v6207_v2 = vmax.f32 %v6079_v18, 0.0 }
 0x754   : > { %12774 = vst [vmem:[#allocation95_spill] sm:$0xff] %v11514_v16  ;;  %v6078_v27 = vadd.f32 %v11506_v51, %v5721_v39  ;;  %v5001_v42 = vpop.f32.mrb[30].mxu1  ;;  %v6205_v43 = vmax.f32 %v6077_v45, 0.0 }
 0x755   : > { %v6208_v63 = vmax.f32 %v6080_v25, 0.0  ;;  %v5202_v57 = vadd.f32 %v11232_v58, %v5001_v42  ;;  %v11518_v7 = vpop.f32.mrb[31].mxu1  ;;  %v5329_v50 = vmax.f32 %v5201_v60, 0.0 }
 0x756   : > { %12775 = vst [vmem:[#allocation93_spill] sm:$0xff] %v11518_v7  ;;  %v6206_v35 = vmax.f32 %v6078_v27, 0.0  ;;  %v12780_v7 = vld [vmem:[#allocation100_spill] sm:$0xff] }
 0x757   : > { %v11520_v6 = vpack.c.bf16 %v6208_v63, %v6207_v2  ;;  %v5330_v33 = vmax.f32 %v5202_v57, 0.0  ;;  %v12778_v63 = vld [vmem:[#allocation99_spill] sm:$0xff] }
 0x758   : > { %v11522_v46 = vpack.c.bf16 %v6206_v35, %v6205_v43  ;;  %v12779_v43 = vld [vmem:[#allocation97_spill] sm:$0xff] }
 0x759   : > { %v5402_v20 = vpack.c.bf16 %v5330_v33, %v5329_v50 }
 0x75a   : > { %v5007_v16 = vpop.f32.mrb[32].mxu1 }
 0x75b   : > { %v5203_v15 = vadd.f32 %v11232_v58, %v5007_v16  ;;  %v11525_v39 = vpop.f32.mrb[33].mxu1  ;;  %8656 = vmatmul.mubr.bf16.gmra.mrb[172].mxu0 %v5402_v20 }
 0x75c   : > { %12776 = vst [vmem:[#allocation96_spill] sm:$0xff] %v11525_v39  ;;  %v5011_v18 = vpop.f32.mrb[34].mxu1 }
 0x75d   : > { %v5204_v25 = vadd.f32 %v11232_v58, %v5011_v18  ;;  %v11528_v42 = vpop.f32.mrb[35].mxu1  ;;  %v5331_v27 = vmax.f32 %v5203_v15, 0.0  ;;  %v12781_v18 = vld [vmem:[#allocation98_spill] sm:$0xff] }
 0x75e   : > { %12777 = vst [vmem:[#allocation94_spill] sm:$0xff] %v11528_v42  ;;  %v8605_v45 = vpop.f32.mrb[120].mxu0 }
 0x75f   : > { %v5332_v2 = vmax.f32 %v5204_v25, 0.0  ;;  %v5742_v60 = vadd.f32 %v8605_v45, %v12778_v63  ;;  %v5733_v57 = vpop.f32.mrb[121].mxu0 }
 0x760   : > { %v5734_v35 = vadd.f32 %v5733_v57, %v12779_v43  ;;  %v8606_v50 = vpop.f32.mrb[122].mxu0 }
 0x761   : > { %v5403_v33 = vpack.c.bf16 %v5332_v2, %v5331_v27  ;;  %v6083_v16 = vadd.f32 %v11506_v51, %v5742_v60  ;;  %v5745_v39 = vadd.f32 %v8606_v50, %v12780_v7  ;;  %v5736_v20 = vpop.f32.mrb[123].mxu0 }
 0x762   : > { %v6081_v41 = vadd.f32 %v11506_v51, %v5734_v35  ;;  %v5737_v54 = vadd.f32 %v5736_v20, %v12781_v18  ;;  %v5017_v42 = vpop.f32.mrb[36].mxu1 }
 0x763   : > { %v6084_v15 = vadd.f32 %v11506_v51, %v5745_v39  ;;  %v5205_v25 = vadd.f32 %v11232_v58, %v5017_v42  ;;  %v11538_v45 = vpop.f32.mrb[37].mxu1  ;;  %8659 = vmatprep.mubr.bf16.mxu0 %v5403_v33  ;;  %v6211_v2 = vmax.f32 %v6083_v16, 0.0 }
 0x764   : > { %12782 = vst [vmem:[#allocation99_spill] sm:$0xff] %v11538_v45  ;;  %v6082_v63 = vadd.f32 %v11506_v51, %v5737_v54  ;;  %v5021_v27 = vpop.f32.mrb[38].mxu1  ;;  %v6209_v43 = vmax.f32 %v6081_v41, 0.0 }
 0x765   : > { %v6212_v60 = vmax.f32 %v6084_v15, 0.0  ;;  %v5206_v7 = vadd.f32 %v11232_v58, %v5021_v27  ;;  %v11542_v57 = vpop.f32.mrb[39].mxu1  ;;  %v5333_v20 = vmax.f32 %v5205_v25, 0.0 }
 0x766   : > { %12783 = vst [vmem:[#allocation97_spill] sm:$0xff] %v11542_v57  ;;  %v6210_v35 = vmax.f32 %v6082_v63, 0.0  ;;  %v12788_v57 = vld [vmem:[#allocation104_spill] sm:$0xff] }
 0x767   : > { %v11544_v50 = vpack.c.bf16 %v6212_v60, %v6211_v2  ;;  %v5334_v39 = vmax.f32 %v5206_v7, 0.0  ;;  %v12786_v60 = vld [vmem:[#allocation103_spill] sm:$0xff] }
 0x768   : > { %v11546_v18 = vpack.c.bf16 %v6210_v35, %v6209_v43  ;;  %v12787_v43 = vld [vmem:[#allocation101_spill] sm:$0xff] }
 0x769   : > { %v5404_v42 = vpack.c.bf16 %v5334_v39, %v5333_v20 }
 0x76a   : > { %v5027_v45 = vpop.f32.mrb[40].mxu1 }
 0x76b   : > { %v5207_v33 = vadd.f32 %v11232_v58, %v5027_v45  ;;  %v11549_v54 = vpop.f32.mrb[41].mxu1  ;;  %8660 = vmatmul.mubr.bf16.gmra.mrb[176].mxu0 %v5404_v42 }
 0x76c   : > { %12784 = vst [vmem:[#allocation100_spill] sm:$0xff] %v11549_v54  ;;  %v5031_v16 = vpop.f32.mrb[42].mxu1 }
 0x76d   : > { %v5208_v15 = vadd.f32 %v11232_v58, %v5031_v16  ;;  %v11552_v27 = vpop.f32.mrb[43].mxu1  ;;  %v5335_v63 = vmax.f32 %v5207_v33, 0.0  ;;  %v12789_v16 = vld [vmem:[#allocation102_spill] sm:$0xff] }
 0x76e   : > { %12785 = vst [vmem:[#allocation98_spill] sm:$0xff] %v11552_v27  ;;  %v8609_v41 = vpop.f32.mrb[124].mxu0 }
 0x76f   : > { %v5336_v2 = vmax.f32 %v5208_v15, 0.0  ;;  %v5758_v25 = vadd.f32 %v8609_v41, %v12786_v60  ;;  %v5749_v7 = vpop.f32.mrb[125].mxu0 }
 0x770   : > { %v5750_v35 = vadd.f32 %v5749_v7, %v12787_v43  ;;  %v8610_v20 = vpop.f32.mrb[126].mxu0  ;;  %v11565_v7 = vld [vmem:[#allocation6 + $0x4] ss:$0 sm:$0xff] }
 0x771   : > { %v5405_v39 = vpack.c.bf16 %v5336_v2, %v5335_v63  ;;  %v6087_v45 = vadd.f32 %v11506_v51, %v5758_v25  ;;  %v5761_v54 = vadd.f32 %v8610_v20, %v12788_v57  ;;  %v5752_v42 = vpop.f32.mrb[127].mxu0 }
 0x772   : > { %v6085_v34 = vadd.f32 %v11506_v51, %v5750_v35  ;;  %v5753_v9 = vadd.f32 %v5752_v42, %v12789_v16  ;;  %v5037_v27 = vpop.f32.mrb[44].mxu1 }
 0x773   : > { %v6088_v33 = vadd.f32 %v11506_v51, %v5761_v54  ;;  %v5209_v15 = vadd.f32 %v11232_v58, %v5037_v27  ;;  %v11562_v41 = vpop.f32.mrb[45].mxu1  ;;  %8663 = vmatprep.mubr.bf16.mxu0 %v5405_v39  ;;  %v6215_v2 = vmax.f32 %v6087_v45, 0.0 }
 0x774   : > { %12790 = vst [vmem:[#allocation103_spill] sm:$0xff] %v11562_v41  ;;  %v6086_v60 = vadd.f32 %v11506_v51, %v5753_v9  ;;  %v5041_v63 = vpop.f32.mrb[46].mxu1  ;;  %v6213_v35 = vmax.f32 %v6085_v34, 0.0 }
 0x775   : > { %v6216_v25 = vmax.f32 %v6088_v33, 0.0  ;;  %v5210_v57 = vadd.f32 %v11565_v7, %v5041_v63  ;;  %v11568_v43 = vpop.f32.mrb[47].mxu1  ;;  %v5337_v54 = vmax.f32 %v5209_v15, 0.0 }
 0x776   : > { %12791 = vst [vmem:[#allocation101_spill] sm:$0xff] %v11568_v43  ;;  %v6214_v20 = vmax.f32 %v6086_v60, 0.0  ;;  %v12796_v43 = vld [vmem:[#allocation108_spill] sm:$0xff] }
 0x777   : > { %v11570_v42 = vpack.c.bf16 %v6216_v25, %v6215_v2  ;;  %v5338_v58 = vmax.f32 %v5210_v57, 0.0  ;;  %v12794_v25 = vld [vmem:[#allocation107_spill] sm:$0xff] }
 0x778   : > { %v11572_v27 = vpack.c.bf16 %v6214_v20, %v6213_v35  ;;  %v12795_v35 = vld [vmem:[#allocation105_spill] sm:$0xff] }
 0x779   : > { %v5406_v39 = vpack.c.bf16 %v5338_v58, %v5337_v54 }
 0x77a   : > { %v5047_v16 = vpop.f32.mrb[48].mxu1 }
 0x77b   : > { %v5211_v9 = vadd.f32 %v11565_v7, %v5047_v16  ;;  %v11575_v45 = vpop.f32.mrb[49].mxu1  ;;  %8664 = vmatmul.mubr.bf16.gmra.mrb[180].mxu0 %v5406_v39 }
 0x77c   : > { %12792 = vst [vmem:[#allocation104_spill] sm:$0xff] %v11575_v45  ;;  %v5051_v33 = vpop.f32.mrb[50].mxu1 }
 0x77d   : > { %v5212_v63 = vadd.f32 %v11565_v7, %v5051_v33  ;;  %v11578_v41 = vpop.f32.mrb[51].mxu1  ;;  %v5339_v60 = vmax.f32 %v5211_v9, 0.0  ;;  %v12797_v33 = vld [vmem:[#allocation106_spill] sm:$0xff] }
 0x77e   : > { %12793 = vst [vmem:[#allocation102_spill] sm:$0xff] %v11578_v41  ;;  %v8613_v34 = vpop.f32.mrb[128].mxu0 }
 0x77f   : > { %v5340_v2 = vmax.f32 %v5212_v63, 0.0  ;;  %v5774_v15 = vadd.f32 %v8613_v34, %v12794_v25  ;;  %v5765_v57 = vpop.f32.mrb[129].mxu0 }
 0x780   : > { %v5766_v20 = vadd.f32 %v5765_v57, %v12795_v35  ;;  %v8614_v54 = vpop.f32.mrb[130].mxu0 }
 0x781   : > { %v5407_v58 = vpack.c.bf16 %v5340_v2, %v5339_v60  ;;  %v6091_v16 = vadd.f32 %v11506_v51, %v5774_v15  ;;  %v5777_v45 = vadd.f32 %v8614_v54, %v12796_v43  ;;  %v5768_v39 = vpop.f32.mrb[131].mxu0 }
 0x782   : > { %v6089_v28 = vadd.f32 %v11506_v51, %v5766_v20  ;;  %v5769_v4 = vadd.f32 %v5768_v39, %v12797_v33  ;;  %v5057_v41 = vpop.f32.mrb[52].mxu1 }
 0x783   : > { %v6092_v9 = vadd.f32 %v11506_v51, %v5777_v45  ;;  %v5213_v63 = vadd.f32 %v11565_v7, %v5057_v41  ;;  %v11588_v34 = vpop.f32.mrb[53].mxu1  ;;  %8667 = vmatprep.mubr.bf16.mxu0 %v5407_v58  ;;  %v6219_v2 = vmax.f32 %v6091_v16, 0.0 }
 0x784   : > { %12798 = vst [vmem:[#allocation107_spill] sm:$0xff] %v11588_v34  ;;  %v6090_v25 = vadd.f32 %v11506_v51, %v5769_v4  ;;  %v5061_v60 = vpop.f32.mrb[54].mxu1  ;;  %v6217_v35 = vmax.f32 %v6089_v28, 0.0 }
 0x785   : > { %v6220_v15 = vmax.f32 %v6092_v9, 0.0  ;;  %v5214_v43 = vadd.f32 %v11565_v7, %v5061_v60  ;;  %v11592_v57 = vpop.f32.mrb[55].mxu1  ;;  %v5341_v39 = vmax.f32 %v5213_v63, 0.0 }
 0x786   : > { %12799 = vst [vmem:[#allocation105_spill] sm:$0xff] %v11592_v57  ;;  %v6218_v20 = vmax.f32 %v6090_v25, 0.0  ;;  %v12804_v57 = vld [vmem:[#allocation112_spill] sm:$0xff] }
 0x787   : > { %v11594_v54 = vpack.c.bf16 %v6220_v15, %v6219_v2  ;;  %v5342_v45 = vmax.f32 %v5214_v43, 0.0  ;;  %v12802_v15 = vld [vmem:[#allocation111_spill] sm:$0xff] }
 0x788   : > { %v11596_v33 = vpack.c.bf16 %v6218_v20, %v6217_v35  ;;  %v12803_v35 = vld [vmem:[#allocation109_spill] sm:$0xff] }
 0x789   : > { %v5408_v41 = vpack.c.bf16 %v5342_v45, %v5341_v39 }
 0x78a   : > { %v5067_v34 = vpop.f32.mrb[56].mxu1 }
 0x78b   : > { %v5215_v58 = vadd.f32 %v11565_v7, %v5067_v34  ;;  %v11599_v4 = vpop.f32.mrb[57].mxu1  ;;  %8668 = vmatmul.mubr.bf16.gmra.mrb[184].mxu0 %v5408_v41 }
 0x78c   : > { %12800 = vst [vmem:[#allocation108_spill] sm:$0xff] %v11599_v4  ;;  %v5071_v16 = vpop.f32.mrb[58].mxu1 }
 0x78d   : > { %v5216_v9 = vadd.f32 %v11565_v7, %v5071_v16  ;;  %v11602_v60 = vpop.f32.mrb[59].mxu1  ;;  %v5343_v25 = vmax.f32 %v5215_v58, 0.0  ;;  %v12805_v16 = vld [vmem:[#allocation110_spill] sm:$0xff] }
 0x78e   : > { %12801 = vst [vmem:[#allocation106_spill] sm:$0xff] %v11602_v60  ;;  %v8617_v28 = vpop.f32.mrb[132].mxu0 }
 0x78f   : > { %v5344_v2 = vmax.f32 %v5216_v9, 0.0  ;;  %v5790_v63 = vadd.f32 %v8617_v28, %v12802_v15  ;;  %v5781_v43 = vpop.f32.mrb[133].mxu0 }
 0x790   : > { %v5782_v20 = vadd.f32 %v5781_v43, %v12803_v35  ;;  %v8618_v39 = vpop.f32.mrb[134].mxu0 }
 0x791   : > { %v5409_v45 = vpack.c.bf16 %v5344_v2, %v5343_v25  ;;  %v6095_v34 = vadd.f32 %v11506_v51, %v5790_v63  ;;  %v5793_v4 = vadd.f32 %v8618_v39, %v12804_v57  ;;  %v5784_v41 = vpop.f32.mrb[135].mxu0 }
 0x792   : > { %v6093_v31 = vadd.f32 %v11506_v51, %v5782_v20  ;;  %v5785_v10 = vadd.f32 %v5784_v41, %v12805_v16  ;;  %v5077_v60 = vpop.f32.mrb[60].mxu1 }
 0x793   : > { %v6096_v58 = vadd.f32 %v11506_v51, %v5793_v4  ;;  %v5217_v9 = vadd.f32 %v11565_v7, %v5077_v60  ;;  %v11612_v28 = vpop.f32.mrb[61].mxu1  ;;  %8671 = vmatprep.mubr.bf16.mxu0 %v5409_v45  ;;  %v6223_v2 = vmax.f32 %v6095_v34, 0.0  ;;  %v12806_v45 = vld [vmem:[#allocation115_spill] sm:$0xff] }
 0x794   : > { %v6094_v15 = vadd.f32 %v11506_v51, %v5785_v10  ;;  %v5081_v25 = vpop.f32.mrb[62].mxu1  ;;  %v6221_v35 = vmax.f32 %v6093_v31, 0.0 }
 0x795   : > { %v6224_v63 = vmax.f32 %v6096_v58, 0.0  ;;  %v5218_v57 = vadd.f32 %v11565_v7, %v5081_v25  ;;  %v11616_v43 = vpop.f32.mrb[63].mxu1  ;;  %v5345_v41 = vmax.f32 %v5217_v9, 0.0  ;;  %v12807_v58 = vld [vmem:[#allocation113_spill] sm:$0xff] }
 0x796   : > { %v6222_v20 = vmax.f32 %v6094_v15, 0.0 }
 0x797   : > { %v11618_v39 = vpack.c.bf16 %v6224_v63, %v6223_v2  ;;  %v5346_v4 = vmax.f32 %v5218_v57, 0.0  ;;  %v12808_v2 = vld [vmem:[#allocation116_spill] sm:$0xff] }
 0x798   : > { %v11620_v16 = vpack.c.bf16 %v6222_v20, %v6221_v35  ;;  %v12809_v35 = vld [vmem:[#allocation114_spill] sm:$0xff] }
 0x799   : > { %v5410_v60 = vpack.c.bf16 %v5346_v4, %v5345_v41 }
 0x79b   : > { %8672 = vmatmul.mubr.bf16.gmra.mrb[188].mxu0 %v5410_v60 }
 0x79c   : > { %8683 = vmatprep.mubr.msk.bf16.mxu0 %vm6377_vm2, %v11186_v32 }
 0x79e   : > { %v8621_v10 = vpop.f32.mrb[136].mxu0 }
 0x79f   : > { %v5806_v34 = vadd.f32 %v8621_v10, %v12806_v45  ;;  %v5797_v7 = vpop.f32.mrb[137].mxu0 }
 0x7a0   : > { %v5798_v25 = vadd.f32 %v5797_v7, %v12807_v58  ;;  %v8622_v31 = vpop.f32.mrb[138].mxu0  ;;  %v12810_v58 = vld [vmem:[#allocation119_spill] sm:$0xff] }
 0x7a1   : > { %v6099_v15 = vadd.f32 %v11506_v51, %v5806_v34  ;;  %v5809_v9 = vadd.f32 %v8622_v31, %v12808_v2  ;;  %v5800_v63 = vpop.f32.mrb[139].mxu0  ;;  %v12811_v2 = vld [vmem:[#allocation117_spill] sm:$0xff] }
 0x7a2   : > { %v6097_v57 = vadd.f32 %v11506_v51, %v5798_v25  ;;  %v5801_v20 = vadd.f32 %v5800_v63, %v12809_v35  ;;  %v12812_v63 = vld [vmem:[#allocation121_spill] sm:$0xff] }
 0x7a3   : > { %v6100_v41 = vadd.f32 %v11506_v51, %v5809_v9  ;;  %8684 = vmatmul.mubr.msk.bf16.vlgmr.msra.gmra.mrb[192].mxu0 %vm6377_vm2, %v11183_v61  ;;  %v6227_v4 = vmax.f32 %v6099_v15, 0.0 }
 0x7a4   : > { %v6098_v32 = vadd.f32 %v11506_v51, %v5801_v20  ;;  %8687 = vmatprep.mubr.msk.bf16.mxu0 %vm6377_vm2, %v11214_v1  ;;  %v6225_v10 = vmax.f32 %v6097_v57, 0.0 }
 0x7a5   : > { %v6228_v60 = vmax.f32 %v6100_v41, 0.0  ;;  %v12813_v41 = vld [vmem:[#allocation118_spill] sm:$0xff] }
 0x7a6   : > { %v6226_v45 = vmax.f32 %v6098_v32, 0.0 }
 0x7a7   : > { %v11636_v34 = vpack.c.bf16 %v6228_v60, %v6227_v4 }
 0x7a8   : > { %v11638_v7 = vpack.c.bf16 %v6226_v45, %v6225_v10 }
 0x7ab   : > { %8688 = vmatmul.mubr.msk.bf16.gmra.mrb[196].mxu0 %vm6377_vm2, %v11211_v30 }
 0x7ac   : > { %8691 = vmatprep.mubr.msk.bf16.mxu0 %vm6377_vm2, %v11244_v48 }
 0x7ae   : > { %v8625_v61 = vpop.f32.mrb[140].mxu0 }
 0x7af   : > { %v5822_v25 = vadd.f32 %v8625_v61, %v12810_v58  ;;  %v5813_v31 = vpop.f32.mrb[141].mxu0 }
 0x7b0   : > { %v5814_v1 = vadd.f32 %v5813_v31, %v12811_v2  ;;  %v8626_v15 = vpop.f32.mrb[142].mxu0 }
 0x7b1   : > { %v6103_v9 = vadd.f32 %v11506_v51, %v5822_v25  ;;  %v5825_v57 = vadd.f32 %v8626_v15, %v12812_v63  ;;  %v5816_v35 = vpop.f32.mrb[143].mxu0  ;;  %v12814_v25 = vld [vmem:[#allocation124_spill] sm:$0xff]  ;;  %v12816_v63 = vld [vmem:[#allocation127_spill] sm:$0xff] }
 0x7b2   : > { %v6101_v20 = vadd.f32 %v11506_v51, %v5814_v1  ;;  %v5817_v32 = vadd.f32 %v5816_v35, %v12813_v41  ;;  %v12815_v1 = vld [vmem:[#allocation122_spill] sm:$0xff]  ;;  %v12817_v41 = vld [vmem:[#allocation123_spill] sm:$0xff] }
 0x7b3   : > { %v6104_v30 = vadd.f32 %v11506_v51, %v5825_v57  ;;  %8692 = vmatmul.mubr.msk.bf16.gmra.mrb[200].mxu0 %vm6377_vm2, %v11241_v0  ;;  %v6231_v4 = vmax.f32 %v6103_v9, 0.0 }
 0x7b4   : > { %v6102_v48 = vadd.f32 %v11506_v51, %v5817_v32  ;;  %8695 = vmatprep.mubr.msk.bf16.mxu0 %vm6377_vm2, %v11275_v56  ;;  %v6229_v10 = vmax.f32 %v6101_v20, 0.0 }
 0x7b5   : > { %v6232_v60 = vmax.f32 %v6104_v30, 0.0 }
 0x7b6   : > { %v6230_v45 = vmax.f32 %v6102_v48, 0.0 }
 0x7b7   : > { %v11656_v61 = vpack.c.bf16 %v6232_v60, %v6231_v4 }
 0x7b8   : > { %v11658_v58 = vpack.c.bf16 %v6230_v45, %v6229_v10 }
 0x7bb   : > { %8696 = vmatmul.mubr.msk.bf16.gmra.mrb[204].mxu0 %vm6377_vm2, %v11272_v11 }
 0x7bc   : > { %8699 = vmatprep.mubr.msk.bf16.mxu0 %vm6377_vm2, %v11301_v19 }
 0x7be   : > { %v8629_v0 = vpop.f32.mrb[144].mxu0 }
 0x7bf   : > { %v5838_v31 = vadd.f32 %v8629_v0, %v12814_v25  ;;  %v5829_v2 = vpop.f32.mrb[145].mxu0  ;;  %v12818_v0 = vld [vmem:[#allocation130_spill] sm:$0xff] }
 0x7c0   : > { %v5830_v56 = vadd.f32 %v5829_v2, %v12815_v1  ;;  %v8630_v15 = vpop.f32.mrb[146].mxu0  ;;  %v12819_v2 = vld [vmem:[#allocation128_spill] sm:$0xff] }
 0x7c1   : > { %v6107_v9 = vadd.f32 %v11506_v51, %v5838_v31  ;;  %v5841_v57 = vadd.f32 %v8630_v15, %v12816_v63  ;;  %v5832_v35 = vpop.f32.mrb[147].mxu0  ;;  %v12820_v15 = vld [vmem:[#allocation133_spill] sm:$0xff] }
 0x7c2   : > { %v6105_v20 = vadd.f32 %v11506_v51, %v5830_v56  ;;  %v5833_v32 = vadd.f32 %v5832_v35, %v12817_v41  ;;  %v12821_v35 = vld [vmem:[#allocation129_spill] sm:$0xff] }
 0x7c3   : > { %v6108_v11 = vadd.f32 %v11506_v51, %v5841_v57  ;;  %8700 = vmatmul.mubr.msk.bf16.gmra.mrb[208].mxu0 %vm6377_vm2, %v11299_v24  ;;  %v6235_v30 = vmax.f32 %v6107_v9, 0.0 }
 0x7c4   : > { %v6106_v19 = vadd.f32 %v11506_v51, %v5833_v32  ;;  %8703 = vmatprep.mubr.msk.bf16.mxu0 %vm6377_vm2, %v11325_v8  ;;  %v6233_v4 = vmax.f32 %v6105_v20, 0.0 }
 0x7c5   : > { %v6236_v48 = vmax.f32 %v6108_v11, 0.0 }
 0x7c6   : > { %v6234_v60 = vmax.f32 %v6106_v19, 0.0 }
 0x7c7   : > { %v11676_v10 = vpack.c.bf16 %v6236_v48, %v6235_v30 }
 0x7c8   : > { %v11678_v45 = vpack.c.bf16 %v6234_v60, %v6233_v4  ;;  %v12822_v4 = vld [vmem:[#allocation136_spill] sm:$0xff] }
 0x7cb   : > { %8704 = vmatmul.mubr.msk.bf16.gmra.mrb[212].mxu0 %vm6377_vm2, %v11323_v47 }
 0x7cc   : > { %8707 = vmatprep.mubr.msk.bf16.mxu0 %vm6377_vm2, %v11349_v3 }
 0x7ce   : > { %v8633_v24 = vpop.f32.mrb[148].mxu0 }
 0x7cf   : > { %v5854_v25 = vadd.f32 %v8633_v24, %v12818_v0  ;;  %v5845_v31 = vpop.f32.mrb[149].mxu0  ;;  %v12823_v0 = vld [vmem:[#allocation134_spill] sm:$0xff] }
 0x7d0   : > { %v5846_v8 = vadd.f32 %v5845_v31, %v12819_v2  ;;  %v8634_v1 = vpop.f32.mrb[150].mxu0  ;;  %v12824_v2 = vld [vmem:[#allocation139_spill] sm:$0xff] }
 0x7d1   : > { %v6111_v56 = vadd.f32 %v11506_v51, %v5854_v25  ;;  %v5857_v9 = vadd.f32 %v8634_v1, %v12820_v15  ;;  %v5848_v63 = vpop.f32.mrb[151].mxu0  ;;  %v12825_v15 = vld [vmem:[#allocation135_spill] sm:$0xff] }
 0x7d2   : > { %v6109_v57 = vadd.f32 %v11506_v51, %v5846_v8  ;;  %v5849_v20 = vadd.f32 %v5848_v63, %v12821_v35 }
 0x7d3   : > { %v6112_v47 = vadd.f32 %v11506_v51, %v5857_v9  ;;  %8708 = vmatmul.mubr.msk.bf16.gmra.mrb[216].mxu0 %vm6377_vm2, %v11347_v29  ;;  %v6239_v41 = vmax.f32 %v6111_v56, 0.0 }
 0x7d4   : > { %v6110_v3 = vadd.f32 %v11506_v51, %v5849_v20  ;;  %8711 = vmatprep.mubr.msk.bf16.mxu0 %vm6377_vm2, %v11376_v13  ;;  %v6237_v11 = vmax.f32 %v6109_v57, 0.0 }
 0x7d5   : > { %v6240_v32 = vmax.f32 %v6112_v47, 0.0 }
 0x7d6   : > { %v6238_v19 = vmax.f32 %v6110_v3, 0.0 }
 0x7d7   : > { %v11696_v30 = vpack.c.bf16 %v6240_v32, %v6239_v41 }
 0x7d8   : > { %v11698_v48 = vpack.c.bf16 %v6238_v19, %v6237_v11  ;;  %v12826_v11 = vld [vmem:[#allocation140_spill] sm:$0xff] }
 0x7db   : > { %8712 = vmatmul.mubr.msk.bf16.gmra.mrb[220].mxu0 %vm6377_vm2, %v11374_v21 }
 0x7dc   : > { %8715 = vmatprep.mubr.msk.bf16.mxu0 %vm6377_vm2, %v11400_v49 }
 0x7de   : > { %v8637_v29 = vpop.f32.mrb[152].mxu0 }
 0x7df   : > { %v5870_v60 = vadd.f32 %v8637_v29, %v12822_v4  ;;  %v5861_v24 = vpop.f32.mrb[153].mxu0 }
 0x7e0   : > { %v5862_v13 = vadd.f32 %v5861_v24, %v12823_v0  ;;  %v8638_v25 = vpop.f32.mrb[154].mxu0  ;;  %v12827_v0 = vld [vmem:[#allocation141_spill] sm:$0xff] }
 0x7e1   : > { %v6115_v31 = vadd.f32 %v11506_v51, %v5870_v60  ;;  %v5873_v8 = vadd.f32 %v8638_v25, %v12824_v2  ;;  %v5864_v1 = vpop.f32.mrb[155].mxu0 }
 0x7e2   : > { %v6113_v56 = vadd.f32 %v11506_v51, %v5862_v13  ;;  %v5865_v9 = vadd.f32 %v5864_v1, %v12825_v15  ;;  %v12828_v1 = vld [vmem:[#allocation21_spill] sm:$0xff] }
 0x7e3   : > { %v6116_v21 = vadd.f32 %v11506_v51, %v5873_v8  ;;  %8716 = vmatmul.mubr.msk.bf16.gmra.mrb[224].mxu0 %vm6377_vm2, %v11398_v22  ;;  %v6243_v63 = vmax.f32 %v6115_v31, 0.0 }
 0x7e4   : > { %v6114_v49 = vadd.f32 %v11506_v51, %v5865_v9  ;;  %8719 = vmatprep.mubr.msk.bf16.mxu0 %vm6377_vm2, %v11424_v23  ;;  %v6241_v35 = vmax.f32 %v6113_v56, 0.0  ;;  %v12829_v9 = vld [vmem:[#allocation19_spill] sm:$0xff] }
 0x7e5   : > { %v6244_v57 = vmax.f32 %v6116_v21, 0.0 }
 0x7e6   : > { %v6242_v20 = vmax.f32 %v6114_v49, 0.0 }
 0x7e7   : > { %v11716_v47 = vpack.c.bf16 %v6244_v57, %v6243_v63  ;;  %v12830_v63 = vld [vmem:[#allocation23_spill] sm:$0xff] }
 0x7e8   : > { %v11718_v3 = vpack.c.bf16 %v6242_v20, %v6241_v35 }
 0x7eb   : > { %8720 = vmatmul.mubr.msk.bf16.gmra.mrb[228].mxu0 %vm6377_vm2, %v11422_v55 }
 0x7ec   : > { %8723 = vmatprep.mubr.msk.bf16.mxu0 %vm6377_vm2, %v11448_v37 }
 0x7ee   : > { %v8641_v22 = vpop.f32.mrb[156].mxu0 }
 0x7ef   : > { %v5886_v41 = vadd.f32 %v8641_v22, %v10126_v44  ;;  %v5877_v32 = vpop.f32.mrb[157].mxu0  ;;  %v12831_v22 = vld [vmem:[#allocation20_spill] sm:$0xff] }
 0x7f0   : > { %v5878_v23 = vadd.f32 %v5877_v32, %v12826_v11  ;;  %v8642_v19 = vpop.f32.mrb[158].mxu0 }
 0x7f1   : > { %v6119_v29 = vadd.f32 %v11506_v51, %v5886_v41  ;;  %v5889_v4 = vadd.f32 %v8642_v19, %v10134_v5  ;;  %v5880_v60 = vpop.f32.mrb[159].mxu0 }
 0x7f2   : > { %v6117_v24 = vadd.f32 %v11506_v51, %v5878_v23  ;;  %v5881_v13 = vadd.f32 %v5880_v60, %v12827_v0  ;;  %v12832_v60 = vld [vmem:[#allocation27_spill] sm:$0xff] }
 0x7f3   : > { %v6120_v55 = vadd.f32 %v11506_v51, %v5889_v4  ;;  %8724 = vmatmul.mubr.msk.bf16.gmra.mrb[232].mxu0 %vm6377_vm2, %v11446_v40  ;;  %v6247_v37 = vmax.f32 %v6119_v29, 0.0 }
 0x7f4   : > { %v6118_v44 = vadd.f32 %v11506_v51, %v5881_v13  ;;  %8727 = vmatprep.mubr.msk.bf16.mxu0 %vm6377_vm2, %v11472_v52  ;;  %v6245_v31 = vmax.f32 %v6117_v24, 0.0  ;;  %v12833_v13 = vld [vmem:[#allocation25_spill] sm:$0xff] }
 0x7f5   : > { %v6248_v25 = vmax.f32 %v6120_v55, 0.0 }
 0x7f6   : > { %v6246_v2 = vmax.f32 %v6118_v44, 0.0 }
 0x7f7   : > { %v11736_v5 = vpack.c.bf16 %v6248_v25, %v6247_v37  ;;  %v12834_v37 = vld [vmem:[#allocation29_spill] sm:$0xff] }
 0x7f8   : > { %v11738_v8 = vpack.c.bf16 %v6246_v2, %v6245_v31 }
 0x7fb   : > { %8728 = vmatmul.mubr.msk.bf16.gmra.mrb[236].mxu0 %vm6377_vm2, %v11470_v38 }
 0x7fc   : > { %8731 = vmatprep.mubr.msk.bf16.mxu0 %vm6377_vm2, %v11496_v12 }
 0x7fe   : > { %v8645_v40 = vpop.f32.mrb[160].mxu0 }
 0x7ff   : > { %v5902_v56 = vadd.f32 %v8645_v40, %v12828_v1  ;;  %v5893_v15 = vpop.f32.mrb[161].mxu0  ;;  %v12835_v40 = vld [vmem:[#allocation26_spill] sm:$0xff] }
 0x800   : > { %v5894_v52 = vadd.f32 %v5893_v15, %v12829_v9  ;;  %v8646_v21 = vpop.f32.mrb[162].mxu0 }
 0x801   : > { %v6123_v49 = vadd.f32 %v11506_v51, %v5902_v56  ;;  %v5905_v57 = vadd.f32 %v8646_v21, %v12830_v63  ;;  %v5896_v35 = vpop.f32.mrb[163].mxu0  ;;  %v12836_v63 = vld [vmem:[#allocation33_spill] sm:$0xff] }
 0x802   : > { %v6121_v20 = vadd.f32 %v11506_v51, %v5894_v52  ;;  %v5897_v41 = vadd.f32 %v5896_v35, %v12831_v22 }
 0x803   : > { %v6124_v38 = vadd.f32 %v11506_v51, %v5905_v57  ;;  %8732 = vmatmul.mubr.msk.bf16.gmra.mrb[240].mxu0 %vm6377_vm2, %v11494_v59  ;;  %v6251_v32 = vmax.f32 %v6123_v49, 0.0 }
 0x804   : > { %v6122_v12 = vadd.f32 %v11506_v51, %v5897_v41  ;;  %8735 = vmatprep.mubr.msk.bf16.mxu0 %vm6377_vm2, %v11522_v46  ;;  %v6249_v23 = vmax.f32 %v6121_v20, 0.0  ;;  %v12837_v20 = vld [vmem:[#allocation31_spill] sm:$0xff] }
 0x805   : > { %v6252_v11 = vmax.f32 %v6124_v38, 0.0  ;;  %v12838_v38 = vld [vmem:[#allocation35_spill] sm:$0xff] }
 0x806   : > { %v6250_v19 = vmax.f32 %v6122_v12, 0.0 }
 0x807   : > { %v11756_v29 = vpack.c.bf16 %v6252_v11, %v6251_v32 }
 0x808   : > { %v11758_v4 = vpack.c.bf16 %v6250_v19, %v6249_v23  ;;  %v12839_v23 = vld [vmem:[#allocation32_spill] sm:$0xff] }
 0x80b   : > { %8736 = vmatmul.mubr.msk.bf16.gmra.mrb[244].mxu0 %vm6377_vm2, %v11520_v6 }
 0x80c   : > { %8739 = vmatprep.mubr.msk.bf16.mxu0 %vm6377_vm2, %v11546_v18 }
 0x80e   : > { %v8649_v59 = vpop.f32.mrb[164].mxu0 }
 0x80f   : > { %v5918_v24 = vadd.f32 %v8649_v59, %v12832_v60  ;;  %v5909_v0 = vpop.f32.mrb[165].mxu0 }
 0x810   : > { %v5910_v46 = vadd.f32 %v5909_v0, %v12833_v13  ;;  %v8650_v55 = vpop.f32.mrb[166].mxu0 }
 0x811   : > { %v6127_v44 = vadd.f32 %v11506_v51, %v5918_v24  ;;  %v5921_v25 = vadd.f32 %v8650_v55, %v12834_v37  ;;  %v5912_v31 = vpop.f32.mrb[167].mxu0  ;;  %v12840_v55 = vld [vmem:[#allocation39_spill] sm:$0xff] }
 0x812   : > { %v6125_v2 = vadd.f32 %v11506_v51, %v5910_v46  ;;  %v5913_v1 = vadd.f32 %v5912_v31, %v12835_v40  ;;  %v12842_v40 = vld [vmem:[#allocation41_spill] sm:$0xff] }
 0x813   : > { %v6128_v6 = vadd.f32 %v11506_v51, %v5921_v25  ;;  %8740 = vmatmul.mubr.msk.bf16.gmra.mrb[248].mxu0 %vm6377_vm2, %v11544_v50  ;;  %v6255_v56 = vmax.f32 %v6127_v44, 0.0  ;;  %v12841_v25 = vld [vmem:[#allocation37_spill] sm:$0xff] }
 0x814   : > { %v6126_v18 = vadd.f32 %v11506_v51, %v5913_v1  ;;  %8743 = vmatprep.mubr.msk.bf16.mxu0 %vm6377_vm2, %v11572_v27  ;;  %v6253_v9 = vmax.f32 %v6125_v2, 0.0 }
 0x815   : > { %v6256_v15 = vmax.f32 %v6128_v6, 0.0 }
 0x816   : > { %v6254_v52 = vmax.f32 %v6126_v18, 0.0 }
 0x817   : > { %v11776_v21 = vpack.c.bf16 %v6256_v15, %v6255_v56  ;;  %v12843_v56 = vld [vmem:[#allocation38_spill] sm:$0xff] }
 0x818   : > { %v11778_v49 = vpack.c.bf16 %v6254_v52, %v6253_v9 }
 0x81b   : > { %8744 = vmatmul.mubr.msk.bf16.gmra.mrb[252].mxu0 %vm6377_vm2, %v11570_v42 }
 0x81c   : > { %8747 = vmatprep.mubr.msk.bf16.mxu0 %vm6377_vm2, %v11596_v33 }
 0x81e   : > { %v8653_v50 = vpop.f32.mrb[168].mxu0 }
 0x81f   : > { %v5934_v57 = vadd.f32 %v8653_v50, %v12836_v63  ;;  %v5925_v35 = vpop.f32.mrb[169].mxu0 }
 0x820   : > { %v5926_v27 = vadd.f32 %v5925_v35, %v12837_v20  ;;  %v8654_v22 = vpop.f32.mrb[170].mxu0  ;;  %v12844_v20 = vld [vmem:[#allocation46_spill] sm:$0xff] }
 0x821   : > { %v6131_v41 = vadd.f32 %v11506_v51, %v5934_v57  ;;  %v5937_v12 = vadd.f32 %v8654_v22, %v12838_v38  ;;  %v5928_v32 = vpop.f32.mrb[171].mxu0 }
 0x822   : > { %v6129_v11 = vadd.f32 %v11506_v51, %v5926_v27  ;;  %v5929_v19 = vadd.f32 %v5928_v32, %v12839_v23  ;;  %v12846_v32 = vld [vmem:[#allocation48_spill] sm:$0xff] }
 0x823   : > { %v6132_v42 = vadd.f32 %v11506_v51, %v5937_v12  ;;  %8748 = vmatmul.mubr.msk.bf16.gmra.mrb[0].mxu0 %vm6377_vm2, %v11594_v54  ;;  %v6259_v59 = vmax.f32 %v6131_v41, 0.0  ;;  %v12845_v41 = vld [vmem:[#allocation43_spill] sm:$0xff] }
 0x824   : > { %v6130_v33 = vadd.f32 %v11506_v51, %v5929_v19  ;;  %8751 = vmatprep.mubr.msk.bf16.mxu0 %vm6377_vm2, %v11620_v16  ;;  %v6257_v24 = vmax.f32 %v6129_v11, 0.0 }
 0x825   : > { %v6260_v60 = vmax.f32 %v6132_v42, 0.0  ;;  %v12847_v42 = vld [vmem:[#allocation44_spill] sm:$0xff] }
 0x826   : > { %v6258_v0 = vmax.f32 %v6130_v33, 0.0 }
 0x827   : > { %v11796_v13 = vpack.c.bf16 %v6260_v60, %v6259_v59 }
 0x828   : > { %v11798_v46 = vpack.c.bf16 %v6258_v0, %v6257_v24 }
 0x82b   : > { %8752 = vmatmul.mubr.msk.bf16.gmra.mrb[4].mxu0 %vm6377_vm2, %v11618_v39 }
 0x82c   : > { %8755 = vmatprep.mubr.msk.bf16.mxu0 %vm6377_vm2, %v11638_v7 }
 0x82e   : > { %v8657_v54 = vpop.f32.mrb[172].mxu0 }
 0x82f   : > { %v5950_v44 = vadd.f32 %v8657_v54, %v12840_v55  ;;  %v5941_v37 = vpop.f32.mrb[173].mxu0 }
 0x830   : > { %v5942_v16 = vadd.f32 %v5941_v37, %v12841_v25  ;;  %v8658_v31 = vpop.f32.mrb[174].mxu0 }
 0x831   : > { %v6135_v2 = vadd.f32 %v11506_v51, %v5950_v44  ;;  %v5953_v1 = vadd.f32 %v8658_v31, %v12842_v40  ;;  %v5944_v6 = vpop.f32.mrb[175].mxu0  ;;  %v12848_v44 = vld [vmem:[#allocation54_spill] sm:$0xff]  ;;  %v12850_v40 = vld [vmem:[#allocation56_spill] sm:$0xff] }
 0x832   : > { %v6133_v18 = vadd.f32 %v11506_v51, %v5942_v16  ;;  %v5945_v15 = vadd.f32 %v5944_v6, %v12843_v56  ;;  %v12849_v16 = vld [vmem:[#allocation50_spill] sm:$0xff]  ;;  %v12851_v56 = vld [vmem:[#allocation52_spill] sm:$0xff] }
 0x833   : > { %v6136_v39 = vadd.f32 %v11506_v51, %v5953_v1  ;;  %8756 = vmatmul.mubr.msk.bf16.gmra.mrb[8].mxu0 %vm6377_vm2, %v11636_v34  ;;  %v6263_v9 = vmax.f32 %v6135_v2, 0.0 }
 0x834   : > { %v6134_v7 = vadd.f32 %v11506_v51, %v5945_v15  ;;  %8759 = vmatprep.mubr.msk.bf16.mxu0 %vm6377_vm2, %v11658_v58  ;;  %v6261_v50 = vmax.f32 %v6133_v18, 0.0 }
 0x835   : > { %v6264_v52 = vmax.f32 %v6136_v39, 0.0 }
 0x836   : > { %v6262_v63 = vmax.f32 %v6134_v7, 0.0 }
 0x837   : > { %v11816_v57 = vpack.c.bf16 %v6264_v52, %v6263_v9 }
 0x838   : > { %v11818_v35 = vpack.c.bf16 %v6262_v63, %v6261_v50 }
 0x83b   : > { %8760 = vmatmul.mubr.msk.bf16.gmra.mrb[12].mxu0 %vm6377_vm2, %v11656_v61 }
 0x83c   : > { %8763 = vmatprep.mubr.msk.bf16.mxu0 %vm6377_vm2, %v11678_v45 }
 0x83e   : > { %v8661_v34 = vpop.f32.mrb[176].mxu0 }
 0x83f   : > { %v5966_v27 = vadd.f32 %v8661_v34, %v12844_v20  ;;  %v5957_v22 = vpop.f32.mrb[177].mxu0  ;;  %v12852_v34 = vld [vmem:[#allocation62_spill] sm:$0xff] }
 0x840   : > { %v5958_v58 = vadd.f32 %v5957_v22, %v12845_v41  ;;  %v8662_v38 = vpop.f32.mrb[178].mxu0  ;;  %v12853_v22 = vld [vmem:[#allocation58_spill] sm:$0xff] }
 0x841   : > { %v6139_v12 = vadd.f32 %v11506_v51, %v5966_v27  ;;  %v5969_v11 = vadd.f32 %v8662_v38, %v12846_v32  ;;  %v5960_v23 = vpop.f32.mrb[179].mxu0  ;;  %v12854_v38 = vld [vmem:[#allocation64_spill] sm:$0xff] }
 0x842   : > { %v6137_v19 = vadd.f32 %v11506_v51, %v5958_v58  ;;  %v5961_v33 = vadd.f32 %v5960_v23, %v12847_v42  ;;  %v12855_v23 = vld [vmem:[#allocation60_spill] sm:$0xff] }
 0x843   : > { %v6140_v61 = vadd.f32 %v11506_v51, %v5969_v11  ;;  %8764 = vmatmul.mubr.msk.bf16.gmra.mrb[16].mxu0 %vm6377_vm2, %v11676_v10  ;;  %v6267_v59 = vmax.f32 %v6139_v12, 0.0 }
 0x844   : > { %v6138_v45 = vadd.f32 %v11506_v51, %v5961_v33  ;;  %8767 = vmatprep.mubr.msk.bf16.mxu0 %vm6377_vm2, %v11698_v48  ;;  %v6265_v24 = vmax.f32 %v6137_v19, 0.0 }
 0x845   : > { %v6268_v60 = vmax.f32 %v6140_v61, 0.0 }
 0x846   : > { %v6266_v0 = vmax.f32 %v6138_v45, 0.0 }
 0x847   : > { %v11836_v54 = vpack.c.bf16 %v6268_v60, %v6267_v59 }
 0x848   : > { %v11838_v55 = vpack.c.bf16 %v6266_v0, %v6265_v24  ;;  %v12856_v24 = vld [vmem:[#allocation70_spill] sm:$0xff] }
 0x84b   : > { %8768 = vmatmul.mubr.msk.bf16.gmra.mrb[20].mxu0 %vm6377_vm2, %v11696_v30 }
 0x84c   : > { %8771 = vmatprep.mubr.msk.bf16.mxu0 %vm6377_vm2, %v11718_v3 }
 0x84e   : > { %v8665_v10 = vpop.f32.mrb[180].mxu0 }
 0x84f   : > { %v5982_v37 = vadd.f32 %v8665_v10, %v12848_v44  ;;  %v5973_v25 = vpop.f32.mrb[181].mxu0 }
 0x850   : > { %v5974_v48 = vadd.f32 %v5973_v25, %v12849_v16  ;;  %v8666_v31 = vpop.f32.mrb[182].mxu0  ;;  %v12858_v16 = vld [vmem:[#allocation72_spill] sm:$0xff] }
 0x851   : > { %v6143_v2 = vadd.f32 %v11506_v51, %v5982_v37  ;;  %v5985_v1 = vadd.f32 %v8666_v31, %v12850_v40  ;;  %v5976_v6 = vpop.f32.mrb[183].mxu0  ;;  %v12859_v40 = vld [vmem:[#allocation68_spill] sm:$0xff] }
 0x852   : > { %v6141_v18 = vadd.f32 %v11506_v51, %v5974_v48  ;;  %v5977_v15 = vadd.f32 %v5976_v6, %v12851_v56 }
 0x853   : > { %v6144_v30 = vadd.f32 %v11506_v51, %v5985_v1  ;;  %8772 = vmatmul.mubr.msk.bf16.gmra.mrb[24].mxu0 %vm6377_vm2, %v11716_v47  ;;  %v6271_v39 = vmax.f32 %v6143_v2, 0.0 }
 0x854   : > { %v6142_v3 = vadd.f32 %v11506_v51, %v5977_v15  ;;  %8775 = vmatprep.mubr.msk.bf16.mxu0 %vm6377_vm2, %v11738_v8  ;;  %v6269_v9 = vmax.f32 %v6141_v18, 0.0 }
 0x855   : > { %v6272_v7 = vmax.f32 %v6144_v30, 0.0 }
 0x856   : > { %v6270_v52 = vmax.f32 %v6142_v3, 0.0  ;;  %v11897_v3 = vld [vmem:[#allocation6 + $0x6] ss:$0 sm:$0xff] }
 0x857   : > { %v11856_v50 = vpack.c.bf16 %v6272_v7, %v6271_v39 }
 0x858   : > { %v11858_v63 = vpack.c.bf16 %v6270_v52, %v6269_v9 }
 0x85b   : > { %8776 = vmatmul.mubr.msk.bf16.gmra.mrb[28].mxu0 %vm6377_vm2, %v11736_v5 }
 0x85c   : > { %8779 = vmatprep.mubr.msk.bf16.mxu0 %vm6377_vm2, %v11758_v4 }
 0x85e   : > { %v8669_v47 = vpop.f32.mrb[184].mxu0 }
 0x85f   : > { %v5998_v20 = vadd.f32 %v8669_v47, %v12852_v34  ;;  %v5989_v27 = vpop.f32.mrb[185].mxu0 }
 0x860   : > { %v5990_v8 = vadd.f32 %v5989_v27, %v12853_v22  ;;  %v8670_v41 = vpop.f32.mrb[186].mxu0 }
 0x861   : > { %v6147_v58 = vadd.f32 %v11506_v51, %v5998_v20  ;;  %v6001_v12 = vadd.f32 %v8670_v41, %v12854_v38  ;;  %v5992_v32 = vpop.f32.mrb[187].mxu0 }
 0x862   : > { %v6145_v11 = vadd.f32 %v11506_v51, %v5990_v8  ;;  %v5993_v19 = vadd.f32 %v5992_v32, %v12855_v23  ;;  %v12861_v32 = vld [vmem:[#allocation120_spill] sm:$0xff] }
 0x863   : > { %v6148_v5 = vadd.f32 %v11506_v51, %v6001_v12  ;;  %8780 = vmatmul.mubr.msk.bf16.gmra.mrb[32].mxu0 %vm6377_vm2, %v11756_v29  ;;  %v6275_v42 = vmax.f32 %v6147_v58, 0.0  ;;  %v12860_v58 = vld [vmem:[#allocation126_spill] sm:$0xff] }
 0x864   : > { %v6146_v4 = vadd.f32 %v11506_v51, %v5993_v19  ;;  %8783 = vmatprep.mubr.msk.bf16.mxu0 %vm6377_vm2, %v11778_v49  ;;  %v6273_v61 = vmax.f32 %v6145_v11, 0.0  ;;  %v12857_v49 = vld [vmem:[#allocation66_spill] sm:$0xff]  ;;  %v12862_v19 = vld [vmem:[#allocation131_spill] sm:$0xff] }
 0x865   : > { %v6276_v33 = vmax.f32 %v6148_v5, 0.0 }
 0x866   : > { %v6274_v45 = vmax.f32 %v6146_v4, 0.0 }
 0x867   : > { %v11876_v59 = vpack.c.bf16 %v6276_v33, %v6275_v42 }
 0x868   : > { %v11878_v60 = vpack.c.bf16 %v6274_v45, %v6273_v61  ;;  %v12864_v45 = vld [vmem:[#allocation138_spill] sm:$0xff] }
 0x86b   : > { %8784 = vmatmul.mubr.msk.bf16.gmra.mrb[36].mxu0 %vm6377_vm2, %v11776_v21 }
 0x86c   : > { %8787 = vmatprep.mubr.msk.bf16.mxu0 %vm6377_vm2, %v11798_v46 }
 0x86e   : > { %v8673_v29 = vpop.f32.mrb[188].mxu0 }
 0x86f   : > { %v6014_v0 = vadd.f32 %v8673_v29, %v12856_v24  ;;  %v6005_v10 = vpop.f32.mrb[189].mxu0 }
 0x870   : > { %v6006_v44 = vadd.f32 %v6005_v10, %v12857_v49  ;;  %v8674_v37 = vpop.f32.mrb[190].mxu0 }
 0x871   : > { %v6151_v25 = vadd.f32 %v11506_v51, %v6014_v0  ;;  %v6017_v48 = vadd.f32 %v8674_v37, %v12858_v16  ;;  %v6008_v31 = vpop.f32.mrb[191].mxu0  ;;  %v12865_v0 = vld [vmem:[#allocation132_spill] sm:$0xff] }
 0x872   : > { %v6149_v2 = vadd.f32 %v11506_v51, %v6006_v44  ;;  %v6009_v21 = vadd.f32 %v6008_v31, %v12859_v40 }
 0x873   : > { %v6152_v1 = vadd.f32 %v11506_v51, %v6017_v48  ;;  %8788 = vmatmul.mubr.msk.bf16.gmra.mrb[40].mxu0 %vm6377_vm2, %v11796_v13  ;;  %v6279_v6 = vmax.f32 %v6151_v25, 0.0  ;;  %v12866_v25 = vld [vmem:[#allocation143_spill] sm:$0xff] }
 0x874   : > { %v6150_v46 = vadd.f32 %v11506_v51, %v6009_v21  ;;  %8791 = vmatprep.mubr.msk.bf16.mxu0 %vm6377_vm2, %v11818_v35  ;;  %v6277_v56 = vmax.f32 %v6149_v2, 0.0  ;;  %v12868_v21 = vld [vmem:[#allocation144_spill] sm:$0xff] }
 0x875   : > { %v6280_v18 = vmax.f32 %v6152_v1, 0.0 }
 0x876   : > { %v6278_v15 = vmax.f32 %v6150_v46, 0.0  ;;  %v8685_v30 = vpop.f32.mrb[192].mxu0 }
 0x877   : > { %v11899_v39 = vpack.c.bf16 %v6280_v18, %v6279_v6  ;;  %v6613_v7 = vadd.f32 %v8685_v30, %v10910_v36  ;;  %v6604_v9 = vpop.f32.mrb[193].mxu0  ;;  %v12869_v6 = vld [vmem:[#allocation142_spill] sm:$0xff] }
 0x878   : > { %v11902_v52 = vpack.c.bf16 %v6278_v15, %v6277_v56  ;;  %v6605_v51 = vadd.f32 %v6604_v9, %v10894_v53  ;;  %v8686_v13 = vpop.f32.mrb[194].mxu0 }
 0x879   : > { %v7122_v35 = vadd.f32 %v11897_v3, %v6613_v7  ;;  %v6616_v36 = vadd.f32 %v8686_v13, %v10917_v26  ;;  %v6607_v47 = vpop.f32.mrb[195].mxu0  ;;  %v12870_v7 = vld [vmem:[#allocation147_spill] sm:$0xff] }
 0x87a   : > { %v7120_v34 = vadd.f32 %v11897_v3, %v6605_v51  ;;  %v6608_v20 = vadd.f32 %v6607_v47, %v10901_v62  ;;  %v12872_v47 = vld [vmem:[#allocation148_spill] sm:$0xff] }
 0x87b   : > { %7251 = vst.msk [vmem:[%s11907_s29 + $0x10] sm:$0xff] %vm7248_vm3, %v7122_v35  ;;  %v7123_v27 = vadd.f32 %v11897_v3, %v6616_v36  ;;  %8792 = vmatmul.mubr.msk.bf16.gmra.mrb[44].mxu0 %vm6377_vm2, %v11816_v57 }
 0x87c   : > { %7249 = vst.msk [vmem:[%s11907_s29] sm:$0xff] %vm7248_vm3, %v7120_v34  ;;  %v7121_v53 = vadd.f32 %v11897_v3, %v6608_v20  ;;  %8795 = vmatprep.mubr.msk.bf16.mxu0 %vm6377_vm2, %v11838_v55 }
 0x87d   : > { %7252 = vst.msk [vmem:[%s11907_s29 + $0x18] sm:$0xff] %vm7248_vm3, %v7123_v27  ;;  %v12873_v27 = vld [vmem:[#allocation146_spill] sm:$0xff] }
 0x87e   : > { %7250 = vst.msk [vmem:[%s11907_s29 + $0x8] sm:$0xff] %vm7248_vm3, %v7121_v53  ;;  %v8689_v62 = vpop.f32.mrb[196].mxu0 }
 0x87f   : > { %v6629_v26 = vadd.f32 %v8689_v62, %v10942_v14  ;;  %v6620_v22 = vpop.f32.mrb[197].mxu0 }
 0x880   : > { %v6621_v57 = vadd.f32 %v6620_v22, %v10926_v17  ;;  %v8690_v8 = vpop.f32.mrb[198].mxu0 }
 0x881   : > { %v7126_v41 = vadd.f32 %v11897_v3, %v6629_v26  ;;  %v6632_v38 = vadd.f32 %v8690_v8, %v12860_v58  ;;  %v6623_v12 = vpop.f32.mrb[199].mxu0  ;;  %v12875_v58 = vld [vmem:[#allocation149_spill] sm:$0xff] }
 0x882   : > { %v7124_v55 = vadd.f32 %v11897_v3, %v6621_v57  ;;  %v6624_v11 = vadd.f32 %v6623_v12, %v12861_v32  ;;  %v12874_v57 = vld [vmem:[#allocation151_spill] sm:$0xff] }
 0x883   : > { %7255 = vst.msk [vmem:[%s11907_s29 + $0x30] sm:$0xff] %vm7248_vm3, %v7126_v41  ;;  %v7127_v23 = vadd.f32 %v11897_v3, %v6632_v38  ;;  %8796 = vmatmul.mubr.msk.bf16.gmra.mrb[48].mxu0 %vm6377_vm2, %v11836_v54  ;;  %v12863_v54 = vld [vmem:[#allocation125_spill] sm:$0xff] }
 0x884   : > { %7253 = vst.msk [vmem:[%s11907_s29 + $0x20] sm:$0xff] %vm7248_vm3, %v7124_v55  ;;  %v7125_v17 = vadd.f32 %v11897_v3, %v6624_v11  ;;  %8799 = vmatprep.mubr.msk.bf16.mxu0 %vm6377_vm2, %v11858_v63  ;;  %v12876_v55 = vld [vmem:[#allocation152_spill] sm:$0xff] }
 0x885   : > { %7256 = vst.msk [vmem:[%s11907_s29 + $0x38] sm:$0xff] %vm7248_vm3, %v7127_v23 }
 0x886   : > { %7254 = vst.msk [vmem:[%s11907_s29 + $0x28] sm:$0xff] %vm7248_vm3, %v7125_v17  ;;  %v8693_v14 = vpop.f32.mrb[200].mxu0  ;;  %v12877_v17 = vld [vmem:[#allocation150_spill] sm:$0xff] }
 0x887   : > { %v6645_v5 = vadd.f32 %v8693_v14, %v12862_v19  ;;  %v6636_v4 = vpop.f32.mrb[201].mxu0 }
 0x888   : > { %v6637_v42 = vadd.f32 %v6636_v4, %v12863_v54  ;;  %v8694_v33 = vpop.f32.mrb[202].mxu0  ;;  %v12878_v54 = vld [vmem:[#allocation155_spill] sm:$0xff] }
 0x889   : > { %v7130_v61 = vadd.f32 %v11897_v3, %v6645_v5  ;;  %v6648_v29 = vadd.f32 %v8694_v33, %v12864_v45  ;;  %v6639_v24 = vpop.f32.mrb[203].mxu0 }
 0x88a   : > { %v7128_v63 = vadd.f32 %v11897_v3, %v6637_v42  ;;  %v6640_v10 = vadd.f32 %v6639_v24, %v12865_v0 }
 0x88b   : > { %7259 = vst.msk [vmem:[%s11907_s29 + $0x50] sm:$0xff] %vm7248_vm3, %v7130_v61  ;;  %v7131_v49 = vadd.f32 %v11897_v3, %v6648_v29  ;;  %8800 = vmatmul.mubr.msk.bf16.gmra.mrb[52].mxu0 %vm6377_vm2, %v11856_v50  ;;  %v12867_v50 = vld [vmem:[#allocation137_spill] sm:$0xff] }
 0x88c   : > { %7257 = vst.msk [vmem:[%s11907_s29 + $0x40] sm:$0xff] %vm7248_vm3, %v7128_v63  ;;  %v7129_v44 = vadd.f32 %v11897_v3, %v6640_v10  ;;  %8803 = vmatprep.mubr.msk.bf16.mxu0 %vm6377_vm2, %v11878_v60  ;;  %v12879_v61 = vld [vmem:[#allocation153_spill] sm:$0xff]  ;;  %v12880_v63 = vld [vmem:[#allocation156_spill] sm:$0xff] }
 0x88d   : > { %7260 = vst.msk [vmem:[%s11907_s29 + $0x58] sm:$0xff] %vm7248_vm3, %v7131_v49 }
 0x88e   : > { %7258 = vst.msk [vmem:[%s11907_s29 + $0x48] sm:$0xff] %vm7248_vm3, %v7129_v44  ;;  %v8697_v37 = vpop.f32.mrb[204].mxu0  ;;  %v12881_v44 = vld [vmem:[#allocation154_spill] sm:$0xff] }
 0x88f   : > { %v6661_v16 = vadd.f32 %v8697_v37, %v12866_v25  ;;  %v6652_v48 = vpop.f32.mrb[205].mxu0 }
 0x890   : > { %v6653_v31 = vadd.f32 %v6652_v48, %v12867_v50  ;;  %v8698_v2 = vpop.f32.mrb[206].mxu0  ;;  %v12882_v50 = vld [vmem:[#allocation159_spill] sm:$0xff] }
 0x891   : > { %v7134_v40 = vadd.f32 %v11897_v3, %v6661_v16  ;;  %v6664_v1 = vadd.f32 %v8698_v2, %v12868_v21  ;;  %v6655_v46 = vpop.f32.mrb[207].mxu0 }
 0x892   : > { %v7132_v60 = vadd.f32 %v11897_v3, %v6653_v31  ;;  %v6656_v18 = vadd.f32 %v6655_v46, %v12869_v6 }
 0x893   : > { %7263 = vst.msk [vmem:[%s11907_s29 + $0x70] sm:$0xff] %vm7248_vm3, %v7134_v40  ;;  %v7135_v56 = vadd.f32 %v11897_v3, %v6664_v1  ;;  %8804 = vmatmul.mubr.msk.bf16.gmra.mrb[56].mxu0 %vm6377_vm2, %v11876_v59  ;;  %v12871_v59 = vld [vmem:[#allocation145_spill] sm:$0xff] }
 0x894   : > { %7261 = vst.msk [vmem:[%s11907_s29 + $0x60] sm:$0xff] %vm7248_vm3, %v7132_v60  ;;  %v7133_v15 = vadd.f32 %v11897_v3, %v6656_v18  ;;  %8807 = vmatprep.mubr.msk.bf16.mxu0 %vm6377_vm2, %v11902_v52  ;;  %v12883_v40 = vld [vmem:[#allocation157_spill] sm:$0xff]  ;;  %v12884_v60 = vld [vmem:[#allocation160_spill] sm:$0xff] }
 0x895   : > { %7264 = vst.msk [vmem:[%s11907_s29 + $0x78] sm:$0xff] %vm7248_vm3, %v7135_v56 }
 0x896   : > { %7262 = vst.msk [vmem:[%s11907_s29 + $0x68] sm:$0xff] %vm7248_vm3, %v7133_v15  ;;  %v8701_v30 = vpop.f32.mrb[208].mxu0  ;;  %v12885_v15 = vld [vmem:[#allocation158_spill] sm:$0xff] }
 0x897   : > { %v6677_v9 = vadd.f32 %v8701_v30, %v12870_v7  ;;  %v6668_v51 = vpop.f32.mrb[209].mxu0 }
 0x898   : > { %v6669_v13 = vadd.f32 %v6668_v51, %v12871_v59  ;;  %v8702_v35 = vpop.f32.mrb[210].mxu0  ;;  %v12886_v59 = vld [vmem:[#allocation163_spill] sm:$0xff] }
 0x899   : > { %v7138_v36 = vadd.f32 %v11897_v3, %v6677_v9  ;;  %v6680_v34 = vadd.f32 %v8702_v35, %v12872_v47  ;;  %v6671_v20 = vpop.f32.mrb[211].mxu0 }
 0x89a   : > { %v7136_v52 = vadd.f32 %v11897_v3, %v6669_v13  ;;  %v6672_v53 = vadd.f32 %v6671_v20, %v12873_v27 }
 0x89b   : > { %7267 = vst.msk [vmem:[%s11907_s29 + $0x90] sm:$0xff] %vm7248_vm3, %v7138_v36  ;;  %v7139_v62 = vadd.f32 %v11897_v3, %v6680_v34  ;;  %8808 = vmatmul.mubr.msk.bf16.gmra.mrb[60].mxu0 %vm6377_vm2, %v11899_v39  ;;  %v12887_v36 = vld [vmem:[#allocation161_spill] sm:$0xff] }
 0x89c   : > { %7265 = vst.msk [vmem:[%s11907_s29 + $0x80] sm:$0xff] %vm7248_vm3, %v7136_v52  ;;  %v7137_v26 = vadd.f32 %v11897_v3, %v6672_v53  ;;  %v12888_v52 = vld [vmem:[#allocation164_spill] sm:$0xff] }
 0x89d   : > { %7268 = vst.msk [vmem:[%s11907_s29 + $0x98] sm:$0xff] %vm7248_vm3, %v7139_v62 }
 0x89e   : > { %7266 = vst.msk [vmem:[%s11907_s29 + $0x88] sm:$0xff] %vm7248_vm3, %v7137_v26  ;;  %v8705_v22 = vpop.f32.mrb[212].mxu0  ;;  %v12889_v26 = vld [vmem:[#allocation162_spill] sm:$0xff] }
 0x89f   : > { %v6693_v8 = vadd.f32 %v8705_v22, %v12874_v57  ;;  %v6684_v41 = vpop.f32.mrb[213].mxu0 }
 0x8a0   : > { %v6685_v38 = vadd.f32 %v6684_v41, %v12875_v58  ;;  %v8706_v12 = vpop.f32.mrb[214].mxu0  ;;  %v12890_v58 = vld [vmem:[#allocation167_spill] sm:$0xff] }
 0x8a1   : > { %v7142_v39 = vadd.f32 %v11897_v3, %v6693_v8  ;;  %v6696_v32 = vadd.f32 %v8706_v12, %v12876_v55  ;;  %v6687_v11 = vpop.f32.mrb[215].mxu0 }
 0x8a2   : > { %v7140_v23 = vadd.f32 %v11897_v3, %v6685_v38  ;;  %v6688_v14 = vadd.f32 %v6687_v11, %v12877_v17 }
 0x8a3   : > { %7271 = vst.msk [vmem:[%s11907_s29 + $0xb0] sm:$0xff] %vm7248_vm3, %v7142_v39  ;;  %v7143_v19 = vadd.f32 %v11897_v3, %v6696_v32  ;;  %v12891_v39 = vld [vmem:[#allocation165_spill] sm:$0xff] }
 0x8a4   : > { %7269 = vst.msk [vmem:[%s11907_s29 + $0xa0] sm:$0xff] %vm7248_vm3, %v7140_v23  ;;  %v7141_v5 = vadd.f32 %v11897_v3, %v6688_v14  ;;  %v12892_v23 = vld [vmem:[#allocation168_spill] sm:$0xff] }
 0x8a5   : > { %7272 = vst.msk [vmem:[%s11907_s29 + $0xb8] sm:$0xff] %vm7248_vm3, %v7143_v19 }
 0x8a6   : > { %7270 = vst.msk [vmem:[%s11907_s29 + $0xa8] sm:$0xff] %vm7248_vm3, %v7141_v5  ;;  %v8709_v4 = vpop.f32.mrb[216].mxu0  ;;  %v12893_v5 = vld [vmem:[#allocation166_spill] sm:$0xff] }
 0x8a7   : > { %v6709_v42 = vadd.f32 %v8709_v4, %v12878_v54  ;;  %v6700_v33 = vpop.f32.mrb[217].mxu0 }
 0x8a8   : > { %v6701_v45 = vadd.f32 %v6700_v33, %v12879_v61  ;;  %v8710_v29 = vpop.f32.mrb[218].mxu0  ;;  %v12894_v61 = vld [vmem:[#allocation171_spill] sm:$0xff] }
 0x8a9   : > { %v7146_v24 = vadd.f32 %v11897_v3, %v6709_v42  ;;  %v6712_v0 = vadd.f32 %v8710_v29, %v12880_v63  ;;  %v6703_v10 = vpop.f32.mrb[219].mxu0 }
 0x8aa   : > { %v7144_v49 = vadd.f32 %v11897_v3, %v6701_v45  ;;  %v6704_v37 = vadd.f32 %v6703_v10, %v12881_v44 }
 0x8ab   : > { %7275 = vst.msk [vmem:[%s11907_s29 + $0xd0] sm:$0xff] %vm7248_vm3, %v7146_v24  ;;  %v7147_v25 = vadd.f32 %v11897_v3, %v6712_v0  ;;  %v12895_v24 = vld [vmem:[#allocation169_spill] sm:$0xff] }
 0x8ac   : > { %7273 = vst.msk [vmem:[%s11907_s29 + $0xc0] sm:$0xff] %vm7248_vm3, %v7144_v49  ;;  %v7145_v16 = vadd.f32 %v11897_v3, %v6704_v37  ;;  %v12896_v49 = vld [vmem:[#allocation172_spill] sm:$0xff] }
 0x8ad   : > { %7276 = vst.msk [vmem:[%s11907_s29 + $0xd8] sm:$0xff] %vm7248_vm3, %v7147_v25 }
 0x8ae   : > { %7274 = vst.msk [vmem:[%s11907_s29 + $0xc8] sm:$0xff] %vm7248_vm3, %v7145_v16  ;;  %v8713_v48 = vpop.f32.mrb[220].mxu0  ;;  %v12897_v16 = vld [vmem:[#allocation170_spill] sm:$0xff] }
 0x8af   : > { %v6725_v31 = vadd.f32 %v8713_v48, %v12882_v50  ;;  %v6716_v2 = vpop.f32.mrb[221].mxu0 }
 0x8b0   : > { %v6717_v21 = vadd.f32 %v6716_v2, %v12883_v40  ;;  %v8714_v1 = vpop.f32.mrb[222].mxu0  ;;  %v12898_v40 = vld [vmem:[#allocation175_spill] sm:$0xff] }
 0x8b1   : > { %v7150_v46 = vadd.f32 %v11897_v3, %v6725_v31  ;;  %v6728_v6 = vadd.f32 %v8714_v1, %v12884_v60  ;;  %v6719_v18 = vpop.f32.mrb[223].mxu0 }
 0x8b2   : > { %v7148_v56 = vadd.f32 %v11897_v3, %v6717_v21  ;;  %v6720_v30 = vadd.f32 %v6719_v18, %v12885_v15 }
 0x8b3   : > { %7279 = vst.msk [vmem:[%s11907_s29 + $0xf0] sm:$0xff] %vm7248_vm3, %v7150_v46  ;;  %v7151_v7 = vadd.f32 %v11897_v3, %v6728_v6  ;;  %v12899_v46 = vld [vmem:[#allocation173_spill] sm:$0xff] }
 0x8b4   : > { %7277 = vst.msk [vmem:[%s11907_s29 + $0xe0] sm:$0xff] %vm7248_vm3, %v7148_v56  ;;  %v7149_v9 = vadd.f32 %v11897_v3, %v6720_v30  ;;  %v12900_v56 = vld [vmem:[#allocation176_spill] sm:$0xff] }
 0x8b5   : > { %7280 = vst.msk [vmem:[%s11907_s29 + $0xf8] sm:$0xff] %vm7248_vm3, %v7151_v7 }
 0x8b6   : > { %7278 = vst.msk [vmem:[%s11907_s29 + $0xe8] sm:$0xff] %vm7248_vm3, %v7149_v9  ;;  %v8717_v51 = vpop.f32.mrb[224].mxu0  ;;  %v12901_v9 = vld [vmem:[#allocation174_spill] sm:$0xff] }
 0x8b7   : > { %v6741_v13 = vadd.f32 %v8717_v51, %v12886_v59  ;;  %v6732_v35 = vpop.f32.mrb[225].mxu0 }
 0x8b8   : > { %v6733_v47 = vadd.f32 %v6732_v35, %v12887_v36  ;;  %v8718_v34 = vpop.f32.mrb[226].mxu0  ;;  %v12902_v36 = vld [vmem:[#allocation179_spill] sm:$0xff] }
 0x8b9   : > { %v7154_v20 = vadd.f32 %v11897_v3, %v6741_v13  ;;  %v6744_v27 = vadd.f32 %v8718_v34, %v12888_v52  ;;  %v6735_v53 = vpop.f32.mrb[227].mxu0 }
 0x8ba   : > { %v7152_v62 = vadd.f32 %v11897_v3, %v6733_v47  ;;  %v6736_v22 = vadd.f32 %v6735_v53, %v12889_v26 }
 0x8bb   : > { %7283 = vst.msk [vmem:[%s11907_s29 + $0x110] sm:$0xff] %vm7248_vm3, %v7154_v20  ;;  %v7155_v57 = vadd.f32 %v11897_v3, %v6744_v27  ;;  %v12903_v20 = vld [vmem:[#allocation177_spill] sm:$0xff] }
 0x8bc   : > { %7281 = vst.msk [vmem:[%s11907_s29 + $0x100] sm:$0xff] %vm7248_vm3, %v7152_v62  ;;  %v7153_v8 = vadd.f32 %v11897_v3, %v6736_v22  ;;  %v12904_v62 = vld [vmem:[#allocation180_spill] sm:$0xff] }
 0x8bd   : > { %7284 = vst.msk [vmem:[%s11907_s29 + $0x118] sm:$0xff] %vm7248_vm3, %v7155_v57 }
 0x8be   : > { %7282 = vst.msk [vmem:[%s11907_s29 + $0x108] sm:$0xff] %vm7248_vm3, %v7153_v8  ;;  %v8721_v41 = vpop.f32.mrb[228].mxu0  ;;  %v12905_v8 = vld [vmem:[#allocation178_spill] sm:$0xff] }
 0x8bf   : > { %v6757_v38 = vadd.f32 %v8721_v41, %v12890_v58  ;;  %v6748_v12 = vpop.f32.mrb[229].mxu0 }
 0x8c0   : > { %v6749_v55 = vadd.f32 %v6748_v12, %v12891_v39  ;;  %v8722_v32 = vpop.f32.mrb[230].mxu0  ;;  %v12906_v39 = vld [vmem:[#allocation183_spill] sm:$0xff] }
 0x8c1   : > { %v7158_v11 = vadd.f32 %v11897_v3, %v6757_v38  ;;  %v6760_v17 = vadd.f32 %v8722_v32, %v12892_v23  ;;  %v6751_v14 = vpop.f32.mrb[231].mxu0 }
 0x8c2   : > { %v7156_v19 = vadd.f32 %v11897_v3, %v6749_v55  ;;  %v6752_v4 = vadd.f32 %v6751_v14, %v12893_v5 }
 0x8c3   : > { %7287 = vst.msk [vmem:[%s11907_s29 + $0x130] sm:$0xff] %vm7248_vm3, %v7158_v11  ;;  %v7159_v54 = vadd.f32 %v11897_v3, %v6760_v17  ;;  %v12907_v11 = vld [vmem:[#allocation181_spill] sm:$0xff] }
 0x8c4   : > { %7285 = vst.msk [vmem:[%s11907_s29 + $0x120] sm:$0xff] %vm7248_vm3, %v7156_v19  ;;  %v7157_v42 = vadd.f32 %v11897_v3, %v6752_v4  ;;  %v12908_v19 = vld [vmem:[#allocation184_spill] sm:$0xff] }
 0x8c5   : > { %7288 = vst.msk [vmem:[%s11907_s29 + $0x138] sm:$0xff] %vm7248_vm3, %v7159_v54 }
 0x8c6   : > { %7286 = vst.msk [vmem:[%s11907_s29 + $0x128] sm:$0xff] %vm7248_vm3, %v7157_v42  ;;  %v8725_v33 = vpop.f32.mrb[232].mxu0  ;;  %v12909_v42 = vld [vmem:[#allocation182_spill] sm:$0xff] }
 0x8c7   : > { %v6773_v45 = vadd.f32 %v8725_v33, %v12894_v61  ;;  %v6764_v29 = vpop.f32.mrb[233].mxu0 }
 0x8c8   : > { %v6765_v63 = vadd.f32 %v6764_v29, %v12895_v24  ;;  %v8726_v0 = vpop.f32.mrb[234].mxu0  ;;  %v12910_v24 = vld [vmem:[#allocation11_spill] sm:$0xff] }
 0x8c9   : > { %v7162_v10 = vadd.f32 %v11897_v3, %v6773_v45  ;;  %v6776_v44 = vadd.f32 %v8726_v0, %v12896_v49  ;;  %v6767_v37 = vpop.f32.mrb[235].mxu0 }
 0x8ca   : > { %v7160_v25 = vadd.f32 %v11897_v3, %v6765_v63  ;;  %v6768_v48 = vadd.f32 %v6767_v37, %v12897_v16 }
 0x8cb   : > { %7291 = vst.msk [vmem:[%s11907_s29 + $0x150] sm:$0xff] %vm7248_vm3, %v7162_v10  ;;  %v7163_v50 = vadd.f32 %v11897_v3, %v6776_v44  ;;  %v12911_v10 = vld [vmem:[#allocation185_spill] sm:$0xff] }
 0x8cc   : > { %7289 = vst.msk [vmem:[%s11907_s29 + $0x140] sm:$0xff] %vm7248_vm3, %v7160_v25  ;;  %v7161_v31 = vadd.f32 %v11897_v3, %v6768_v48  ;;  %v12912_v25 = vld [vmem:[#allocation9_spill] sm:$0xff] }
 0x8cd   : > { %7292 = vst.msk [vmem:[%s11907_s29 + $0x158] sm:$0xff] %vm7248_vm3, %v7163_v50 }
 0x8ce   : > { %7290 = vst.msk [vmem:[%s11907_s29 + $0x148] sm:$0xff] %vm7248_vm3, %v7161_v31  ;;  %v8729_v2 = vpop.f32.mrb[236].mxu0  ;;  %v12913_v31 = vld [vmem:[#allocation186_spill] sm:$0xff] }
 0x8cf   : > { %v6789_v21 = vadd.f32 %v8729_v2, %v12898_v40  ;;  %v6780_v1 = vpop.f32.mrb[237].mxu0 }
 0x8d0   : > { %v6781_v60 = vadd.f32 %v6780_v1, %v12899_v46  ;;  %v8730_v6 = vpop.f32.mrb[238].mxu0  ;;  %v12914_v46 = vld [vmem:[#allocation15_spill] sm:$0xff] }
 0x8d1   : > { %v7166_v18 = vadd.f32 %v11897_v3, %v6789_v21  ;;  %v6792_v15 = vadd.f32 %v8730_v6, %v12900_v56  ;;  %v6783_v30 = vpop.f32.mrb[239].mxu0 }
 0x8d2   : > { %v7164_v7 = vadd.f32 %v11897_v3, %v6781_v60  ;;  %v6784_v51 = vadd.f32 %v6783_v30, %v12901_v9 }
 0x8d3   : > { %7295 = vst.msk [vmem:[%s11907_s29 + $0x170] sm:$0xff] %vm7248_vm3, %v7166_v18  ;;  %v7167_v59 = vadd.f32 %v11897_v3, %v6792_v15  ;;  %v12915_v18 = vld [vmem:[#allocation12_spill] sm:$0xff] }
 0x8d4   : > { %7293 = vst.msk [vmem:[%s11907_s29 + $0x160] sm:$0xff] %vm7248_vm3, %v7164_v7  ;;  %v7165_v13 = vadd.f32 %v11897_v3, %v6784_v51  ;;  %v12916_v7 = vld [vmem:[#allocation13_spill] sm:$0xff] }
 0x8d5   : > { %7296 = vst.msk [vmem:[%s11907_s29 + $0x178] sm:$0xff] %vm7248_vm3, %v7167_v59 }
 0x8d6   : > { %7294 = vst.msk [vmem:[%s11907_s29 + $0x168] sm:$0xff] %vm7248_vm3, %v7165_v13  ;;  %v8733_v35 = vpop.f32.mrb[240].mxu0  ;;  %v12917_v13 = vld [vmem:[#allocation10_spill] sm:$0xff] }
 0x8d7   : > { %v6805_v47 = vadd.f32 %v8733_v35, %v12902_v36  ;;  %v6796_v34 = vpop.f32.mrb[241].mxu0 }
 0x8d8   : > { %v6797_v52 = vadd.f32 %v6796_v34, %v12903_v20  ;;  %v8734_v27 = vpop.f32.mrb[242].mxu0  ;;  %v12918_v20 = vld [vmem:[#allocation22_spill] sm:$0xff] }
 0x8d9   : > { %v7170_v53 = vadd.f32 %v11897_v3, %v6805_v47  ;;  %v6808_v26 = vadd.f32 %v8734_v27, %v12904_v62  ;;  %v6799_v22 = vpop.f32.mrb[243].mxu0 }
 0x8da   : > { %v7168_v57 = vadd.f32 %v11897_v3, %v6797_v52  ;;  %v6800_v41 = vadd.f32 %v6799_v22, %v12905_v8 }
 0x8db   : > { %7299 = vst.msk [vmem:[%s11907_s29 + $0x190] sm:$0xff] %vm7248_vm3, %v7170_v53  ;;  %v7171_v58 = vadd.f32 %v11897_v3, %v6808_v26  ;;  %v12919_v53 = vld [vmem:[#allocation16_spill] sm:$0xff] }
 0x8dc   : > { %7297 = vst.msk [vmem:[%s11907_s29 + $0x180] sm:$0xff] %vm7248_vm3, %v7168_v57  ;;  %v7169_v38 = vadd.f32 %v11897_v3, %v6800_v41  ;;  %v12920_v57 = vld [vmem:[#allocation17_spill] sm:$0xff] }
 0x8dd   : > { %7300 = vst.msk [vmem:[%s11907_s29 + $0x198] sm:$0xff] %vm7248_vm3, %v7171_v58 }
 0x8de   : > { %7298 = vst.msk [vmem:[%s11907_s29 + $0x188] sm:$0xff] %vm7248_vm3, %v7169_v38  ;;  %v8737_v12 = vpop.f32.mrb[244].mxu0  ;;  %v12921_v38 = vld [vmem:[#allocation14_spill] sm:$0xff] }
 0x8df   : > { %v6821_v55 = vadd.f32 %v8737_v12, %v12906_v39  ;;  %v6812_v32 = vpop.f32.mrb[245].mxu0 }
 0x8e0   : > { %v6813_v23 = vadd.f32 %v6812_v32, %v12907_v11  ;;  %v8738_v17 = vpop.f32.mrb[246].mxu0  ;;  %v12922_v11 = vld [vmem:[#allocation34_spill] sm:$0xff] }
 0x8e1   : > { %v7174_v14 = vadd.f32 %v11897_v3, %v6821_v55  ;;  %v6824_v5 = vadd.f32 %v8738_v17, %v12908_v19  ;;  %v6815_v4 = vpop.f32.mrb[247].mxu0 }
 0x8e2   : > { %v7172_v54 = vadd.f32 %v11897_v3, %v6813_v23  ;;  %v6816_v33 = vadd.f32 %v6815_v4, %v12909_v42 }
 0x8e3   : > { %7303 = vst.msk [vmem:[%s11907_s29 + $0x1b0] sm:$0xff] %vm7248_vm3, %v7174_v14  ;;  %v7175_v61 = vadd.f32 %v11897_v3, %v6824_v5  ;;  %v12923_v14 = vld [vmem:[#allocation24_spill] sm:$0xff] }
 0x8e4   : > { %7301 = vst.msk [vmem:[%s11907_s29 + $0x1a0] sm:$0xff] %vm7248_vm3, %v7172_v54  ;;  %v7173_v45 = vadd.f32 %v11897_v3, %v6816_v33  ;;  %v12924_v54 = vld [vmem:[#allocation28_spill] sm:$0xff] }
 0x8e5   : > { %7304 = vst.msk [vmem:[%s11907_s29 + $0x1b8] sm:$0xff] %vm7248_vm3, %v7175_v61 }
 0x8e6   : > { %7302 = vst.msk [vmem:[%s11907_s29 + $0x1a8] sm:$0xff] %vm7248_vm3, %v7173_v45  ;;  %v8741_v29 = vpop.f32.mrb[248].mxu0  ;;  %v12925_v45 = vld [vmem:[#allocation18_spill] sm:$0xff] }
 0x8e7   : > { %v6837_v63 = vadd.f32 %v8741_v29, %v12910_v24  ;;  %v6828_v0 = vpop.f32.mrb[249].mxu0 }
 0x8e8   : > { %v6829_v49 = vadd.f32 %v6828_v0, %v12911_v10  ;;  %v8742_v44 = vpop.f32.mrb[250].mxu0  ;;  %v12926_v10 = vld [vmem:[#allocation45_spill] sm:$0xff] }
 0x8e9   : > { %v7178_v37 = vadd.f32 %v11897_v3, %v6837_v63  ;;  %v6840_v16 = vadd.f32 %v8742_v44, %v12912_v25  ;;  %v6831_v48 = vpop.f32.mrb[251].mxu0 }
 0x8ea   : > { %v7176_v50 = vadd.f32 %v11897_v3, %v6829_v49  ;;  %v6832_v2 = vadd.f32 %v6831_v48, %v12913_v31 }
 0x8eb   : > { %7307 = vst.msk [vmem:[%s11907_s29 + $0x1d0] sm:$0xff] %vm7248_vm3, %v7178_v37  ;;  %v7179_v40 = vadd.f32 %v11897_v3, %v6840_v16  ;;  %v12927_v37 = vld [vmem:[#allocation36_spill] sm:$0xff] }
 0x8ec   : > { %7305 = vst.msk [vmem:[%s11907_s29 + $0x1c0] sm:$0xff] %vm7248_vm3, %v7176_v50  ;;  %v7177_v21 = vadd.f32 %v11897_v3, %v6832_v2  ;;  %v12928_v50 = vld [vmem:[#allocation40_spill] sm:$0xff] }
 0x8ed   : > { %7308 = vst.msk [vmem:[%s11907_s29 + $0x1d8] sm:$0xff] %vm7248_vm3, %v7179_v40 }
 0x8ee   : > { %7306 = vst.msk [vmem:[%s11907_s29 + $0x1c8] sm:$0xff] %vm7248_vm3, %v7177_v21  ;;  %v8745_v1 = vpop.f32.mrb[252].mxu0  ;;  %v12929_v21 = vld [vmem:[#allocation30_spill] sm:$0xff] }
 0x8ef   : > { %v6853_v60 = vadd.f32 %v8745_v1, %v12914_v46  ;;  %v6844_v6 = vpop.f32.mrb[253].mxu0 }
 0x8f0   : > { %v6845_v56 = vadd.f32 %v6844_v6, %v12915_v18  ;;  %v8746_v15 = vpop.f32.mrb[254].mxu0  ;;  %v12930_v18 = vld [vmem:[#allocation53_spill] sm:$0xff] }
 0x8f1   : > { %v7182_v30 = vadd.f32 %v11897_v3, %v6853_v60  ;;  %v6856_v9 = vadd.f32 %v8746_v15, %v12916_v7  ;;  %v6847_v51 = vpop.f32.mrb[255].mxu0 }
 0x8f2   : > { %v7180_v59 = vadd.f32 %v11897_v3, %v6845_v56  ;;  %v6848_v35 = vadd.f32 %v6847_v51, %v12917_v13 }
 0x8f3   : > { %7311 = vst.msk [vmem:[%s11907_s29 + $0x1f0] sm:$0xff] %vm7248_vm3, %v7182_v30  ;;  %v7183_v36 = vadd.f32 %v11897_v3, %v6856_v9  ;;  %v12931_v30 = vld [vmem:[#allocation47_spill] sm:$0xff] }
 0x8f4   : > { %7309 = vst.msk [vmem:[%s11907_s29 + $0x1e0] sm:$0xff] %vm7248_vm3, %v7180_v59  ;;  %v7181_v47 = vadd.f32 %v11897_v3, %v6848_v35  ;;  %v12932_v59 = vld [vmem:[#allocation49_spill] sm:$0xff] }
 0x8f5   : > { %7312 = vst.msk [vmem:[%s11907_s29 + $0x1f8] sm:$0xff] %vm7248_vm3, %v7183_v36 }
 0x8f6   : > { %7310 = vst.msk [vmem:[%s11907_s29 + $0x1e8] sm:$0xff] %vm7248_vm3, %v7181_v47  ;;  %v8749_v34 = vpop.f32.mrb[0].mxu0  ;;  %v12933_v47 = vld [vmem:[#allocation42_spill] sm:$0xff] }
 0x8f7   : > { %v6869_v52 = vadd.f32 %v8749_v34, %v12918_v20  ;;  %v6860_v27 = vpop.f32.mrb[1].mxu0 }
 0x8f8   : > { %v6861_v62 = vadd.f32 %v6860_v27, %v12919_v53  ;;  %v8750_v26 = vpop.f32.mrb[2].mxu0  ;;  %v12934_v53 = vld [vmem:[#allocation61_spill] sm:$0xff] }
 0x8f9   : > { %v7186_v22 = vadd.f32 %v11897_v3, %v6869_v52  ;;  %v6872_v8 = vadd.f32 %v8750_v26, %v12920_v57  ;;  %v6863_v41 = vpop.f32.mrb[3].mxu0 }
 0x8fa   : > { %v7184_v58 = vadd.f32 %v11897_v3, %v6861_v62  ;;  %v6864_v12 = vadd.f32 %v6863_v41, %v12921_v38 }
 0x8fb   : > { %7315 = vst.msk [vmem:[%s11907_s29 + $0x210] sm:$0xff] %vm7248_vm3, %v7186_v22  ;;  %v7187_v39 = vadd.f32 %v11897_v3, %v6872_v8  ;;  %v12935_v22 = vld [vmem:[#allocation55_spill] sm:$0xff] }
 0x8fc   : > { %7313 = vst.msk [vmem:[%s11907_s29 + $0x200] sm:$0xff] %vm7248_vm3, %v7184_v58  ;;  %v7185_v55 = vadd.f32 %v11897_v3, %v6864_v12  ;;  %v12936_v58 = vld [vmem:[#allocation57_spill] sm:$0xff] }
 0x8fd   : > { %7316 = vst.msk [vmem:[%s11907_s29 + $0x218] sm:$0xff] %vm7248_vm3, %v7187_v39 }
 0x8fe   : > { %7314 = vst.msk [vmem:[%s11907_s29 + $0x208] sm:$0xff] %vm7248_vm3, %v7185_v55  ;;  %v8753_v32 = vpop.f32.mrb[4].mxu0  ;;  %v12937_v55 = vld [vmem:[#allocation51_spill] sm:$0xff] }
 0x8ff   : > { %v6885_v23 = vadd.f32 %v8753_v32, %v12922_v11  ;;  %v6876_v17 = vpop.f32.mrb[5].mxu0 }
 0x900   : > { %v6877_v19 = vadd.f32 %v6876_v17, %v12923_v14  ;;  %v8754_v5 = vpop.f32.mrb[6].mxu0  ;;  %v12938_v14 = vld [vmem:[#allocation69_spill] sm:$0xff] }
 0x901   : > { %v7190_v4 = vadd.f32 %v11897_v3, %v6885_v23  ;;  %v6888_v42 = vadd.f32 %v8754_v5, %v12924_v54  ;;  %v6879_v33 = vpop.f32.mrb[7].mxu0 }
 0x902   : > { %v7188_v61 = vadd.f32 %v11897_v3, %v6877_v19  ;;  %v6880_v29 = vadd.f32 %v6879_v33, %v12925_v45 }
 0x903   : > { %7319 = vst.msk [vmem:[%s11907_s29 + $0x230] sm:$0xff] %vm7248_vm3, %v7190_v4  ;;  %v7191_v24 = vadd.f32 %v11897_v3, %v6888_v42  ;;  %v12939_v4 = vld [vmem:[#allocation63_spill] sm:$0xff] }
 0x904   : > { %7317 = vst.msk [vmem:[%s11907_s29 + $0x220] sm:$0xff] %vm7248_vm3, %v7188_v61  ;;  %v7189_v63 = vadd.f32 %v11897_v3, %v6880_v29  ;;  %v12940_v61 = vld [vmem:[#allocation65_spill] sm:$0xff] }
 0x905   : > { %7320 = vst.msk [vmem:[%s11907_s29 + $0x238] sm:$0xff] %vm7248_vm3, %v7191_v24 }
 0x906   : > { %7318 = vst.msk [vmem:[%s11907_s29 + $0x228] sm:$0xff] %vm7248_vm3, %v7189_v63  ;;  %v8757_v0 = vpop.f32.mrb[8].mxu0  ;;  %v12941_v63 = vld [vmem:[#allocation59_spill] sm:$0xff] }
 0x907   : > { %v6901_v49 = vadd.f32 %v8757_v0, %v12926_v10  ;;  %v6892_v44 = vpop.f32.mrb[9].mxu0 }
 0x908   : > { %v6893_v25 = vadd.f32 %v6892_v44, %v12927_v37  ;;  %v8758_v16 = vpop.f32.mrb[10].mxu0  ;;  %v12942_v37 = vld [vmem:[#allocation75_spill] sm:$0xff] }
 0x909   : > { %v7194_v48 = vadd.f32 %v11897_v3, %v6901_v49  ;;  %v6904_v31 = vadd.f32 %v8758_v16, %v12928_v50  ;;  %v6895_v2 = vpop.f32.mrb[11].mxu0 }
 0x90a   : > { %v7192_v40 = vadd.f32 %v11897_v3, %v6893_v25  ;;  %v6896_v1 = vadd.f32 %v6895_v2, %v12929_v21 }
 0x90b   : > { %7323 = vst.msk [vmem:[%s11907_s29 + $0x250] sm:$0xff] %vm7248_vm3, %v7194_v48  ;;  %v7195_v46 = vadd.f32 %v11897_v3, %v6904_v31  ;;  %v12943_v48 = vld [vmem:[#allocation71_spill] sm:$0xff] }
 0x90c   : > { %7321 = vst.msk [vmem:[%s11907_s29 + $0x240] sm:$0xff] %vm7248_vm3, %v7192_v40  ;;  %v7193_v60 = vadd.f32 %v11897_v3, %v6896_v1  ;;  %v12944_v40 = vld [vmem:[#allocation73_spill] sm:$0xff] }
 0x90d   : > { %7324 = vst.msk [vmem:[%s11907_s29 + $0x258] sm:$0xff] %vm7248_vm3, %v7195_v46 }
 0x90e   : > { %7322 = vst.msk [vmem:[%s11907_s29 + $0x248] sm:$0xff] %vm7248_vm3, %v7193_v60  ;;  %v8761_v6 = vpop.f32.mrb[12].mxu0  ;;  %v12945_v60 = vld [vmem:[#allocation67_spill] sm:$0xff] }
 0x90f   : > { %v6917_v56 = vadd.f32 %v8761_v6, %v12930_v18  ;;  %v6908_v15 = vpop.f32.mrb[13].mxu0 }
 0x910   : > { %v6909_v7 = vadd.f32 %v6908_v15, %v12931_v30  ;;  %v8762_v9 = vpop.f32.mrb[14].mxu0  ;;  %v12946_v30 = vld [vmem:[#allocation79_spill] sm:$0xff] }
 0x911   : > { %v7198_v51 = vadd.f32 %v11897_v3, %v6917_v56  ;;  %v6920_v13 = vadd.f32 %v8762_v9, %v12932_v59  ;;  %v6911_v35 = vpop.f32.mrb[15].mxu0 }
 0x912   : > { %v7196_v36 = vadd.f32 %v11897_v3, %v6909_v7  ;;  %v6912_v34 = vadd.f32 %v6911_v35, %v12933_v47 }
 0x913   : > { %7327 = vst.msk [vmem:[%s11907_s29 + $0x270] sm:$0xff] %vm7248_vm3, %v7198_v51  ;;  %v7199_v20 = vadd.f32 %v11897_v3, %v6920_v13  ;;  %v12947_v51 = vld [vmem:[#allocation76_spill] sm:$0xff] }
 0x914   : > { %7325 = vst.msk [vmem:[%s11907_s29 + $0x260] sm:$0xff] %vm7248_vm3, %v7196_v36  ;;  %v7197_v52 = vadd.f32 %v11897_v3, %v6912_v34  ;;  %v12948_v36 = vld [vmem:[#allocation77_spill] sm:$0xff] }
 0x915   : > { %7328 = vst.msk [vmem:[%s11907_s29 + $0x278] sm:$0xff] %vm7248_vm3, %v7199_v20 }
 0x916   : > { %7326 = vst.msk [vmem:[%s11907_s29 + $0x268] sm:$0xff] %vm7248_vm3, %v7197_v52  ;;  %v8765_v27 = vpop.f32.mrb[16].mxu0  ;;  %v12949_v52 = vld [vmem:[#allocation74_spill] sm:$0xff] }
 0x917   : > { %v6933_v62 = vadd.f32 %v8765_v27, %v12934_v53  ;;  %v6924_v26 = vpop.f32.mrb[17].mxu0 }
 0x918   : > { %v6925_v57 = vadd.f32 %v6924_v26, %v12935_v22  ;;  %v8766_v8 = vpop.f32.mrb[18].mxu0  ;;  %v12950_v22 = vld [vmem:[#allocation83_spill] sm:$0xff] }
 0x919   : > { %v7202_v41 = vadd.f32 %v11897_v3, %v6933_v62  ;;  %v6936_v38 = vadd.f32 %v8766_v8, %v12936_v58  ;;  %v6927_v12 = vpop.f32.mrb[19].mxu0 }
 0x91a   : > { %v7200_v39 = vadd.f32 %v11897_v3, %v6925_v57  ;;  %v6928_v32 = vadd.f32 %v6927_v12, %v12937_v55 }
 0x91b   : > { %7331 = vst.msk [vmem:[%s11907_s29 + $0x290] sm:$0xff] %vm7248_vm3, %v7202_v41  ;;  %v7203_v11 = vadd.f32 %v11897_v3, %v6936_v38  ;;  %v12951_v41 = vld [vmem:[#allocation80_spill] sm:$0xff] }
 0x91c   : > { %7329 = vst.msk [vmem:[%s11907_s29 + $0x280] sm:$0xff] %vm7248_vm3, %v7200_v39  ;;  %v7201_v23 = vadd.f32 %v11897_v3, %v6928_v32  ;;  %v12952_v39 = vld [vmem:[#allocation81_spill] sm:$0xff] }
 0x91d   : > { %7332 = vst.msk [vmem:[%s11907_s29 + $0x298] sm:$0xff] %vm7248_vm3, %v7203_v11 }
 0x91e   : > { %7330 = vst.msk [vmem:[%s11907_s29 + $0x288] sm:$0xff] %vm7248_vm3, %v7201_v23  ;;  %v8769_v17 = vpop.f32.mrb[20].mxu0  ;;  %v12953_v23 = vld [vmem:[#allocation78_spill] sm:$0xff] }
 0x91f   : > { %v6949_v19 = vadd.f32 %v8769_v17, %v12938_v14  ;;  %v6940_v5 = vpop.f32.mrb[21].mxu0 }
 0x920   : > { %v6941_v54 = vadd.f32 %v6940_v5, %v12939_v4  ;;  %v8770_v42 = vpop.f32.mrb[22].mxu0  ;;  %v12954_v4 = vld [vmem:[#allocation87_spill] sm:$0xff] }
 0x921   : > { %v7206_v33 = vadd.f32 %v11897_v3, %v6949_v19  ;;  %v6952_v45 = vadd.f32 %v8770_v42, %v12940_v61  ;;  %v6943_v29 = vpop.f32.mrb[23].mxu0 }
 0x922   : > { %v7204_v24 = vadd.f32 %v11897_v3, %v6941_v54  ;;  %v6944_v0 = vadd.f32 %v6943_v29, %v12941_v63 }
 0x923   : > { %7335 = vst.msk [vmem:[%s11907_s29 + $0x2b0] sm:$0xff] %vm7248_vm3, %v7206_v33  ;;  %v7207_v10 = vadd.f32 %v11897_v3, %v6952_v45  ;;  %v12955_v33 = vld [vmem:[#allocation84_spill] sm:$0xff] }
 0x924   : > { %7333 = vst.msk [vmem:[%s11907_s29 + $0x2a0] sm:$0xff] %vm7248_vm3, %v7204_v24  ;;  %v7205_v49 = vadd.f32 %v11897_v3, %v6944_v0  ;;  %v12956_v24 = vld [vmem:[#allocation85_spill] sm:$0xff] }
 0x925   : > { %7336 = vst.msk [vmem:[%s11907_s29 + $0x2b8] sm:$0xff] %vm7248_vm3, %v7207_v10 }
 0x926   : > { %7334 = vst.msk [vmem:[%s11907_s29 + $0x2a8] sm:$0xff] %vm7248_vm3, %v7205_v49  ;;  %v8773_v44 = vpop.f32.mrb[24].mxu0  ;;  %v12957_v49 = vld [vmem:[#allocation82_spill] sm:$0xff] }
 0x927   : > { %v6965_v25 = vadd.f32 %v8773_v44, %v12942_v37  ;;  %v6956_v16 = vpop.f32.mrb[25].mxu0 }
 0x928   : > { %v6957_v50 = vadd.f32 %v6956_v16, %v12943_v48  ;;  %v8774_v31 = vpop.f32.mrb[26].mxu0  ;;  %v12958_v48 = vld [vmem:[#allocation91_spill] sm:$0xff] }
 0x929   : > { %v7210_v2 = vadd.f32 %v11897_v3, %v6965_v25  ;;  %v6968_v21 = vadd.f32 %v8774_v31, %v12944_v40  ;;  %v6959_v1 = vpop.f32.mrb[27].mxu0 }
 0x92a   : > { %v7208_v46 = vadd.f32 %v11897_v3, %v6957_v50  ;;  %v6960_v6 = vadd.f32 %v6959_v1, %v12945_v60 }
 0x92b   : > { %7339 = vst.msk [vmem:[%s11907_s29 + $0x2d0] sm:$0xff] %vm7248_vm3, %v7210_v2  ;;  %v7211_v18 = vadd.f32 %v11897_v3, %v6968_v21  ;;  %v12959_v2 = vld [vmem:[#allocation88_spill] sm:$0xff] }
 0x92c   : > { %7337 = vst.msk [vmem:[%s11907_s29 + $0x2c0] sm:$0xff] %vm7248_vm3, %v7208_v46  ;;  %v7209_v56 = vadd.f32 %v11897_v3, %v6960_v6  ;;  %v12960_v46 = vld [vmem:[#allocation89_spill] sm:$0xff] }
 0x92d   : > { %7340 = vst.msk [vmem:[%s11907_s29 + $0x2d8] sm:$0xff] %vm7248_vm3, %v7211_v18 }
 0x92e   : > { %7338 = vst.msk [vmem:[%s11907_s29 + $0x2c8] sm:$0xff] %vm7248_vm3, %v7209_v56  ;;  %v8777_v15 = vpop.f32.mrb[28].mxu0  ;;  %v12961_v56 = vld [vmem:[#allocation86_spill] sm:$0xff] }
 0x92f   : > { %v6981_v7 = vadd.f32 %v8777_v15, %v12946_v30  ;;  %v6972_v9 = vpop.f32.mrb[29].mxu0 }
 0x930   : > { %v6973_v59 = vadd.f32 %v6972_v9, %v12947_v51  ;;  %v8778_v13 = vpop.f32.mrb[30].mxu0  ;;  %v12962_v51 = vld [vmem:[#allocation95_spill] sm:$0xff] }
 0x931   : > { %v7214_v35 = vadd.f32 %v11897_v3, %v6981_v7  ;;  %v6984_v47 = vadd.f32 %v8778_v13, %v12948_v36  ;;  %v6975_v34 = vpop.f32.mrb[31].mxu0 }
 0x932   : > { %v7212_v20 = vadd.f32 %v11897_v3, %v6973_v59  ;;  %v6976_v27 = vadd.f32 %v6975_v34, %v12949_v52 }
 0x933   : > { %7343 = vst.msk [vmem:[%s11907_s29 + $0x2f0] sm:$0xff] %vm7248_vm3, %v7214_v35  ;;  %v7215_v53 = vadd.f32 %v11897_v3, %v6984_v47  ;;  %v12963_v35 = vld [vmem:[#allocation92_spill] sm:$0xff] }
 0x934   : > { %7341 = vst.msk [vmem:[%s11907_s29 + $0x2e0] sm:$0xff] %vm7248_vm3, %v7212_v20  ;;  %v7213_v62 = vadd.f32 %v11897_v3, %v6976_v27  ;;  %v12964_v20 = vld [vmem:[#allocation93_spill] sm:$0xff] }
 0x935   : > { %7344 = vst.msk [vmem:[%s11907_s29 + $0x2f8] sm:$0xff] %vm7248_vm3, %v7215_v53 }
 0x936   : > { %7342 = vst.msk [vmem:[%s11907_s29 + $0x2e8] sm:$0xff] %vm7248_vm3, %v7213_v62  ;;  %v8781_v26 = vpop.f32.mrb[32].mxu0  ;;  %v12965_v62 = vld [vmem:[#allocation90_spill] sm:$0xff] }
 0x937   : > { %v6997_v57 = vadd.f32 %v8781_v26, %v12950_v22  ;;  %v6988_v8 = vpop.f32.mrb[33].mxu0 }
 0x938   : > { %v6989_v58 = vadd.f32 %v6988_v8, %v12951_v41  ;;  %v8782_v38 = vpop.f32.mrb[34].mxu0  ;;  %v12966_v41 = vld [vmem:[#allocation99_spill] sm:$0xff] }
 0x939   : > { %v7218_v12 = vadd.f32 %v11897_v3, %v6997_v57  ;;  %v7000_v55 = vadd.f32 %v8782_v38, %v12952_v39  ;;  %v6991_v32 = vpop.f32.mrb[35].mxu0 }
 0x93a   : > { %v7216_v11 = vadd.f32 %v11897_v3, %v6989_v58  ;;  %v6992_v17 = vadd.f32 %v6991_v32, %v12953_v23 }
 0x93b   : > { %7347 = vst.msk [vmem:[%s11907_s29 + $0x310] sm:$0xff] %vm7248_vm3, %v7218_v12  ;;  %v7219_v14 = vadd.f32 %v11897_v3, %v7000_v55  ;;  %v12967_v12 = vld [vmem:[#allocation96_spill] sm:$0xff] }
 0x93c   : > { %7345 = vst.msk [vmem:[%s11907_s29 + $0x300] sm:$0xff] %vm7248_vm3, %v7216_v11  ;;  %v7217_v19 = vadd.f32 %v11897_v3, %v6992_v17  ;;  %v12968_v11 = vld [vmem:[#allocation97_spill] sm:$0xff] }
 0x93d   : > { %7348 = vst.msk [vmem:[%s11907_s29 + $0x318] sm:$0xff] %vm7248_vm3, %v7219_v14 }
 0x93e   : > { %7346 = vst.msk [vmem:[%s11907_s29 + $0x308] sm:$0xff] %vm7248_vm3, %v7217_v19  ;;  %v8785_v5 = vpop.f32.mrb[36].mxu0  ;;  %v12969_v19 = vld [vmem:[#allocation94_spill] sm:$0xff] }
 0x93f   : > { %v7013_v54 = vadd.f32 %v8785_v5, %v12954_v4  ;;  %v7004_v42 = vpop.f32.mrb[37].mxu0 }
 0x940   : > { %v7005_v61 = vadd.f32 %v7004_v42, %v12955_v33  ;;  %v8786_v45 = vpop.f32.mrb[38].mxu0  ;;  %v12970_v33 = vld [vmem:[#allocation103_spill] sm:$0xff] }
 0x941   : > { %v7222_v29 = vadd.f32 %v11897_v3, %v7013_v54  ;;  %v7016_v63 = vadd.f32 %v8786_v45, %v12956_v24  ;;  %v7007_v0 = vpop.f32.mrb[39].mxu0 }
 0x942   : > { %v7220_v10 = vadd.f32 %v11897_v3, %v7005_v61  ;;  %v7008_v44 = vadd.f32 %v7007_v0, %v12957_v49 }
 0x943   : > { %7351 = vst.msk [vmem:[%s11907_s29 + $0x330] sm:$0xff] %vm7248_vm3, %v7222_v29  ;;  %v7223_v37 = vadd.f32 %v11897_v3, %v7016_v63  ;;  %v12971_v29 = vld [vmem:[#allocation100_spill] sm:$0xff] }
 0x944   : > { %7349 = vst.msk [vmem:[%s11907_s29 + $0x320] sm:$0xff] %vm7248_vm3, %v7220_v10  ;;  %v7221_v25 = vadd.f32 %v11897_v3, %v7008_v44  ;;  %v12972_v10 = vld [vmem:[#allocation101_spill] sm:$0xff] }
 0x945   : > { %7352 = vst.msk [vmem:[%s11907_s29 + $0x338] sm:$0xff] %vm7248_vm3, %v7223_v37 }
 0x946   : > { %7350 = vst.msk [vmem:[%s11907_s29 + $0x328] sm:$0xff] %vm7248_vm3, %v7221_v25  ;;  %v8789_v16 = vpop.f32.mrb[40].mxu0  ;;  %v12973_v25 = vld [vmem:[#allocation98_spill] sm:$0xff] }
 0x947   : > { %v7029_v50 = vadd.f32 %v8789_v16, %v12958_v48  ;;  %v7020_v31 = vpop.f32.mrb[41].mxu0 }
 0x948   : > { %v7021_v40 = vadd.f32 %v7020_v31, %v12959_v2  ;;  %v8790_v21 = vpop.f32.mrb[42].mxu0  ;;  %v12974_v2 = vld [vmem:[#allocation107_spill] sm:$0xff] }
 0x949   : > { %v7226_v1 = vadd.f32 %v11897_v3, %v7029_v50  ;;  %v7032_v60 = vadd.f32 %v8790_v21, %v12960_v46  ;;  %v7023_v6 = vpop.f32.mrb[43].mxu0 }
 0x94a   : > { %v7224_v18 = vadd.f32 %v11897_v3, %v7021_v40  ;;  %v7024_v15 = vadd.f32 %v7023_v6, %v12961_v56 }
 0x94b   : > { %7355 = vst.msk [vmem:[%s11907_s29 + $0x350] sm:$0xff] %vm7248_vm3, %v7226_v1  ;;  %v7227_v30 = vadd.f32 %v11897_v3, %v7032_v60  ;;  %v12975_v1 = vld [vmem:[#allocation104_spill] sm:$0xff] }
 0x94c   : > { %7353 = vst.msk [vmem:[%s11907_s29 + $0x340] sm:$0xff] %vm7248_vm3, %v7224_v18  ;;  %v7225_v7 = vadd.f32 %v11897_v3, %v7024_v15  ;;  %v12976_v18 = vld [vmem:[#allocation105_spill] sm:$0xff] }
 0x94d   : > { %7356 = vst.msk [vmem:[%s11907_s29 + $0x358] sm:$0xff] %vm7248_vm3, %v7227_v30 }
 0x94e   : > { %7354 = vst.msk [vmem:[%s11907_s29 + $0x348] sm:$0xff] %vm7248_vm3, %v7225_v7  ;;  %v8793_v9 = vpop.f32.mrb[44].mxu0  ;;  %v12977_v7 = vld [vmem:[#allocation102_spill] sm:$0xff] }
 0x94f   : > { %v7045_v59 = vadd.f32 %v8793_v9, %v12962_v51  ;;  %v7036_v13 = vpop.f32.mrb[45].mxu0 }
 0x950   : > { %v7037_v36 = vadd.f32 %v7036_v13, %v12963_v35  ;;  %v8794_v47 = vpop.f32.mrb[46].mxu0 }
 0x951   : > { %v7230_v34 = vadd.f32 %v11897_v3, %v7045_v59  ;;  %v7048_v52 = vadd.f32 %v8794_v47, %v12964_v20  ;;  %v7039_v27 = vpop.f32.mrb[47].mxu0  ;;  %v12978_v47 = vld [vmem:[#allocation108_spill] sm:$0xff] }
 0x952   : > { %v7228_v53 = vadd.f32 %v11897_v3, %v7037_v36  ;;  %v7040_v26 = vadd.f32 %v7039_v27, %v12965_v62 }
 0x953   : > { %7359 = vst.msk [vmem:[%s11907_s29 + $0x370] sm:$0xff] %vm7248_vm3, %v7230_v34  ;;  %v7231_v22 = vadd.f32 %v11897_v3, %v7048_v52  ;;  %v9010_v52 = vld [vmem:[#allocation6 + $0x6] ss:$0 sm:$0xff] }
 0x954   : > { %7357 = vst.msk [vmem:[%s11907_s29 + $0x360] sm:$0xff] %vm7248_vm3, %v7228_v53  ;;  %v7229_v57 = vadd.f32 %v11897_v3, %v7040_v26  ;;  %v12979_v26 = vld [vmem:[#allocation106_spill] sm:$0xff] }
 0x955   : > { %7360 = vst.msk [vmem:[%s11907_s29 + $0x378] sm:$0xff] %vm7248_vm3, %v7231_v22 }
 0x956   : > { %7358 = vst.msk [vmem:[%s11907_s29 + $0x368] sm:$0xff] %vm7248_vm3, %v7229_v57  ;;  %v8797_v8 = vpop.f32.mrb[48].mxu0 }
 0x957   : > { %v7061_v58 = vadd.f32 %v8797_v8, %v12966_v41  ;;  %v7052_v38 = vpop.f32.mrb[49].mxu0 }
 0x958   : > { %v7053_v39 = vadd.f32 %v7052_v38, %v12967_v12  ;;  %v8798_v55 = vpop.f32.mrb[50].mxu0 }
 0x959   : > { %v7234_v32 = vadd.f32 %v11897_v3, %v7061_v58  ;;  %v7064_v23 = vadd.f32 %v8798_v55, %v12968_v11  ;;  %v7055_v17 = vpop.f32.mrb[51].mxu0 }
 0x95a   : > { %v7232_v14 = vadd.f32 %v11897_v3, %v7053_v39  ;;  %v7056_v5 = vadd.f32 %v7055_v17, %v12969_v19 }
 0x95b   : > { %7363 = vst.msk [vmem:[%s11907_s29 + $0x390] sm:$0xff] %vm7248_vm3, %v7234_v32  ;;  %v7235_v4 = vadd.f32 %v11897_v3, %v7064_v23 }
 0x95c   : > { %7361 = vst.msk [vmem:[%s11907_s29 + $0x380] sm:$0xff] %vm7248_vm3, %v7232_v14  ;;  %v7233_v54 = vadd.f32 %v11897_v3, %v7056_v5 }
 0x95d   : > { %7364 = vst.msk [vmem:[%s11907_s29 + $0x398] sm:$0xff] %vm7248_vm3, %v7235_v4 }
 0x95e   : > { %7362 = vst.msk [vmem:[%s11907_s29 + $0x388] sm:$0xff] %vm7248_vm3, %v7233_v54  ;;  %v8801_v42 = vpop.f32.mrb[52].mxu0 }
 0x95f   : > { %v7077_v61 = vadd.f32 %v8801_v42, %v12970_v33  ;;  %v7068_v45 = vpop.f32.mrb[53].mxu0 }
 0x960   : > { %v7069_v24 = vadd.f32 %v7068_v45, %v12971_v29  ;;  %v8802_v63 = vpop.f32.mrb[54].mxu0 }
 0x961   : > { %v7238_v0 = vadd.f32 %v11897_v3, %v7077_v61  ;;  %v7080_v49 = vadd.f32 %v8802_v63, %v12972_v10  ;;  %v7071_v44 = vpop.f32.mrb[55].mxu0 }
 0x962   : > { %v7236_v37 = vadd.f32 %v11897_v3, %v7069_v24  ;;  %v7072_v16 = vadd.f32 %v7071_v44, %v12973_v25 }
 0x963   : > { %7367 = vst.msk [vmem:[%s11907_s29 + $0x3b0] sm:$0xff] %vm7248_vm3, %v7238_v0  ;;  %v7239_v48 = vadd.f32 %v11897_v3, %v7080_v49 }
 0x964   : > { %7365 = vst.msk [vmem:[%s11907_s29 + $0x3a0] sm:$0xff] %vm7248_vm3, %v7236_v37  ;;  %v7237_v50 = vadd.f32 %v11897_v3, %v7072_v16 }
 0x965   : > { %7368 = vst.msk [vmem:[%s11907_s29 + $0x3b8] sm:$0xff] %vm7248_vm3, %v7239_v48 }
 0x966   : > { %7366 = vst.msk [vmem:[%s11907_s29 + $0x3a8] sm:$0xff] %vm7248_vm3, %v7237_v50  ;;  %v8805_v31 = vpop.f32.mrb[56].mxu0 }
 0x967   : > { %v7093_v40 = vadd.f32 %v8805_v31, %v12974_v2  ;;  %v7084_v21 = vpop.f32.mrb[57].mxu0 }
 0x968   : > { %v7085_v46 = vadd.f32 %v7084_v21, %v12975_v1  ;;  %v8806_v60 = vpop.f32.mrb[58].mxu0 }
 0x969   : > { %v7242_v6 = vadd.f32 %v11897_v3, %v7093_v40  ;;  %v7096_v56 = vadd.f32 %v8806_v60, %v12976_v18  ;;  %v7087_v15 = vpop.f32.mrb[59].mxu0 }
 0x96a   : > { %v7240_v30 = vadd.f32 %v11897_v3, %v7085_v46  ;;  %v7088_v9 = vadd.f32 %v7087_v15, %v12977_v7 }
 0x96b   : > { %7371 = vst.msk [vmem:[%s11907_s29 + $0x3d0] sm:$0xff] %vm7248_vm3, %v7242_v6  ;;  %v7243_v51 = vadd.f32 %v11897_v3, %v7096_v56 }
 0x96c   : > { %7369 = vst.msk [vmem:[%s11907_s29 + $0x3c0] sm:$0xff] %vm7248_vm3, %v7240_v30  ;;  %v7241_v59 = vadd.f32 %v11897_v3, %v7088_v9 }
 0x96d   : > { %7372 = vst.msk [vmem:[%s11907_s29 + $0x3d8] sm:$0xff] %vm7248_vm3, %v7243_v51 }
 0x96e   : > { %7370 = vst.msk [vmem:[%s11907_s29 + $0x3c8] sm:$0xff] %vm7248_vm3, %v7241_v59  ;;  %v8809_v13 = vpop.f32.mrb[60].mxu0 }
 0x96f   : > { %v7109_v35 = vadd.f32 %v8809_v13, %v11612_v28  ;;  %v7100_v36 = vpop.f32.mrb[61].mxu0 }
 0x970   : > { %v7101_v34 = vadd.f32 %v7100_v36, %v12978_v47  ;;  %v8810_v20 = vpop.f32.mrb[62].mxu0 }
 0x971   : > { %v7246_v27 = vadd.f32 %v9010_v52, %v7109_v35  ;;  %v7112_v53 = vadd.f32 %v8810_v20, %v11616_v43  ;;  %v7103_v62 = vpop.f32.mrb[63].mxu0 }
 0x972   : > { %v7244_v3 = vadd.f32 %v9010_v52, %v7101_v34  ;;  %v7104_v22 = vadd.f32 %v7103_v62, %v12979_v26 }
 0x973   : > { %7375 = vst.msk [vmem:[%s11907_s29 + $0x3f0] sm:$0xff] %vm7248_vm3, %v7246_v27  ;;  %v7247_v57 = vadd.f32 %v9010_v52, %v7112_v53 }
 0x974   : > { %7373 = vst.msk [vmem:[%s11907_s29 + $0x3e0] sm:$0xff] %vm7248_vm3, %v7244_v3  ;;  %v7245_v8 = vadd.f32 %v9010_v52, %v7104_v22 }
 0x975   : > { %7376 = vst.msk [vmem:[%s11907_s29 + $0x3f8] sm:$0xff] %vm7248_vm3, %v7247_v57 }
 0x976   : > { %7374 = vst.msk [vmem:[%s11907_s29 + $0x3e8] sm:$0xff] %vm7248_vm3, %v7245_v8 }
 0x977 PF: > { %s19_s24 = sadd.s32 1, %s9109_s24  }
 0x978   : > { %p16_p3 = scmp.ge.s32.totalorder %s19_s24, 5  }
 0x97a   :  { %18 = sbr.rel (!%p16_p3) target bundleno = 2 (0x2), region = 93 }
 0x981   :  { %7399 = vsyncpa [#allocation3], 1 }
 0x982   :  { %7401 = vsyncpa [#allocation3 + $0x1], 1 }
 0x983   :  { %7402 = vsyncpa [#allocation5], 1 }

</bundles_post_ra>
